<compile_context>
chip_gen: v6e
topology: v6e:2x2x1
jax: 0.10.0
libtpu: 0.0.40
codegen_flags: <defaults>
</compile_context>

<pallas_src>
import functools

import jax
import jax.numpy as jnp
from jax.experimental import pallas as pl
from jax.experimental.pallas import tpu as pltpu

# ---- hyperparameters (model dims match the PyTorch module) ----
N_EMBD = 192
N_HEADS = 6
HEAD_SIZE = N_EMBD // N_HEADS      # 32
N_LAYERS = 6
BLOCK_SIZE = 64
FF_HIDDEN = 4 * N_EMBD             # 768
VOCAB_SIZE = 512                   # TODO(synk): tiktoken gpt-4o vocab not loadable here; synthetic stand-in
LN_EPS = 1e-5                      # nn.LayerNorm default
WEIGHT_DTYPE = jnp.bfloat16        # set to jnp.float32 for bit-near parity with the PyTorch f32 reference


# ----------------------------------------------------------------------------
# In-kernel helpers
# ----------------------------------------------------------------------------
def _layernorm_rows(x, gamma, beta, eps=LN_EPS):
    """Row-wise LayerNorm (biased variance, matching PyTorch). x: (N, C) f32."""
    mu = jnp.mean(x, axis=-1, keepdims=True)
    var = jnp.mean((x - mu) ** 2, axis=-1, keepdims=True)
    return (x - mu) * jax.lax.rsqrt(var + eps) * gamma + beta


# ----------------------------------------------------------------------------
# Fully fused kernel: all layers + final LN + lm_head in one pallas_call.
# grid = (NB, L); NB = batch tiles ("parallel"), L = layer axis ("arbitrary").
# ----------------------------------------------------------------------------
def _stack_kernel(x_ref, wqkv_ref, wproj_ref, wfc1_ref, wfc2_ref,
                  vecs_ref, bfc1_ref, lnf_ref, wlm_ref, blm_ref,
                  o_ref, resid_ref, *, bb, seq):
    l = pl.program_id(1)
    n_layers = pl.num_programs(1)
    C = x_ref.shape[2]
    scale = float(C) ** (-0.5)          # reference scales by n_embd**-0.5, not head_size**-0.5
    cdt = wqkv_ref.dtype                # matmul compute dtype (bf16 by default)

    # ---- residual stream stays in VMEM across the whole layer stack ----
    @pl.when(l == 0)
    def _init():
        resid_ref[...] = x_ref[0].astype(jnp.float32)

    x = resid_ref[...]                                        # (R, C) f32, R = bb*seq

    # packed per-layer vectors: [ln1_g, ln1_b, b_proj, ln2_g, ln2_b, b_fc2, pad, pad]
    vecs = vecs_ref[0]                                        # (8, C) f32
    ln1_g, ln1_b = vecs[0:1], vecs[1:2]
    b_proj = vecs[2:3]
    ln2_g, ln2_b = vecs[3:4], vecs[4:5]
    b_fc2 = vecs[5:6]

    # additive causal mask built in-kernel (cheap VPU iota/compare, no DMA)
    rows = jax.lax.broadcasted_iota(jnp.int32, (seq, seq), 0)
    cols = jax.lax.broadcasted_iota(jnp.int32, (seq, seq), 1)
    mask = jnp.where(cols <= rows, 0.0, -jnp.inf).astype(jnp.float32)   # (T, T)

    # ---- ln1 + multi-head causal self-attention (q == k == v per head) ----
    ln1 = _layernorm_rows(x, ln1_g, ln1_b)
    ln1_c = ln1.astype(cdt)

    n_heads = wqkv_ref.shape[1]
    attn_rows = [jnp.zeros((seq, C), jnp.float32) for _ in range(bb)]
    for h in range(n_heads):
        # leading-axis head slices of the weight refs are free (no lane relayout)
        qh = jnp.dot(ln1_c, wqkv_ref[0, h], preferred_element_type=jnp.float32)   # (R, hs)
        wp_h = wproj_ref[0, h]                                                    # (hs, C)
        for b in range(bb):
            qb = qh[b * seq:(b + 1) * seq].astype(cdt)        # (T, hs); q == k == v
            s = jax.lax.dot_general(qb, qb, (((1,), (1,)), ((), ())),
                                    preferred_element_type=jnp.float32) * scale   # (T, T)
            s = s + mask
            m = jnp.max(s, axis=-1, keepdims=True)
            e = jnp.exp(s - m)
            # EUP approx reciprocal: ~1e-4 rel error, consistent with bf16 tolerance
            p = e * pl.reciprocal(jnp.sum(e, axis=-1, keepdims=True), approx=True)
            o = jnp.dot(p.astype(cdt), qb, preferred_element_type=jnp.float32)    # (T, hs)
            # accumulated projection == concat(heads) @ W_proj, but lane-dense (192 wide)
            attn_rows[b] = attn_rows[b] + jnp.dot(o.astype(cdt), wp_h,
                                                  preferred_element_type=jnp.float32)
    sattn = attn_rows[0] if bb == 1 else jnp.concatenate(attn_rows, axis=0)       # (R, C)

    # ---- attention projection bias + residual ----
    x = x + sattn + b_proj

    # ---- ln2 + feed-forward (relu) + residual ----
    ln2 = _layernorm_rows(x, ln2_g, ln2_b)
    h1 = jnp.dot(ln2.astype(cdt), wfc1_ref[0],
                 preferred_element_type=jnp.float32) + bfc1_ref[0]
    h1 = jnp.maximum(h1, 0.0)
    x = x + jnp.dot(h1.astype(cdt), wfc2_ref[0],
                    preferred_element_type=jnp.float32) + b_fc2

    resid_ref[...] = x

    # ---- final LayerNorm + lm_head fused as the last stage ----
    @pl.when(l == n_layers - 1)
    def _final():
        lnf = lnf_ref[...]                                    # (2, C): gamma, beta
        xf = _layernorm_rows(x, lnf[0:1], lnf[1:2])
        logits = jnp.dot(xf.astype(wlm_ref.dtype), wlm_ref[...],
                         preferred_element_type=jnp.float32) + blm_ref[...]
        o_ref[0] = logits.astype(o_ref.dtype)


def fused_stack_forward(x, params, *, bb):
    """x: (NB, bb*T, C) f32 -> logits (NB, bb*T, V) f32. One pallas_call."""
    NB, R, C = x.shape
    seq = R // bb
    L, H, _, hs = params["w_qkv"].shape
    FF = params["w_fc1"].shape[2]
    V = params["w_lm"].shape[1]

    kernel = functools.partial(_stack_kernel, bb=bb, seq=seq)

    def fixed(shape):
        return pl.BlockSpec(shape, lambda nb, l: (0,) * len(shape))

    def per_layer(shape):
        return pl.BlockSpec((1,) + shape, lambda nb, l: (l,) + (0,) * len(shape))

    return pl.pallas_call(
        kernel,
        out_shape=jax.ShapeDtypeStruct((NB, R, V), jnp.float32),
        grid=(NB, L),
        in_specs=[
            pl.BlockSpec((1, R, C), lambda nb, l: (nb, 0, 0)),   # x (constant across l -> no re-DMA)
            per_layer((H, C, hs)),                               # w_qkv  (shared q=k=v per head)
            per_layer((H, hs, C)),                               # w_proj (head-split)
            per_layer((C, FF)),                                  # w_fc1
            per_layer((FF, C)),                                  # w_fc2
            per_layer((8, C)),                                   # packed ln/bias slab
            per_layer((1, FF)),                                  # b_fc1
            fixed((2, C)),                                       # final LN gamma/beta
            fixed((C, V)),                                       # lm_head W (DMA'd once)
            fixed((1, V)),                                       # lm_head b
        ],
        out_specs=pl.BlockSpec((1, R, V), lambda nb, l: (nb, 0, 0)),
        scratch_shapes=[pltpu.VMEM((R, C), jnp.float32)],        # resident residual stream
        compiler_params=pltpu.CompilerParams(
            dimension_semantics=("parallel", "arbitrary")),
    )(x, params["w_qkv"], params["w_proj"], params["w_fc1"], params["w_fc2"],
      params["vecs"], params["b_fc1"], params["lnf"], params["w_lm"], params["b_lm"])


# ----------------------------------------------------------------------------
# Parameters (deterministic synthetic init; per-layer weights stacked on axis 0)
# ----------------------------------------------------------------------------
def init_params(key):
    def normal(k, shape, scale=0.02, dtype=jnp.float32):
        return (scale * jax.random.normal(k, shape, dtype=jnp.float32)).astype(dtype)

    L, C, H, hs = N_LAYERS, N_EMBD, N_HEADS, HEAD_SIZE
    FF, V = FF_HIDDEN, VOCAB_SIZE
    keys = jax.random.split(key, 7)

    # packed per-layer vector slab: rows [ln1_g, ln1_b, b_proj, ln2_g, ln2_b, b_fc2, pad, pad]
    vecs = jnp.zeros((L, 8, C), jnp.float32)
    vecs = vecs.at[:, 0, :].set(1.0)    # ln1 gamma
    vecs = vecs.at[:, 3, :].set(1.0)    # ln2 gamma

    return {
        "tok_embd": normal(keys[0], (V, C)),
        "pos_embd": normal(keys[1], (BLOCK_SIZE, C)),
        # head h's single shared key=query=value weight is w_qkv[l, h]  (C, hs)
        "w_qkv": normal(keys[2], (L, H, C, hs), dtype=WEIGHT_DTYPE),
        # rows h*hs:(h+1)*hs of the proj matrix live at w_proj[l, h]  (hs, C)
        "w_proj": normal(keys[3], (L, H, hs, C), dtype=WEIGHT_DTYPE),
        "w_fc1": normal(keys[4], (L, C, FF), dtype=WEIGHT_DTYPE),
        "w_fc2": normal(keys[5], (L, FF, C), dtype=WEIGHT_DTYPE),
        "vecs": vecs,
        "b_fc1": jnp.zeros((L, 1, FF), jnp.float32),
        "lnf": jnp.concatenate([jnp.ones((1, C), jnp.float32),
                                jnp.zeros((1, C), jnp.float32)], axis=0),
        "w_lm": normal(keys[6], (C, V), dtype=WEIGHT_DTYPE),
        "b_lm": jnp.zeros((1, V), jnp.float32),
    }


# ----------------------------------------------------------------------------
# Forward pass (glue: embedding gather + add; compute: one fused Pallas kernel)
# ----------------------------------------------------------------------------
def bigram_forward(params, idx, targets=None):
    B, T = idx.shape
    C = N_EMBD

    tok = params["tok_embd"][idx]               # (B, T, C) embedding gather (plain-JAX glue)
    pos = params["pos_embd"][:T]                # (T, C)
    x = (tok + pos).astype(jnp.float32)         # (B, T, C)

    # fold as many batch elements as possible into the 128-row matmul M dimension
    bb = max(1, min(B, 128 // max(T, 1)))
    while B % bb != 0:
        bb -= 1
    nb = B // bb
    x = x.reshape(nb, bb * T, C)

    logits = fused_stack_forward(x, params, bb=bb)           # (nb, bb*T, V)
    logits = logits.reshape(B, T, VOCAB_SIZE)

    if targets is None:
        loss = None
    else:
        # cross-entropy (plain-JAX glue; reference path only used when targets given)
        logits2d = logits.reshape(B * T, VOCAB_SIZE)
        lse = jax.nn.logsumexp(logits2d, axis=-1)
        tgt = jnp.take_along_axis(logits2d, targets.reshape(-1, 1), axis=-1)[:, 0]
        loss = jnp.mean(lse - tgt)
    return logits, loss


# ----------------------------------------------------------------------------
if __name__ == "__main__":
    key = jax.random.PRNGKey(0)
    pkey, ikey = jax.random.split(key)
    params = init_params(pkey)

    B, T = 2, BLOCK_SIZE
    idx = jax.random.randint(ikey, (B, T), 0, VOCAB_SIZE, dtype=jnp.int32)

    forward = jax.jit(lambda p, i: bigram_forward(p, i))
    logits, loss = forward(params, idx)
    jax.block_until_ready(logits)

    assert logits.shape == (B, T, VOCAB_SIZE), logits.shape
    assert logits.dtype == jnp.float32
    assert loss is None
    assert bool(jnp.isfinite(logits).all())
    print("KERNEL_OK")
</pallas_src>

<mosaic_0001>
module attributes {stable_mosaic.version = 11 : i64} {
  func.func @_stack_kernel(%arg0: i32, %arg1: i32, %arg2: memref<1x128x192xf32, #tpu.memory_space<vmem>>, %arg3: memref<1x6x192x32xbf16, #tpu.memory_space<vmem>>, %arg4: memref<1x6x32x192xbf16, #tpu.memory_space<vmem>>, %arg5: memref<1x192x768xbf16, #tpu.memory_space<vmem>>, %arg6: memref<1x768x192xbf16, #tpu.memory_space<vmem>>, %arg7: memref<1x8x192xf32, #tpu.memory_space<vmem>>, %arg8: memref<1x1x768xf32, #tpu.memory_space<vmem>>, %arg9: memref<2x192xf32, #tpu.memory_space<vmem>>, %arg10: memref<192x512xbf16, #tpu.memory_space<vmem>>, %arg11: memref<1x512xf32, #tpu.memory_space<vmem>>, %arg12: memref<1x128x512xf32, #tpu.memory_space<vmem>>, %arg13: memref<128x192xf32, #tpu.memory_space<vmem>>) attributes {dimension_semantics = [#tpu.dimension_semantics<parallel>, #tpu.dimension_semantics<arbitrary>], iteration_bounds = array<i64: 1, 6>, scalar_prefetch = 0 : i64, scratch_operands = 1 : i64, tpu.core_type = #tpu.core_type<tc>, window_params = [{transform_indices = @transform_0, window_bounds = array<i64: 1, 128, 192>}, {transform_indices = @transform_1, window_bounds = array<i64: 1, 6, 192, 32>}, {transform_indices = @transform_2, window_bounds = array<i64: 1, 6, 32, 192>}, {transform_indices = @transform_3, window_bounds = array<i64: 1, 192, 768>}, {transform_indices = @transform_4, window_bounds = array<i64: 1, 768, 192>}, {transform_indices = @transform_5, window_bounds = array<i64: 1, 8, 192>}, {transform_indices = @transform_6, window_bounds = array<i64: 1, 1, 768>}, {pipeline_mode = #tpu.pipeline_mode<synchronous>, transform_indices = @transform_7, window_bounds = array<i64: 2, 192>}, {pipeline_mode = #tpu.pipeline_mode<synchronous>, transform_indices = @transform_8, window_bounds = array<i64: 192, 512>}, {pipeline_mode = #tpu.pipeline_mode<synchronous>, transform_indices = @transform_9, window_bounds = array<i64: 1, 512>}, {transform_indices = @transform_10, window_bounds = array<i64: 1, 128, 512>}]} {
    %c0_i32 = arith.constant 0 : i32
    %0 = arith.cmpi eq, %arg1, %c0_i32 : i32
    %1 = arith.extui %0 : i1 to i32
    %c0_i32_0 = arith.constant 0 : i32
    %2 = arith.cmpi ne, %1, %c0_i32_0 : i32
    scf.if %2 {
      %c0_154 = arith.constant 0 : index
      %c0_155 = arith.constant 0 : index
      %c0_156 = arith.constant 0 : index
      %372 = vector.load %arg2[%c0_154, %c0_155, %c0_156] : memref<1x128x192xf32, #tpu.memory_space<vmem>>, vector<1x128x192xf32>
      %373 = vector.shape_cast %372 : vector<1x128x192xf32> to vector<128x192xf32>
      %c0_157 = arith.constant 0 : index
      %c0_158 = arith.constant 0 : index
      %374 = vector.load %arg13[%c0_157, %c0_158] : memref<128x192xf32, #tpu.memory_space<vmem>>, vector<128x192xf32>
      tpu.vector_store %arg13[%c0_157, %c0_158], %373 {strides = array<i32>} : memref<128x192xf32, #tpu.memory_space<vmem>>, vector<128x192xf32>,
    } else {
    }
    %c0 = arith.constant 0 : index
    %c0_1 = arith.constant 0 : index
    %3 = vector.load %arg13[%c0, %c0_1] : memref<128x192xf32, #tpu.memory_space<vmem>>, vector<128x192xf32>
    %c0_2 = arith.constant 0 : index
    %c0_3 = arith.constant 0 : index
    %c0_4 = arith.constant 0 : index
    %4 = vector.load %arg7[%c0_2, %c0_3, %c0_4] : memref<1x8x192xf32, #tpu.memory_space<vmem>>, vector<1x8x192xf32>
    %5 = vector.shape_cast %4 : vector<1x8x192xf32> to vector<8x192xf32>
    %6 = vector.extract_strided_slice %5 {offsets = [0, 0], sizes = [1, 192], strides = [1, 1]} : vector<8x192xf32> to vector<1x192xf32>
    %7 = vector.extract_strided_slice %5 {offsets = [1, 0], sizes = [1, 192], strides = [1, 1]} : vector<8x192xf32> to vector<1x192xf32>
    %8 = vector.extract_strided_slice %5 {offsets = [2, 0], sizes = [1, 192], strides = [1, 1]} : vector<8x192xf32> to vector<1x192xf32>
    %9 = vector.extract_strided_slice %5 {offsets = [3, 0], sizes = [1, 192], strides = [1, 1]} : vector<8x192xf32> to vector<1x192xf32>
    %10 = vector.extract_strided_slice %5 {offsets = [4, 0], sizes = [1, 192], strides = [1, 1]} : vector<8x192xf32> to vector<1x192xf32>
    %11 = vector.extract_strided_slice %5 {offsets = [5, 0], sizes = [1, 192], strides = [1, 1]} : vector<8x192xf32> to vector<1x192xf32>
    %12 = tpu.iota {dimensions = array<i32: 0>} : vector<64x64xi32>
    %13 = tpu.iota {dimensions = array<i32: 1>} : vector<64x64xi32>
    %14 = arith.cmpi sle, %13, %12 : vector<64x64xi32>
    %cst = arith.constant 0.000000e+00 : f32
    %cst_5 = arith.constant 0xFF800000 : f32
    %15 = vector.broadcast %cst : f32 to vector<64x64xf32>
    %16 = vector.broadcast %cst_5 : f32 to vector<64x64xf32>
    %17 = arith.select %14, %15, %16 : vector<64x64xi1>, vector<64x64xf32>
    %cst_6 = arith.constant dense<0.000000e+00> : vector<128xf32>
    %18 = vector.multi_reduction <add>, %3, %cst_6 [1] : vector<128x192xf32> to vector<128xf32>
    %19 = vector.shape_cast %18 : vector<128xf32> to vector<128x1xf32>
    %cst_7 = arith.constant 1.920000e+02 : f32
    %20 = vector.broadcast %cst_7 : f32 to vector<128x1xf32>
    %21 = arith.divf %19, %20 : vector<128x1xf32>
    %22 = vector.broadcast %21 : vector<128x1xf32> to vector<128x192xf32>
    %23 = arith.subf %3, %22 : vector<128x192xf32>
    %24 = arith.mulf %23, %23 : vector<128x192xf32>
    %cst_8 = arith.constant dense<0.000000e+00> : vector<128xf32>
    %25 = vector.multi_reduction <add>, %24, %cst_8 [1] : vector<128x192xf32> to vector<128xf32>
    %26 = vector.shape_cast %25 : vector<128xf32> to vector<128x1xf32>
    %cst_9 = arith.constant 1.920000e+02 : f32
    %27 = vector.broadcast %cst_9 : f32 to vector<128x1xf32>
    %28 = arith.divf %26, %27 : vector<128x1xf32>
    %29 = vector.broadcast %21 : vector<128x1xf32> to vector<128x192xf32>
    %30 = arith.subf %3, %29 : vector<128x192xf32>
    %cst_10 = arith.constant 9.99999974E-6 : f32
    %31 = vector.broadcast %cst_10 : f32 to vector<128x1xf32>
    %32 = arith.addf %28, %31 : vector<128x1xf32>
    %33 = math.rsqrt %32 : vector<128x1xf32>
    %34 = vector.broadcast %33 : vector<128x1xf32> to vector<128x192xf32>
    %35 = arith.mulf %30, %34 : vector<128x192xf32>
    %36 = vector.broadcast %6 : vector<1x192xf32> to vector<128x192xf32>
    %37 = arith.mulf %35, %36 : vector<128x192xf32>
    %38 = vector.broadcast %7 : vector<1x192xf32> to vector<128x192xf32>
    %39 = arith.addf %37, %38 : vector<128x192xf32>
    %40 = arith.truncf %39 : vector<128x192xf32> to vector<128x192xbf16>
    %cst_11 = arith.constant 0.000000e+00 : f32
    %41 = vector.broadcast %cst_11 : f32 to vector<64x192xf32>
    %cst_12 = arith.constant 0.000000e+00 : f32
    %42 = vector.broadcast %cst_12 : f32 to vector<64x192xf32>
    %c0_13 = arith.constant 0 : index
    %c0_14 = arith.constant 0 : index
    %c0_15 = arith.constant 0 : index
    %c0_16 = arith.constant 0 : index
    %43 = vector.load %arg3[%c0_13, %c0_14, %c0_15, %c0_16] : memref<1x6x192x32xbf16, #tpu.memory_space<vmem>>, vector<1x1x192x32xbf16>
    %44 = vector.shape_cast %43 : vector<1x1x192x32xbf16> to vector<192x32xbf16>
    %cst_17 = arith.constant dense<0.000000e+00> : vector<128x32xf32>
    %45 = tpu.matmul %40, %44, %cst_17 {dimension_numbers = #tpu.dot_dimension_numbers<[1], [0], [0], [1], [0, 0, 1, 1], [], []>} : vector<128x192xbf16>, vector<192x32xbf16>, vector<128x32xf32> -> vector<128x32xf32>
    %c0_18 = arith.constant 0 : index
    %c0_19 = arith.constant 0 : index
    %c0_20 = arith.constant 0 : index
    %c0_21 = arith.constant 0 : index
    %46 = vector.load %arg4[%c0_18, %c0_19, %c0_20, %c0_21] : memref<1x6x32x192xbf16, #tpu.memory_space<vmem>>, vector<1x1x32x192xbf16>
    %47 = vector.shape_cast %46 : vector<1x1x32x192xbf16> to vector<32x192xbf16>
    %48 = vector.extract_strided_slice %45 {offsets = [0, 0], sizes = [64, 32], strides = [1, 1]} : vector<128x32xf32> to vector<64x32xf32>
    %49 = arith.truncf %48 : vector<64x32xf32> to vector<64x32xbf16>
    %cst_22 = arith.constant dense<0.000000e+00> : vector<64x64xf32>
    %50 = tpu.matmul %49, %49, %cst_22 {dimension_numbers = #tpu.dot_dimension_numbers<[1], [1], [0], [0], [0, 0, 1, 0], [], []>} : vector<64x32xbf16>, vector<64x32xbf16>, vector<64x64xf32> -> vector<64x64xf32>
    %cst_23 = arith.constant 0.0721687824 : f32
    %51 = vector.broadcast %cst_23 : f32 to vector<64x64xf32>
    %52 = arith.mulf %50, %51 : vector<64x64xf32>
    %53 = arith.addf %52, %17 : vector<64x64xf32>
    %cst_24 = arith.constant dense<0xFF800000> : vector<64xf32>
    %54 = vector.multi_reduction <maximumf>, %53, %cst_24 [1] : vector<64x64xf32> to vector<64xf32>
    %55 = vector.shape_cast %54 : vector<64xf32> to vector<64x1xf32>
    %56 = vector.broadcast %55 : vector<64x1xf32> to vector<64x64xf32>
    %57 = arith.subf %53, %56 : vector<64x64xf32>
    %58 = math.exp %57 : vector<64x64xf32>
    %cst_25 = arith.constant dense<0.000000e+00> : vector<64xf32>
    %59 = vector.multi_reduction <add>, %58, %cst_25 [1] : vector<64x64xf32> to vector<64xf32>
    %60 = vector.shape_cast %59 : vector<64xf32> to vector<64x1xf32>
    %61 = tpu.reciprocal %60 {approx = true} : vector<64x1xf32> -> vector<64x1xf32>
    %62 = vector.broadcast %61 : vector<64x1xf32> to vector<64x64xf32>
    %63 = arith.mulf %58, %62 : vector<64x64xf32>
    %64 = arith.truncf %63 : vector<64x64xf32> to vector<64x64xbf16>
    %cst_26 = arith.constant dense<0.000000e+00> : vector<64x32xf32>
    %65 = tpu.matmul %64, %49, %cst_26 {dimension_numbers = #tpu.dot_dimension_numbers<[1], [0], [0], [1], [0, 0, 1, 1], [], []>} : vector<64x64xbf16>, vector<64x32xbf16>, vector<64x32xf32> -> vector<64x32xf32>
    %66 = arith.truncf %65 : vector<64x32xf32> to vector<64x32xbf16>
    %cst_27 = arith.constant dense<0.000000e+00> : vector<64x192xf32>
    %67 = tpu.matmul %66, %47, %cst_27 {dimension_numbers = #tpu.dot_dimension_numbers<[1], [0], [0], [1], [0, 0, 1, 1], [], []>} : vector<64x32xbf16>, vector<32x192xbf16>, vector<64x192xf32> -> vector<64x192xf32>
    %68 = arith.addf %41, %67 : vector<64x192xf32>
    %69 = vector.extract_strided_slice %45 {offsets = [64, 0], sizes = [64, 32], strides = [1, 1]} : vector<128x32xf32> to vector<64x32xf32>
    %70 = arith.truncf %69 : vector<64x32xf32> to vector<64x32xbf16>
    %cst_28 = arith.constant dense<0.000000e+00> : vector<64x64xf32>
    %71 = tpu.matmul %70, %70, %cst_28 {dimension_numbers = #tpu.dot_dimension_numbers<[1], [1], [0], [0], [0, 0, 1, 0], [], []>} : vector<64x32xbf16>, vector<64x32xbf16>, vector<64x64xf32> -> vector<64x64xf32>
    %cst_29 = arith.constant 0.0721687824 : f32
    %72 = vector.broadcast %cst_29 : f32 to vector<64x64xf32>
    %73 = arith.mulf %71, %72 : vector<64x64xf32>
    %74 = arith.addf %73, %17 : vector<64x64xf32>
    %cst_30 = arith.constant dense<0xFF800000> : vector<64xf32>
    %75 = vector.multi_reduction <maximumf>, %74, %cst_30 [1] : vector<64x64xf32> to vector<64xf32>
    %76 = vector.shape_cast %75 : vector<64xf32> to vector<64x1xf32>
    %77 = vector.broadcast %76 : vector<64x1xf32> to vector<64x64xf32>
    %78 = arith.subf %74, %77 : vector<64x64xf32>
    %79 = math.exp %78 : vector<64x64xf32>
    %cst_31 = arith.constant dense<0.000000e+00> : vector<64xf32>
    %80 = vector.multi_reduction <add>, %79, %cst_31 [1] : vector<64x64xf32> to vector<64xf32>
    %81 = vector.shape_cast %80 : vector<64xf32> to vector<64x1xf32>
    %82 = tpu.reciprocal %81 {approx = true} : vector<64x1xf32> -> vector<64x1xf32>
    %83 = vector.broadcast %82 : vector<64x1xf32> to vector<64x64xf32>
    %84 = arith.mulf %79, %83 : vector<64x64xf32>
    %85 = arith.truncf %84 : vector<64x64xf32> to vector<64x64xbf16>
    %cst_32 = arith.constant dense<0.000000e+00> : vector<64x32xf32>
    %86 = tpu.matmul %85, %70, %cst_32 {dimension_numbers = #tpu.dot_dimension_numbers<[1], [0], [0], [1], [0, 0, 1, 1], [], []>} : vector<64x64xbf16>, vector<64x32xbf16>, vector<64x32xf32> -> vector<64x32xf32>
    %87 = arith.truncf %86 : vector<64x32xf32> to vector<64x32xbf16>
    %cst_33 = arith.constant dense<0.000000e+00> : vector<64x192xf32>
    %88 = tpu.matmul %87, %47, %cst_33 {dimension_numbers = #tpu.dot_dimension_numbers<[1], [0], [0], [1], [0, 0, 1, 1], [], []>} : vector<64x32xbf16>, vector<32x192xbf16>, vector<64x192xf32> -> vector<64x192xf32>
    %89 = arith.addf %42, %88 : vector<64x192xf32>
    %c0_34 = arith.constant 0 : index
    %c1 = arith.constant 1 : index
    %c0_35 = arith.constant 0 : index
    %c0_36 = arith.constant 0 : index
    %90 = vector.load %arg3[%c0_34, %c1, %c0_35, %c0_36] : memref<1x6x192x32xbf16, #tpu.memory_space<vmem>>, vector<1x1x192x32xbf16>
    %91 = vector.shape_cast %90 : vector<1x1x192x32xbf16> to vector<192x32xbf16>
    %cst_37 = arith.constant dense<0.000000e+00> : vector<128x32xf32>
    %92 = tpu.matmul %40, %91, %cst_37 {dimension_numbers = #tpu.dot_dimension_numbers<[1], [0], [0], [1], [0, 0, 1, 1], [], []>} : vector<128x192xbf16>, vector<192x32xbf16>, vector<128x32xf32> -> vector<128x32xf32>
    %c0_38 = arith.constant 0 : index
    %c1_39 = arith.constant 1 : index
    %c0_40 = arith.constant 0 : index
    %c0_41 = arith.constant 0 : index
    %93 = vector.load %arg4[%c0_38, %c1_39, %c0_40, %c0_41] : memref<1x6x32x192xbf16, #tpu.memory_space<vmem>>, vector<1x1x32x192xbf16>
    %94 = vector.shape_cast %93 : vector<1x1x32x192xbf16> to vector<32x192xbf16>
    %95 = vector.extract_strided_slice %92 {offsets = [0, 0], sizes = [64, 32], strides = [1, 1]} : vector<128x32xf32> to vector<64x32xf32>
    %96 = arith.truncf %95 : vector<64x32xf32> to vector<64x32xbf16>
    %cst_42 = arith.constant dense<0.000000e+00> : vector<64x64xf32>
    %97 = tpu.matmul %96, %96, %cst_42 {dimension_numbers = #tpu.dot_dimension_numbers<[1], [1], [0], [0], [0, 0, 1, 0], [], []>} : vector<64x32xbf16>, vector<64x32xbf16>, vector<64x64xf32> -> vector<64x64xf32>
    %cst_43 = arith.constant 0.0721687824 : f32
    %98 = vector.broadcast %cst_43 : f32 to vector<64x64xf32>
    %99 = arith.mulf %97, %98 : vector<64x64xf32>
    %100 = arith.addf %99, %17 : vector<64x64xf32>
    %cst_44 = arith.constant dense<0xFF800000> : vector<64xf32>
    %101 = vector.multi_reduction <maximumf>, %100, %cst_44 [1] : vector<64x64xf32> to vector<64xf32>
    %102 = vector.shape_cast %101 : vector<64xf32> to vector<64x1xf32>
    %103 = vector.broadcast %102 : vector<64x1xf32> to vector<64x64xf32>
    %104 = arith.subf %100, %103 : vector<64x64xf32>
    %105 = math.exp %104 : vector<64x64xf32>
    %cst_45 = arith.constant dense<0.000000e+00> : vector<64xf32>
    %106 = vector.multi_reduction <add>, %105, %cst_45 [1] : vector<64x64xf32> to vector<64xf32>
    %107 = vector.shape_cast %106 : vector<64xf32> to vector<64x1xf32>
    %108 = tpu.reciprocal %107 {approx = true} : vector<64x1xf32> -> vector<64x1xf32>
    %109 = vector.broadcast %108 : vector<64x1xf32> to vector<64x64xf32>
    %110 = arith.mulf %105, %109 : vector<64x64xf32>
    %111 = arith.truncf %110 : vector<64x64xf32> to vector<64x64xbf16>
    %cst_46 = arith.constant dense<0.000000e+00> : vector<64x32xf32>
    %112 = tpu.matmul %111, %96, %cst_46 {dimension_numbers = #tpu.dot_dimension_numbers<[1], [0], [0], [1], [0, 0, 1, 1], [], []>} : vector<64x64xbf16>, vector<64x32xbf16>, vector<64x32xf32> -> vector<64x32xf32>
    %113 = arith.truncf %112 : vector<64x32xf32> to vector<64x32xbf16>
    %cst_47 = arith.constant dense<0.000000e+00> : vector<64x192xf32>
    %114 = tpu.matmul %113, %94, %cst_47 {dimension_numbers = #tpu.dot_dimension_numbers<[1], [0], [0], [1], [0, 0, 1, 1], [], []>} : vector<64x32xbf16>, vector<32x192xbf16>, vector<64x192xf32> -> vector<64x192xf32>
    %115 = arith.addf %68, %114 : vector<64x192xf32>
    %116 = vector.extract_strided_slice %92 {offsets = [64, 0], sizes = [64, 32], strides = [1, 1]} : vector<128x32xf32> to vector<64x32xf32>
    %117 = arith.truncf %116 : vector<64x32xf32> to vector<64x32xbf16>
    %cst_48 = arith.constant dense<0.000000e+00> : vector<64x64xf32>
    %118 = tpu.matmul %117, %117, %cst_48 {dimension_numbers = #tpu.dot_dimension_numbers<[1], [1], [0], [0], [0, 0, 1, 0], [], []>} : vector<64x32xbf16>, vector<64x32xbf16>, vector<64x64xf32> -> vector<64x64xf32>
    %cst_49 = arith.constant 0.0721687824 : f32
    %119 = vector.broadcast %cst_49 : f32 to vector<64x64xf32>
    %120 = arith.mulf %118, %119 : vector<64x64xf32>
    %121 = arith.addf %120, %17 : vector<64x64xf32>
    %cst_50 = arith.constant dense<0xFF800000> : vector<64xf32>
    %122 = vector.multi_reduction <maximumf>, %121, %cst_50 [1] : vector<64x64xf32> to vector<64xf32>
    %123 = vector.shape_cast %122 : vector<64xf32> to vector<64x1xf32>
    %124 = vector.broadcast %123 : vector<64x1xf32> to vector<64x64xf32>
    %125 = arith.subf %121, %124 : vector<64x64xf32>
    %126 = math.exp %125 : vector<64x64xf32>
    %cst_51 = arith.constant dense<0.000000e+00> : vector<64xf32>
    %127 = vector.multi_reduction <add>, %126, %cst_51 [1] : vector<64x64xf32> to vector<64xf32>
    %128 = vector.shape_cast %127 : vector<64xf32> to vector<64x1xf32>
    %129 = tpu.reciprocal %128 {approx = true} : vector<64x1xf32> -> vector<64x1xf32>
    %130 = vector.broadcast %129 : vector<64x1xf32> to vector<64x64xf32>
    %131 = arith.mulf %126, %130 : vector<64x64xf32>
    %132 = arith.truncf %131 : vector<64x64xf32> to vector<64x64xbf16>
    %cst_52 = arith.constant dense<0.000000e+00> : vector<64x32xf32>
    %133 = tpu.matmul %132, %117, %cst_52 {dimension_numbers = #tpu.dot_dimension_numbers<[1], [0], [0], [1], [0, 0, 1, 1], [], []>} : vector<64x64xbf16>, vector<64x32xbf16>, vector<64x32xf32> -> vector<64x32xf32>
    %134 = arith.truncf %133 : vector<64x32xf32> to vector<64x32xbf16>
    %cst_53 = arith.constant dense<0.000000e+00> : vector<64x192xf32>
    %135 = tpu.matmul %134, %94, %cst_53 {dimension_numbers = #tpu.dot_dimension_numbers<[1], [0], [0], [1], [0, 0, 1, 1], [], []>} : vector<64x32xbf16>, vector<32x192xbf16>, vector<64x192xf32> -> vector<64x192xf32>
    %136 = arith.addf %89, %135 : vector<64x192xf32>
    %c0_54 = arith.constant 0 : index
    %c2 = arith.constant 2 : index
    %c0_55 = arith.constant 0 : index
    %c0_56 = arith.constant 0 : index
    %137 = vector.load %arg3[%c0_54, %c2, %c0_55, %c0_56] : memref<1x6x192x32xbf16, #tpu.memory_space<vmem>>, vector<1x1x192x32xbf16>
    %138 = vector.shape_cast %137 : vector<1x1x192x32xbf16> to vector<192x32xbf16>
    %cst_57 = arith.constant dense<0.000000e+00> : vector<128x32xf32>
    %139 = tpu.matmul %40, %138, %cst_57 {dimension_numbers = #tpu.dot_dimension_numbers<[1], [0], [0], [1], [0, 0, 1, 1], [], []>} : vector<128x192xbf16>, vector<192x32xbf16>, vector<128x32xf32> -> vector<128x32xf32>
    %c0_58 = arith.constant 0 : index
    %c2_59 = arith.constant 2 : index
    %c0_60 = arith.constant 0 : index
    %c0_61 = arith.constant 0 : index
    %140 = vector.load %arg4[%c0_58, %c2_59, %c0_60, %c0_61] : memref<1x6x32x192xbf16, #tpu.memory_space<vmem>>, vector<1x1x32x192xbf16>
    %141 = vector.shape_cast %140 : vector<1x1x32x192xbf16> to vector<32x192xbf16>
    %142 = vector.extract_strided_slice %139 {offsets = [0, 0], sizes = [64, 32], strides = [1, 1]} : vector<128x32xf32> to vector<64x32xf32>
    %143 = arith.truncf %142 : vector<64x32xf32> to vector<64x32xbf16>
    %cst_62 = arith.constant dense<0.000000e+00> : vector<64x64xf32>
    %144 = tpu.matmul %143, %143, %cst_62 {dimension_numbers = #tpu.dot_dimension_numbers<[1], [1], [0], [0], [0, 0, 1, 0], [], []>} : vector<64x32xbf16>, vector<64x32xbf16>, vector<64x64xf32> -> vector<64x64xf32>
    %cst_63 = arith.constant 0.0721687824 : f32
    %145 = vector.broadcast %cst_63 : f32 to vector<64x64xf32>
    %146 = arith.mulf %144, %145 : vector<64x64xf32>
    %147 = arith.addf %146, %17 : vector<64x64xf32>
    %cst_64 = arith.constant dense<0xFF800000> : vector<64xf32>
    %148 = vector.multi_reduction <maximumf>, %147, %cst_64 [1] : vector<64x64xf32> to vector<64xf32>
    %149 = vector.shape_cast %148 : vector<64xf32> to vector<64x1xf32>
    %150 = vector.broadcast %149 : vector<64x1xf32> to vector<64x64xf32>
    %151 = arith.subf %147, %150 : vector<64x64xf32>
    %152 = math.exp %151 : vector<64x64xf32>
    %cst_65 = arith.constant dense<0.000000e+00> : vector<64xf32>
    %153 = vector.multi_reduction <add>, %152, %cst_65 [1] : vector<64x64xf32> to vector<64xf32>
    %154 = vector.shape_cast %153 : vector<64xf32> to vector<64x1xf32>
    %155 = tpu.reciprocal %154 {approx = true} : vector<64x1xf32> -> vector<64x1xf32>
    %156 = vector.broadcast %155 : vector<64x1xf32> to vector<64x64xf32>
    %157 = arith.mulf %152, %156 : vector<64x64xf32>
    %158 = arith.truncf %157 : vector<64x64xf32> to vector<64x64xbf16>
    %cst_66 = arith.constant dense<0.000000e+00> : vector<64x32xf32>
    %159 = tpu.matmul %158, %143, %cst_66 {dimension_numbers = #tpu.dot_dimension_numbers<[1], [0], [0], [1], [0, 0, 1, 1], [], []>} : vector<64x64xbf16>, vector<64x32xbf16>, vector<64x32xf32> -> vector<64x32xf32>
    %160 = arith.truncf %159 : vector<64x32xf32> to vector<64x32xbf16>
    %cst_67 = arith.constant dense<0.000000e+00> : vector<64x192xf32>
    %161 = tpu.matmul %160, %141, %cst_67 {dimension_numbers = #tpu.dot_dimension_numbers<[1], [0], [0], [1], [0, 0, 1, 1], [], []>} : vector<64x32xbf16>, vector<32x192xbf16>, vector<64x192xf32> -> vector<64x192xf32>
    %162 = arith.addf %115, %161 : vector<64x192xf32>
    %163 = vector.extract_strided_slice %139 {offsets = [64, 0], sizes = [64, 32], strides = [1, 1]} : vector<128x32xf32> to vector<64x32xf32>
    %164 = arith.truncf %163 : vector<64x32xf32> to vector<64x32xbf16>
    %cst_68 = arith.constant dense<0.000000e+00> : vector<64x64xf32>
    %165 = tpu.matmul %164, %164, %cst_68 {dimension_numbers = #tpu.dot_dimension_numbers<[1], [1], [0], [0], [0, 0, 1, 0], [], []>} : vector<64x32xbf16>, vector<64x32xbf16>, vector<64x64xf32> -> vector<64x64xf32>
    %cst_69 = arith.constant 0.0721687824 : f32
    %166 = vector.broadcast %cst_69 : f32 to vector<64x64xf32>
    %167 = arith.mulf %165, %166 : vector<64x64xf32>
    %168 = arith.addf %167, %17 : vector<64x64xf32>
    %cst_70 = arith.constant dense<0xFF800000> : vector<64xf32>
    %169 = vector.multi_reduction <maximumf>, %168, %cst_70 [1] : vector<64x64xf32> to vector<64xf32>
    %170 = vector.shape_cast %169 : vector<64xf32> to vector<64x1xf32>
    %171 = vector.broadcast %170 : vector<64x1xf32> to vector<64x64xf32>
    %172 = arith.subf %168, %171 : vector<64x64xf32>
    %173 = math.exp %172 : vector<64x64xf32>
    %cst_71 = arith.constant dense<0.000000e+00> : vector<64xf32>
    %174 = vector.multi_reduction <add>, %173, %cst_71 [1] : vector<64x64xf32> to vector<64xf32>
    %175 = vector.shape_cast %174 : vector<64xf32> to vector<64x1xf32>
    %176 = tpu.reciprocal %175 {approx = true} : vector<64x1xf32> -> vector<64x1xf32>
    %177 = vector.broadcast %176 : vector<64x1xf32> to vector<64x64xf32>
    %178 = arith.mulf %173, %177 : vector<64x64xf32>
    %179 = arith.truncf %178 : vector<64x64xf32> to vector<64x64xbf16>
    %cst_72 = arith.constant dense<0.000000e+00> : vector<64x32xf32>
    %180 = tpu.matmul %179, %164, %cst_72 {dimension_numbers = #tpu.dot_dimension_numbers<[1], [0], [0], [1], [0, 0, 1, 1], [], []>} : vector<64x64xbf16>, vector<64x32xbf16>, vector<64x32xf32> -> vector<64x32xf32>
    %181 = arith.truncf %180 : vector<64x32xf32> to vector<64x32xbf16>
    %cst_73 = arith.constant dense<0.000000e+00> : vector<64x192xf32>
    %182 = tpu.matmul %181, %141, %cst_73 {dimension_numbers = #tpu.dot_dimension_numbers<[1], [0], [0], [1], [0, 0, 1, 1], [], []>} : vector<64x32xbf16>, vector<32x192xbf16>, vector<64x192xf32> -> vector<64x192xf32>
    %183 = arith.addf %136, %182 : vector<64x192xf32>
    %c0_74 = arith.constant 0 : index
    %c3 = arith.constant 3 : index
    %c0_75 = arith.constant 0 : index
    %c0_76 = arith.constant 0 : index
    %184 = vector.load %arg3[%c0_74, %c3, %c0_75, %c0_76] : memref<1x6x192x32xbf16, #tpu.memory_space<vmem>>, vector<1x1x192x32xbf16>
    %185 = vector.shape_cast %184 : vector<1x1x192x32xbf16> to vector<192x32xbf16>
    %cst_77 = arith.constant dense<0.000000e+00> : vector<128x32xf32>
    %186 = tpu.matmul %40, %185, %cst_77 {dimension_numbers = #tpu.dot_dimension_numbers<[1], [0], [0], [1], [0, 0, 1, 1], [], []>} : vector<128x192xbf16>, vector<192x32xbf16>, vector<128x32xf32> -> vector<128x32xf32>
    %c0_78 = arith.constant 0 : index
    %c3_79 = arith.constant 3 : index
    %c0_80 = arith.constant 0 : index
    %c0_81 = arith.constant 0 : index
    %187 = vector.load %arg4[%c0_78, %c3_79, %c0_80, %c0_81] : memref<1x6x32x192xbf16, #tpu.memory_space<vmem>>, vector<1x1x32x192xbf16>
    %188 = vector.shape_cast %187 : vector<1x1x32x192xbf16> to vector<32x192xbf16>
    %189 = vector.extract_strided_slice %186 {offsets = [0, 0], sizes = [64, 32], strides = [1, 1]} : vector<128x32xf32> to vector<64x32xf32>
    %190 = arith.truncf %189 : vector<64x32xf32> to vector<64x32xbf16>
    %cst_82 = arith.constant dense<0.000000e+00> : vector<64x64xf32>
    %191 = tpu.matmul %190, %190, %cst_82 {dimension_numbers = #tpu.dot_dimension_numbers<[1], [1], [0], [0], [0, 0, 1, 0], [], []>} : vector<64x32xbf16>, vector<64x32xbf16>, vector<64x64xf32> -> vector<64x64xf32>
    %cst_83 = arith.constant 0.0721687824 : f32
    %192 = vector.broadcast %cst_83 : f32 to vector<64x64xf32>
    %193 = arith.mulf %191, %192 : vector<64x64xf32>
    %194 = arith.addf %193, %17 : vector<64x64xf32>
    %cst_84 = arith.constant dense<0xFF800000> : vector<64xf32>
    %195 = vector.multi_reduction <maximumf>, %194, %cst_84 [1] : vector<64x64xf32> to vector<64xf32>
    %196 = vector.shape_cast %195 : vector<64xf32> to vector<64x1xf32>
    %197 = vector.broadcast %196 : vector<64x1xf32> to vector<64x64xf32>
    %198 = arith.subf %194, %197 : vector<64x64xf32>
    %199 = math.exp %198 : vector<64x64xf32>
    %cst_85 = arith.constant dense<0.000000e+00> : vector<64xf32>
    %200 = vector.multi_reduction <add>, %199, %cst_85 [1] : vector<64x64xf32> to vector<64xf32>
    %201 = vector.shape_cast %200 : vector<64xf32> to vector<64x1xf32>
    %202 = tpu.reciprocal %201 {approx = true} : vector<64x1xf32> -> vector<64x1xf32>
    %203 = vector.broadcast %202 : vector<64x1xf32> to vector<64x64xf32>
    %204 = arith.mulf %199, %203 : vector<64x64xf32>
    %205 = arith.truncf %204 : vector<64x64xf32> to vector<64x64xbf16>
    %cst_86 = arith.constant dense<0.000000e+00> : vector<64x32xf32>
    %206 = tpu.matmul %205, %190, %cst_86 {dimension_numbers = #tpu.dot_dimension_numbers<[1], [0], [0], [1], [0, 0, 1, 1], [], []>} : vector<64x64xbf16>, vector<64x32xbf16>, vector<64x32xf32> -> vector<64x32xf32>
    %207 = arith.truncf %206 : vector<64x32xf32> to vector<64x32xbf16>
    %cst_87 = arith.constant dense<0.000000e+00> : vector<64x192xf32>
    %208 = tpu.matmul %207, %188, %cst_87 {dimension_numbers = #tpu.dot_dimension_numbers<[1], [0], [0], [1], [0, 0, 1, 1], [], []>} : vector<64x32xbf16>, vector<32x192xbf16>, vector<64x192xf32> -> vector<64x192xf32>
    %209 = arith.addf %162, %208 : vector<64x192xf32>
    %210 = vector.extract_strided_slice %186 {offsets = [64, 0], sizes = [64, 32], strides = [1, 1]} : vector<128x32xf32> to vector<64x32xf32>
    %211 = arith.truncf %210 : vector<64x32xf32> to vector<64x32xbf16>
    %cst_88 = arith.constant dense<0.000000e+00> : vector<64x64xf32>
    %212 = tpu.matmul %211, %211, %cst_88 {dimension_numbers = #tpu.dot_dimension_numbers<[1], [1], [0], [0], [0, 0, 1, 0], [], []>} : vector<64x32xbf16>, vector<64x32xbf16>, vector<64x64xf32> -> vector<64x64xf32>
    %cst_89 = arith.constant 0.0721687824 : f32
    %213 = vector.broadcast %cst_89 : f32 to vector<64x64xf32>
    %214 = arith.mulf %212, %213 : vector<64x64xf32>
    %215 = arith.addf %214, %17 : vector<64x64xf32>
    %cst_90 = arith.constant dense<0xFF800000> : vector<64xf32>
    %216 = vector.multi_reduction <maximumf>, %215, %cst_90 [1] : vector<64x64xf32> to vector<64xf32>
    %217 = vector.shape_cast %216 : vector<64xf32> to vector<64x1xf32>
    %218 = vector.broadcast %217 : vector<64x1xf32> to vector<64x64xf32>
    %219 = arith.subf %215, %218 : vector<64x64xf32>
    %220 = math.exp %219 : vector<64x64xf32>
    %cst_91 = arith.constant dense<0.000000e+00> : vector<64xf32>
    %221 = vector.multi_reduction <add>, %220, %cst_91 [1] : vector<64x64xf32> to vector<64xf32>
    %222 = vector.shape_cast %221 : vector<64xf32> to vector<64x1xf32>
    %223 = tpu.reciprocal %222 {approx = true} : vector<64x1xf32> -> vector<64x1xf32>
    %224 = vector.broadcast %223 : vector<64x1xf32> to vector<64x64xf32>
    %225 = arith.mulf %220, %224 : vector<64x64xf32>
    %226 = arith.truncf %225 : vector<64x64xf32> to vector<64x64xbf16>
    %cst_92 = arith.constant dense<0.000000e+00> : vector<64x32xf32>
    %227 = tpu.matmul %226, %211, %cst_92 {dimension_numbers = #tpu.dot_dimension_numbers<[1], [0], [0], [1], [0, 0, 1, 1], [], []>} : vector<64x64xbf16>, vector<64x32xbf16>, vector<64x32xf32> -> vector<64x32xf32>
    %228 = arith.truncf %227 : vector<64x32xf32> to vector<64x32xbf16>
    %cst_93 = arith.constant dense<0.000000e+00> : vector<64x192xf32>
    %229 = tpu.matmul %228, %188, %cst_93 {dimension_numbers = #tpu.dot_dimension_numbers<[1], [0], [0], [1], [0, 0, 1, 1], [], []>} : vector<64x32xbf16>, vector<32x192xbf16>, vector<64x192xf32> -> vector<64x192xf32>
    %230 = arith.addf %183, %229 : vector<64x192xf32>
    %c0_94 = arith.constant 0 : index
    %c4 = arith.constant 4 : index
    %c0_95 = arith.constant 0 : index
    %c0_96 = arith.constant 0 : index
    %231 = vector.load %arg3[%c0_94, %c4, %c0_95, %c0_96] : memref<1x6x192x32xbf16, #tpu.memory_space<vmem>>, vector<1x1x192x32xbf16>
    %232 = vector.shape_cast %231 : vector<1x1x192x32xbf16> to vector<192x32xbf16>
    %cst_97 = arith.constant dense<0.000000e+00> : vector<128x32xf32>
    %233 = tpu.matmul %40, %232, %cst_97 {dimension_numbers = #tpu.dot_dimension_numbers<[1], [0], [0], [1], [0, 0, 1, 1], [], []>} : vector<128x192xbf16>, vector<192x32xbf16>, vector<128x32xf32> -> vector<128x32xf32>
    %c0_98 = arith.constant 0 : index
    %c4_99 = arith.constant 4 : index
    %c0_100 = arith.constant 0 : index
    %c0_101 = arith.constant 0 : index
    %234 = vector.load %arg4[%c0_98, %c4_99, %c0_100, %c0_101] : memref<1x6x32x192xbf16, #tpu.memory_space<vmem>>, vector<1x1x32x192xbf16>
    %235 = vector.shape_cast %234 : vector<1x1x32x192xbf16> to vector<32x192xbf16>
    %236 = vector.extract_strided_slice %233 {offsets = [0, 0], sizes = [64, 32], strides = [1, 1]} : vector<128x32xf32> to vector<64x32xf32>
    %237 = arith.truncf %236 : vector<64x32xf32> to vector<64x32xbf16>
    %cst_102 = arith.constant dense<0.000000e+00> : vector<64x64xf32>
    %238 = tpu.matmul %237, %237, %cst_102 {dimension_numbers = #tpu.dot_dimension_numbers<[1], [1], [0], [0], [0, 0, 1, 0], [], []>} : vector<64x32xbf16>, vector<64x32xbf16>, vector<64x64xf32> -> vector<64x64xf32>
    %cst_103 = arith.constant 0.0721687824 : f32
    %239 = vector.broadcast %cst_103 : f32 to vector<64x64xf32>
    %240 = arith.mulf %238, %239 : vector<64x64xf32>
    %241 = arith.addf %240, %17 : vector<64x64xf32>
    %cst_104 = arith.constant dense<0xFF800000> : vector<64xf32>
    %242 = vector.multi_reduction <maximumf>, %241, %cst_104 [1] : vector<64x64xf32> to vector<64xf32>
    %243 = vector.shape_cast %242 : vector<64xf32> to vector<64x1xf32>
    %244 = vector.broadcast %243 : vector<64x1xf32> to vector<64x64xf32>
    %245 = arith.subf %241, %244 : vector<64x64xf32>
    %246 = math.exp %245 : vector<64x64xf32>
    %cst_105 = arith.constant dense<0.000000e+00> : vector<64xf32>
    %247 = vector.multi_reduction <add>, %246, %cst_105 [1] : vector<64x64xf32> to vector<64xf32>
    %248 = vector.shape_cast %247 : vector<64xf32> to vector<64x1xf32>
    %249 = tpu.reciprocal %248 {approx = true} : vector<64x1xf32> -> vector<64x1xf32>
    %250 = vector.broadcast %249 : vector<64x1xf32> to vector<64x64xf32>
    %251 = arith.mulf %246, %250 : vector<64x64xf32>
    %252 = arith.truncf %251 : vector<64x64xf32> to vector<64x64xbf16>
    %cst_106 = arith.constant dense<0.000000e+00> : vector<64x32xf32>
    %253 = tpu.matmul %252, %237, %cst_106 {dimension_numbers = #tpu.dot_dimension_numbers<[1], [0], [0], [1], [0, 0, 1, 1], [], []>} : vector<64x64xbf16>, vector<64x32xbf16>, vector<64x32xf32> -> vector<64x32xf32>
    %254 = arith.truncf %253 : vector<64x32xf32> to vector<64x32xbf16>
    %cst_107 = arith.constant dense<0.000000e+00> : vector<64x192xf32>
    %255 = tpu.matmul %254, %235, %cst_107 {dimension_numbers = #tpu.dot_dimension_numbers<[1], [0], [0], [1], [0, 0, 1, 1], [], []>} : vector<64x32xbf16>, vector<32x192xbf16>, vector<64x192xf32> -> vector<64x192xf32>
    %256 = arith.addf %209, %255 : vector<64x192xf32>
    %257 = vector.extract_strided_slice %233 {offsets = [64, 0], sizes = [64, 32], strides = [1, 1]} : vector<128x32xf32> to vector<64x32xf32>
    %258 = arith.truncf %257 : vector<64x32xf32> to vector<64x32xbf16>
    %cst_108 = arith.constant dense<0.000000e+00> : vector<64x64xf32>
    %259 = tpu.matmul %258, %258, %cst_108 {dimension_numbers = #tpu.dot_dimension_numbers<[1], [1], [0], [0], [0, 0, 1, 0], [], []>} : vector<64x32xbf16>, vector<64x32xbf16>, vector<64x64xf32> -> vector<64x64xf32>
    %cst_109 = arith.constant 0.0721687824 : f32
    %260 = vector.broadcast %cst_109 : f32 to vector<64x64xf32>
    %261 = arith.mulf %259, %260 : vector<64x64xf32>
    %262 = arith.addf %261, %17 : vector<64x64xf32>
    %cst_110 = arith.constant dense<0xFF800000> : vector<64xf32>
    %263 = vector.multi_reduction <maximumf>, %262, %cst_110 [1] : vector<64x64xf32> to vector<64xf32>
    %264 = vector.shape_cast %263 : vector<64xf32> to vector<64x1xf32>
    %265 = vector.broadcast %264 : vector<64x1xf32> to vector<64x64xf32>
    %266 = arith.subf %262, %265 : vector<64x64xf32>
    %267 = math.exp %266 : vector<64x64xf32>
    %cst_111 = arith.constant dense<0.000000e+00> : vector<64xf32>
    %268 = vector.multi_reduction <add>, %267, %cst_111 [1] : vector<64x64xf32> to vector<64xf32>
    %269 = vector.shape_cast %268 : vector<64xf32> to vector<64x1xf32>
    %270 = tpu.reciprocal %269 {approx = true} : vector<64x1xf32> -> vector<64x1xf32>
    %271 = vector.broadcast %270 : vector<64x1xf32> to vector<64x64xf32>
    %272 = arith.mulf %267, %271 : vector<64x64xf32>
    %273 = arith.truncf %272 : vector<64x64xf32> to vector<64x64xbf16>
    %cst_112 = arith.constant dense<0.000000e+00> : vector<64x32xf32>
    %274 = tpu.matmul %273, %258, %cst_112 {dimension_numbers = #tpu.dot_dimension_numbers<[1], [0], [0], [1], [0, 0, 1, 1], [], []>} : vector<64x64xbf16>, vector<64x32xbf16>, vector<64x32xf32> -> vector<64x32xf32>
    %275 = arith.truncf %274 : vector<64x32xf32> to vector<64x32xbf16>
    %cst_113 = arith.constant dense<0.000000e+00> : vector<64x192xf32>
    %276 = tpu.matmul %275, %235, %cst_113 {dimension_numbers = #tpu.dot_dimension_numbers<[1], [0], [0], [1], [0, 0, 1, 1], [], []>} : vector<64x32xbf16>, vector<32x192xbf16>, vector<64x192xf32> -> vector<64x192xf32>
    %277 = arith.addf %230, %276 : vector<64x192xf32>
    %c0_114 = arith.constant 0 : index
    %c5 = arith.constant 5 : index
    %c0_115 = arith.constant 0 : index
    %c0_116 = arith.constant 0 : index
    %278 = vector.load %arg3[%c0_114, %c5, %c0_115, %c0_116] : memref<1x6x192x32xbf16, #tpu.memory_space<vmem>>, vector<1x1x192x32xbf16>
    %279 = vector.shape_cast %278 : vector<1x1x192x32xbf16> to vector<192x32xbf16>
    %cst_117 = arith.constant dense<0.000000e+00> : vector<128x32xf32>
    %280 = tpu.matmul %40, %279, %cst_117 {dimension_numbers = #tpu.dot_dimension_numbers<[1], [0], [0], [1], [0, 0, 1, 1], [], []>} : vector<128x192xbf16>, vector<192x32xbf16>, vector<128x32xf32> -> vector<128x32xf32>
    %c0_118 = arith.constant 0 : index
    %c5_119 = arith.constant 5 : index
    %c0_120 = arith.constant 0 : index
    %c0_121 = arith.constant 0 : index
    %281 = vector.load %arg4[%c0_118, %c5_119, %c0_120, %c0_121] : memref<1x6x32x192xbf16, #tpu.memory_space<vmem>>, vector<1x1x32x192xbf16>
    %282 = vector.shape_cast %281 : vector<1x1x32x192xbf16> to vector<32x192xbf16>
    %283 = vector.extract_strided_slice %280 {offsets = [0, 0], sizes = [64, 32], strides = [1, 1]} : vector<128x32xf32> to vector<64x32xf32>
    %284 = arith.truncf %283 : vector<64x32xf32> to vector<64x32xbf16>
    %cst_122 = arith.constant dense<0.000000e+00> : vector<64x64xf32>
    %285 = tpu.matmul %284, %284, %cst_122 {dimension_numbers = #tpu.dot_dimension_numbers<[1], [1], [0], [0], [0, 0, 1, 0], [], []>} : vector<64x32xbf16>, vector<64x32xbf16>, vector<64x64xf32> -> vector<64x64xf32>
    %cst_123 = arith.constant 0.0721687824 : f32
    %286 = vector.broadcast %cst_123 : f32 to vector<64x64xf32>
    %287 = arith.mulf %285, %286 : vector<64x64xf32>
    %288 = arith.addf %287, %17 : vector<64x64xf32>
    %cst_124 = arith.constant dense<0xFF800000> : vector<64xf32>
    %289 = vector.multi_reduction <maximumf>, %288, %cst_124 [1] : vector<64x64xf32> to vector<64xf32>
    %290 = vector.shape_cast %289 : vector<64xf32> to vector<64x1xf32>
    %291 = vector.broadcast %290 : vector<64x1xf32> to vector<64x64xf32>
    %292 = arith.subf %288, %291 : vector<64x64xf32>
    %293 = math.exp %292 : vector<64x64xf32>
    %cst_125 = arith.constant dense<0.000000e+00> : vector<64xf32>
    %294 = vector.multi_reduction <add>, %293, %cst_125 [1] : vector<64x64xf32> to vector<64xf32>
    %295 = vector.shape_cast %294 : vector<64xf32> to vector<64x1xf32>
    %296 = tpu.reciprocal %295 {approx = true} : vector<64x1xf32> -> vector<64x1xf32>
    %297 = vector.broadcast %296 : vector<64x1xf32> to vector<64x64xf32>
    %298 = arith.mulf %293, %297 : vector<64x64xf32>
    %299 = arith.truncf %298 : vector<64x64xf32> to vector<64x64xbf16>
    %cst_126 = arith.constant dense<0.000000e+00> : vector<64x32xf32>
    %300 = tpu.matmul %299, %284, %cst_126 {dimension_numbers = #tpu.dot_dimension_numbers<[1], [0], [0], [1], [0, 0, 1, 1], [], []>} : vector<64x64xbf16>, vector<64x32xbf16>, vector<64x32xf32> -> vector<64x32xf32>
    %301 = arith.truncf %300 : vector<64x32xf32> to vector<64x32xbf16>
    %cst_127 = arith.constant dense<0.000000e+00> : vector<64x192xf32>
    %302 = tpu.matmul %301, %282, %cst_127 {dimension_numbers = #tpu.dot_dimension_numbers<[1], [0], [0], [1], [0, 0, 1, 1], [], []>} : vector<64x32xbf16>, vector<32x192xbf16>, vector<64x192xf32> -> vector<64x192xf32>
    %303 = arith.addf %256, %302 : vector<64x192xf32>
    %304 = vector.extract_strided_slice %280 {offsets = [64, 0], sizes = [64, 32], strides = [1, 1]} : vector<128x32xf32> to vector<64x32xf32>
    %305 = arith.truncf %304 : vector<64x32xf32> to vector<64x32xbf16>
    %cst_128 = arith.constant dense<0.000000e+00> : vector<64x64xf32>
    %306 = tpu.matmul %305, %305, %cst_128 {dimension_numbers = #tpu.dot_dimension_numbers<[1], [1], [0], [0], [0, 0, 1, 0], [], []>} : vector<64x32xbf16>, vector<64x32xbf16>, vector<64x64xf32> -> vector<64x64xf32>
    %cst_129 = arith.constant 0.0721687824 : f32
    %307 = vector.broadcast %cst_129 : f32 to vector<64x64xf32>
    %308 = arith.mulf %306, %307 : vector<64x64xf32>
    %309 = arith.addf %308, %17 : vector<64x64xf32>
    %cst_130 = arith.constant dense<0xFF800000> : vector<64xf32>
    %310 = vector.multi_reduction <maximumf>, %309, %cst_130 [1] : vector<64x64xf32> to vector<64xf32>
    %311 = vector.shape_cast %310 : vector<64xf32> to vector<64x1xf32>
    %312 = vector.broadcast %311 : vector<64x1xf32> to vector<64x64xf32>
    %313 = arith.subf %309, %312 : vector<64x64xf32>
    %314 = math.exp %313 : vector<64x64xf32>
    %cst_131 = arith.constant dense<0.000000e+00> : vector<64xf32>
    %315 = vector.multi_reduction <add>, %314, %cst_131 [1] : vector<64x64xf32> to vector<64xf32>
    %316 = vector.shape_cast %315 : vector<64xf32> to vector<64x1xf32>
    %317 = tpu.reciprocal %316 {approx = true} : vector<64x1xf32> -> vector<64x1xf32>
    %318 = vector.broadcast %317 : vector<64x1xf32> to vector<64x64xf32>
    %319 = arith.mulf %314, %318 : vector<64x64xf32>
    %320 = arith.truncf %319 : vector<64x64xf32> to vector<64x64xbf16>
    %cst_132 = arith.constant dense<0.000000e+00> : vector<64x32xf32>
    %321 = tpu.matmul %320, %305, %cst_132 {dimension_numbers = #tpu.dot_dimension_numbers<[1], [0], [0], [1], [0, 0, 1, 1], [], []>} : vector<64x64xbf16>, vector<64x32xbf16>, vector<64x32xf32> -> vector<64x32xf32>
    %322 = arith.truncf %321 : vector<64x32xf32> to vector<64x32xbf16>
    %cst_133 = arith.constant dense<0.000000e+00> : vector<64x192xf32>
    %323 = tpu.matmul %322, %282, %cst_133 {dimension_numbers = #tpu.dot_dimension_numbers<[1], [0], [0], [1], [0, 0, 1, 1], [], []>} : vector<64x32xbf16>, vector<32x192xbf16>, vector<64x192xf32> -> vector<64x192xf32>
    %324 = arith.addf %277, %323 : vector<64x192xf32>
    %325 = tpu.concatenate %303, %324 in 0 : vector<64x192xf32>, vector<64x192xf32> -> vector<128x192xf32>
    %326 = arith.addf %3, %325 : vector<128x192xf32>
    %327 = vector.broadcast %8 : vector<1x192xf32> to vector<128x192xf32>
    %328 = arith.addf %326, %327 : vector<128x192xf32>
    %cst_134 = arith.constant dense<0.000000e+00> : vector<128xf32>
    %329 = vector.multi_reduction <add>, %328, %cst_134 [1] : vector<128x192xf32> to vector<128xf32>
    %330 = vector.shape_cast %329 : vector<128xf32> to vector<128x1xf32>
    %cst_135 = arith.constant 1.920000e+02 : f32
    %331 = vector.broadcast %cst_135 : f32 to vector<128x1xf32>
    %332 = arith.divf %330, %331 : vector<128x1xf32>
    %333 = vector.broadcast %332 : vector<128x1xf32> to vector<128x192xf32>
    %334 = arith.subf %328, %333 : vector<128x192xf32>
    %335 = arith.mulf %334, %334 : vector<128x192xf32>
    %cst_136 = arith.constant dense<0.000000e+00> : vector<128xf32>
    %336 = vector.multi_reduction <add>, %335, %cst_136 [1] : vector<128x192xf32> to vector<128xf32>
    %337 = vector.shape_cast %336 : vector<128xf32> to vector<128x1xf32>
    %cst_137 = arith.constant 1.920000e+02 : f32
    %338 = vector.broadcast %cst_137 : f32 to vector<128x1xf32>
    %339 = arith.divf %337, %338 : vector<128x1xf32>
    %340 = vector.broadcast %332 : vector<128x1xf32> to vector<128x192xf32>
    %341 = arith.subf %328, %340 : vector<128x192xf32>
    %cst_138 = arith.constant 9.99999974E-6 : f32
    %342 = vector.broadcast %cst_138 : f32 to vector<128x1xf32>
    %343 = arith.addf %339, %342 : vector<128x1xf32>
    %344 = math.rsqrt %343 : vector<128x1xf32>
    %345 = vector.broadcast %344 : vector<128x1xf32> to vector<128x192xf32>
    %346 = arith.mulf %341, %345 : vector<128x192xf32>
    %347 = vector.broadcast %9 : vector<1x192xf32> to vector<128x192xf32>
    %348 = arith.mulf %346, %347 : vector<128x192xf32>
    %349 = vector.broadcast %10 : vector<1x192xf32> to vector<128x192xf32>
    %350 = arith.addf %348, %349 : vector<128x192xf32>
    %351 = arith.truncf %350 : vector<128x192xf32> to vector<128x192xbf16>
    %c0_139 = arith.constant 0 : index
    %c0_140 = arith.constant 0 : index
    %c0_141 = arith.constant 0 : index
    %352 = vector.load %arg5[%c0_139, %c0_140, %c0_141] : memref<1x192x768xbf16, #tpu.memory_space<vmem>>, vector<1x192x768xbf16>
    %353 = vector.shape_cast %352 : vector<1x192x768xbf16> to vector<192x768xbf16>
    %cst_142 = arith.constant dense<0.000000e+00> : vector<128x768xf32>
    %354 = tpu.matmul %351, %353, %cst_142 {dimension_numbers = #tpu.dot_dimension_numbers<[1], [0], [0], [1], [0, 0, 1, 1], [], []>} : vector<128x192xbf16>, vector<192x768xbf16>, vector<128x768xf32> -> vector<128x768xf32>
    %c0_143 = arith.constant 0 : index
    %c0_144 = arith.constant 0 : index
    %c0_145 = arith.constant 0 : index
    %355 = vector.load %arg8[%c0_143, %c0_144, %c0_145] : memref<1x1x768xf32, #tpu.memory_space<vmem>>, vector<1x1x768xf32>
    %356 = vector.shape_cast %355 : vector<1x1x768xf32> to vector<1x768xf32>
    %357 = vector.broadcast %356 : vector<1x768xf32> to vector<128x768xf32>
    %358 = arith.addf %354, %357 : vector<128x768xf32>
    %cst_146 = arith.constant 0.000000e+00 : f32
    %359 = vector.broadcast %cst_146 : f32 to vector<128x768xf32>
    %360 = arith.maximumf %358, %359 : vector<128x768xf32>
    %361 = arith.truncf %360 : vector<128x768xf32> to vector<128x768xbf16>
    %c0_147 = arith.constant 0 : index
    %c0_148 = arith.constant 0 : index
    %c0_149 = arith.constant 0 : index
    %362 = vector.load %arg6[%c0_147, %c0_148, %c0_149] : memref<1x768x192xbf16, #tpu.memory_space<vmem>>, vector<1x768x192xbf16>
    %363 = vector.shape_cast %362 : vector<1x768x192xbf16> to vector<768x192xbf16>
    %cst_150 = arith.constant dense<0.000000e+00> : vector<128x192xf32>
    %364 = tpu.matmul %361, %363, %cst_150 {dimension_numbers = #tpu.dot_dimension_numbers<[1], [0], [0], [1], [0, 0, 1, 1], [], []>} : vector<128x768xbf16>, vector<768x192xbf16>, vector<128x192xf32> -> vector<128x192xf32>
    %365 = arith.addf %328, %364 : vector<128x192xf32>
    %366 = vector.broadcast %11 : vector<1x192xf32> to vector<128x192xf32>
    %367 = arith.addf %365, %366 : vector<128x192xf32>
    %c0_151 = arith.constant 0 : index
    %c0_152 = arith.constant 0 : index
    %368 = vector.load %arg13[%c0_151, %c0_152] : memref<128x192xf32, #tpu.memory_space<vmem>>, vector<128x192xf32>
    tpu.vector_store %arg13[%c0_151, %c0_152], %367 {strides = array<i32>} : memref<128x192xf32, #tpu.memory_space<vmem>>, vector<128x192xf32>,
    %c5_i32 = arith.constant 5 : i32
    %369 = arith.cmpi eq, %arg1, %c5_i32 : i32
    %370 = arith.extui %369 : i1 to i32
    %c0_i32_153 = arith.constant 0 : i32
    %371 = arith.cmpi ne, %370, %c0_i32_153 : i32
    scf.if %371 {
      %c0_154 = arith.constant 0 : index
      %c0_155 = arith.constant 0 : index
      %372 = vector.load %arg9[%c0_154, %c0_155] : memref<2x192xf32, #tpu.memory_space<vmem>>, vector<2x192xf32>
      %373 = vector.extract_strided_slice %372 {offsets = [0, 0], sizes = [1, 192], strides = [1, 1]} : vector<2x192xf32> to vector<1x192xf32>
      %374 = vector.extract_strided_slice %372 {offsets = [1, 0], sizes = [1, 192], strides = [1, 1]} : vector<2x192xf32> to vector<1x192xf32>
      %cst_156 = arith.constant dense<0.000000e+00> : vector<128xf32>
      %375 = vector.multi_reduction <add>, %367, %cst_156 [1] : vector<128x192xf32> to vector<128xf32>
      %376 = vector.shape_cast %375 : vector<128xf32> to vector<128x1xf32>
      %cst_157 = arith.constant 1.920000e+02 : f32
      %377 = vector.broadcast %cst_157 : f32 to vector<128x1xf32>
      %378 = arith.divf %376, %377 : vector<128x1xf32>
      %379 = vector.broadcast %378 : vector<128x1xf32> to vector<128x192xf32>
      %380 = arith.subf %367, %379 : vector<128x192xf32>
      %381 = arith.mulf %380, %380 : vector<128x192xf32>
      %cst_158 = arith.constant dense<0.000000e+00> : vector<128xf32>
      %382 = vector.multi_reduction <add>, %381, %cst_158 [1] : vector<128x192xf32> to vector<128xf32>
      %383 = vector.shape_cast %382 : vector<128xf32> to vector<128x1xf32>
      %cst_159 = arith.constant 1.920000e+02 : f32
      %384 = vector.broadcast %cst_159 : f32 to vector<128x1xf32>
      %385 = arith.divf %383, %384 : vector<128x1xf32>
      %386 = vector.broadcast %378 : vector<128x1xf32> to vector<128x192xf32>
      %387 = arith.subf %367, %386 : vector<128x192xf32>
      %cst_160 = arith.constant 9.99999974E-6 : f32
      %388 = vector.broadcast %cst_160 : f32 to vector<128x1xf32>
      %389 = arith.addf %385, %388 : vector<128x1xf32>
      %390 = math.rsqrt %389 : vector<128x1xf32>
      %391 = vector.broadcast %390 : vector<128x1xf32> to vector<128x192xf32>
      %392 = arith.mulf %387, %391 : vector<128x192xf32>
      %393 = vector.broadcast %373 : vector<1x192xf32> to vector<128x192xf32>
      %394 = arith.mulf %392, %393 : vector<128x192xf32>
      %395 = vector.broadcast %374 : vector<1x192xf32> to vector<128x192xf32>
      %396 = arith.addf %394, %395 : vector<128x192xf32>
      %397 = arith.truncf %396 : vector<128x192xf32> to vector<128x192xbf16>
      %c0_161 = arith.constant 0 : index
      %c0_162 = arith.constant 0 : index
      %398 = vector.load %arg10[%c0_161, %c0_162] : memref<192x512xbf16, #tpu.memory_space<vmem>>, vector<192x512xbf16>
      %cst_163 = arith.constant dense<0.000000e+00> : vector<128x512xf32>
      %399 = tpu.matmul %397, %398, %cst_163 {dimension_numbers = #tpu.dot_dimension_numbers<[1], [0], [0], [1], [0, 0, 1, 1], [], []>} : vector<128x192xbf16>, vector<192x512xbf16>, vector<128x512xf32> -> vector<128x512xf32>
      %c0_164 = arith.constant 0 : index
      %c0_165 = arith.constant 0 : index
      %400 = vector.load %arg11[%c0_164, %c0_165] : memref<1x512xf32, #tpu.memory_space<vmem>>, vector<1x512xf32>
      %401 = vector.broadcast %400 : vector<1x512xf32> to vector<128x512xf32>
      %402 = arith.addf %399, %401 : vector<128x512xf32>
      %c0_166 = arith.constant 0 : index
      %c0_167 = arith.constant 0 : index
      %c0_168 = arith.constant 0 : index
      %403 = vector.load %arg12[%c0_166, %c0_167, %c0_168] : memref<1x128x512xf32, #tpu.memory_space<vmem>>, vector<1x128x512xf32>
      %404 = vector.shape_cast %403 : vector<1x128x512xf32> to vector<128x512xf32>
      %405 = vector.shape_cast %402 : vector<128x512xf32> to vector<1x128x512xf32>
      tpu.vector_store %arg12[%c0_166, %c0_167, %c0_168], %405 {strides = array<i32>} : memref<1x128x512xf32, #tpu.memory_space<vmem>>, vector<1x128x512xf32>,
    } else {
    }
    return
  }
  func.func @transform_0(%arg0: i32, %arg1: i32) -> (i32, i32, i32) {
    %c0_i32 = arith.constant 0 : i32
    %c0_i32_0 = arith.constant 0 : i32
    %c0_i32_1 = arith.constant 0 : i32
    return %arg0, %c0_i32, %c0_i32_0 : i32, i32, i32
  }
  func.func @transform_1(%arg0: i32, %arg1: i32) -> (i32, i32, i32, i32) {
    %c0_i32 = arith.constant 0 : i32
    %c0_i32_0 = arith.constant 0 : i32
    %c0_i32_1 = arith.constant 0 : i32
    %c0_i32_2 = arith.constant 0 : i32
    return %arg1, %c0_i32, %c0_i32_0, %c0_i32_1 : i32, i32, i32, i32
  }
  func.func @transform_2(%arg0: i32, %arg1: i32) -> (i32, i32, i32, i32) {
    %c0_i32 = arith.constant 0 : i32
    %c0_i32_0 = arith.constant 0 : i32
    %c0_i32_1 = arith.constant 0 : i32
    %c0_i32_2 = arith.constant 0 : i32
    return %arg1, %c0_i32, %c0_i32_0, %c0_i32_1 : i32, i32, i32, i32
  }
  func.func @transform_3(%arg0: i32, %arg1: i32) -> (i32, i32, i32) {
    %c0_i32 = arith.constant 0 : i32
    %c0_i32_0 = arith.constant 0 : i32
    %c0_i32_1 = arith.constant 0 : i32
    return %arg1, %c0_i32, %c0_i32_0 : i32, i32, i32
  }
  func.func @transform_4(%arg0: i32, %arg1: i32) -> (i32, i32, i32) {
    %c0_i32 = arith.constant 0 : i32
    %c0_i32_0 = arith.constant 0 : i32
    %c0_i32_1 = arith.constant 0 : i32
    return %arg1, %c0_i32, %c0_i32_0 : i32, i32, i32
  }
  func.func @transform_5(%arg0: i32, %arg1: i32) -> (i32, i32, i32) {
    %c0_i32 = arith.constant 0 : i32
    %c0_i32_0 = arith.constant 0 : i32
    %c0_i32_1 = arith.constant 0 : i32
    return %arg1, %c0_i32, %c0_i32_0 : i32, i32, i32
  }
  func.func @transform_6(%arg0: i32, %arg1: i32) -> (i32, i32, i32) {
    %c0_i32 = arith.constant 0 : i32
    %c0_i32_0 = arith.constant 0 : i32
    %c0_i32_1 = arith.constant 0 : i32
    return %arg1, %c0_i32, %c0_i32_0 : i32, i32, i32
  }
  func.func @transform_7(%arg0: i32, %arg1: i32) -> (i32, i32) {
    %c0_i32 = arith.constant 0 : i32
    %c0_i32_0 = arith.constant 0 : i32
    %c0_i32_1 = arith.constant 0 : i32
    return %c0_i32, %c0_i32_0 : i32, i32
  }
  func.func @transform_8(%arg0: i32, %arg1: i32) -> (i32, i32) {
    %c0_i32 = arith.constant 0 : i32
    %c0_i32_0 = arith.constant 0 : i32
    %c0_i32_1 = arith.constant 0 : i32
    return %c0_i32, %c0_i32_0 : i32, i32
  }
  func.func @transform_9(%arg0: i32, %arg1: i32) -> (i32, i32) {
    %c0_i32 = arith.constant 0 : i32
    %c0_i32_0 = arith.constant 0 : i32
    %c0_i32_1 = arith.constant 0 : i32
    return %c0_i32, %c0_i32_0 : i32, i32
  }
  func.func @transform_10(%arg0: i32, %arg1: i32) -> (i32, i32, i32) {
    %c0_i32 = arith.constant 0 : i32
    %c0_i32_0 = arith.constant 0 : i32
    %c0_i32_1 = arith.constant 0 : i32
    return %arg0, %c0_i32, %c0_i32_0 : i32, i32, i32
  }
}

</mosaic_0001>

<bundles_post_ra>
// kernel: _lambda_.1
= control target key start
LH: loop header
LB: loop body
LE: loop exit
PB: predicated region body
PF: predicated region fallthrough
CT: control target
= control target key end

     0   :  { %s16935_s0 = inlined_call_operand.vmem [shape: f32[1,128,192], index: 0, kind: input, shape index: {}]   ;;  %s16936_s1 = inlined_call_operand.vmem [shape: bf16[6,6,192,32], index: 1, kind: input, shape index: {}]   ;;  %s16937_s2 = inlined_call_operand.vmem [shape: bf16[6,6,32,192], index: 2, kind: input, shape index: {}]   ;;  %s16938_s3 = inlined_call_operand.vmem [shape: bf16[6,192,768], index: 3, kind: input, shape index: {}]   ;;  %s16939_s4 = inlined_call_operand.vmem [shape: bf16[6,768,192], index: 4, kind: input, shape index: {}]   ;;  %s16940_s5 = inlined_call_operand.vmem [shape: f32[6,8,192], index: 5, kind: input, shape index: {}]   ;;  %s16941_s6 = inlined_call_operand.vmem [shape: f32[6,1,768], index: 6, kind: input, shape index: {}]   ;;  %s16942_s7 = inlined_call_operand.vmem [shape: f32[2,192], index: 7, kind: input, shape index: {}]   ;;  %s16943_s8 = inlined_call_operand.vmem [shape: bf16[192,512], index: 8, kind: input, shape index: {}]   ;;  %s16944_s9 = inlined_call_operand.vmem [shape: f32[1,512], index: 9, kind: input, shape index: {}]   ;;  %s16945_s10 = inlined_call_operand.hbm [shape: f32[1,128,512], index: 10, kind: output, shape index: {}]  }
   0x1   :  { %16993 = sst [smem:[#allocation67_spill]] %s16936_s1 }
   0x2   :  { %15 = vsyncpa [#allocation4], 0  ;;  %s12777_s13 = smov 0   ;;  %s12779_s14 = smov 0  }
   0x3   :  { %s12781_s15 = smov 0  }
   0x4 LB: > { %16994 = sst [smem:[#allocation6_spill]] %s12711_s14  ;;  %s30_s17 = sadd.s32 1, %s12711_s14  ;;  %s12715_s15 = sphi %s12781_s15, %s21_s15   ;;  %s12711_s14 = sphi %s12779_s14, %s17289_s14   ;;  %s12707_s13 = sphi %s12777_s13, %s17288_s13  }
   0x5   : > { %p31_p0 = scmp.ge.s32.totalorder %s30_s17, 6  ;;  %p10343_p1 = scmp.ge.s32.totalorder %s12715_s15, 1 }
   0x6   : > { %p384_p2 = scmp.lt.s32.totalorder %s12715_s15, 7 }
   0x7   : > { %s17291_s17 = smov (%p31_p0, %s30_s17), 0 }
   0x8   : > { %16995 = sst [smem:[#allocation7_spill]] %s17291_s17  ;;  %p385_p3 = pnand %p10343_p1, %p384_p2 }
   0xa   : > { %388 = sbr.rel (%p385_p3) target bundleno = 11343 (0x2c4f), region = 60 }
   0xf   : > { %p451_p4 = scmp.lt.s32.totalorder %s12707_s13, 5  ;;  %s16996_s1 = sld [smem:[#allocation67_spill]] }
  0x10   : > { %p10350_p5 = scmp.ne.s32.totalorder %s12707_s13, 0 }
  0x11   : > { %s452_s18 = scalar_select %p451_p4, %s12707_s13, 5 }
  0x13   : > { %s11673_s19 = smul.u32 576, %s452_s18  ;;  %s11040_s20 = sshll.u32 %s452_s18, 4 }
  0x14   : > { %s11674_s21 = smul.u32 192, %s452_s18  ;;  %s12803_s24 = scalar_lea.vmem %s16940_s5, %s11040_s20 }
  0x15   : > { %s12808_s27 = scalar_lea.vmem %s16996_s1, %s11673_s19  ;;  %s12813_s30 = scalar_lea.vmem %s16938_s3, %s11673_s19 }
  0x16   : > { %s12818_s16 = scalar_lea.vmem %s16937_s2, %s11674_s21  ;;  %s11675_s17 = smul.u32 768, %s452_s18 }
  0x17   : > { %s11676_s14 = smul.u32 6, %s452_s18 }
  0x18   : > { %s12823_s23 = scalar_lea.vmem %s16939_s4, %s11675_s17  ;;  %484 = sbr.rel (%p10350_p5) target bundleno = 46 (0x2e), region = 64 }
  0x19   : > { %s12828_s1 = scalar_lea.vmem %s16941_s6, %s11676_s14 }
  0x1d   : > { %v485_v0 = vld [vmem:[%s16935_s0] sm:$0xff]  ;;  %v486_v1 = vld [vmem:[%s16935_s0 + $0x8] sm:$0xff]  ;;  %vm518_vm0 = vcmask 523264   ;;  %v487_v2 = vld [vmem:[%s16935_s0 + $0x10] sm:$0xff] }
  0x1e   : > { %517 = vst [vmem:[#allocation2] sm:$0xff] %v485_v0  ;;  %519 = vst.msk [vmem:[#allocation2 + $0x8] sm:$0xff] %vm518_vm0, %v486_v1  ;;  %v488_v3 = vld [vmem:[%s16935_s0 + $0x18] sm:$0xff]  ;;  %v489_v4 = vld [vmem:[%s16935_s0 + $0x20] sm:$0xff] }
  0x1f   : > { %520 = vst [vmem:[#allocation2 + $0x10] sm:$0xff] %v487_v2  ;;  %v490_v5 = vld [vmem:[%s16935_s0 + $0x28] sm:$0xff]  ;;  %521 = vst.msk [vmem:[#allocation2 + $0x18] sm:$0xff] %vm518_vm0, %v488_v3  ;;  %v491_v6 = vld [vmem:[%s16935_s0 + $0x30] sm:$0xff] }
  0x20   : > { %522 = vst [vmem:[#allocation2 + $0x20] sm:$0xff] %v489_v4  ;;  %523 = vst.msk [vmem:[#allocation2 + $0x28] sm:$0xff] %vm518_vm0, %v490_v5  ;;  %v492_v7 = vld [vmem:[%s16935_s0 + $0x38] sm:$0xff]  ;;  %v493_v8 = vld [vmem:[%s16935_s0 + $0x40] sm:$0xff] }
  0x21   : > { %524 = vst [vmem:[#allocation2 + $0x30] sm:$0xff] %v491_v6  ;;  %525 = vst.msk [vmem:[#allocation2 + $0x38] sm:$0xff] %vm518_vm0, %v492_v7  ;;  %v494_v9 = vld [vmem:[%s16935_s0 + $0x48] sm:$0xff]  ;;  %v495_v10 = vld [vmem:[%s16935_s0 + $0x50] sm:$0xff] }
  0x22   : > { %526 = vst [vmem:[#allocation2 + $0x40] sm:$0xff] %v493_v8  ;;  %v496_v11 = vld [vmem:[%s16935_s0 + $0x58] sm:$0xff]  ;;  %527 = vst.msk [vmem:[#allocation2 + $0x48] sm:$0xff] %vm518_vm0, %v494_v9  ;;  %v497_v12 = vld [vmem:[%s16935_s0 + $0x60] sm:$0xff] }
  0x23   : > { %528 = vst [vmem:[#allocation2 + $0x50] sm:$0xff] %v495_v10  ;;  %529 = vst.msk [vmem:[#allocation2 + $0x58] sm:$0xff] %vm518_vm0, %v496_v11  ;;  %v498_v13 = vld [vmem:[%s16935_s0 + $0x68] sm:$0xff]  ;;  %v499_v14 = vld [vmem:[%s16935_s0 + $0x70] sm:$0xff] }
  0x24   : > { %530 = vst [vmem:[#allocation2 + $0x60] sm:$0xff] %v497_v12  ;;  %531 = vst.msk [vmem:[#allocation2 + $0x68] sm:$0xff] %vm518_vm0, %v498_v13  ;;  %v500_v15 = vld [vmem:[%s16935_s0 + $0x78] sm:$0xff]  ;;  %v501_v16 = vld [vmem:[%s16935_s0 + $0x80] sm:$0xff] }
  0x25   : > { %532 = vst [vmem:[#allocation2 + $0x70] sm:$0xff] %v499_v14  ;;  %v502_v17 = vld [vmem:[%s16935_s0 + $0x88] sm:$0xff]  ;;  %533 = vst.msk [vmem:[#allocation2 + $0x78] sm:$0xff] %vm518_vm0, %v500_v15  ;;  %v503_v18 = vld [vmem:[%s16935_s0 + $0x90] sm:$0xff] }
  0x26   : > { %534 = vst [vmem:[#allocation2 + $0x80] sm:$0xff] %v501_v16  ;;  %535 = vst.msk [vmem:[#allocation2 + $0x88] sm:$0xff] %vm518_vm0, %v502_v17  ;;  %v504_v19 = vld [vmem:[%s16935_s0 + $0x98] sm:$0xff]  ;;  %v505_v20 = vld [vmem:[%s16935_s0 + $0xa0] sm:$0xff] }
  0x27   : > { %536 = vst [vmem:[#allocation2 + $0x90] sm:$0xff] %v503_v18  ;;  %537 = vst.msk [vmem:[#allocation2 + $0x98] sm:$0xff] %vm518_vm0, %v504_v19  ;;  %v506_v21 = vld [vmem:[%s16935_s0 + $0xa8] sm:$0xff]  ;;  %v507_v22 = vld [vmem:[%s16935_s0 + $0xb0] sm:$0xff] }
  0x28   : > { %538 = vst [vmem:[#allocation2 + $0xa0] sm:$0xff] %v505_v20  ;;  %v508_v23 = vld [vmem:[%s16935_s0 + $0xb8] sm:$0xff]  ;;  %539 = vst.msk [vmem:[#allocation2 + $0xa8] sm:$0xff] %vm518_vm0, %v506_v21  ;;  %v509_v24 = vld [vmem:[%s16935_s0 + $0xc0] sm:$0xff] }
  0x29   : > { %540 = vst [vmem:[#allocation2 + $0xb0] sm:$0xff] %v507_v22  ;;  %541 = vst.msk [vmem:[#allocation2 + $0xb8] sm:$0xff] %vm518_vm0, %v508_v23  ;;  %v510_v25 = vld [vmem:[%s16935_s0 + $0xc8] sm:$0xff]  ;;  %v511_v26 = vld [vmem:[%s16935_s0 + $0xd0] sm:$0xff] }
  0x2a   : > { %542 = vst [vmem:[#allocation2 + $0xc0] sm:$0xff] %v509_v24  ;;  %543 = vst.msk [vmem:[#allocation2 + $0xc8] sm:$0xff] %vm518_vm0, %v510_v25  ;;  %v512_v27 = vld [vmem:[%s16935_s0 + $0xd8] sm:$0xff]  ;;  %v513_v28 = vld [vmem:[%s16935_s0 + $0xe0] sm:$0xff] }
  0x2b   : > { %544 = vst [vmem:[#allocation2 + $0xd0] sm:$0xff] %v511_v26  ;;  %v514_v29 = vld [vmem:[%s16935_s0 + $0xe8] sm:$0xff]  ;;  %545 = vst.msk [vmem:[#allocation2 + $0xd8] sm:$0xff] %vm518_vm0, %v512_v27  ;;  %v515_v30 = vld [vmem:[%s16935_s0 + $0xf0] sm:$0xff] }
  0x2c   : > { %546 = vst [vmem:[#allocation2 + $0xe0] sm:$0xff] %v513_v28  ;;  %547 = vst.msk [vmem:[#allocation2 + $0xe8] sm:$0xff] %vm518_vm0, %v514_v29  ;;  %v516_v31 = vld [vmem:[%s16935_s0 + $0xf8] sm:$0xff] }
  0x2d   : > { %548 = vst [vmem:[#allocation2 + $0xf0] sm:$0xff] %v515_v30  ;;  %549 = vst.msk [vmem:[#allocation2 + $0xf8] sm:$0xff] %vm518_vm0, %v516_v31 }
  0x2e PF: > { %v550_v32 = vld [vmem:[#allocation2] sm:$0xff]  ;;  %v551_v33 = vld [vmem:[#allocation2 + $0x8] sm:$0xff]  ;;  %vm611_vm1 = vcmask 523264   ;;  %v12944_v37 = vld [vmem:[#allocation2 + $0x10] sm:$0xff]  ;;  %v16947_v1 = vmov 0   ;;  %vm1222_vm2 = vcmask 261120  }
  0x2f   : > { %v554_v34 = vld [vmem:[#allocation2 + $0x20] sm:$0xff]  ;;  %v612_v35 = vsel %vm611_vm1, %v551_v33, 0.0  ;;  %v555_v36 = vld [vmem:[#allocation2 + $0x28] sm:$0xff]  ;;  %v12946_v38 = vld [vmem:[#allocation2 + $0x18] sm:$0xff]  ;;  %1117 = vmatprep.subr.bf16.mxu0 %v16947_v1  ;;  %p10971_p6 = scmp.ne.s32.totalorder %s12707_s13, 5 }
  0x30   : > { %v613_v39 = vadd.f32 %v612_v35, %v550_v32  ;;  %v620_v40 = vsel %vm611_vm1, %v555_v36, 0.0  ;;  %v616_v41 = vsel %vm611_vm1, %v12946_v38, 0.0  ;;  %v12951_v42 = vld [vmem:[#allocation2 + $0x30] sm:$0xff]  ;;  %v12953_v43 = vld [vmem:[#allocation2 + $0x38] sm:$0xff]  ;;  %v12957_v46 = vld [vmem:[#allocation2 + $0x48] sm:$0xff] }
  0x31   : > { %v621_v44 = vadd.f32 %v620_v40, %v554_v34  ;;  %v624_v45 = vsel %vm611_vm1, %v12953_v43, 0.0  ;;  %v12959_v47 = vld [vmem:[#allocation2 + $0x58] sm:$0xff]  ;;  %v617_v48 = vadd.f32 %v616_v41, %v12944_v37  ;;  %v12962_v49 = vld [vmem:[#allocation2 + $0x40] sm:$0xff]  ;;  %v628_v50 = vsel %vm611_vm1, %v12957_v46, 0.0  ;;  %v12966_v51 = vld [vmem:[#allocation2 + $0x50] sm:$0xff] }
  0x32   : > { %614 = vadd.xlane.f32.xlu0 %v613_v39  ;;  %v632_v52 = vsel %vm611_vm1, %v12959_v47, 0.0  ;;  %v12970_v53 = vld [vmem:[#allocation2 + $0x68] sm:$0xff]  ;;  %v625_v54 = vadd.f32 %v624_v45, %v12951_v42  ;;  %v12975_v56 = vld [vmem:[#allocation2 + $0x78] sm:$0xff]  ;;  %v12979_v58 = vld [vmem:[#allocation2 + $0x60] sm:$0xff]  ;;  %v629_v59 = vadd.f32 %v628_v50, %v12962_v49 }
  0x33   : > { %622 = vadd.xlane.f32.xlu1 %v621_v44  ;;  %v636_v55 = vsel %vm611_vm1, %v12970_v53, 0.0  ;;  %v640_v57 = vsel %vm611_vm1, %v12975_v56, 0.0  ;;  %v12982_v60 = vld [vmem:[#allocation2 + $0x70] sm:$0xff]  ;;  %v633_v61 = vadd.f32 %v632_v52, %v12966_v51  ;;  %v11712_v0 = vld [vmem:[%s12808_s27 + $0x38] sm:$0xff]   ;;  %v11714_v3 = vld [vmem:[%s12808_s27 + $0x28] sm:$0xff]  }
  0x34   : > { %v637_v62 = vadd.f32 %v636_v55, %v12979_v58  ;;  %v641_v63 = vadd.f32 %v640_v57, %v12982_v60  ;;  %1118 = vmatpush1.bf16.msra.mxu0 %v11712_v0  ;;  %v11713_v2 = vld [vmem:[%s12808_s27 + $0x30] sm:$0xff]   ;;  %v11715_v4 = vld [vmem:[%s12808_s27 + $0x20] sm:$0xff]   ;;  %v13070_v0 = vld [vmem:[#allocation2 + $0x88] sm:$0xff] }
  0x35   : > { %1119 = vmatprep.subr.bf16.mxu0 %v16947_v1 }
  0x36   : > { %618 = vadd.xlane.f32.xlu0 %v617_v48 }
  0x37   : > { %626 = vadd.xlane.f32.xlu1 %v625_v54 }
  0x38   : > { %1120 = vmatpush1.bf16.msra.mxu0 %v11713_v2 }
  0x39   : > { %1121 = vmatprep.subr.bf16.mxu0 %v16947_v1 }
  0x3a   : > { %630 = vadd.xlane.f32.xlu0 %v629_v59 }
  0x3b   : > { %634 = vadd.xlane.f32.xlu1 %v633_v61 }
  0x3c   : > { %1122 = vmatpush1.bf16.msra.mxu0 %v11714_v3  ;;  %v11716_v3 = vld [vmem:[%s12808_s27 + $0x18] sm:$0xff]  }
  0x3d   : > { %1123 = vmatprep.subr.bf16.mxu0 %v16947_v1 }
  0x3e   : > { %638 = vadd.xlane.f32.xlu0 %v637_v62 }
  0x3f   : > { %642 = vadd.xlane.f32.xlu1 %v641_v63 }
  0x40   : > { %1124 = vmatpush1.bf16.msra.mxu0 %v11715_v4 }
  0x41   : > { %1125 = vmatprep.subr.bf16.mxu0 %v16947_v1 }
  0x44   : > { %1126 = vmatpush1.bf16.msra.mxu0 %v11716_v3 }
  0x45   : > { %1127 = vmatprep.subr.bf16.mxu0 %v16947_v1 }
  0xbb   : > { %v615_v5 = vpop.xlane.xlu0 %614 }
  0xbc   : > { %v677_v6 = vmul.f32 0.0052083335, %v615_v5  ;;  %v623_v7 = vpop.xlane.xlu1 %622  ;;  %v13082_v5 = vld [vmem:[#allocation2 + $0x80] sm:$0xff] }
  0xbd   : > { %v679_v8 = vmul.f32 0.0052083335, %v623_v7 }
  0xbe   : > { %v12996_v9 = vsub.f32 %v550_v32, %v677_v6  ;;  %v12998_v10 = vsub.f32 %v551_v33, %v677_v6  ;;  %v644_v6 = vsel %vm611_vm1, %v13070_v0, 0.0 }
  0xbf   : > { %v13000_v11 = vsub.f32 %v554_v34, %v679_v8  ;;  %v13002_v12 = vsub.f32 %v555_v36, %v679_v8  ;;  %v619_v13 = vpop.xlane.xlu0 %618 }
  0xc0   : > { %v678_v14 = vmul.f32 0.0052083335, %v619_v13  ;;  %v627_v15 = vpop.xlane.xlu1 %626  ;;  %v725_v16 = vmul.f32 %v12996_v9, %v12996_v9  ;;  %v726_v17 = vmul.f32 %v12998_v10, %v12998_v10  ;;  %v13087_v13 = vld [vmem:[#allocation2 + $0x98] sm:$0xff] }
  0xc1   : > { %v680_v18 = vmul.f32 0.0052083335, %v627_v15  ;;  %v729_v19 = vmul.f32 %v13000_v11, %v13000_v11  ;;  %v730_v20 = vmul.f32 %v13002_v12, %v13002_v12 }
  0xc2   : > { %v13013_v21 = vsub.f32 %v12944_v37, %v678_v14  ;;  %v13016_v22 = vsub.f32 %v12946_v38, %v678_v14  ;;  %v757_v23 = vsel %vm611_vm1, %v726_v17, 0.0  ;;  %v13089_v14 = vld [vmem:[#allocation2 + $0xa8] sm:$0xff]  ;;  %v13093_v17 = vld [vmem:[#allocation2 + $0x90] sm:$0xff] }
  0xc3   : > { %v13020_v24 = vsub.f32 %v12951_v42, %v680_v18  ;;  %v13023_v25 = vsub.f32 %v12953_v43, %v680_v18  ;;  %v631_v26 = vpop.xlane.xlu0 %630  ;;  %v758_v27 = vadd.f32 %v757_v23, %v725_v16  ;;  %v765_v28 = vsel %vm611_vm1, %v730_v20, 0.0  ;;  %v11717_v23 = vld [vmem:[%s12808_s27 + $0x10] sm:$0xff]  }
  0xc4   : > { %v681_v29 = vmul.f32 0.0052083335, %v631_v26  ;;  %v635_v30 = vpop.xlane.xlu1 %634  ;;  %v727_v31 = vmul.f32 %v13013_v21, %v13013_v21  ;;  %v728_v32 = vmul.f32 %v13016_v22, %v13016_v22  ;;  %v766_v34 = vadd.f32 %v765_v28, %v729_v19  ;;  %v13097_v19 = vld [vmem:[#allocation2 + $0xa0] sm:$0xff]  ;;  %v13102_v26 = vld [vmem:[#allocation2 + $0xb8] sm:$0xff]  ;;  %1128 = vmatpush1.bf16.msra.mxu0 %v11717_v23 }
  0xc5   : > { %759 = vadd.xlane.f32.xlu0 %v758_v27  ;;  %v682_v33 = vmul.f32 0.0052083335, %v635_v30  ;;  %v731_v35 = vmul.f32 %v13020_v24, %v13020_v24  ;;  %v732_v36 = vmul.f32 %v13023_v25, %v13023_v25  ;;  %v645_v16 = vadd.f32 %v644_v6, %v13082_v5  ;;  %v13104_v27 = vld [vmem:[#allocation2 + $0xc8] sm:$0xff]  ;;  %v13108_v30 = vld [vmem:[#allocation2 + $0xb0] sm:$0xff]  ;;  %1129 = vmatprep.subr.bf16.mxu0 %v16947_v1 }
  0xc6   : > { %v13035_v37 = vsub.f32 %v12962_v49, %v681_v29  ;;  %v13038_v38 = vsub.f32 %v12957_v46, %v681_v29  ;;  %v761_v39 = vsel %vm611_vm1, %v728_v32, 0.0  ;;  %v648_v18 = vsel %vm611_vm1, %v13087_v13, 0.0  ;;  %v13112_v32 = vld [vmem:[#allocation2 + $0xc0] sm:$0xff] }
  0xc7   : > { %v13042_v40 = vsub.f32 %v12966_v51, %v682_v33  ;;  %v13045_v41 = vsub.f32 %v12959_v47, %v682_v33  ;;  %v639_v42 = vpop.xlane.xlu0 %638  ;;  %v762_v43 = vadd.f32 %v761_v39, %v727_v31  ;;  %v769_v44 = vsel %vm611_vm1, %v732_v36, 0.0  ;;  %v13120_v36 = vld [vmem:[#allocation2 + $0xe8] sm:$0xff] }
  0xc8   : > { %v683_v45 = vmul.f32 0.0052083335, %v639_v42  ;;  %v643_v48 = vpop.xlane.xlu1 %642  ;;  %v733_v49 = vmul.f32 %v13035_v37, %v13035_v37  ;;  %v734_v46 = vmul.f32 %v13038_v38, %v13038_v38  ;;  %v770_v51 = vadd.f32 %v769_v44, %v731_v35  ;;  %v13118_v35 = vld [vmem:[#allocation2 + $0xd8] sm:$0xff] }
  0xc9   : > { %767 = vadd.xlane.f32.xlu0 %v766_v34  ;;  %763 = vadd.xlane.f32.xlu1 %v762_v43  ;;  %v684_v50 = vmul.f32 0.0052083335, %v643_v48  ;;  %v735_v47 = vmul.f32 %v13042_v40, %v13042_v40  ;;  %v736_v52 = vmul.f32 %v13045_v41, %v13045_v41  ;;  %v652_v20 = vsel %vm611_vm1, %v13089_v14, 0.0  ;;  %v11718_v34 = vld [vmem:[%s12808_s27 + $0x8] sm:$0xff]   ;;  %v13124_v43 = vld [vmem:[#allocation2 + $0xd0] sm:$0xff] }
  0xca   : > { %v13057_v54 = vsub.f32 %v12979_v58, %v683_v45  ;;  %v13060_v55 = vsub.f32 %v12970_v53, %v683_v45  ;;  %v773_v57 = vsel %vm611_vm1, %v734_v46, 0.0  ;;  %v649_v28 = vadd.f32 %v648_v18, %v13093_v17  ;;  %1130 = vmatpush1.bf16.msra.mxu0 %v11718_v34  ;;  %v13128_v45 = vld [vmem:[#allocation2 + $0xe0] sm:$0xff]  ;;  %v13134_v46 = vld [vmem:[#allocation2 + $0xf8] sm:$0xff] }
  0xcb   : > { %v13064_v59 = vsub.f32 %v12982_v60, %v684_v50  ;;  %v13067_v61 = vsub.f32 %v12975_v56, %v684_v50  ;;  %v774_v62 = vadd.f32 %v773_v57, %v733_v49  ;;  %v777_v63 = vsel %vm611_vm1, %v736_v52, 0.0  ;;  %1131 = vmatprep.subr.bf16.mxu0 %v16947_v1  ;;  %v11719_v49 = vld [vmem:[%s12808_s27] sm:$0xff]   ;;  %v11720_v57 = vld [vmem:[%s12808_s27 + $0x58] sm:$0xff]  }
  0xcc   : > { %v737_v58 = vmul.f32 %v13057_v54, %v13057_v54  ;;  %v738_v53 = vmul.f32 %v13060_v55, %v13060_v55  ;;  %v778_v2 = vadd.f32 %v777_v63, %v735_v47  ;;  %v653_v29 = vadd.f32 %v652_v20, %v13097_v19  ;;  %v13138_v47 = vld [vmem:[#allocation2 + $0xf0] sm:$0xff] }
  0xcd   : > { %771 = vadd.xlane.f32.xlu1 %v770_v51  ;;  %775 = vadd.xlane.f32.xlu0 %v774_v62  ;;  %v739_v60 = vmul.f32 %v13064_v59, %v13064_v59  ;;  %v740_v56 = vmul.f32 %v13067_v61, %v13067_v61  ;;  %v656_v31 = vsel %vm611_vm1, %v13102_v26, 0.0  ;;  %v660_v33 = vsel %vm611_vm1, %v13104_v27, 0.0  ;;  %v11721_v63 = vld [vmem:[%s12808_s27 + $0x50] sm:$0xff]  }
  0xce   : > { %v781_v4 = vsel %vm611_vm1, %v738_v53, 0.0  ;;  %v657_v39 = vadd.f32 %v656_v31, %v13108_v30  ;;  %v661_v42 = vadd.f32 %v660_v33, %v13112_v32  ;;  %v664_v44 = vsel %vm611_vm1, %v13118_v35, 0.0  ;;  %1132 = vmatpush1.bf16.msra.mxu0 %v11719_v49  ;;  %v11723_v53 = vld [vmem:[%s12808_s27 + $0x40] sm:$0xff]  }
  0xcf   : > { %v782_v7 = vadd.f32 %v781_v4, %v737_v58  ;;  %v785_v8 = vsel %vm611_vm1, %v740_v56, 0.0  ;;  %v668_v48 = vsel %vm611_vm1, %v13120_v36, 0.0  ;;  %v665_v50 = vadd.f32 %v664_v44, %v13124_v43  ;;  %1141 = vmatprep.subr.bf16.mxu0 %v16947_v1  ;;  %v11722_v58 = vld [vmem:[%s12808_s27 + $0x48] sm:$0xff]  }
  0xd0   : > { %v786_v15 = vadd.f32 %v785_v8, %v739_v60  ;;  %v669_v51 = vadd.f32 %v668_v48, %v13128_v45  ;;  %v672_v52 = vsel %vm611_vm1, %v13134_v46, 0.0  ;;  %v584_v20 = vlaneseq }
  0xd1   : > { %779 = vadd.xlane.f32.xlu1 %v778_v2  ;;  %783 = vadd.xlane.f32.xlu0 %v782_v7  ;;  %v673_v62 = vadd.f32 %v672_v52, %v13138_v47 }
  0xd2   : > { %1142 = vmatpush2.bf16.msra.mxu0 %v11720_v57 }
  0xd3   : > { %1143 = vmatprep.subr.bf16.mxu0 %v16947_v1 }
  0xd5   : > { %787 = vadd.xlane.f32.xlu1 %v786_v15  ;;  %646 = vadd.xlane.f32.xlu0 %v645_v16 }
  0xd6   : > { %1144 = vmatpush2.bf16.msra.mxu0 %v11721_v63 }
  0xd7   : > { %1145 = vmatprep.subr.bf16.mxu0 %v16947_v1 }
  0xd9   : > { %650 = vadd.xlane.f32.xlu1 %v649_v28  ;;  %654 = vadd.xlane.f32.xlu0 %v653_v29 }
  0xda   : > { %1146 = vmatpush2.bf16.msra.mxu0 %v11722_v58  ;;  %v583_v58 = vld [vmem:[%s12803_s24 + $0x8] sm:$0xff] }
  0xdb   : > { %1147 = vmatprep.subr.bf16.mxu0 %v16947_v1 }
  0xdd   : > { %658 = vadd.xlane.f32.xlu1 %v657_v39  ;;  %662 = vadd.xlane.f32.xlu0 %v661_v42  ;;  %v13153_v39 = vshrl.u32 %v584_v20, 7 }
  0xde   : > { %1148 = vmatpush2.bf16.msra.mxu0 %v11723_v53  ;;  %v582_v53 = vld [vmem:[%s12803_s24] sm:$0xff] }
  0xdf   : > { %1856 = vmatprep.subr.bf16.mxu0 %v16947_v1  ;;  %16997 = vst [vmem:[#allocation8_spill] sm:$0xff] %v13153_v39  ;;  %v13156_v52 = vsub.s32 0, %v13153_v39 }
  0xe1   : > { %666 = vadd.xlane.f32.xlu1 %v665_v50  ;;  %670 = vadd.xlane.f32.xlu0 %v669_v51  ;;  %16998 = vst [vmem:[#allocation9_spill] sm:$0xff] %v13156_v52 }
  0xe5   : > { %674 = vadd.xlane.f32.xlu1 %v673_v62 }
 0x14e   : > { %v760_v2 = vpop.xlane.xlu0 %759 }
 0x14f   : > { %v821_v60 = vmul.f32 0.0052083335, %v760_v2 }
 0x151   : > { %v837_v56 = vadd.f32 1e-05, %v821_v60 }
 0x152   : > { %v764_v3 = vpop.xlane.xlu1 %763  ;;  %v768_v4 = vpop.xlane.xlu0 %767 }
 0x153   : > { %12072 = vrsqrt.f32 %v837_v56  ;;  %v822_v6 = vmul.f32 0.0052083335, %v764_v3  ;;  %v823_v7 = vmul.f32 0.0052083335, %v768_v4 }
 0x155   : > { %v838_v8 = vadd.f32 1e-05, %v822_v6  ;;  %v839_v15 = vadd.f32 1e-05, %v823_v7  ;;  %v13167_v6 = vsub.s32 1, %v13153_v39  ;;  %v13170_v7 = vrot.slane %v583_v58, %v13156_v52 }
 0x156   : > { %v772_v16 = vpop.xlane.xlu1 %771  ;;  %v776_v18 = vpop.xlane.xlu0 %775 }
 0x157   : > { %12074 = vrsqrt.f32 %v838_v8  ;;  %v824_v23 = vmul.f32 0.0052083335, %v772_v16  ;;  %v825_v28 = vmul.f32 0.0052083335, %v776_v18  ;;  %16999 = vst [vmem:[#allocation10_spill] sm:$0xff] %v13167_v6  ;;  %v13174_v18 = vrot.slane %v582_v53, %v13156_v52 }
 0x158   : > { %12076 = vrsqrt.f32 %v839_v15 }
 0x159   : > { %v840_v29 = vadd.f32 1e-05, %v824_v23  ;;  %v841_v31 = vadd.f32 1e-05, %v825_v28 }
 0x15a   : > { %v780_v33 = vpop.xlane.xlu1 %779  ;;  %v784_v34 = vpop.xlane.xlu0 %783 }
 0x15b   : > { %12078 = vrsqrt.f32 %v840_v29  ;;  %v826_v42 = vmul.f32 0.0052083335, %v780_v33  ;;  %v827_v44 = vmul.f32 0.0052083335, %v784_v34 }
 0x15c   : > { %12080 = vrsqrt.f32 %v841_v31 }
 0x15d   : > { %v842_v48 = vadd.f32 1e-05, %v826_v42  ;;  %v843_v49 = vadd.f32 1e-05, %v827_v44  ;;  %v13191_v44 = vrot.slane %v583_v58, %v13167_v6 }
 0x15e   : > { %v788_v50 = vpop.xlane.xlu1 %787  ;;  %v647_v51 = vpop.xlane.xlu0 %646 }
 0x15f   : > { %12082 = vrsqrt.f32 %v842_v48  ;;  %v828_v57 = vmul.f32 0.0052083335, %v788_v50  ;;  %v685_v62 = vmul.f32 0.0052083335, %v647_v51 }
 0x160   : > { %v12073_v63 = vpop.eup %12072  ;;  %12084 = vrsqrt.f32 %v843_v49 }
 0x161   : > { %v844_v2 = vadd.f32 1e-05, %v828_v57  ;;  %v13161_v56 = vsub.f32 %v13082_v5, %v685_v62  ;;  %v13164_v3 = vsub.f32 %v13070_v0, %v685_v62  ;;  %v870_v8 = vmul.f32 %v12073_v63, %v12998_v10 }
 0x162   : > { %v651_v60 = vpop.xlane.xlu1 %650  ;;  %v655_v4 = vpop.xlane.xlu0 %654  ;;  %v869_v5 = vmul.f32 %v12073_v63, %v12996_v9 }
 0x163   : > { %12086 = vrsqrt.f32 %v844_v2  ;;  %v686_v15 = vmul.f32 0.0052083335, %v651_v60  ;;  %v687_v23 = vmul.f32 0.0052083335, %v655_v4  ;;  %v742_v0 = vmul.f32 %v13164_v3, %v13164_v3 }
 0x164   : > { %v12075_v16 = vpop.eup %12074  ;;  %v741_v9 = vmul.f32 %v13161_v56, %v13161_v56  ;;  %v910_v48 = vmul.f32 %v13170_v7, %v870_v8  ;;  %v909_v62 = vmul.f32 %v13174_v18, %v869_v5 }
 0x165   : > { %v12077_v28 = vpop.eup %12076  ;;  %v871_v29 = vmul.f32 %v12075_v16, %v13013_v21  ;;  %v872_v31 = vmul.f32 %v12075_v16, %v13016_v22  ;;  %v13182_v33 = vsub.f32 %v13093_v17, %v686_v15  ;;  %v13185_v10 = vsub.f32 %v13087_v13, %v686_v15 }
 0x166   : > { %v874_v34 = vmul.f32 %v12077_v28, %v13002_v12  ;;  %v659_v42 = vpop.xlane.xlu1 %658  ;;  %v873_v21 = vmul.f32 %v12077_v28, %v13000_v11  ;;  %v13198_v17 = vrot.slane %v582_v53, %v13167_v6  ;;  %v789_v51 = vsel %vm611_vm1, %v742_v0, 0.0 }
 0x167   : > { %v743_v22 = vmul.f32 %v13182_v33, %v13182_v33  ;;  %v912_v12 = vmul.f32 %v13170_v7, %v872_v31  ;;  %v688_v49 = vmul.f32 0.0052083335, %v659_v42  ;;  %v744_v50 = vmul.f32 %v13185_v10, %v13185_v10  ;;  %v663_v42 = vpop.xlane.xlu0 %662 }
 0x168   : > { %v12079_v13 = vpop.eup %12078  ;;  %v911_v11 = vmul.f32 %v13174_v18, %v871_v29  ;;  %v13208_v58 = vsub.f32 %v13097_v19, %v687_v23  ;;  %v914_v53 = vmul.f32 %v13170_v7, %v874_v34  ;;  %v13212_v2 = vsub.f32 %v13089_v14, %v687_v23 }
 0x169   : > { %v12081_v57 = vpop.eup %12080  ;;  %v876_v63 = vmul.f32 %v12079_v13, %v13023_v25  ;;  %v793_v60 = vsel %vm611_vm1, %v744_v50, 0.0  ;;  %v790_v4 = vadd.f32 %v789_v51, %v741_v9  ;;  %v913_v8 = vmul.f32 %v13174_v18, %v873_v21 }
 0x16a   : > { %v875_v15 = vmul.f32 %v12079_v13, %v13020_v24  ;;  %v794_v5 = vadd.f32 %v793_v60, %v743_v22  ;;  %v878_v25 = vmul.f32 %v12081_v57, %v13038_v38  ;;  %v13220_v19 = vsub.f32 %v13108_v30, %v688_v49  ;;  %v667_v28 = vpop.xlane.xlu1 %666 }
 0x16b   : > { %v916_v16 = vmul.f32 %v13170_v7, %v876_v63  ;;  %791 = vadd.xlane.f32.xlu0 %v790_v4  ;;  %v950_v14 = vadd.f32 %v13191_v44, %v910_v48  ;;  %v952_v23 = vadd.f32 %v13191_v44, %v912_v12  ;;  %v949_v34 = vadd.f32 %v13198_v17, %v909_v62 }
 0x16c   : > { %v12083_v0 = vpop.eup %12082  ;;  %795 = vadd.xlane.f32.xlu1 %v794_v5  ;;  %v951_v38 = vadd.f32 %v13198_v17, %v911_v11  ;;  %v13231_v30 = vsub.f32 %v13102_v26, %v688_v49  ;;  %v954_v48 = vadd.f32 %v13191_v44, %v914_v53  ;;  %v915_v22 = vmul.f32 %v13174_v18, %v875_v15 }
 0x16d   : > { %v13224_v29 = vpop.eup %12084  ;;  %v879_v31 = vmul.f32 %v12083_v0, %v13042_v40  ;;  %v880_v24 = vmul.f32 %v12083_v0, %v13045_v41  ;;  %v13233_v9 = vpack.c.bf16 %v952_v23, %v950_v14  ;;  %v956_v21 = vadd.f32 %v13191_v44, %v916_v16 }
 0x16e   : > { %v877_v40 = vmul.f32 %v12081_v57, %v13035_v37  ;;  %v13239_v41 = vpack.c.bf16 %v951_v38, %v949_v34  ;;  %v690_v13 = vmul.f32 0.0052083335, %v667_v28  ;;  %v918_v50 = vmul.f32 %v13170_v7, %v878_v25  ;;  %v675_v60 = vpop.xlane.xlu1 %674 }
 0x16f   : > { %v882_v26 = vmul.f32 %v13224_v29, %v13060_v55  ;;  %10363 = vmatprep.mubr.msk.bf16.mxu0 %vm611_vm1, %v13233_v9  ;;  %v13246_v49 = vpack.c.bf16 %v956_v21, %v954_v48  ;;  %v689_v51 = vmul.f32 0.0052083335, %v663_v42  ;;  %v919_v62 = vmul.f32 %v13174_v18, %v879_v31 }
 0x170   : > { %v12087_v12 = vpop.eup %12086  ;;  %v920_v11 = vmul.f32 %v13170_v7, %v880_v24  ;;  %1150 = vmatmul.mubr.bf16.vlgmr.msra.gmra.mxu0 %v13239_v41  ;;  %v13253_v57 = vsub.f32 %v13124_v43, %v690_v13  ;;  %v13258_v55 = vsub.f32 %v13118_v35, %v690_v13  ;;  %v747_v53 = vmul.f32 %v13220_v19, %v13220_v19 }
 0x171   : > { %v884_v37 = vmul.f32 %v12087_v12, %v13067_v61  ;;  %10364 = vmatprep.mubr.msk.bf16.mxu0 %vm611_vm1, %v13246_v49  ;;  %v13261_v63 = vsub.f32 %v13112_v32, %v689_v51  ;;  %v748_v61 = vmul.f32 %v13231_v30, %v13231_v30  ;;  %v13269_v43 = vsub.f32 %v13104_v27, %v689_v51  ;;  %v671_v32 = vpop.xlane.xlu0 %670 }
 0x172   : > { %v745_v15 = vmul.f32 %v13208_v58, %v13208_v58  ;;  %v746_v35 = vmul.f32 %v13212_v2, %v13212_v2  ;;  %v953_v5 = vadd.f32 %v13198_v17, %v913_v8  ;;  %v955_v0 = vadd.f32 %v13198_v17, %v915_v22 }
 0x173   : > { %v924_v4 = vmul.f32 %v13170_v7, %v884_v37  ;;  %v801_v16 = vsel %vm611_vm1, %v748_v61, 0.0  ;;  %v958_v25 = vadd.f32 %v13191_v44, %v918_v50  ;;  %v960_v27 = vadd.f32 %v13191_v44, %v920_v11 }
 0x174   : > { %v802_v14 = vadd.f32 %v801_v16, %v747_v53  ;;  %v797_v23 = vsel %vm611_vm1, %v746_v35, 0.0  ;;  %v692_v28 = vmul.f32 0.0052083335, %v675_v60  ;;  %v13281_v24 = vpack.c.bf16 %v955_v0, %v953_v5 }
 0x175   : > { %v798_v31 = vadd.f32 %v797_v23, %v745_v15  ;;  %v691_v34 = vmul.f32 0.0052083335, %v671_v32  ;;  %v751_v38 = vmul.f32 %v13253_v57, %v13253_v57  ;;  %v13285_v42 = vpack.c.bf16 %v960_v27, %v958_v25 }
 0x176   : > { %803 = vadd.xlane.f32.xlu1 %v802_v14  ;;  %v13288_v8 = vsub.f32 %v13138_v47, %v692_v28  ;;  %v13291_v48 = vsub.f32 %v13134_v46, %v692_v28  ;;  %v752_v21 = vmul.f32 %v13258_v55, %v13258_v55  ;;  %v749_v50 = vmul.f32 %v13261_v63, %v13261_v63  ;;  %v11724_v28 = vld [vmem:[%s12808_s27 + $0x98] sm:$0xff]  }
 0x177   : > { %799 = vadd.xlane.f32.xlu0 %v798_v31  ;;  %v13296_v22 = vsub.f32 %v13128_v45, %v691_v34  ;;  %v13299_v13 = vsub.f32 %v13120_v36, %v691_v34  ;;  %v750_v47 = vmul.f32 %v13269_v43, %v13269_v43  ;;  %v917_v51 = vmul.f32 %v13174_v18, %v877_v40  ;;  %v11725_v31 = vld [vmem:[%s12808_s27 + $0x90] sm:$0xff]   ;;  %v11726_v34 = vld [vmem:[%s12808_s27 + $0x88] sm:$0xff]  }
 0x178   : > { %v922_v46 = vmul.f32 %v13170_v7, %v882_v26  ;;  %1158 = vmatmul.mubr.bf16.gmra.mxu0 %v13281_v24  ;;  %v809_v11 = vsel %vm611_vm1, %v752_v21, 0.0  ;;  %v883_v45 = vmul.f32 %v12087_v12, %v13064_v59  ;;  %v755_v53 = vmul.f32 %v13288_v8, %v13288_v8  ;;  %v11728_v21 = vld [vmem:[%s12808_s27 + $0x78] sm:$0xff]  }
 0x179   : > { %10365 = vmatprep.mubr.msk.bf16.mxu0 %vm611_vm1, %v13285_v42  ;;  %v810_v36 = vadd.f32 %v809_v11, %v751_v38  ;;  %v805_v37 = vsel %vm611_vm1, %v750_v47, 0.0  ;;  %v959_v40 = vadd.f32 %v13198_v17, %v919_v62  ;;  %v756_v26 = vmul.f32 %v13291_v48, %v13291_v48  ;;  %1857 = vmatpush1.bf16.msra.mxu0 %v11724_v28  ;;  %v11727_v38 = vld [vmem:[%s12808_s27 + $0x80] sm:$0xff]   ;;  %v11730_v47 = vld [vmem:[%s12808_s27 + $0x68] sm:$0xff]   ;;  %v11733_v11 = vld [vmem:[%s12808_s27 + $0xb0] sm:$0xff]  }
 0x17a   : > { %v806_v61 = vadd.f32 %v805_v37, %v749_v50  ;;  %v753_v60 = vmul.f32 %v13296_v22, %v13296_v22  ;;  %v964_v59 = vadd.f32 %v13191_v44, %v924_v4  ;;  %v754_v12 = vmul.f32 %v13299_v13, %v13299_v13  ;;  %1858 = vmatprep.subr.bf16.mxu0 %v16947_v1  ;;  %v11729_v50 = vld [vmem:[%s12808_s27 + $0x70] sm:$0xff]  }
 0x17b   : > { %811 = vadd.xlane.f32.xlu1 %v810_v36  ;;  %v881_v15 = vmul.f32 %v13224_v29, %v13057_v54  ;;  %v957_v35 = vadd.f32 %v13198_v17, %v917_v51  ;;  %v817_v62 = vsel %vm611_vm1, %v756_v26, 0.0  ;;  %v962_v32 = vadd.f32 %v13191_v44, %v922_v46  ;;  %v11731_v51 = vld [vmem:[%s12808_s27 + $0x60] sm:$0xff]   ;;  %v11732_v46 = vld [vmem:[%s12808_s27 + $0xb8] sm:$0xff]  }
 0x17c   : > { %807 = vadd.xlane.f32.xlu0 %v806_v61  ;;  %v818_v16 = vadd.f32 %v817_v62, %v755_v53  ;;  %v813_v5 = vsel %vm611_vm1, %v754_v12, 0.0  ;;  %v923_v0 = vmul.f32 %v13174_v18, %v883_v45  ;;  %v11734_v45 = vld [vmem:[%s12808_s27 + $0xa8] sm:$0xff]   ;;  %v11735_v36 = vld [vmem:[%s12808_s27 + $0xa0] sm:$0xff]  }
 0x17d   : > { %v13330_v4 = vpack.c.bf16 %v959_v40, %v957_v35  ;;  %v814_v25 = vadd.f32 %v813_v5, %v753_v60  ;;  %v13332_v14 = vpack.c.bf16 %v964_v59, %v962_v32  ;;  %v921_v54 = vmul.f32 %v13174_v18, %v881_v15  ;;  %1859 = vmatpush1.bf16.msra.mxu0 %v11725_v31 }
 0x17e   : > { %v963_v29 = vadd.f32 %v13198_v17, %v923_v0  ;;  %1860 = vmatprep.subr.bf16.mxu0 %v16947_v1 }
 0x17f   : > { %819 = vadd.xlane.f32.xlu1 %v818_v16  ;;  %v961_v23 = vadd.f32 %v13198_v17, %v921_v54 }
 0x180   : > { %1166 = vmatmul.mubr.bf16.gmra.mxu0 %v13330_v4  ;;  %815 = vadd.xlane.f32.xlu0 %v814_v25 }
 0x181   : > { %10366 = vmatprep.mubr.msk.bf16.mxu0 %vm611_vm1, %v13332_v14  ;;  %v13340_v27 = vpack.c.bf16 %v963_v29, %v961_v23  ;;  %1861 = vmatpush1.bf16.msra.mxu0 %v11726_v34 }
 0x182   : > { %1862 = vmatprep.subr.bf16.mxu0 %v16947_v1 }
 0x185   : > { %1863 = vmatpush1.bf16.msra.mxu0 %v11727_v38 }
 0x186   : > { %1864 = vmatprep.subr.bf16.mxu0 %v16947_v1 }
 0x188   : > { %1174 = vmatmul.mubr.bf16.gmra.mxu0 %v13340_v27 }
 0x189   : > { %1865 = vmatpush1.bf16.msra.mxu0 %v11728_v21 }
 0x18a   : > { %1866 = vmatprep.subr.bf16.mxu0 %v16947_v1 }
 0x18d   : > { %1867 = vmatpush1.bf16.msra.mxu0 %v11729_v50 }
 0x18e   : > { %1868 = vmatprep.subr.bf16.mxu0 %v16947_v1 }
 0x191   : > { %1869 = vmatpush1.bf16.msra.mxu0 %v11730_v47 }
 0x192   : > { %1870 = vmatprep.subr.bf16.mxu0 %v16947_v1 }
 0x195   : > { %1871 = vmatpush1.bf16.msra.mxu0 %v11731_v51 }
 0x196   : > { %1880 = vmatprep.subr.bf16.mxu0 %v16947_v1 }
 0x199   : > { %1881 = vmatpush2.bf16.msra.mxu0 %v11732_v46 }
 0x19a   : > { %1882 = vmatprep.subr.bf16.mxu0 %v16947_v1 }
 0x19d   : > { %1883 = vmatpush2.bf16.msra.mxu0 %v11733_v11 }
 0x19e   : > { %1884 = vmatprep.subr.bf16.mxu0 %v16947_v1 }
 0x1a1   : > { %1885 = vmatpush2.bf16.msra.mxu0 %v11734_v45 }
 0x1a2   : > { %1886 = vmatprep.subr.bf16.mxu0 %v16947_v1 }
 0x1a5   : > { %1887 = vmatpush2.bf16.msra.mxu0 %v11735_v36 }
 0x1f4   : > { %v792_v37 = vpop.xlane.xlu0 %791 }
 0x1f5   : > { %v796_v53 = vpop.xlane.xlu1 %795  ;;  %v829_v61 = vmul.f32 0.0052083335, %v792_v37 }
 0x1f6   : > { %v830_v40 = vmul.f32 0.0052083335, %v796_v53 }
 0x1f7   : > { %v845_v26 = vadd.f32 1e-05, %v829_v61 }
 0x1f8   : > { %v846_v60 = vadd.f32 1e-05, %v830_v40 }
 0x1f9   : > { %12088 = vrsqrt.f32 %v845_v26 }
 0x1fa   : > { %12090 = vrsqrt.f32 %v846_v60 }
 0x1ff   : > { %v804_v59 = vpop.xlane.xlu1 %803 }
 0x200   : > { %v832_v12 = vmul.f32 0.0052083335, %v804_v59  ;;  %v800_v15 = vpop.xlane.xlu0 %799 }
 0x201   : > { %v831_v35 = vmul.f32 0.0052083335, %v800_v15 }
 0x202   : > { %v848_v62 = vadd.f32 1e-05, %v832_v12 }
 0x203   : > { %v847_v32 = vadd.f32 1e-05, %v831_v35 }
 0x204   : > { %12092 = vrsqrt.f32 %v848_v62  ;;  %v812_v16 = vpop.xlane.xlu1 %811 }
 0x205   : > { %12094 = vrsqrt.f32 %v847_v32  ;;  %v834_v5 = vmul.f32 0.0052083335, %v812_v16  ;;  %v808_v0 = vpop.xlane.xlu0 %807 }
 0x206   : > { %v12089_v25 = vpop.eup %12088  ;;  %v833_v54 = vmul.f32 0.0052083335, %v808_v0 }
 0x207   : > { %v12091_v29 = vpop.eup %12090  ;;  %v885_v23 = vmul.f32 %v12089_v25, %v13161_v56  ;;  %v886_v28 = vmul.f32 %v12089_v25, %v13164_v3  ;;  %v850_v31 = vadd.f32 1e-05, %v834_v5 }
 0x208   : > { %v887_v34 = vmul.f32 %v12091_v29, %v13182_v33  ;;  %v888_v38 = vmul.f32 %v12091_v29, %v13185_v10  ;;  %v849_v21 = vadd.f32 1e-05, %v833_v54  ;;  %v820_v50 = vpop.xlane.xlu1 %819 }
 0x209   : > { %v925_v47 = vmul.f32 %v13174_v18, %v885_v23  ;;  %v926_v51 = vmul.f32 %v13170_v7, %v886_v28  ;;  %12096 = vrsqrt.f32 %v850_v31  ;;  %v836_v46 = vmul.f32 0.0052083335, %v820_v50  ;;  %v816_v11 = vpop.xlane.xlu0 %815 }
 0x20a   : > { %v927_v45 = vmul.f32 %v13174_v18, %v887_v34  ;;  %v928_v56 = vmul.f32 %v13170_v7, %v888_v38  ;;  %12098 = vrsqrt.f32 %v849_v21  ;;  %v835_v3 = vmul.f32 0.0052083335, %v816_v11 }
 0x20b   : > { %v852_v36 = vadd.f32 1e-05, %v836_v46  ;;  %v966_v33 = vadd.f32 %v13191_v44, %v926_v51  ;;  %v965_v10 = vadd.f32 %v13198_v17, %v925_v47 }
 0x20c   : > { %v851_v37 = vadd.f32 1e-05, %v835_v3  ;;  %v968_v53 = vadd.f32 %v13191_v44, %v928_v56  ;;  %v967_v61 = vadd.f32 %v13198_v17, %v927_v45 }
 0x20d   : > { %12100 = vrsqrt.f32 %v852_v36 }
 0x20e   : > { %12102 = vrsqrt.f32 %v851_v37  ;;  %v13378_v40 = vpack.c.bf16 %v968_v53, %v966_v33  ;;  %v13380_v26 = vpack.c.bf16 %v967_v61, %v965_v10 }
 0x210   : > { %10367 = vmatprep.mubr.msk.bf16.mxu0 %vm611_vm1, %v13378_v40 }
 0x211   : > { %v12093_v60 = vpop.eup %12092  ;;  %1182 = vmatmul.mubr.bf16.gmra.mxu0 %v13380_v26 }
 0x212   : > { %v12095_v59 = vpop.eup %12094  ;;  %v891_v12 = vmul.f32 %v12093_v60, %v13220_v19  ;;  %v892_v15 = vmul.f32 %v12093_v60, %v13231_v30 }
 0x213   : > { %v889_v35 = vmul.f32 %v12095_v59, %v13208_v58  ;;  %v890_v62 = vmul.f32 %v12095_v59, %v13212_v2 }
 0x214   : > { %v931_v32 = vmul.f32 %v13174_v18, %v891_v12  ;;  %v932_v16 = vmul.f32 %v13170_v7, %v892_v15 }
 0x215   : > { %v929_v5 = vmul.f32 %v13174_v18, %v889_v35  ;;  %v930_v0 = vmul.f32 %v13170_v7, %v890_v62 }
 0x216   : > { %v12097_v25 = vpop.eup %12096  ;;  %v972_v54 = vadd.f32 %v13191_v44, %v932_v16  ;;  %v971_v29 = vadd.f32 %v13198_v17, %v931_v32 }
 0x217   : > { %v12099_v19 = vpop.eup %12098  ;;  %v895_v30 = vmul.f32 %v12097_v25, %v13253_v57  ;;  %v896_v58 = vmul.f32 %v12097_v25, %v13258_v55  ;;  %v970_v2 = vadd.f32 %v13191_v44, %v930_v0  ;;  %v969_v23 = vadd.f32 %v13198_v17, %v929_v5 }
 0x218   : > { %v893_v28 = vmul.f32 %v12099_v19, %v13261_v63  ;;  %v894_v31 = vmul.f32 %v12099_v19, %v13269_v43 }
 0x219   : > { %v935_v34 = vmul.f32 %v13174_v18, %v895_v30  ;;  %v936_v38 = vmul.f32 %v13170_v7, %v896_v58  ;;  %v13403_v21 = vpack.c.bf16 %v972_v54, %v970_v2  ;;  %v13405_v50 = vpack.c.bf16 %v971_v29, %v969_v23 }
 0x21a   : > { %v12101_v47 = vpop.eup %12100  ;;  %v933_v57 = vmul.f32 %v13174_v18, %v893_v28  ;;  %v934_v55 = vmul.f32 %v13170_v7, %v894_v31 }
 0x21b   : > { %17000 = vst [vmem:[#allocation11_spill] sm:$0xff] %v13403_v21  ;;  %17001 = vst [vmem:[#allocation12_spill] sm:$0xff] %v13405_v50  ;;  %v12103_v51 = vpop.eup %12102  ;;  %v899_v46 = vmul.f32 %v12101_v47, %v13288_v8  ;;  %v900_v63 = vmul.f32 %v12101_v47, %v13291_v48  ;;  %10368 = vmatprep.mubr.msk.bf16.mxu0 %vm611_vm1, %v13403_v21  ;;  %v976_v43 = vadd.f32 %v13191_v44, %v936_v38 }
 0x21c   : > { %v975_v11 = vadd.f32 %v13198_v17, %v935_v34  ;;  %v897_v45 = vmul.f32 %v12103_v51, %v13296_v22  ;;  %v898_v56 = vmul.f32 %v12103_v51, %v13299_v13  ;;  %1190 = vmatmul.mubr.bf16.gmra.mxu0 %v13405_v50  ;;  %v974_v3 = vadd.f32 %v13191_v44, %v934_v55 }
 0x21d   : > { %v973_v36 = vadd.f32 %v13198_v17, %v933_v57  ;;  %v940_v8 = vmul.f32 %v13170_v7, %v900_v63  ;;  %v939_v37 = vmul.f32 %v13174_v18, %v899_v46 }
 0x21e   : > { %v938_v48 = vmul.f32 %v13170_v7, %v898_v56  ;;  %v13422_v33 = vpack.c.bf16 %v976_v43, %v974_v3  ;;  %v937_v22 = vmul.f32 %v13174_v18, %v897_v45 }
 0x21f   : > { %v980_v10 = vadd.f32 %v13191_v44, %v940_v8  ;;  %v13429_v13 = vpack.c.bf16 %v975_v11, %v973_v36  ;;  %v979_v60 = vadd.f32 %v13198_v17, %v939_v37 }
 0x220   : > { %17002 = vst [vmem:[#allocation13_spill] sm:$0xff] %v13422_v33  ;;  %10369 = vmatprep.mubr.msk.bf16.mxu0 %vm611_vm1, %v13422_v33  ;;  %v978_v53 = vadd.f32 %v13191_v44, %v938_v48  ;;  %v977_v7 = vadd.f32 %v13198_v17, %v937_v22 }
 0x221   : > { %17003 = vst [vmem:[#allocation14_spill] sm:$0xff] %v13429_v13 }
 0x222   : > { %v13432_v61 = vpack.c.bf16 %v980_v10, %v978_v53  ;;  %v13439_v59 = vpack.c.bf16 %v979_v60, %v977_v7 }
 0x224   : > { %17004 = vst [vmem:[#allocation15_spill] sm:$0xff] %v13432_v61  ;;  %1198 = vmatmul.mubr.bf16.gmra.mxu0 %v13429_v13  ;;  %17005 = vst [vmem:[#allocation16_spill] sm:$0xff] %v13439_v59 }
 0x225   : > { %10370 = vmatprep.mubr.msk.bf16.mxu0 %vm611_vm1, %v13432_v61 }
 0x22c   : > { %1206 = vmatmul.mubr.bf16.gmra.mxu0 %v13439_v59 }
 0x22d   : > { %10423 = vmatprep.mubr.msk.bf16.mxu0 %vm611_vm1, %v13233_v9 }
 0x230   : > { %v1151_v18 = vpop.f32.mrf.mxu0 }
 0x232   : > { %v1153_v44 = vpop.f32.mrf.mxu0 }
 0x234   : > { %1889 = vmatmul.mubr.bf16.vlgmr.msra.gmra.mxu0 %v13239_v41  ;;  %v1154_v12 = vpop.f32.mrf.mxu0 }
 0x235   : > { %v1218_v15 = vpack.c.bf16 %v1154_v12, %v1151_v18  ;;  %10424 = vmatprep.mubr.msk.bf16.mxu0 %vm611_vm1, %v13246_v49 }
 0x236   : > { %v1156_v17 = vpop.f32.mrf.mxu0 }
 0x237   : > { %11241 = vmatprep.mubr.msk.bf16.mxu1 %vm1222_vm2, %v1218_v15  ;;  %v1224_v47 = vsel %vm1222_vm2, %v1218_v15, 0 }
 0x238   : > { %v1159_v35 = vpop.f32.mrf.mxu0 }
 0x23a   : > { %v1161_v62 = vpop.f32.mrf.mxu0 }
 0x23c   : > { %1897 = vmatmul.mubr.bf16.gmra.mxu0 %v13281_v24  ;;  %v1162_v32 = vpop.f32.mrf.mxu0 }
 0x23d   : > { %10425 = vmatprep.mubr.msk.bf16.mxu0 %vm611_vm1, %v13285_v42  ;;  %v1219_v31 = vpack.c.bf16 %v1162_v32, %v1159_v35 }
 0x23e   : > { %v1164_v16 = vpop.f32.mrf.mxu0 }
 0x23f   : > { %v1227_v38 = vsel %vm1222_vm2, %v1219_v31, 0 }
 0x240   : > { %v1167_v5 = vpop.f32.mrf.mxu0 }
 0x242   : > { %v1169_v0 = vpop.f32.mrf.mxu0 }
 0x244   : > { %1905 = vmatmul.mubr.bf16.gmra.mxu0 %v13330_v4  ;;  %v1170_v25 = vpop.f32.mrf.mxu0 }
 0x245   : > { %10426 = vmatprep.mubr.msk.bf16.mxu0 %vm611_vm1, %v13332_v14  ;;  %v1220_v23 = vpack.c.bf16 %v1170_v25, %v1167_v5 }
 0x246   : > { %v1172_v54 = vpop.f32.mrf.mxu0 }
 0x247   : > { %v1230_v34 = vsel %vm1222_vm2, %v1220_v23, 0 }
 0x248   : > { %v1175_v29 = vpop.f32.mrf.mxu0 }
 0x24a   : > { %v1177_v19 = vpop.f32.mrf.mxu0 }
 0x24c   : > { %1913 = vmatmul.mubr.bf16.gmra.mxu0 %v13340_v27  ;;  %v1178_v30 = vpop.f32.mrf.mxu0 }
 0x24d   : > { %v1221_v58 = vpack.c.bf16 %v1178_v30, %v1175_v29  ;;  %10427 = vmatprep.mubr.msk.bf16.mxu0 %vm611_vm1, %v13378_v40 }
 0x24e   : > { %v1180_v2 = vpop.f32.mrf.mxu0 }
 0x24f   : > { %11625 = vmatprep.subr.msk.bf16.mxu1 %vm1222_vm2, %v1221_v58  ;;  %v1233_v28 = vsel %vm1222_vm2, %v1221_v58, 0 }
 0x250   : > { %11234 = vmatpush3.bf16.xpose.msra.mxu1 %v1233_v28 }
 0x251   : > { %11626 = vmatprep.subr.msk.bf16.mxu1 %vm1222_vm2, %v1220_v23 }
 0x254   : > { %1921 = vmatmul.mubr.bf16.gmra.mxu0 %v13380_v26 }
 0x255   : > { %10428 = vmatprep.mubr.msk.bf16.mxu0 %vm611_vm1, %v13403_v21 }
 0x258   : > { %11236 = vmatpush3.bf16.xpose.msra.mxu1 %v1230_v34 }
 0x259   : > { %11627 = vmatprep.subr.msk.bf16.mxu1 %vm1222_vm2, %v1219_v31 }
 0x25c   : > { %1929 = vmatmul.mubr.bf16.gmra.mxu0 %v13405_v50 }
 0x25d   : > { %10429 = vmatprep.mubr.msk.bf16.mxu0 %vm611_vm1, %v13422_v33 }
 0x260   : > { %11238 = vmatpush3.bf16.xpose.msra.mxu1 %v1227_v38 }
 0x261   : > { %11628 = vmatprep.subr.msk.bf16.mxu1 %vm1222_vm2, %v1218_v15 }
 0x264   : > { %1937 = vmatmul.mubr.bf16.gmra.mxu0 %v13429_v13 }
 0x265   : > { %10430 = vmatprep.mubr.msk.bf16.mxu0 %vm611_vm1, %v13432_v61 }
 0x268   : > { %11240 = vmatpush3.bf16.xpose.msra.mxu1 %v1224_v47 }
 0x269   : > { %11249 = vmatprep.subr.bf16.mxu1 %v1221_v58 }
 0x26c   : > { %1945 = vmatmul.mubr.bf16.gmra.mxu0 %v13439_v59 }
 0x26d   : > { %2397 = vmatprep.mubr.bf16.mxu0 %v16947_v1 }
 0x26f   : > { %11242 = vmatmul.mubr.msk.bf16.vlgmr.msra.gmra.mxu1 %vm1222_vm2, %v1219_v31 }
 0x270   : > { %11245 = vmatprep.mubr.msk.bf16.mxu1 %vm1222_vm2, %v1220_v23  ;;  %11250 = vmatpush3.bf16.msra.mxu1 %v1221_v58 }
 0x271   : > { %11251 = vmatprep.subr.bf16.mxu1 %v1220_v23 }
 0x274   : > { %11252 = vmatpush3.bf16.msra.mxu1 %v1220_v23 }
 0x275   : > { %11253 = vmatprep.subr.bf16.mxu1 %v1219_v31 }
 0x277   : > { %11246 = vmatmul.mubr.msk.bf16.gmra.mxu1 %vm1222_vm2, %v1221_v58 }
 0x278   : > { %11254 = vmatpush3.bf16.msra.mxu1 %v1219_v31 }
 0x279   : > { %11255 = vmatprep.subr.bf16.mxu1 %v1218_v15 }
 0x27c   : > { %11256 = vmatpush3.bf16.msra.mxu1 %v1218_v15 }
 0x2d1   : > { %v1183_v57 = vpop.f32.mrf.mxu0 }
 0x2d3   : > { %v1185_v55 = vpop.f32.mrf.mxu0 }
 0x2d5   : > { %v1186_v51 = vpop.f32.mrf.mxu0 }
 0x2d6   : > { %v13479_v46 = vpack.c.bf16 %v1186_v51, %v1183_v57 }
 0x2d7   : > { %v1188_v63 = vpop.f32.mrf.mxu0 }
 0x2dc   : > { %v1191_v43 = vpop.f32.mrf.mxu0 }
 0x2de   : > { %v1193_v11 = vpop.f32.mrf.mxu0 }
 0x2e0   : > { %v1194_v45 = vpop.f32.mrf.mxu0 }
 0x2e1   : > { %v13481_v56 = vpack.c.bf16 %v1194_v45, %v1191_v43 }
 0x2e2   : > { %v1196_v3 = vpop.f32.mrf.mxu0 }
 0x2e4   : > { %v1199_v36 = vpop.f32.mrf.mxu0 }
 0x2e6   : > { %v1201_v8 = vpop.f32.mrf.mxu0 }
 0x2e7   : > { %v594_v8 = vand.u32 127, %v584_v20  ;;  %v589_v20 = vadd.s32 32, %v13153_v39 }
 0x2e8   : > { %v1202_v48 = vpop.f32.mrf.mxu0 }
 0x2e9   : > { %v13483_v10 = vpack.c.bf16 %v1202_v48, %v1199_v36  ;;  %v587_v48 = vadd.s32 16, %v13153_v39  ;;  %vm595_vm3 = vcmp.le.s32.totalorder %v594_v8, %v13153_v39  ;;  %vm599_vm7 = vcmp.le.s32.totalorder %v594_v8, %v589_v20 }
 0x2ea   : > { %v1204_v37 = vpop.f32.mrf.mxu0 }
 0x2eb   : > { %v586_v37 = vadd.s32 8, %v13153_v39  ;;  %vm597_vm4 = vcmp.le.s32.totalorder %v594_v8, %v587_v48 }
 0x2ec   : > { %v1207_v22 = vpop.f32.mrf.mxu0 }
 0x2ed   : > { %vm596_vm5 = vcmp.le.s32.totalorder %v594_v8, %v586_v37 }
 0x2ee   : > { %v1209_v53 = vpop.f32.mrf.mxu0 }
 0x2f0   : > { %v1210_v7 = vpop.f32.mrf.mxu0 }
 0x2f1   : > { %v13485_v60 = vpack.c.bf16 %v1210_v7, %v1207_v22  ;;  %v588_v22 = vadd.s32 24, %v13153_v39 }
 0x2f2   : > { %v1212_v18 = vpop.f32.mrf.mxu0 }
 0x2f3   : > { %11629 = vmatprep.subr.msk.bf16.mxu1 %vm1222_vm2, %v13485_v60  ;;  %v12718_v18 = vmov -inf   ;;  %vm598_vm6 = vcmp.le.s32.totalorder %v594_v8, %v588_v22 }
 0x2f4   : > { %v1890_v44 = vpop.f32.mrf.mxu0 }
 0x2f6   : > { %v1892_v12 = vpop.f32.mrf.mxu0 }
 0x2f8   : > { %v1893_v15 = vpop.f32.mrf.mxu0 }
 0x2f9   : > { %v13489_v17 = vpack.c.bf16 %v1893_v15, %v1890_v44  ;;  %v13508_v44 = vsel %vm595_vm3, 0.0, %v12718_v18 }
 0x2fa   : > { %v1895_v35 = vpop.f32.mrf.mxu0 }
 0x2fc   : > { %v1898_v62 = vpop.f32.mrf.mxu0 }
 0x2fe   : > { %v1900_v32 = vpop.f32.mrf.mxu0 }
 0x300   : > { %v1901_v16 = vpop.f32.mrf.mxu0 }
 0x301   : > { %v13491_v5 = vpack.c.bf16 %v1901_v16, %v1898_v62  ;;  %v13511_v62 = vsel %vm597_vm4, 0.0, %v12718_v18  ;;  %v591_v16 = vadd.s32 48, %v13153_v39 }
 0x302   : > { %v1903_v0 = vpop.f32.mrf.mxu0 }
 0x303   : > { %vm601_vm8 = vcmp.le.s32.totalorder %v594_v8, %v591_v16 }
 0x304   : > { %v1906_v25 = vpop.f32.mrf.mxu0  ;;  %v13537_v37 = vsel %vm601_vm8, 0.0, %v12718_v18 }
 0x306   : > { %v1908_v54 = vpop.f32.mrf.mxu0 }
 0x307   : > { %v13517_v54 = vsel %vm596_vm5, 0.0, %v12718_v18 }
 0x308   : > { %v1909_v29 = vpop.f32.mrf.mxu0 }
 0x309   : > { %v13493_v19 = vpack.c.bf16 %v1909_v29, %v1906_v25  ;;  %v13519_v29 = vsel %vm598_vm6, 0.0, %v12718_v18 }
 0x30a   : > { %v1911_v30 = vpop.f32.mrf.mxu0 }
 0x30b   : > { %v590_v30 = vadd.s32 40, %v13153_v39 }
 0x30c   : > { %v1914_v58 = vpop.f32.mrf.mxu0 }
 0x30d   : > { %vm600_vm9 = vcmp.le.s32.totalorder %v594_v8, %v590_v30 }
 0x30e   : > { %v1916_v2 = vpop.f32.mrf.mxu0 }
 0x310   : > { %v1917_v23 = vpop.f32.mrf.mxu0 }
 0x311   : > { %v13495_v28 = vpack.c.bf16 %v1917_v23, %v1914_v58 }
 0x312   : > { %v1919_v31 = vpop.f32.mrf.mxu0 }
 0x314   : > { %v1922_v34 = vpop.f32.mrf.mxu0 }
 0x316   : > { %v1924_v38 = vpop.f32.mrf.mxu0 }
 0x317   : > { %v592_v38 = vadd.s32 56, %v13153_v39 }
 0x318   : > { %v1925_v47 = vpop.f32.mrf.mxu0 }
 0x319   : > { %v13497_v57 = vpack.c.bf16 %v1925_v47, %v1922_v34  ;;  %vm602_vm10 = vcmp.le.s32.totalorder %v594_v8, %v592_v38 }
 0x31a   : > { %v1927_v55 = vpop.f32.mrf.mxu0 }
 0x31c   : > { %v1930_v51 = vpop.f32.mrf.mxu0 }
 0x31e   : > { %v1932_v63 = vpop.f32.mrf.mxu0 }
 0x320   : > { %v1933_v43 = vpop.f32.mrf.mxu0 }
 0x321   : > { %v13499_v11 = vpack.c.bf16 %v1933_v43, %v1930_v51  ;;  %v13532_v51 = vsel %vm599_vm7, 0.0, %v12718_v18 }
 0x322   : > { %v1935_v45 = vpop.f32.mrf.mxu0 }
 0x324   : > { %v13501_v3 = vpop.f32.mrf.mxu0 }
 0x326   : > { %v1940_v36 = vpop.f32.mrf.mxu0 }
 0x32f   : > { %v11243_v53 = vpop.f32.mrf.mxu1 }
 0x330   : > { %v1302_v12 = vmul.f32 0.07216878, %v11243_v53 }
 0x331   : > { %v1269_v7 = vpop.f32.mrf.mxu1 }
 0x332   : > { %v1300_v15 = vmul.f32 0.07216878, %v1269_v7  ;;  %v13525_v23 = vadd.f32 %v1302_v12, %v13511_v62  ;;  %v13542_v12 = vsel %vm600_vm9, 0.0, %v12718_v18 }
 0x333   : > { %v11244_v35 = vpop.f32.mrf.mxu1 }
 0x334   : > { %v13514_v32 = vadd.f32 %v1300_v15, %v13508_v44  ;;  %v1303_v0 = vmul.f32 0.07216878, %v11244_v35  ;;  %v1322_v36 = vsel %vm611_vm1, %v13525_v23, -inf }
 0x335   : > { %v1272_v25 = vpop.f32.mrf.mxu1 }
 0x336   : > { %v1301_v58 = vmul.f32 0.07216878, %v1272_v25  ;;  %v1316_v2 = vsel %vm611_vm1, %v13514_v32, -inf  ;;  %v13530_v55 = vadd.f32 %v1303_v0, %v13519_v29  ;;  %v13546_v0 = vsel %vm602_vm10, 0.0, %v12718_v18 }
 0x337   : > { %v11247_v31 = vpop.f32.mrf.mxu1  ;;  %1317 = vmax.xlane.f32.xlu0 %v1316_v2 }
 0x338   : > { %v1309_v34 = vadd.f32 %v1301_v58, %v13517_v54  ;;  %v1306_v63 = vmul.f32 0.07216878, %v11247_v31  ;;  %v1325_v7 = vsel %vm611_vm1, %v13530_v55, -inf  ;;  %v1941_v31 = vpop.f32.mrf.mxu0 }
 0x339   : > { %v1285_v47 = vpop.f32.mrf.mxu1  ;;  %v13554_v38 = vpack.c.bf16 %v1941_v31, %v13501_v3 }
 0x33a   : > { %v1304_v43 = vmul.f32 0.07216878, %v1285_v47  ;;  %v1319_v45 = vsel %vm611_vm1, %v1309_v34, -inf  ;;  %v1314_v16 = vadd.f32 %v1306_v63, %v13537_v37  ;;  %v1943_v18 = vpop.f32.mrf.mxu0  ;;  %v11736_v63 = vld [vmem:[%s12818_s16 + $0x10] ss:$8 sps:$4 sm:$0xff]  }
 0x33b   : > { %1320 = vmax.xlane.f32.xlu1 %v1319_v45  ;;  %v11248_v48 = vpop.f32.mrf.mxu1  ;;  %1323 = vmax.xlane.f32.xlu0 %v1322_v36 }
 0x33c   : > { %v1312_v22 = vadd.f32 %v1304_v43, %v13532_v51  ;;  %v1307_v15 = vmul.f32 0.07216878, %v11248_v48  ;;  %v1334_v30 = vsel %vm611_vm1, %v1314_v16, -inf  ;;  %v1946_v47 = vpop.f32.mrf.mxu0  ;;  %v13558_v43 = vld [vmem:[%s12818_s16 + $0x14] ss:$8 sps:$4 sm:$0xff]  }
 0x33d   : > { %v1288_v53 = vpop.f32.mrf.mxu1  ;;  %2377 = vmatprep.subr.bf16.mxu0 %v13558_v43 }
 0x33e   : > { %v1305_v20 = vmul.f32 0.07216878, %v1288_v53  ;;  %v1328_v35 = vsel %vm611_vm1, %v1312_v22, -inf  ;;  %v1315_v58 = vadd.f32 %v1307_v15, %v13546_v0  ;;  %v1948_v45 = vpop.f32.mrf.mxu0  ;;  %2378 = vmatpush1.bf16.msra.mxu0 %v11736_v63  ;;  %v11739_v53 = vld [vmem:[%s12818_s16] ss:$8 sps:$4 sm:$0xff]  }
 0x33f   : > { %1326 = vmax.xlane.f32.xlu1 %v1325_v7  ;;  %1329 = vmax.xlane.f32.xlu0 %v1328_v35  ;;  %v11741_v7 = vld [vmem:[%s12818_s16 + $0x4] ss:$8 sps:$4 sm:$0xff]  }
 0x340   : > { %v1313_v8 = vadd.f32 %v1305_v20, %v13542_v12  ;;  %v1337_v2 = vsel %vm611_vm1, %v1315_v58, -inf  ;;  %v1949_v36 = vpop.f32.mrf.mxu0  ;;  %2379 = vmatprep.subr.bf16.mxu0 %v11741_v7 }
 0x341   : > { %v13561_v48 = vpack.c.bf16 %v1949_v36, %v1946_v47 }
 0x342   : > { %v1331_v25 = vsel %vm611_vm1, %v1313_v8, -inf  ;;  %v1951_v15 = vpop.f32.mrf.mxu0  ;;  %2380 = vmatpush1.bf16.msra.mxu0 %v11739_v53 }
 0x343   : > { %1332 = vmax.xlane.f32.xlu1 %v1331_v25  ;;  %1335 = vmax.xlane.f32.xlu0 %v1334_v30 }
 0x344   : > { %11345 = vmatprep.subr.bf16.mxu0 %v13561_v48 }
 0x347   : > { %1338 = vmax.xlane.f32.xlu1 %v1337_v2 }
 0x3c0   : > { %v1318_v3 = vpop.xlane.xlu0 %1317 }
 0x3c1   : > { %v1340_v20 = vsub.f32 %v13514_v32, %v1318_v3 }
 0x3c3   : > { %v1348_v35 = vmul.f32 1.442695, %v1340_v20 }
 0x3c4   : > { %v1321_v25 = vpop.xlane.xlu1 %1320  ;;  %v1324_v30 = vpop.xlane.xlu0 %1323 }
 0x3c5   : > { %12104 = vpow2.f32 %v1348_v35  ;;  %v1341_v2 = vsub.f32 %v1309_v34, %v1321_v25  ;;  %v1342_v31 = vsub.f32 %v13525_v23, %v1324_v30 }
 0x3c7   : > { %v1350_v18 = vmul.f32 1.442695, %v1341_v2  ;;  %v1352_v47 = vmul.f32 1.442695, %v1342_v31 }
 0x3c8   : > { %v1327_v63 = vpop.xlane.xlu1 %1326  ;;  %v1330_v45 = vpop.xlane.xlu0 %1329 }
 0x3c9   : > { %12106 = vpow2.f32 %v1350_v18  ;;  %v1343_v36 = vsub.f32 %v13530_v55, %v1327_v63  ;;  %v1344_v53 = vsub.f32 %v1312_v22, %v1330_v45 }
 0x3ca   : > { %12108 = vpow2.f32 %v1352_v47 }
 0x3cb   : > { %v1354_v7 = vmul.f32 1.442695, %v1343_v36  ;;  %v1356_v15 = vmul.f32 1.442695, %v1344_v53 }
 0x3cc   : > { %v1333_v1 = vpop.xlane.xlu1 %1332  ;;  %v1336_v32 = vpop.xlane.xlu0 %1335 }
 0x3cd   : > { %12110 = vpow2.f32 %v1354_v7  ;;  %v1345_v3 = vsub.f32 %v1313_v8, %v1333_v1  ;;  %v1346_v20 = vsub.f32 %v1314_v16, %v1336_v32 }
 0x3ce   : > { %12112 = vpow2.f32 %v1356_v15 }
 0x3cf   : > { %v1358_v34 = vmul.f32 1.442695, %v1345_v3  ;;  %v1360_v35 = vmul.f32 1.442695, %v1346_v20 }
 0x3d0   : > { %v1339_v23 = vpop.xlane.xlu1 %1338 }
 0x3d1   : > { %12114 = vpow2.f32 %v1358_v34  ;;  %v1347_v25 = vsub.f32 %v1315_v58, %v1339_v23 }
 0x3d2   : > { %v12105_v30 = vpop.eup %12104  ;;  %12116 = vpow2.f32 %v1360_v35 }
 0x3d3   : > { %v1362_v2 = vmul.f32 1.442695, %v1347_v25  ;;  %v1364_v55 = vsel %vm611_vm1, %v12105_v30, 0.0 }
 0x3d4   : > { %1365 = vadd.xlane.f32.xlu0 %v1364_v55 }
 0x3d5   : > { %12118 = vpow2.f32 %v1362_v2 }
 0x3d6   : > { %v12107_v22 = vpop.eup %12106 }
 0x3d7   : > { %v12109_v31 = vpop.eup %12108  ;;  %v1367_v18 = vsel %vm611_vm1, %v12107_v22, 0.0 }
 0x3d8   : > { %1368 = vadd.xlane.f32.xlu1 %v1367_v18  ;;  %v1370_v1 = vsel %vm611_vm1, %v12109_v31, 0.0 }
 0x3d9   : > { %1371 = vadd.xlane.f32.xlu0 %v1370_v1 }
 0x3da   : > { %v12111_v16 = vpop.eup %12110 }
 0x3db   : > { %v12113_v8 = vpop.eup %12112  ;;  %v1373_v47 = vsel %vm611_vm1, %v12111_v16, 0.0 }
 0x3dc   : > { %1374 = vadd.xlane.f32.xlu1 %v1373_v47  ;;  %v1376_v58 = vsel %vm611_vm1, %v12113_v8, 0.0 }
 0x3dd   : > { %1377 = vadd.xlane.f32.xlu0 %v1376_v58 }
 0x3de   : > { %v12115_v63 = vpop.eup %12114 }
 0x3df   : > { %v12117_v45 = vpop.eup %12116  ;;  %v1379_v36 = vsel %vm611_vm1, %v12115_v63, 0.0 }
 0x3e0   : > { %1380 = vadd.xlane.f32.xlu1 %v1379_v36  ;;  %v1382_v53 = vsel %vm611_vm1, %v12117_v45, 0.0 }
 0x3e1   : > { %1383 = vadd.xlane.f32.xlu0 %v1382_v53 }
 0x3e2   : > { %v12119_v7 = vpop.eup %12118 }
 0x3e3   : > { %v1385_v15 = vsel %vm611_vm1, %v12119_v7, 0.0 }
 0x3e4   : > { %1386 = vadd.xlane.f32.xlu1 %v1385_v15 }
 0x45d   : > { %v1366_v32 = vpop.xlane.xlu0 %1365 }
 0x45e   : > { %12120 = vrcp.f32 %v1366_v32 }
 0x461   : > { %v1369_v3 = vpop.xlane.xlu1 %1368 }
 0x462   : > { %12122 = vrcp.f32 %v1369_v3  ;;  %v1372_v20 = vpop.xlane.xlu0 %1371 }
 0x463   : > { %12124 = vrcp.f32 %v1372_v20 }
 0x465   : > { %v1375_v34 = vpop.xlane.xlu1 %1374 }
 0x466   : > { %12126 = vrcp.f32 %v1375_v34  ;;  %v1378_v35 = vpop.xlane.xlu0 %1377 }
 0x467   : > { %12128 = vrcp.f32 %v1378_v35  ;;  %v1503_v35 = vsel %vm1222_vm2, %v13485_v60, 0 }
 0x469   : > { %v1381_v23 = vpop.xlane.xlu1 %1380 }
 0x46a   : > { %12130 = vrcp.f32 %v1381_v23  ;;  %v1384_v25 = vpop.xlane.xlu0 %1383 }
 0x46b   : > { %12132 = vrcp.f32 %v1384_v25  ;;  %v12121_v2 = vpop.eup %12120 }
 0x46c   : > { %v1396_v1 = vmul.f32 %v12121_v2, %v12105_v30 }
 0x46d   : > { %v1387_v55 = vpop.xlane.xlu1 %1386 }
 0x46e   : > { %12134 = vrcp.f32 %v1387_v55 }
 0x46f   : > { %v12123_v18 = vpop.eup %12122 }
 0x470   : > { %v1397_v47 = vmul.f32 %v12123_v18, %v12107_v22  ;;  %v12125_v58 = vpop.eup %12124  ;;  %v1500_v18 = vsel %vm1222_vm2, %v13483_v10, 0 }
 0x471   : > { %v1398_v15 = vmul.f32 %v12125_v58, %v12109_v31 }
 0x472   : > { %v1404_v36 = vpack.c.bf16 %v1397_v47, %v1396_v1 }
 0x473   : > { %v12127_v53 = vpop.eup %12126 }
 0x474   : > { %v1399_v32 = vmul.f32 %v12127_v53, %v12111_v16  ;;  %11257 = vmatprep.mubr.msk.bf16.mxu1 %vm611_vm1, %v1404_v36  ;;  %v12129_v3 = vpop.eup %12128 }
 0x475   : > { %v1400_v23 = vmul.f32 %v12129_v3, %v12113_v8  ;;  %v1497_v8 = vsel %vm1222_vm2, %v13481_v56, 0 }
 0x476   : > { %v1405_v20 = vpack.c.bf16 %v1399_v32, %v1398_v15 }
 0x477   : > { %v12131_v34 = vpop.eup %12130 }
 0x478   : > { %11258 = vmatmul.mubr.msk.bf16.vlgmr.msra.gmra.mxu1 %vm611_vm1, %v1405_v20  ;;  %v1401_v25 = vmul.f32 %v12131_v34, %v12115_v63  ;;  %v12133_v55 = vpop.eup %12132  ;;  %v1494_v63 = vsel %vm1222_vm2, %v13479_v46, 0 }
 0x479   : > { %11266 = vmatpush3.bf16.xpose.msra.mxu1 %v1503_v35  ;;  %v1402_v31 = vmul.f32 %v12133_v55, %v12117_v45 }
 0x47a   : > { %11630 = vmatprep.subr.msk.bf16.mxu1 %vm1222_vm2, %v13483_v10  ;;  %v1406_v30 = vpack.c.bf16 %v1401_v25, %v1400_v23 }
 0x47b   : > { %v12135_v22 = vpop.eup %12134 }
 0x47c   : > { %11261 = vmatprep.mubr.msk.bf16.mxu1 %vm611_vm1, %v1406_v30  ;;  %v1403_v16 = vmul.f32 %v12135_v22, %v12119_v7 }
 0x47e   : > { %v1407_v2 = vpack.c.bf16 %v1403_v16, %v1402_v31 }
 0x480   : > { %11262 = vmatmul.mubr.msk.bf16.gmra.mxu1 %vm611_vm1, %v1407_v2 }
 0x481   : > { %11268 = vmatpush3.bf16.xpose.msra.mxu1 %v1500_v18  ;;  %11273 = vmatprep.mubr.msk.bf16.mxu1 %vm1222_vm2, %v13479_v46 }
 0x482   : > { %11631 = vmatprep.subr.msk.bf16.mxu1 %vm1222_vm2, %v13481_v56 }
 0x489   : > { %11270 = vmatpush3.bf16.xpose.msra.mxu1 %v1497_v8 }
 0x48a   : > { %11632 = vmatprep.subr.msk.bf16.mxu1 %vm1222_vm2, %v13479_v46 }
 0x491   : > { %11272 = vmatpush3.bf16.xpose.msra.mxu1 %v1494_v63 }
 0x492   : > { %11281 = vmatprep.subr.bf16.mxu1 %v13485_v60 }
 0x498   : > { %11274 = vmatmul.mubr.msk.bf16.vlgmr.msra.gmra.mxu1 %vm1222_vm2, %v13481_v56 }
 0x499   : > { %11277 = vmatprep.mubr.msk.bf16.mxu1 %vm1222_vm2, %v13483_v10  ;;  %11282 = vmatpush3.bf16.msra.mxu1 %v13485_v60 }
 0x49a   : > { %11283 = vmatprep.subr.bf16.mxu1 %v13483_v10 }
 0x49d   : > { %11284 = vmatpush3.bf16.msra.mxu1 %v13483_v10 }
 0x49e   : > { %11285 = vmatprep.subr.bf16.mxu1 %v13481_v56 }
 0x4a0   : > { %11278 = vmatmul.mubr.msk.bf16.gmra.mxu1 %vm1222_vm2, %v13485_v60  ;;  %v17006_v60 = vmov 0  }
 0x4a1   : > { %11286 = vmatpush3.bf16.msra.mxu1 %v13481_v56 }
 0x4a2   : > { %11287 = vmatprep.subr.bf16.mxu1 %v13479_v46 }
 0x4a5   : > { %11288 = vmatpush3.bf16.msra.mxu1 %v13479_v46 }
 0x4a6   : > { %11633 = vmatprep.subr.msk.bf16.mxu1 %vm1222_vm2, %v13495_v28 }
 0x538   : > { %v11259_v45 = vpop.f32.mrf.mxu1 }
 0x53a   : > { %v1454_v7 = vpop.f32.mrf.mxu1 }
 0x53c   : > { %v11260_v1 = vpop.f32.mrf.mxu1 }
 0x53d   : > { %v1486_v46 = vpack.c.bf16 %v11260_v1, %v11259_v45 }
 0x53e   : > { %v1457_v47 = vpop.f32.mrf.mxu1 }
 0x53f   : > { %v1485_v58 = vpack.c.bf16 %v1457_v47, %v1454_v7 }
 0x540   : > { %v11263_v10 = vpop.f32.mrf.mxu1 }
 0x541   : > { %10455 = vmatmul.mubr.msk.bf16.vlgmr.msra.gmra.mxu0 %vm1222_vm2, %v1485_v58 }
 0x542   : > { %11346 = vmatpush3.bf16.msra.mxu0 %v13561_v48  ;;  %2407 = vmatprep.mubr.bf16.mxu0 %v17006_v60  ;;  %v1470_v56 = vpop.f32.mrf.mxu1 }
 0x543   : > { %11347 = vmatprep.subr.bf16.mxu0 %v13554_v38 }
 0x544   : > { %v11264_v36 = vpop.f32.mrf.mxu1 }
 0x545   : > { %v1488_v32 = vpack.c.bf16 %v11264_v36, %v11263_v10 }
 0x546   : > { %11348 = vmatpush3.bf16.msra.mxu0 %v13554_v38  ;;  %v1473_v53 = vpop.f32.mrf.mxu1 }
 0x547   : > { %11349 = vmatprep.subr.bf16.mxu0 %v13499_v11  ;;  %v1487_v15 = vpack.c.bf16 %v1473_v53, %v1470_v56 }
 0x549   : > { %10456 = vmatmul.mubr.msk.bf16.gmra.mxu0 %vm1222_vm2, %v1486_v46 }
 0x54a   : > { %11350 = vmatpush3.bf16.msra.mxu0 %v13499_v11  ;;  %2417 = vmatprep.mubr.bf16.mxu0 %v17006_v60 }
 0x54b   : > { %11351 = vmatprep.subr.bf16.mxu0 %v13497_v57 }
 0x54e   : > { %11352 = vmatpush3.bf16.msra.mxu0 %v13497_v57 }
 0x54f   : > { %2817 = vmatprep.subr.bf16.mxu0 %v13558_v43 }
 0x551   : > { %10457 = vmatmul.mubr.msk.bf16.gmra.mxu0 %vm1222_vm2, %v1487_v15 }
 0x552   : > { %2427 = vmatprep.mubr.bf16.mxu0 %v17006_v60 }
 0x558   : > { %v11275_v3 = vpop.f32.mrf.mxu1 }
 0x559   : > { %10458 = vmatmul.mubr.msk.bf16.gmra.mxu0 %vm1222_vm2, %v1488_v32  ;;  %v1572_v34 = vmul.f32 0.07216878, %v11275_v3 }
 0x55a   : > { %v1539_v20 = vpop.f32.mrf.mxu1 }
 0x55b   : > { %v1570_v35 = vmul.f32 0.07216878, %v1539_v20  ;;  %v1580_v43 = vadd.f32 %v1572_v34, %v13511_v62 }
 0x55c   : > { %v11276_v23 = vpop.f32.mrf.mxu1 }
 0x55d   : > { %v1578_v25 = vadd.f32 %v1570_v35, %v13508_v44  ;;  %v1573_v55 = vmul.f32 0.07216878, %v11276_v23  ;;  %v1592_v7 = vsel %vm611_vm1, %v1580_v43, -inf }
 0x55e   : > { %v1542_v30 = vpop.f32.mrf.mxu1 }
 0x55f   : > { %v1571_v22 = vmul.f32 0.07216878, %v1542_v30  ;;  %v1586_v31 = vsel %vm611_vm1, %v1578_v25, -inf  ;;  %v1581_v8 = vadd.f32 %v1573_v55, %v13519_v29 }
 0x560   : > { %1587 = vmax.xlane.f32.xlu0 %v1586_v31  ;;  %v11279_v16 = vpop.f32.mrf.mxu1 }
 0x561   : > { %v1579_v2 = vadd.f32 %v1571_v22, %v13517_v54  ;;  %v1576_v63 = vmul.f32 0.07216878, %v11279_v16  ;;  %v1595_v56 = vsel %vm611_vm1, %v1581_v8, -inf }
 0x562   : > { %v1555_v18 = vpop.f32.mrf.mxu1 }
 0x563   : > { %v1574_v45 = vmul.f32 0.07216878, %v1555_v18  ;;  %v1589_v1 = vsel %vm611_vm1, %v1579_v2, -inf  ;;  %v1584_v15 = vadd.f32 %v1576_v63, %v13537_v37 }
 0x564   : > { %1593 = vmax.xlane.f32.xlu0 %v1592_v7  ;;  %1590 = vmax.xlane.f32.xlu1 %v1589_v1  ;;  %v11280_v47 = vpop.f32.mrf.mxu1 }
 0x565   : > { %v1582_v58 = vadd.f32 %v1574_v45, %v13532_v51  ;;  %v1577_v46 = vmul.f32 0.07216878, %v11280_v47  ;;  %v1604_v3 = vsel %vm611_vm1, %v1584_v15, -inf }
 0x566   : > { %v1558_v10 = vpop.f32.mrf.mxu1 }
 0x567   : > { %v1575_v36 = vmul.f32 0.07216878, %v1558_v10  ;;  %v1598_v53 = vsel %vm611_vm1, %v1582_v58, -inf  ;;  %v1585_v34 = vadd.f32 %v1577_v46, %v13546_v0 }
 0x568   : > { %1596 = vmax.xlane.f32.xlu1 %v1595_v56  ;;  %1599 = vmax.xlane.f32.xlu0 %v1598_v53 }
 0x569   : > { %v1583_v32 = vadd.f32 %v1575_v36, %v13542_v12  ;;  %v1607_v35 = vsel %vm611_vm1, %v1585_v34, -inf }
 0x56b   : > { %v1601_v20 = vsel %vm611_vm1, %v1583_v32, -inf }
 0x56c   : > { %1605 = vmax.xlane.f32.xlu0 %v1604_v3  ;;  %1602 = vmax.xlane.f32.xlu1 %v1601_v20 }
 0x570   : > { %1608 = vmax.xlane.f32.xlu1 %v1607_v35 }
 0x5e9   : > { %v1588_v23 = vpop.xlane.xlu0 %1587 }
 0x5ea   : > { %v1610_v55 = vsub.f32 %v1578_v25, %v1588_v23 }
 0x5ec   : > { %v1618_v30 = vmul.f32 1.442695, %v1610_v55 }
 0x5ed   : > { %v1594_v22 = vpop.xlane.xlu0 %1593  ;;  %v1591_v31 = vpop.xlane.xlu1 %1590 }
 0x5ee   : > { %12136 = vpow2.f32 %v1618_v30  ;;  %v1612_v16 = vsub.f32 %v1580_v43, %v1594_v22  ;;  %v1611_v18 = vsub.f32 %v1579_v2, %v1591_v31 }
 0x5f0   : > { %v1622_v63 = vmul.f32 1.442695, %v1612_v16  ;;  %v1620_v45 = vmul.f32 1.442695, %v1611_v18 }
 0x5f1   : > { %v1597_v7 = vpop.xlane.xlu1 %1596  ;;  %v1600_v1 = vpop.xlane.xlu0 %1599 }
 0x5f2   : > { %12138 = vpow2.f32 %v1622_v63  ;;  %v1613_v47 = vsub.f32 %v1581_v8, %v1597_v7  ;;  %v1614_v10 = vsub.f32 %v1582_v58, %v1600_v1 }
 0x5f3   : > { %12140 = vpow2.f32 %v1620_v45 }
 0x5f4   : > { %v1624_v56 = vmul.f32 1.442695, %v1613_v47  ;;  %v1626_v46 = vmul.f32 1.442695, %v1614_v10 }
 0x5f5   : > { %v1606_v36 = vpop.xlane.xlu0 %1605  ;;  %v1603_v53 = vpop.xlane.xlu1 %1602 }
 0x5f6   : > { %12142 = vpow2.f32 %v1624_v56  ;;  %v1616_v25 = vsub.f32 %v1584_v15, %v1606_v36  ;;  %v1615_v3 = vsub.f32 %v1583_v32, %v1603_v53 }
 0x5f7   : > { %12144 = vpow2.f32 %v1626_v46 }
 0x5f8   : > { %v1630_v20 = vmul.f32 1.442695, %v1616_v25  ;;  %v1628_v35 = vmul.f32 1.442695, %v1615_v3 }
 0x5f9   : > { %v1609_v43 = vpop.xlane.xlu1 %1608 }
 0x5fa   : > { %12146 = vpow2.f32 %v1630_v20  ;;  %v1617_v2 = vsub.f32 %v1585_v34, %v1609_v43 }
 0x5fb   : > { %v12137_v23 = vpop.eup %12136  ;;  %12148 = vpow2.f32 %v1628_v35 }
 0x5fc   : > { %v1632_v55 = vmul.f32 1.442695, %v1617_v2  ;;  %v1634_v8 = vsel %vm611_vm1, %v12137_v23, 0.0 }
 0x5fd   : > { %1635 = vadd.xlane.f32.xlu0 %v1634_v8 }
 0x5fe   : > { %12150 = vpow2.f32 %v1632_v55 }
 0x5ff   : > { %v12139_v58 = vpop.eup %12138 }
 0x600   : > { %v12141_v30 = vpop.eup %12140  ;;  %v1640_v22 = vsel %vm611_vm1, %v12139_v58, 0.0 }
 0x601   : > { %1641 = vadd.xlane.f32.xlu0 %v1640_v22  ;;  %v1637_v15 = vsel %vm611_vm1, %v12141_v30, 0.0 }
 0x602   : > { %1638 = vadd.xlane.f32.xlu1 %v1637_v15 }
 0x603   : > { %v12143_v32 = vpop.eup %12142 }
 0x604   : > { %v12145_v31 = vpop.eup %12144  ;;  %v1643_v16 = vsel %vm611_vm1, %v12143_v32, 0.0 }
 0x605   : > { %v1646_v34 = vsel %vm611_vm1, %v12145_v31, 0.0 }
 0x606   : > { %1647 = vadd.xlane.f32.xlu0 %v1646_v34  ;;  %1644 = vadd.xlane.f32.xlu1 %v1643_v16 }
 0x607   : > { %v12147_v18 = vpop.eup %12146 }
 0x608   : > { %v12149_v63 = vpop.eup %12148  ;;  %v1652_v45 = vsel %vm611_vm1, %v12147_v18, 0.0 }
 0x609   : > { %v1649_v7 = vsel %vm611_vm1, %v12149_v63, 0.0 }
 0x60a   : > { %1653 = vadd.xlane.f32.xlu0 %v1652_v45  ;;  %1650 = vadd.xlane.f32.xlu1 %v1649_v7 }
 0x60b   : > { %v12151_v1 = vpop.eup %12150 }
 0x60c   : > { %v1655_v47 = vsel %vm611_vm1, %v12151_v1, 0.0 }
 0x60e   : > { %1656 = vadd.xlane.f32.xlu1 %v1655_v47 }
 0x686   : > { %v1636_v10 = vpop.xlane.xlu0 %1635 }
 0x687   : > { %12152 = vrcp.f32 %v1636_v10 }
 0x68a   : > { %v1642_v56 = vpop.xlane.xlu0 %1641 }
 0x68b   : > { %v1639_v46 = vpop.xlane.xlu1 %1638 }
 0x68c   : > { %12154 = vrcp.f32 %v1639_v46 }
 0x68d   : > { %12156 = vrcp.f32 %v1642_v56  ;;  %v1972_v56 = vsel %vm1222_vm2, %v13495_v28, 0 }
 0x68f   : > { %v1648_v36 = vpop.xlane.xlu0 %1647  ;;  %v1645_v53 = vpop.xlane.xlu1 %1644 }
 0x690   : > { %12158 = vrcp.f32 %v1645_v53 }
 0x691   : > { %12160 = vrcp.f32 %v1648_v36 }
 0x693   : > { %v1654_v25 = vpop.xlane.xlu0 %1653  ;;  %v1651_v3 = vpop.xlane.xlu1 %1650 }
 0x694   : > { %12162 = vrcp.f32 %v1651_v3  ;;  %v12153_v20 = vpop.eup %12152 }
 0x695   : > { %12164 = vrcp.f32 %v1654_v25  ;;  %v1666_v2 = vmul.f32 %v12153_v20, %v12137_v23  ;;  %v1969_v25 = vsel %vm1222_vm2, %v13493_v19, 0 }
 0x697   : > { %v1657_v35 = vpop.xlane.xlu1 %1656 }
 0x698   : > { %12166 = vrcp.f32 %v1657_v35 }
 0x699   : > { %v12155_v43 = vpop.eup %12154 }
 0x69a   : > { %v1667_v55 = vmul.f32 %v12155_v43, %v12141_v30  ;;  %v12157_v8 = vpop.eup %12156 }
 0x69b   : > { %v1668_v16 = vmul.f32 %v12157_v8, %v12139_v58 }
 0x69c   : > { %v1674_v22 = vpack.c.bf16 %v1667_v55, %v1666_v2 }
 0x69d   : > { %v12159_v15 = vpop.eup %12158 }
 0x69e   : > { %11289 = vmatprep.mubr.msk.bf16.mxu1 %vm611_vm1, %v1674_v22  ;;  %v1669_v34 = vmul.f32 %v12159_v15, %v12143_v32  ;;  %v12161_v45 = vpop.eup %12160 }
 0x69f   : > { %v1670_v46 = vmul.f32 %v12161_v45, %v12145_v31  ;;  %v1966_v31 = vsel %vm1222_vm2, %v13491_v5, 0 }
 0x6a0   : > { %v1675_v7 = vpack.c.bf16 %v1669_v34, %v1668_v16 }
 0x6a1   : > { %v12163_v47 = vpop.eup %12162 }
 0x6a2   : > { %v12165_v10 = vpop.eup %12164  ;;  %11290 = vmatmul.mubr.msk.bf16.vlgmr.msra.gmra.mxu1 %vm611_vm1, %v1675_v7  ;;  %v1671_v36 = vmul.f32 %v12163_v47, %v12149_v63 }
 0x6a3   : > { %11298 = vmatpush3.bf16.xpose.msra.mxu1 %v1972_v56  ;;  %v1672_v53 = vmul.f32 %v12165_v10, %v12147_v18  ;;  %v1963_v18 = vsel %vm1222_vm2, %v13489_v17, 0 }
 0x6a4   : > { %11634 = vmatprep.subr.msk.bf16.mxu1 %vm1222_vm2, %v13493_v19  ;;  %v1676_v30 = vpack.c.bf16 %v1671_v36, %v1670_v46 }
 0x6a5   : > { %v12167_v23 = vpop.eup %12166 }
 0x6a6   : > { %v1673_v58 = vmul.f32 %v12167_v23, %v12151_v1  ;;  %11293 = vmatprep.mubr.msk.bf16.mxu1 %vm611_vm1, %v1676_v30 }
 0x6a8   : > { %v1677_v32 = vpack.c.bf16 %v1673_v58, %v1672_v53 }
 0x6aa   : > { %11294 = vmatmul.mubr.msk.bf16.gmra.mxu1 %vm611_vm1, %v1677_v32 }
 0x6ab   : > { %11300 = vmatpush3.bf16.xpose.msra.mxu1 %v1969_v25  ;;  %11305 = vmatprep.mubr.msk.bf16.mxu1 %vm1222_vm2, %v13489_v17 }
 0x6ac   : > { %11635 = vmatprep.subr.msk.bf16.mxu1 %vm1222_vm2, %v13491_v5 }
 0x6b3   : > { %11302 = vmatpush3.bf16.xpose.msra.mxu1 %v1966_v31 }
 0x6b4   : > { %11636 = vmatprep.subr.msk.bf16.mxu1 %vm1222_vm2, %v13489_v17 }
 0x6bb   : > { %11304 = vmatpush3.bf16.xpose.msra.mxu1 %v1963_v18 }
 0x6bc   : > { %11313 = vmatprep.subr.bf16.mxu1 %v13495_v28 }
 0x6c2   : > { %11306 = vmatmul.mubr.msk.bf16.vlgmr.msra.gmra.mxu1 %vm1222_vm2, %v13491_v5 }
 0x6c3   : > { %11309 = vmatprep.mubr.msk.bf16.mxu1 %vm1222_vm2, %v13493_v19  ;;  %11314 = vmatpush3.bf16.msra.mxu1 %v13495_v28 }
 0x6c4   : > { %11315 = vmatprep.subr.bf16.mxu1 %v13493_v19 }
 0x6c7   : > { %11316 = vmatpush3.bf16.msra.mxu1 %v13493_v19 }
 0x6c8   : > { %11317 = vmatprep.subr.bf16.mxu1 %v13491_v5 }
 0x6ca   : > { %11310 = vmatmul.mubr.msk.bf16.gmra.mxu1 %vm1222_vm2, %v13495_v28 }
 0x6cb   : > { %11318 = vmatpush3.bf16.msra.mxu1 %v13491_v5 }
 0x6cc   : > { %11319 = vmatprep.subr.bf16.mxu1 %v13489_v17 }
 0x6cf   : > { %11320 = vmatpush3.bf16.msra.mxu1 %v13489_v17 }
 0x762   : > { %v13686_v63 = vpop.f32.mrf.mxu1 }
 0x764   : > { %v13688_v1 = vpop.f32.mrf.mxu1 }
 0x766   : > { %v13690_v3 = vpop.f32.mrf.mxu1 }
 0x768   : > { %v13694_v20 = vpop.f32.mrf.mxu1 }
 0x76a   : > { %v13696_v35 = vpop.f32.mrf.mxu1 }
 0x76c   : > { %v13698_v28 = vpop.f32.mrf.mxu1 }
 0x76e   : > { %v13700_v5 = vpop.f32.mrf.mxu1 }
 0x770   : > { %v13704_v43 = vpop.f32.mrf.mxu1 }
 0x782   : > { %v11307_v2 = vpop.f32.mrf.mxu1 }
 0x783   : > { %v2041_v8 = vmul.f32 0.07216878, %v11307_v2 }
 0x784   : > { %v2008_v55 = vpop.f32.mrf.mxu1 }
 0x785   : > { %v2039_v22 = vmul.f32 0.07216878, %v2008_v55  ;;  %v2049_v10 = vadd.f32 %v2041_v8, %v13511_v62 }
 0x786   : > { %v11308_v15 = vpop.f32.mrf.mxu1 }
 0x787   : > { %v2047_v16 = vadd.f32 %v2039_v22, %v13508_v44  ;;  %v2042_v34 = vmul.f32 0.07216878, %v11308_v15  ;;  %v2061_v58 = vsel %vm611_vm1, %v2049_v10, -inf }
 0x788   : > { %v2011_v45 = vpop.f32.mrf.mxu1 }
 0x789   : > { %v2040_v7 = vmul.f32 0.07216878, %v2011_v45  ;;  %v2055_v47 = vsel %vm611_vm1, %v2047_v16, -inf  ;;  %v2050_v23 = vadd.f32 %v2042_v34, %v13519_v29 }
 0x78a   : > { %2056 = vmax.xlane.f32.xlu0 %v2055_v47  ;;  %v11311_v56 = vpop.f32.mrf.mxu1 }
 0x78b   : > { %v2048_v46 = vadd.f32 %v2040_v7, %v13517_v54  ;;  %v2045_v30 = vmul.f32 0.07216878, %v11311_v56  ;;  %v2064_v2 = vsel %vm611_vm1, %v2050_v23, -inf }
 0x78c   : > { %v2024_v36 = vpop.f32.mrf.mxu1 }
 0x78d   : > { %v2043_v53 = vmul.f32 0.07216878, %v2024_v36  ;;  %v2058_v32 = vsel %vm611_vm1, %v2048_v46, -inf  ;;  %v2053_v15 = vadd.f32 %v2045_v30, %v13537_v37 }
 0x78e   : > { %2062 = vmax.xlane.f32.xlu0 %v2061_v58  ;;  %2059 = vmax.xlane.f32.xlu1 %v2058_v32  ;;  %v11312_v25 = vpop.f32.mrf.mxu1 }
 0x78f   : > { %v2051_v31 = vadd.f32 %v2043_v53, %v13532_v51  ;;  %v2046_v55 = vmul.f32 0.07216878, %v11312_v25  ;;  %v2073_v45 = vsel %vm611_vm1, %v2053_v15, -inf }
 0x790   : > { %v2027_v18 = vpop.f32.mrf.mxu1 }
 0x791   : > { %v2044_v8 = vmul.f32 0.07216878, %v2027_v18  ;;  %v2067_v22 = vsel %vm611_vm1, %v2051_v31, -inf  ;;  %v2054_v47 = vadd.f32 %v2046_v55, %v13546_v0 }
 0x792   : > { %2065 = vmax.xlane.f32.xlu1 %v2064_v2  ;;  %2068 = vmax.xlane.f32.xlu0 %v2067_v22 }
 0x793   : > { %v2052_v34 = vadd.f32 %v2044_v8, %v13542_v12  ;;  %v2076_v56 = vsel %vm611_vm1, %v2054_v47, -inf }
 0x795   : > { %v2070_v7 = vsel %vm611_vm1, %v2052_v34, -inf }
 0x796   : > { %2074 = vmax.xlane.f32.xlu0 %v2073_v45  ;;  %2071 = vmax.xlane.f32.xlu1 %v2070_v7 }
 0x79a   : > { %2077 = vmax.xlane.f32.xlu1 %v2076_v56 }
 0x813   : > { %v2057_v36 = vpop.xlane.xlu0 %2056 }
 0x814   : > { %v2079_v53 = vsub.f32 %v2047_v16, %v2057_v36 }
 0x816   : > { %v2087_v58 = vmul.f32 1.442695, %v2079_v53 }
 0x817   : > { %v2063_v32 = vpop.xlane.xlu0 %2062  ;;  %v2060_v30 = vpop.xlane.xlu1 %2059 }
 0x818   : > { %12168 = vpow2.f32 %v2087_v58  ;;  %v2081_v25 = vsub.f32 %v2049_v10, %v2063_v32  ;;  %v2080_v18 = vsub.f32 %v2048_v46, %v2060_v30 }
 0x81a   : > { %v2091_v2 = vmul.f32 1.442695, %v2081_v25  ;;  %v2089_v8 = vmul.f32 1.442695, %v2080_v18 }
 0x81b   : > { %v2066_v22 = vpop.xlane.xlu1 %2065  ;;  %v2069_v17 = vpop.xlane.xlu0 %2068 }
 0x81c   : > { %12170 = vpow2.f32 %v2091_v2  ;;  %v2082_v19 = vsub.f32 %v2050_v23, %v2066_v22  ;;  %v2083_v55 = vsub.f32 %v2051_v31, %v2069_v17 }
 0x81d   : > { %12172 = vpow2.f32 %v2089_v8 }
 0x81e   : > { %v2093_v45 = vmul.f32 1.442695, %v2082_v19  ;;  %v2095_v7 = vmul.f32 1.442695, %v2083_v55 }
 0x81f   : > { %v2075_v52 = vpop.xlane.xlu0 %2074  ;;  %v2072_v56 = vpop.xlane.xlu1 %2071 }
 0x820   : > { %12174 = vpow2.f32 %v2093_v45  ;;  %v2085_v16 = vsub.f32 %v2053_v15, %v2075_v52  ;;  %v2084_v36 = vsub.f32 %v2052_v34, %v2072_v56 }
 0x821   : > { %12176 = vpow2.f32 %v2095_v7  ;;  %v13731_v7 = vld [vmem:[%s12818_s16 + $0x34] ss:$8 sps:$4 sm:$0xff]  }
 0x822   : > { %v2099_v53 = vmul.f32 1.442695, %v2085_v16  ;;  %v2097_v58 = vmul.f32 1.442695, %v2084_v36  ;;  %2272 = vmatprep.subr.bf16.mxu1 %v13731_v7 }
 0x823   : > { %v2078_v10 = vpop.xlane.xlu1 %2077 }
 0x824   : > { %12178 = vpow2.f32 %v2099_v53  ;;  %v2086_v46 = vsub.f32 %v2054_v47, %v2078_v10 }
 0x825   : > { %v12169_v32 = vpop.eup %12168  ;;  %12180 = vpow2.f32 %v2097_v58 }
 0x826   : > { %v2101_v30 = vmul.f32 1.442695, %v2086_v46  ;;  %v2103_v23 = vsel %vm611_vm1, %v12169_v32, 0.0 }
 0x827   : > { %2104 = vadd.xlane.f32.xlu0 %v2103_v23 }
 0x828   : > { %12182 = vpow2.f32 %v2101_v30 }
 0x829   : > { %v12171_v19 = vpop.eup %12170 }
 0x82a   : > { %v12173_v17 = vpop.eup %12172  ;;  %v2109_v31 = vsel %vm611_vm1, %v12171_v19, 0.0 }
 0x82b   : > { %2110 = vadd.xlane.f32.xlu0 %v2109_v31  ;;  %v2106_v52 = vsel %vm611_vm1, %v12173_v17, 0.0 }
 0x82c   : > { %2107 = vadd.xlane.f32.xlu1 %v2106_v52 }
 0x82d   : > { %v12175_v15 = vpop.eup %12174 }
 0x82e   : > { %v12177_v34 = vpop.eup %12176  ;;  %v2112_v47 = vsel %vm611_vm1, %v12175_v15, 0.0 }
 0x82f   : > { %v2115_v25 = vsel %vm611_vm1, %v12177_v34, 0.0 }
 0x830   : > { %2116 = vadd.xlane.f32.xlu0 %v2115_v25  ;;  %2113 = vadd.xlane.f32.xlu1 %v2112_v47 }
 0x831   : > { %v12179_v18 = vpop.eup %12178 }
 0x832   : > { %v12181_v2 = vpop.eup %12180  ;;  %v2121_v8 = vsel %vm611_vm1, %v12179_v18, 0.0 }
 0x833   : > { %v2118_v22 = vsel %vm611_vm1, %v12181_v2, 0.0 }
 0x834   : > { %2122 = vadd.xlane.f32.xlu0 %v2121_v8  ;;  %2119 = vadd.xlane.f32.xlu1 %v2118_v22 }
 0x835   : > { %v12183_v55 = vpop.eup %12182 }
 0x836   : > { %v2124_v45 = vsel %vm611_vm1, %v12183_v55, 0.0 }
 0x838   : > { %2125 = vadd.xlane.f32.xlu1 %v2124_v45 }
 0x8b0   : > { %v2105_v56 = vpop.xlane.xlu0 %2104 }
 0x8b1   : > { %12184 = vrcp.f32 %v2105_v56 }
 0x8b4   : > { %v2111_v16 = vpop.xlane.xlu0 %2110 }
 0x8b5   : > { %v2108_v36 = vpop.xlane.xlu1 %2107 }
 0x8b6   : > { %12186 = vrcp.f32 %v2108_v36  ;;  %v13736_v36 = vld [vmem:[%s12818_s16 + $0x30] ss:$8 sps:$4 sm:$0xff]  }
 0x8b7   : > { %12188 = vrcp.f32 %v2111_v16 }
 0x8b9   : > { %v2117_v53 = vpop.xlane.xlu0 %2116  ;;  %v2114_v58 = vpop.xlane.xlu1 %2113 }
 0x8ba   : > { %12190 = vrcp.f32 %v2114_v58  ;;  %v13739_v58 = vld [vmem:[%s12818_s16 + $0x24] ss:$8 sps:$4 sm:$0xff]  }
 0x8bb   : > { %12192 = vrcp.f32 %v2117_v53 }
 0x8bd   : > { %v2123_v10 = vpop.xlane.xlu0 %2122  ;;  %v2120_v46 = vpop.xlane.xlu1 %2119 }
 0x8be   : > { %12194 = vrcp.f32 %v2120_v46  ;;  %v12185_v30 = vpop.eup %12184 }
 0x8bf   : > { %12196 = vrcp.f32 %v2123_v10  ;;  %v2135_v52 = vmul.f32 %v12185_v30, %v12169_v32  ;;  %v13744_v30 = vld [vmem:[%s12818_s16 + $0x20] ss:$8 sps:$4 sm:$0xff]  }
 0x8c1   : > { %v2126_v23 = vpop.xlane.xlu1 %2125 }
 0x8c2   : > { %12198 = vrcp.f32 %v2126_v23 }
 0x8c3   : > { %v12187_v31 = vpop.eup %12186 }
 0x8c4   : > { %v2136_v47 = vmul.f32 %v12187_v31, %v12173_v17  ;;  %v12189_v25 = vpop.eup %12188 }
 0x8c5   : > { %v2137_v45 = vmul.f32 %v12189_v25, %v12171_v19 }
 0x8c6   : > { %v2143_v8 = vpack.c.bf16 %v2136_v47, %v2135_v52 }
 0x8c7   : > { %v12191_v22 = vpop.eup %12190 }
 0x8c8   : > { %11321 = vmatprep.mubr.msk.bf16.mxu1 %vm611_vm1, %v2143_v8  ;;  %v2138_v56 = vmul.f32 %v12191_v22, %v12175_v15  ;;  %v12193_v16 = vpop.eup %12192 }
 0x8c9   : > { %v2139_v32 = vmul.f32 %v12193_v16, %v12177_v34  ;;  %v2449_v16 = vsel %vm1222_vm2, %v13554_v38, 0 }
 0x8ca   : > { %v2144_v53 = vpack.c.bf16 %v2138_v56, %v2137_v45 }
 0x8cb   : > { %v12195_v10 = vpop.eup %12194 }
 0x8cc   : > { %v12197_v46 = vpop.eup %12196  ;;  %11322 = vmatmul.mubr.msk.bf16.vlgmr.msra.gmra.mxu1 %vm611_vm1, %v2144_v53  ;;  %v2140_v17 = vmul.f32 %v12195_v10, %v12181_v2 }
 0x8cd   : > { %2273 = vmatpush1.bf16.msra.mxu1 %v13736_v36  ;;  %v2141_v15 = vmul.f32 %v12197_v46, %v12179_v18  ;;  %v2452_v18 = vsel %vm1222_vm2, %v13561_v48, 0  ;;  %v2446_v46 = vsel %vm1222_vm2, %v13499_v11, 0 }
 0x8ce   : > { %2274 = vmatprep.subr.bf16.mxu1 %v13739_v58  ;;  %v2145_v19 = vpack.c.bf16 %v2140_v17, %v2139_v32  ;;  %v2443_v17 = vsel %vm1222_vm2, %v13497_v57, 0 }
 0x8cf   : > { %v12199_v23 = vpop.eup %12198 }
 0x8d0   : > { %v2142_v31 = vmul.f32 %v12199_v23, %v12183_v55  ;;  %11325 = vmatprep.mubr.msk.bf16.mxu1 %vm611_vm1, %v2145_v19 }
 0x8d1   : > { %2275 = vmatpush1.bf16.msra.mxu1 %v13744_v30 }
 0x8d2   : > { %v2146_v52 = vpack.c.bf16 %v2142_v31, %v2141_v15  ;;  %11637 = vmatprep.subr.msk.bf16.mxu1 %vm1222_vm2, %v13561_v48 }
 0x8d4   : > { %11326 = vmatmul.mubr.msk.bf16.gmra.mxu1 %vm611_vm1, %v2146_v52 }
 0x8d5   : > { %2292 = vmatprep.mubr.bf16.mxu1 %v17006_v60 }
 0x98c   : > { %v11323_v34 = vpop.f32.mrf.mxu1 }
 0x98e   : > { %v2193_v2 = vpop.f32.mrf.mxu1 }
 0x990   : > { %v11324_v47 = vpop.f32.mrf.mxu1 }
 0x991   : > { %v2225_v45 = vpack.c.bf16 %v11324_v47, %v11323_v34 }
 0x992   : > { %v2196_v25 = vpop.f32.mrf.mxu1 }
 0x993   : > { %v2224_v8 = vpack.c.bf16 %v2196_v25, %v2193_v2 }
 0x994   : > { %v11327_v22 = vpop.f32.mrf.mxu1 }
 0x995   : > { %10447 = vmatmul.mubr.msk.bf16.vlgmr.msra.gmra.mxu1 %vm1222_vm2, %v2224_v8 }
 0x996   : > { %11330 = vmatpush3.bf16.xpose.msra.mxu1 %v2452_v18  ;;  %2302 = vmatprep.mubr.bf16.mxu1 %v17006_v60  ;;  %v2209_v55 = vpop.f32.mrf.mxu1 }
 0x997   : > { %11638 = vmatprep.subr.msk.bf16.mxu1 %vm1222_vm2, %v13554_v38 }
 0x998   : > { %v11328_v56 = vpop.f32.mrf.mxu1 }
 0x999   : > { %v2227_v32 = vpack.c.bf16 %v11328_v56, %v11327_v22 }
 0x99a   : > { %v2212_v53 = vpop.f32.mrf.mxu1 }
 0x99b   : > { %v2226_v10 = vpack.c.bf16 %v2212_v53, %v2209_v55 }
 0x99d   : > { %10448 = vmatmul.mubr.msk.bf16.gmra.mxu1 %vm1222_vm2, %v2225_v45 }
 0x99e   : > { %11332 = vmatpush3.bf16.xpose.msra.mxu1 %v2449_v16  ;;  %2312 = vmatprep.mubr.bf16.mxu1 %v17006_v60 }
 0x99f   : > { %11639 = vmatprep.subr.msk.bf16.mxu1 %vm1222_vm2, %v13499_v11 }
 0x9a5   : > { %10449 = vmatmul.mubr.msk.bf16.gmra.mxu1 %vm1222_vm2, %v2226_v10 }
 0x9a6   : > { %11334 = vmatpush3.bf16.xpose.msra.mxu1 %v2446_v46  ;;  %2322 = vmatprep.mubr.bf16.mxu1 %v17006_v60 }
 0x9a7   : > { %11640 = vmatprep.subr.msk.bf16.mxu1 %vm1222_vm2, %v13497_v57 }
 0x9ad   : > { %10450 = vmatmul.mubr.msk.bf16.gmra.mxu1 %vm1222_vm2, %v2227_v32 }
 0x9ae   : > { %11336 = vmatpush3.bf16.xpose.msra.mxu1 %v2443_v17  ;;  %11337 = vmatprep.mubr.msk.bf16.mxu1 %vm1222_vm2, %v13497_v57 }
 0x9af   : > { %11617 = vmatprep.subr.bf16.mxu1 %v13561_v48 }
 0x9b5   : > { %11338 = vmatmul.mubr.msk.bf16.vlgmr.msra.gmra.mxu1 %vm1222_vm2, %v13499_v11 }
 0x9b6   : > { %11621 = vmatpush3.bf16.msra.mxu1 %v13561_v48  ;;  %11341 = vmatprep.mubr.msk.bf16.mxu1 %vm1222_vm2, %v13554_v38 }
 0x9b7   : > { %11618 = vmatprep.subr.bf16.mxu1 %v13554_v38 }
 0x9ba   : > { %11622 = vmatpush3.bf16.msra.mxu1 %v13554_v38 }
 0x9bb   : > { %11619 = vmatprep.subr.bf16.mxu1 %v13499_v11 }
 0x9bd   : > { %11342 = vmatmul.mubr.msk.bf16.gmra.mxu1 %vm1222_vm2, %v13561_v48 }
 0x9be   : > { %11623 = vmatpush3.bf16.msra.mxu1 %v13499_v11 }
 0x9bf   : > { %11620 = vmatprep.subr.bf16.mxu1 %v13497_v57 }
 0x9c2   : > { %11624 = vmatpush3.bf16.msra.mxu1 %v13497_v57 }
 0x9c3   : > { %2732 = vmatprep.subr.bf16.mxu1 %v13731_v7 }
 0xa55   : > { %v13791_v23 = vpop.f32.mrf.mxu1 }
 0xa57   : > { %v13793_v19 = vpop.f32.mrf.mxu1 }
 0xa59   : > { %v13795_v15 = vpop.f32.mrf.mxu1 }
 0xa5b   : > { %v13797_v38 = vpop.f32.mrf.mxu1 }
 0xa5c   : > { %17007 = vst [vmem:[#allocation17_spill] sm:$0xff] %v13797_v38 }
 0xa5d   : > { %v13799_v31 = vpop.f32.mrf.mxu1 }
 0xa5e   : > { %17008 = vst [vmem:[#allocation18_spill] sm:$0xff] %v13799_v31 }
 0xa5f   : > { %v13801_v52 = vpop.f32.mrf.mxu1 }
 0xa60   : > { %17009 = vst [vmem:[#allocation19_spill] sm:$0xff] %v13801_v52 }
 0xa61   : > { %v13803_v48 = vpop.f32.mrf.mxu1 }
 0xa62   : > { %17010 = vst [vmem:[#allocation20_spill] sm:$0xff] %v13803_v48 }
 0xa63   : > { %v13805_v11 = vpop.f32.mrf.mxu1 }
 0xa64   : > { %17011 = vst [vmem:[#allocation21_spill] sm:$0xff] %v13805_v11 }
 0xa65   : > { %v13807_v34 = vpop.f32.mrf.mxu1 }
 0xa66   : > { %17012 = vst [vmem:[#allocation22_spill] sm:$0xff] %v13807_v34 }
 0xa67   : > { %v13809_v57 = vpop.f32.mrf.mxu1 }
 0xa68   : > { %17013 = vst [vmem:[#allocation23_spill] sm:$0xff] %v13809_v57 }
 0xa69   : > { %v13811_v7 = vpop.f32.mrf.mxu1 }
 0xa6a   : > { %17014 = vst [vmem:[#allocation24_spill] sm:$0xff] %v13811_v7 }
 0xa6b   : > { %v13813_v2 = vpop.f32.mrf.mxu1 }
 0xa6c   : > { %17015 = vst [vmem:[#allocation25_spill] sm:$0xff] %v13813_v2 }
 0xa6d   : > { %v13815_v47 = vpop.f32.mrf.mxu1 }
 0xa6e   : > { %17016 = vst [vmem:[#allocation26_spill] sm:$0xff] %v13815_v47 }
 0xa6f   : > { %v13817_v25 = vpop.f32.mrf.mxu1 }
 0xa70   : > { %17017 = vst [vmem:[#allocation27_spill] sm:$0xff] %v13817_v25 }
 0xa71   : > { %v13819_v8 = vpop.f32.mrf.mxu1 }
 0xa72   : > { %17018 = vst [vmem:[#allocation28_spill] sm:$0xff] %v13819_v8 }
 0xa73   : > { %v13821_v22 = vpop.f32.mrf.mxu1 }
 0xa74   : > { %17019 = vst [vmem:[#allocation29_spill] sm:$0xff] %v13821_v22 }
 0xa75   : > { %v11339_v18 = vpop.f32.mrf.mxu1 }
 0xa76   : > { %v2521_v45 = vmul.f32 0.07216878, %v11339_v18 }
 0xa77   : > { %v2488_v55 = vpop.f32.mrf.mxu1 }
 0xa78   : > { %v2519_v56 = vmul.f32 0.07216878, %v2488_v55  ;;  %v2529_v6 = vadd.f32 %v2521_v45, %v13511_v62 }
 0xa79   : > { %v11340_v16 = vpop.f32.mrf.mxu1 }
 0xa7a   : > { %v2527_v53 = vadd.f32 %v2519_v56, %v13508_v44  ;;  %v2522_v10 = vmul.f32 0.07216878, %v11340_v16  ;;  %v2541_v55 = vsel %vm611_vm1, %v2529_v6, -inf }
 0xa7b   : > { %v2491_v46 = vpop.f32.mrf.mxu1 }
 0xa7c   : > { %v2520_v32 = vmul.f32 0.07216878, %v2491_v46  ;;  %v2535_v17 = vsel %vm611_vm1, %v2527_v53, -inf  ;;  %v2530_v22 = vadd.f32 %v2522_v10, %v13519_v29 }
 0xa7d   : > { %2536 = vmax.xlane.f32.xlu0 %v2535_v17  ;;  %v11343_v2 = vpop.f32.mrf.mxu1 }
 0xa7e   : > { %v2528_v39 = vadd.f32 %v2520_v32, %v13517_v54  ;;  %v2525_v38 = vmul.f32 0.07216878, %v11343_v2  ;;  %v2544_v45 = vsel %vm611_vm1, %v2530_v22, -inf }
 0xa7f   : > { %v2504_v11 = vpop.f32.mrf.mxu1 }
 0xa80   : > { %v2523_v18 = vmul.f32 0.07216878, %v2504_v11  ;;  %v2538_v56 = vsel %vm611_vm1, %v2528_v39, -inf  ;;  %v2533_v10 = vadd.f32 %v2525_v38, %v13537_v37 }
 0xa81   : > { %2542 = vmax.xlane.f32.xlu0 %v2541_v55  ;;  %2539 = vmax.xlane.f32.xlu1 %v2538_v56  ;;  %v11344_v16 = vpop.f32.mrf.mxu1 }
 0xa82   : > { %v2531_v46 = vadd.f32 %v2523_v18, %v13532_v51  ;;  %v2526_v17 = vmul.f32 0.07216878, %v11344_v16  ;;  %v2553_v2 = vsel %vm611_vm1, %v2533_v10, -inf }
 0xa83   : > { %v2507_v8 = vpop.f32.mrf.mxu1 }
 0xa84   : > { %v2524_v25 = vmul.f32 0.07216878, %v2507_v8  ;;  %v2547_v32 = vsel %vm611_vm1, %v2531_v46, -inf  ;;  %v2534_v56 = vadd.f32 %v2526_v17, %v13546_v0 }
 0xa85   : > { %2545 = vmax.xlane.f32.xlu1 %v2544_v45  ;;  %2548 = vmax.xlane.f32.xlu0 %v2547_v32 }
 0xa86   : > { %v2532_v11 = vadd.f32 %v2524_v25, %v13542_v12  ;;  %v2556_v18 = vsel %vm611_vm1, %v2534_v56, -inf }
 0xa88   : > { %v2550_v55 = vsel %vm611_vm1, %v2532_v11, -inf }
 0xa89   : > { %2554 = vmax.xlane.f32.xlu0 %v2553_v2  ;;  %2551 = vmax.xlane.f32.xlu1 %v2550_v55 }
 0xa8d   : > { %2557 = vmax.xlane.f32.xlu1 %v2556_v18 }
 0xb06   : > { %v2537_v8 = vpop.xlane.xlu0 %2536 }
 0xb07   : > { %v2559_v16 = vsub.f32 %v2527_v53, %v2537_v8 }
 0xb09   : > { %v2567_v47 = vmul.f32 1.442695, %v2559_v16 }
 0xb0a   : > { %v2543_v7 = vpop.xlane.xlu0 %2542  ;;  %v2540_v38 = vpop.xlane.xlu1 %2539 }
 0xb0b   : > { %12200 = vpow2.f32 %v2567_v47  ;;  %v2561_v45 = vsub.f32 %v2529_v6, %v2543_v7  ;;  %v2560_v32 = vsub.f32 %v2528_v39, %v2540_v38 }
 0xb0d   : > { %v2571_v25 = vmul.f32 1.442695, %v2561_v45  ;;  %v2569_v57 = vmul.f32 1.442695, %v2560_v32 }
 0xb0e   : > { %v2546_v34 = vpop.xlane.xlu1 %2545  ;;  %v2549_v48 = vpop.xlane.xlu0 %2548 }
 0xb0f   : > { %12202 = vpow2.f32 %v2571_v25  ;;  %v2562_v52 = vsub.f32 %v2530_v22, %v2546_v34  ;;  %v2563_v17 = vsub.f32 %v2531_v46, %v2549_v48 }
 0xb10   : > { %12204 = vpow2.f32 %v2569_v57 }
 0xb11   : > { %v2573_v2 = vmul.f32 1.442695, %v2562_v52  ;;  %v2575_v55 = vmul.f32 1.442695, %v2563_v17 }
 0xb12   : > { %v2555_v31 = vpop.xlane.xlu0 %2554  ;;  %v2552_v18 = vpop.xlane.xlu1 %2551 }
 0xb13   : > { %12206 = vpow2.f32 %v2573_v2  ;;  %v2565_v53 = vsub.f32 %v2533_v10, %v2555_v31  ;;  %v2564_v8 = vsub.f32 %v2532_v11, %v2552_v18 }
 0xb14   : > { %12208 = vpow2.f32 %v2575_v55 }
 0xb15   : > { %v2579_v16 = vmul.f32 1.442695, %v2565_v53  ;;  %v2577_v47 = vmul.f32 1.442695, %v2564_v8 }
 0xb16   : > { %v2558_v6 = vpop.xlane.xlu1 %2557 }
 0xb17   : > { %12210 = vpow2.f32 %v2579_v16  ;;  %v2566_v39 = vsub.f32 %v2534_v56, %v2558_v6 }
 0xb18   : > { %v12201_v7 = vpop.eup %12200  ;;  %12212 = vpow2.f32 %v2577_v47 }
 0xb19   : > { %v2581_v38 = vmul.f32 1.442695, %v2566_v39  ;;  %v2583_v34 = vsel %vm611_vm1, %v12201_v7, 0.0 }
 0xb1a   : > { %2584 = vadd.xlane.f32.xlu0 %v2583_v34 }
 0xb1b   : > { %12214 = vpow2.f32 %v2581_v38 }
 0xb1c   : > { %v12203_v52 = vpop.eup %12202 }
 0xb1d   : > { %v12205_v48 = vpop.eup %12204  ;;  %v2589_v57 = vsel %vm611_vm1, %v12203_v52, 0.0 }
 0xb1e   : > { %2590 = vadd.xlane.f32.xlu0 %v2589_v57  ;;  %v2586_v31 = vsel %vm611_vm1, %v12205_v48, 0.0 }
 0xb1f   : > { %2587 = vadd.xlane.f32.xlu1 %v2586_v31 }
 0xb20   : > { %v12207_v22 = vpop.eup %12206 }
 0xb21   : > { %v12209_v46 = vpop.eup %12208  ;;  %v2592_v10 = vsel %vm611_vm1, %v12207_v22, 0.0 }
 0xb22   : > { %v2595_v11 = vsel %vm611_vm1, %v12209_v46, 0.0 }
 0xb23   : > { %2596 = vadd.xlane.f32.xlu0 %v2595_v11  ;;  %2593 = vadd.xlane.f32.xlu1 %v2592_v10 }
 0xb24   : > { %v12211_v56 = vpop.eup %12210 }
 0xb25   : > { %v12213_v45 = vpop.eup %12212  ;;  %v2601_v32 = vsel %vm611_vm1, %v12211_v56, 0.0 }
 0xb26   : > { %v2598_v25 = vsel %vm611_vm1, %v12213_v45, 0.0 }
 0xb27   : > { %2602 = vadd.xlane.f32.xlu0 %v2601_v32  ;;  %2599 = vadd.xlane.f32.xlu1 %v2598_v25 }
 0xb28   : > { %v12215_v17 = vpop.eup %12214 }
 0xb29   : > { %v2604_v2 = vsel %vm611_vm1, %v12215_v17, 0.0 }
 0xb2b   : > { %2605 = vadd.xlane.f32.xlu1 %v2604_v2 }
 0xba3   : > { %v2585_v55 = vpop.xlane.xlu0 %2584 }
 0xba4   : > { %12216 = vrcp.f32 %v2585_v55 }
 0xba7   : > { %v2591_v18 = vpop.xlane.xlu0 %2590 }
 0xba8   : > { %v2588_v53 = vpop.xlane.xlu1 %2587 }
 0xba9   : > { %12218 = vrcp.f32 %v2588_v53 }
 0xbaa   : > { %12220 = vrcp.f32 %v2591_v18 }
 0xbac   : > { %v2597_v8 = vpop.xlane.xlu0 %2596  ;;  %v2594_v16 = vpop.xlane.xlu1 %2593 }
 0xbad   : > { %12222 = vrcp.f32 %v2594_v16 }
 0xbae   : > { %12224 = vrcp.f32 %v2597_v8 }
 0xbb0   : > { %v2603_v47 = vpop.xlane.xlu0 %2602  ;;  %v2600_v6 = vpop.xlane.xlu1 %2599 }
 0xbb1   : > { %12226 = vrcp.f32 %v2600_v6  ;;  %v12217_v39 = vpop.eup %12216  ;;  %v12520_v6 = vld [vmem:[%s12818_s16 + $0x10] ss:$8 sps:$4 sm:$0xff]  }
 0xbb2   : > { %12228 = vrcp.f32 %v2603_v47  ;;  %v2615_v57 = vmul.f32 %v12217_v39, %v12201_v7  ;;  %v12521_v39 = vld [vmem:[%s12818_s16 + $0x4] ss:$8 sps:$4 sm:$0xff]  }
 0xbb4   : > { %v2606_v38 = vpop.xlane.xlu1 %2605 }
 0xbb5   : > { %12230 = vrcp.f32 %v2606_v38 }
 0xbb6   : > { %v12219_v34 = vpop.eup %12218 }
 0xbb7   : > { %v2616_v31 = vmul.f32 %v12219_v34, %v12205_v48  ;;  %v12221_v10 = vpop.eup %12220 }
 0xbb8   : > { %v2617_v25 = vmul.f32 %v12221_v10, %v12203_v52 }
 0xbb9   : > { %v2623_v11 = vpack.c.bf16 %v2616_v31, %v2615_v57  ;;  %v1755_v57 = vpack.c.bf16 %v13694_v20, %v13688_v1  ;;  %v1757_v1 = vpack.c.bf16 %v13704_v43, %v13698_v28  ;;  %v17021_v20 = vpack.c.bf16 %v13700_v5, %v13696_v35 }
 0xbba   : > { %v12223_v32 = vpop.eup %12222 }
 0xbbb   : > { %11353 = vmatprep.mubr.msk.bf16.mxu0 %vm611_vm1, %v2623_v11  ;;  %v2618_v2 = vmul.f32 %v12223_v32, %v12207_v22  ;;  %v12225_v55 = vpop.eup %12224  ;;  %v12522_v22 = vld [vmem:[%s12818_s16] ss:$8 sps:$4 sm:$0xff]  }
 0xbbc   : > { %v2619_v16 = vmul.f32 %v12225_v55, %v12209_v46  ;;  %v17020_v46 = vpack.c.bf16 %v13690_v3, %v13686_v63 }
 0xbbd   : > { %v2624_v18 = vpack.c.bf16 %v2618_v2, %v2617_v25 }
 0xbbe   : > { %v12227_v53 = vpop.eup %12226 }
 0xbbf   : > { %v12229_v8 = vpop.eup %12228  ;;  %11354 = vmatmul.mubr.msk.bf16.vlgmr.msra.gmra.mxu0 %vm611_vm1, %v2624_v18  ;;  %v2620_v47 = vmul.f32 %v12227_v53, %v12213_v45  ;;  %v11748_v53 = vld [vmem:[%s12808_s27 + $0xf8] sm:$0xff]  }
 0xbc0   : > { %2818 = vmatpush1.bf16.msra.mxu0 %v12520_v6  ;;  %2837 = vmatprep.mubr.bf16.mxu0 %v17006_v60  ;;  %v2621_v38 = vmul.f32 %v12229_v8, %v12211_v56 }
 0xbc1   : > { %v2625_v48 = vpack.c.bf16 %v2620_v47, %v2619_v16  ;;  %2819 = vmatprep.subr.bf16.mxu0 %v12521_v39  ;;  %v11749_v47 = vld [vmem:[%s12808_s27 + $0xf0] sm:$0xff]  }
 0xbc2   : > { %v12231_v7 = vpop.eup %12230 }
 0xbc3   : > { %v2622_v52 = vmul.f32 %v12231_v7, %v12215_v17  ;;  %11357 = vmatprep.mubr.msk.bf16.mxu1 %vm611_vm1, %v2625_v48  ;;  %v11750_v7 = vld [vmem:[%s12808_s27 + $0xe8] sm:$0xff]  }
 0xbc4   : > { %2820 = vmatpush1.bf16.msra.mxu0 %v12522_v22  ;;  %v11752_v22 = vld [vmem:[%s12808_s27 + $0xd8] sm:$0xff]  }
 0xbc5   : > { %v2626_v34 = vpack.c.bf16 %v2622_v52, %v2621_v38  ;;  %v11751_v38 = vld [vmem:[%s12808_s27 + $0xe0] sm:$0xff]  }
 0xbc7   : > { %11358 = vmatmul.mubr.msk.bf16.vlgmr.msra.gmra.mxu1 %vm611_vm1, %v2626_v34  ;;  %10471 = vmatmul.mubr.msk.bf16.vlgmr.msra.gmra.mxu0 %vm1222_vm2, %v1755_v57  ;;  %v11753_v57 = vld [vmem:[%s12808_s27 + $0xd0] sm:$0xff]  }
 0xbc8   : > { %2733 = vmatpush1.bf16.msra.mxu1 %v13736_v36  ;;  %2847 = vmatprep.mubr.bf16.mxu0 %v17006_v60  ;;  %v13877_v36 = vpop.f32.mrf.mxu0 }
 0xbc9   : > { %2734 = vmatprep.subr.bf16.mxu1 %v13739_v58  ;;  %2752 = vmatprep.mubr.bf16.mxu1 %v17006_v60 }
 0xbca   : > { %v13879_v58 = vpop.f32.mrf.mxu0 }
 0xbcc   : > { %2735 = vmatpush1.bf16.msra.mxu1 %v13744_v30  ;;  %v13881_v63 = vpop.f32.mrf.mxu0 }
 0xbcd   : > { %2975 = vmatprep.subr.bf16.mxu1 %v17006_v60 }
 0xbce   : > { %v13883_v3 = vpop.f32.mrf.mxu0 }
 0xbcf   : > { %10472 = vmatmul.mubr.msk.bf16.gmra.mxu0 %vm1222_vm2, %v17020_v46  ;;  %17022 = vst [vmem:[#allocation30_spill] sm:$0xff] %v13883_v3  ;;  %v11754_v46 = vld [vmem:[%s12808_s27 + $0xc8] sm:$0xff]  }
 0xbd0   : > { %2857 = vmatprep.mubr.bf16.mxu0 %v17006_v60  ;;  %v13885_v30 = vpop.f32.mrf.mxu0 }
 0xbd2   : > { %v13887_v28 = vpop.f32.mrf.mxu0 }
 0xbd4   : > { %v13889_v43 = vpop.f32.mrf.mxu0 }
 0xbd6   : > { %v13891_v56 = vpop.f32.mrf.mxu0 }
 0xbd7   : > { %10473 = vmatmul.mubr.msk.bf16.gmra.mxu0 %vm1222_vm2, %v1757_v1  ;;  %17023 = vst [vmem:[#allocation31_spill] sm:$0xff] %v13891_v56 }
 0xbd8   : > { %2867 = vmatprep.mubr.bf16.mxu0 %v17006_v60  ;;  %v13893_v35 = vpop.f32.mrf.mxu0 }
 0xbda   : > { %v13895_v5 = vpop.f32.mrf.mxu0 }
 0xbdc   : > { %v13897_v45 = vpop.f32.mrf.mxu0 }
 0xbde   : > { %v13899_v17 = vpop.f32.mrf.mxu0 }
 0xbdf   : > { %10474 = vmatmul.mubr.msk.bf16.gmra.mxu0 %vm1222_vm2, %v17021_v20  ;;  %17024 = vst [vmem:[#allocation32_spill] sm:$0xff] %v13899_v17  ;;  %v11755_v20 = vld [vmem:[%s12808_s27 + $0xc0] sm:$0xff]  }
 0xbe0   : > { %v13901_v31 = vpop.f32.mrf.mxu0 }
 0xbe2   : > { %v13903_v10 = vpop.f32.mrf.mxu0 }
 0xbe4   : > { %v13905_v11 = vpop.f32.mrf.mxu0 }
 0xbe6   : > { %v13907_v32 = vpop.f32.mrf.mxu0 }
 0xbe7   : > { %17025 = vst [vmem:[#allocation33_spill] sm:$0xff] %v13907_v32 }
 0xc7f   : > { %v11355_v25 = vpop.f32.mrf.mxu0 }
 0xc81   : > { %v2673_v2 = vpop.f32.mrf.mxu0 }
 0xc83   : > { %v11356_v55 = vpop.f32.mrf.mxu0 }
 0xc84   : > { %v2705_v48 = vpack.c.bf16 %v11356_v55, %v11355_v25  ;;  %v11756_v25 = vld [vmem:[%s12808_s27 + $0x118] sm:$0xff]   ;;  %v11758_v55 = vld [vmem:[%s12808_s27 + $0x108] sm:$0xff]  }
 0xc85   : > { %v2676_v18 = vpop.f32.mrf.mxu0 }
 0xc86   : > { %v2704_v8 = vpack.c.bf16 %v2676_v18, %v2673_v2  ;;  %v11757_v2 = vld [vmem:[%s12808_s27 + $0x110] sm:$0xff]   ;;  %v11759_v18 = vld [vmem:[%s12808_s27 + $0x100] sm:$0xff]  }
 0xc87   : > { %v11359_v16 = vpop.f32.mrf.mxu1 }
 0xc88   : > { %10467 = vmatmul.mubr.msk.bf16.vlgmr.msra.gmra.mxu1 %vm1222_vm2, %v2704_v8 }
 0xc89   : > { %2976 = vmatpush1.bf16.msra.mxu1 %v11748_v53  ;;  %2762 = vmatprep.mubr.bf16.mxu1 %v17006_v60  ;;  %v2689_v6 = vpop.f32.mrf.mxu1 }
 0xc8a   : > { %2977 = vmatprep.subr.bf16.mxu1 %v17006_v60 }
 0xc8b   : > { %v11360_v39 = vpop.f32.mrf.mxu1 }
 0xc8c   : > { %v2707_v1 = vpack.c.bf16 %v11360_v39, %v11359_v16 }
 0xc8d   : > { %2978 = vmatpush1.bf16.msra.mxu1 %v11749_v47  ;;  %v2692_v52 = vpop.f32.mrf.mxu1 }
 0xc8e   : > { %2979 = vmatprep.subr.bf16.mxu1 %v17006_v60  ;;  %v2706_v34 = vpack.c.bf16 %v2692_v52, %v2689_v6 }
 0xc90   : > { %10468 = vmatmul.mubr.msk.bf16.gmra.mxu1 %vm1222_vm2, %v2705_v48 }
 0xc91   : > { %2980 = vmatpush1.bf16.msra.mxu1 %v11750_v7  ;;  %2772 = vmatprep.mubr.bf16.mxu1 %v17006_v60 }
 0xc92   : > { %2981 = vmatprep.subr.bf16.mxu1 %v17006_v60 }
 0xc95   : > { %2982 = vmatpush1.bf16.msra.mxu1 %v11751_v38 }
 0xc96   : > { %2983 = vmatprep.subr.bf16.mxu1 %v17006_v60 }
 0xc98   : > { %10469 = vmatmul.mubr.msk.bf16.gmra.mxu1 %vm1222_vm2, %v2706_v34 }
 0xc99   : > { %2984 = vmatpush1.bf16.msra.mxu1 %v11752_v22  ;;  %2782 = vmatprep.mubr.bf16.mxu1 %v17006_v60 }
 0xc9a   : > { %2985 = vmatprep.subr.bf16.mxu1 %v17006_v60 }
 0xc9d   : > { %2986 = vmatpush1.bf16.msra.mxu1 %v11753_v57 }
 0xc9e   : > { %2987 = vmatprep.subr.bf16.mxu1 %v17006_v60 }
 0xca0   : > { %10470 = vmatmul.mubr.msk.bf16.gmra.mxu1 %vm1222_vm2, %v2707_v1 }
 0xca1   : > { %2988 = vmatpush1.bf16.msra.mxu1 %v11754_v46  ;;  %10511 = vmatprep.mubr.msk.bf16.mxu1 %vm611_vm1, %v13233_v9 }
 0xca2   : > { %2989 = vmatprep.subr.bf16.mxu1 %v17006_v60 }
 0xca5   : > { %2990 = vmatpush1.bf16.msra.mxu1 %v11755_v20 }
 0xca6   : > { %2999 = vmatprep.subr.bf16.mxu1 %v17006_v60 }
 0xca9   : > { %3000 = vmatpush2.bf16.msra.mxu1 %v11756_v25 }
 0xcaa   : > { %3001 = vmatprep.subr.bf16.mxu1 %v17006_v60 }
 0xcad   : > { %3002 = vmatpush2.bf16.msra.mxu1 %v11757_v2 }
 0xcae   : > { %3003 = vmatprep.subr.bf16.mxu1 %v17006_v60 }
 0xcb1   : > { %3004 = vmatpush2.bf16.msra.mxu1 %v11758_v55 }
 0xcb2   : > { %3005 = vmatprep.subr.bf16.mxu1 %v17006_v60 }
 0xcb5   : > { %3006 = vmatpush2.bf16.msra.mxu1 %v11759_v18 }
 0xcb8   : > { %3008 = vmatmul.mubr.bf16.vlgmr.msra.gmra.mxu1 %v13239_v41 }
 0xcb9   : > { %10512 = vmatprep.mubr.msk.bf16.mxu1 %vm611_vm1, %v13246_v49 }
 0xcc0   : > { %3016 = vmatmul.mubr.bf16.gmra.mxu1 %v13281_v24 }
 0xcc1   : > { %10513 = vmatprep.mubr.msk.bf16.mxu1 %vm611_vm1, %v13285_v42 }
 0xcc8   : > { %3024 = vmatmul.mubr.bf16.gmra.mxu1 %v13330_v4 }
 0xcc9   : > { %10514 = vmatprep.mubr.msk.bf16.mxu1 %vm611_vm1, %v13332_v14 }
 0xcd0   : > { %3032 = vmatmul.mubr.bf16.gmra.mxu1 %v13340_v27 }
 0xcd1   : > { %10515 = vmatprep.mubr.msk.bf16.mxu1 %vm611_vm1, %v13378_v40 }
 0xcd8   : > { %3040 = vmatmul.mubr.bf16.gmra.mxu1 %v13380_v26 }
 0xcd9   : > { %10516 = vmatprep.mubr.msk.bf16.mxu1 %vm611_vm1, %v13403_v21 }
 0xce0   : > { %3048 = vmatmul.mubr.bf16.gmra.mxu1 %v13405_v50 }
 0xce1   : > { %10517 = vmatprep.mubr.msk.bf16.mxu1 %vm611_vm1, %v13422_v33 }
 0xce8   : > { %3056 = vmatmul.mubr.bf16.gmra.mxu1 %v13429_v13 }
 0xce9   : > { %10518 = vmatprep.mubr.msk.bf16.mxu1 %vm611_vm1, %v13432_v61 }
 0xcf0   : > { %3064 = vmatmul.mubr.bf16.gmra.mxu1 %v13439_v59 }
 0xd48   : > { %v13963_v53 = vpop.f32.mrf.mxu1 }
 0xd49   : > { %17026 = vst [vmem:[#allocation34_spill] sm:$0xff] %v13963_v53 }
 0xd4a   : > { %v13965_v8 = vpop.f32.mrf.mxu1 }
 0xd4b   : > { %17027 = vst [vmem:[#allocation35_spill] sm:$0xff] %v13965_v8 }
 0xd4c   : > { %v13967_v16 = vpop.f32.mrf.mxu1 }
 0xd4d   : > { %17028 = vst [vmem:[#allocation36_spill] sm:$0xff] %v13967_v16 }
 0xd4e   : > { %v13969_v47 = vpop.f32.mrf.mxu1 }
 0xd4f   : > { %17029 = vst [vmem:[#allocation37_spill] sm:$0xff] %v13969_v47 }
 0xd50   : > { %v13971_v6 = vpop.f32.mrf.mxu1 }
 0xd51   : > { %17030 = vst [vmem:[#allocation38_spill] sm:$0xff] %v13971_v6 }
 0xd52   : > { %v13973_v7 = vpop.f32.mrf.mxu1 }
 0xd53   : > { %17031 = vst [vmem:[#allocation39_spill] sm:$0xff] %v13973_v7 }
 0xd54   : > { %v13975_v48 = vpop.f32.mrf.mxu1 }
 0xd55   : > { %17032 = vst [vmem:[#allocation40_spill] sm:$0xff] %v13975_v48 }
 0xd56   : > { %v13977_v39 = vpop.f32.mrf.mxu1 }
 0xd57   : > { %17033 = vst [vmem:[#allocation41_spill] sm:$0xff] %v13977_v39 }
 0xd58   : > { %v13979_v38 = vpop.f32.mrf.mxu1 }
 0xd59   : > { %17034 = vst [vmem:[#allocation42_spill] sm:$0xff] %v13979_v38 }
 0xd5a   : > { %v13981_v52 = vpop.f32.mrf.mxu1 }
 0xd5b   : > { %17035 = vst [vmem:[#allocation43_spill] sm:$0xff] %v13981_v52 }
 0xd5c   : > { %v13983_v22 = vpop.f32.mrf.mxu1 }
 0xd5d   : > { %17036 = vst [vmem:[#allocation44_spill] sm:$0xff] %v13983_v22 }
 0xd5e   : > { %v13985_v34 = vpop.f32.mrf.mxu1 }
 0xd5f   : > { %17037 = vst [vmem:[#allocation45_spill] sm:$0xff] %v13985_v34 }
 0xd60   : > { %v13987_v57 = vpop.f32.mrf.mxu1 }
 0xd61   : > { %17038 = vst [vmem:[#allocation46_spill] sm:$0xff] %v13987_v57 }
 0xd62   : > { %v13989_v46 = vpop.f32.mrf.mxu1 }
 0xd63   : > { %17039 = vst [vmem:[#allocation47_spill] sm:$0xff] %v13989_v46 }
 0xd64   : > { %v13991_v1 = vpop.f32.mrf.mxu1 }
 0xd65   : > { %17040 = vst [vmem:[#allocation48_spill] sm:$0xff] %v13991_v1 }
 0xd66   : > { %v13993_v20 = vpop.f32.mrf.mxu1 }
 0xd67   : > { %17041 = vst [vmem:[#allocation49_spill] sm:$0xff] %v13993_v20 }
 0xd78   : > { %v3009_v25 = vpop.f32.mrf.mxu1 }
 0xd7a   : > { %v3011_v2 = vpop.f32.mrf.mxu1 }
 0xd7c   : > { %v3012_v55 = vpop.f32.mrf.mxu1 }
 0xd7d   : > { %v13995_v18 = vpack.c.bf16 %v3012_v55, %v3009_v25 }
 0xd7e   : > { %v3014_v39 = vpop.f32.mrf.mxu1 }
 0xd7f   : > { %11369 = vmatprep.mubr.msk.bf16.mxu0 %vm1222_vm2, %v13995_v18 }
 0xd80   : > { %v3017_v47 = vpop.f32.mrf.mxu1 }
 0xd82   : > { %v3019_v32 = vpop.f32.mrf.mxu1 }
 0xd84   : > { %v3020_v34 = vpop.f32.mrf.mxu1 }
 0xd86   : > { %v3022_v17 = vpop.f32.mrf.mxu1 }
 0xd88   : > { %v3025_v56 = vpop.f32.mrf.mxu1 }
 0xd8a   : > { %v3027_v3 = vpop.f32.mrf.mxu1 }
 0xd8b   : > { %v3078_v3 = vpack.c.bf16 %v3020_v34, %v3017_v47  ;;  %v3082_v47 = vsel %vm1222_vm2, %v13995_v18, 0 }
 0xd8c   : > { %v3028_v46 = vpop.f32.mrf.mxu1 }
 0xd8d   : > { %v3079_v38 = vpack.c.bf16 %v3028_v46, %v3025_v56 }
 0xd8e   : > { %v3030_v57 = vpop.f32.mrf.mxu1 }
 0xd8f   : > { %v3088_v57 = vsel %vm1222_vm2, %v3079_v38, 0 }
 0xd90   : > { %v3033_v1 = vpop.f32.mrf.mxu1 }
 0xd92   : > { %v3035_v22 = vpop.f32.mrf.mxu1 }
 0xd94   : > { %v3036_v20 = vpop.f32.mrf.mxu1 }
 0xd95   : > { %v3080_v52 = vpack.c.bf16 %v3036_v20, %v3033_v1  ;;  %v3085_v1 = vsel %vm1222_vm2, %v3078_v3, 0 }
 0xd96   : > { %v3038_v2 = vpop.f32.mrf.mxu1 }
 0xd97   : > { %11641 = vmatprep.subr.msk.bf16.mxu0 %vm1222_vm2, %v3080_v52  ;;  %v3091_v39 = vsel %vm1222_vm2, %v3080_v52, 0 }
 0xd98   : > { %v3041_v25 = vpop.f32.mrf.mxu1  ;;  %11362 = vmatpush3.bf16.xpose.msra.mxu0 %v3091_v39 }
 0xd99   : > { %11642 = vmatprep.subr.msk.bf16.mxu0 %vm1222_vm2, %v3079_v38 }
 0xd9a   : > { %v3043_v32 = vpop.f32.mrf.mxu1 }
 0xd9c   : > { %v3044_v17 = vpop.f32.mrf.mxu1 }
 0xd9e   : > { %v3046_v55 = vpop.f32.mrf.mxu1 }
 0xda0   : > { %v3049_v48 = vpop.f32.mrf.mxu1  ;;  %11364 = vmatpush3.bf16.xpose.msra.mxu0 %v3088_v57 }
 0xda1   : > { %11643 = vmatprep.subr.msk.bf16.mxu0 %vm1222_vm2, %v3078_v3 }
 0xda2   : > { %v3051_v22 = vpop.f32.mrf.mxu1 }
 0xda4   : > { %v3052_v56 = vpop.f32.mrf.mxu1 }
 0xda6   : > { %v3054_v46 = vpop.f32.mrf.mxu1 }
 0xda8   : > { %v3057_v20 = vpop.f32.mrf.mxu1  ;;  %11366 = vmatpush3.bf16.xpose.msra.mxu0 %v3085_v1 }
 0xda9   : > { %11644 = vmatprep.subr.msk.bf16.mxu0 %vm1222_vm2, %v13995_v18 }
 0xdaa   : > { %v3059_v2 = vpop.f32.mrf.mxu1 }
 0xdab   : > { %v14018_v2 = vpack.c.bf16 %v3052_v56, %v3049_v48  ;;  %v14031_v48 = vpop.f32.mrf.mxu0 }
 0xdac   : > { %v3060_v39 = vpop.f32.mrf.mxu1  ;;  %17042 = vst [vmem:[#allocation50_spill] sm:$0xff] %v14031_v48 }
 0xdad   : > { %v14013_v1 = vpack.c.bf16 %v3060_v39, %v3057_v20  ;;  %v14023_v20 = vpack.c.bf16 %v3044_v17, %v3041_v25 }
 0xdae   : > { %v3062_v32 = vpop.f32.mrf.mxu1 }
 0xdb0   : > { %v3065_v34 = vpop.f32.mrf.mxu1  ;;  %11368 = vmatpush3.bf16.xpose.msra.mxu0 %v3082_v47 }
 0xdb1   : > { %11377 = vmatprep.subr.bf16.mxu0 %v3080_v52 }
 0xdb2   : > { %v3067_v55 = vpop.f32.mrf.mxu1 }
 0xdb4   : > { %v3068_v57 = vpop.f32.mrf.mxu1 }
 0xdb5   : > { %v14009_v22 = vpack.c.bf16 %v3068_v57, %v3065_v34 }
 0xdb6   : > { %v3070_v46 = vpop.f32.mrf.mxu1 }
 0xdb7   : > { %11370 = vmatmul.mubr.msk.bf16.vlgmr.msra.gmra.mxu0 %vm1222_vm2, %v3078_v3  ;;  %11409 = vmatprep.subr.bf16.mxu1 %v14009_v22 }
 0xdb8   : > { %11373 = vmatprep.mubr.msk.bf16.mxu0 %vm1222_vm2, %v3079_v38  ;;  %11378 = vmatpush3.bf16.msra.mxu0 %v3080_v52 }
 0xdb9   : > { %11410 = vmatpush3.bf16.msra.mxu1 %v14009_v22  ;;  %11379 = vmatprep.subr.bf16.mxu0 %v3079_v38 }
 0xdba   : > { %11411 = vmatprep.subr.bf16.mxu1 %v14013_v1 }
 0xdbc   : > { %11380 = vmatpush3.bf16.msra.mxu0 %v3079_v38  ;;  %v14033_v38 = vpop.f32.mrf.mxu0 }
 0xdbd   : > { %11412 = vmatpush3.bf16.msra.mxu1 %v14013_v1  ;;  %11381 = vmatprep.subr.bf16.mxu0 %v3078_v3  ;;  %17043 = vst [vmem:[#allocation51_spill] sm:$0xff] %v14033_v38 }
 0xdbe   : > { %11413 = vmatprep.subr.bf16.mxu1 %v14018_v2 }
 0xdbf   : > { %11374 = vmatmul.mubr.msk.bf16.gmra.mxu0 %vm1222_vm2, %v3080_v52  ;;  %v14035_v52 = vpop.f32.mrf.mxu0 }
 0xdc0   : > { %11382 = vmatpush3.bf16.msra.mxu0 %v3078_v3  ;;  %17044 = vst [vmem:[#allocation52_spill] sm:$0xff] %v14035_v52 }
 0xdc1   : > { %11414 = vmatpush3.bf16.msra.mxu1 %v14018_v2  ;;  %11383 = vmatprep.subr.bf16.mxu0 %v13995_v18  ;;  %v14037_v25 = vpop.f32.mrf.mxu0 }
 0xdc2   : > { %11415 = vmatprep.subr.bf16.mxu1 %v14023_v20  ;;  %17045 = vst [vmem:[#allocation53_spill] sm:$0xff] %v14037_v25 }
 0xdc3   : > { %v14039_v17 = vpop.f32.mrf.mxu0 }
 0xdc4   : > { %11384 = vmatpush3.bf16.msra.mxu0 %v13995_v18  ;;  %17046 = vst [vmem:[#allocation54_spill] sm:$0xff] %v14039_v17 }
 0xdc5   : > { %11416 = vmatpush3.bf16.msra.mxu1 %v14023_v20  ;;  %v14041_v3 = vpop.f32.mrf.mxu0 }
 0xdc6   : > { %3936 = vmatprep.subr.bf16.mxu1 %v17006_v60  ;;  %17047 = vst [vmem:[#allocation55_spill] sm:$0xff] %v14041_v3 }
 0xdc7   : > { %v14043_v56 = vpop.f32.mrf.mxu0 }
 0xdc8   : > { %17048 = vst [vmem:[#allocation56_spill] sm:$0xff] %v14043_v56 }
 0xdc9   : > { %v14045_v39 = vpop.f32.mrf.mxu0 }
 0xdca   : > { %17049 = vst [vmem:[#allocation57_spill] sm:$0xff] %v14045_v39 }
 0xdcb   : > { %v14047_v18 = vpop.f32.mrf.mxu0 }
 0xdcc   : > { %17050 = vst [vmem:[#allocation58_spill] sm:$0xff] %v14047_v18 }
 0xdcd   : > { %v14049_v32 = vpop.f32.mrf.mxu0 }
 0xdce   : > { %17051 = vst [vmem:[#allocation59_spill] sm:$0xff] %v14049_v32 }
 0xdcf   : > { %v14051_v47 = vpop.f32.mrf.mxu0 }
 0xdd0   : > { %17052 = vst [vmem:[#allocation60_spill] sm:$0xff] %v14051_v47 }
 0xdd1   : > { %v14053_v34 = vpop.f32.mrf.mxu0 }
 0xdd2   : > { %17053 = vst [vmem:[#allocation61_spill] sm:$0xff] %v14053_v34 }
 0xdd3   : > { %v14055_v55 = vpop.f32.mrf.mxu0 }
 0xdd4   : > { %17054 = vst [vmem:[#allocation62_spill] sm:$0xff] %v14055_v55 }
 0xdd5   : > { %v14057_v57 = vpop.f32.mrf.mxu0 }
 0xdd6   : > { %17055 = vst [vmem:[#allocation63_spill] sm:$0xff] %v14057_v57 }
 0xdd7   : > { %v14059_v46 = vpop.f32.mrf.mxu0 }
 0xdd8   : > { %17056 = vst [vmem:[#allocation64_spill] sm:$0xff] %v14059_v46 }
 0xdd9   : > { %v14061_v25 = vpop.f32.mrf.mxu0 }
 0xdda   : > { %17057 = vst [vmem:[#allocation65_spill] sm:$0xff] %v14061_v25 }
 0xe77   : > { %v11371_v3 = vpop.f32.mrf.mxu0 }
 0xe78   : > { %v3160_v7 = vmul.f32 0.07216878, %v11371_v3 }
 0xe79   : > { %v3127_v56 = vpop.f32.mrf.mxu0 }
 0xe7a   : > { %v3158_v39 = vmul.f32 0.07216878, %v3127_v56  ;;  %v3168_v47 = vadd.f32 %v3160_v7, %v13511_v62 }
 0xe7b   : > { %v11372_v17 = vpop.f32.mrf.mxu0 }
 0xe7c   : > { %v3166_v18 = vadd.f32 %v3158_v39, %v13508_v44  ;;  %v3161_v32 = vmul.f32 0.07216878, %v11372_v17  ;;  %v3180_v56 = vsel %vm611_vm1, %v3168_v47, -inf }
 0xe7d   : > { %v3130_v6 = vpop.f32.mrf.mxu0 }
 0xe7e   : > { %v3159_v34 = vmul.f32 0.07216878, %v3130_v6  ;;  %v3174_v55 = vsel %vm611_vm1, %v3166_v18, -inf  ;;  %v3169_v25 = vadd.f32 %v3161_v32, %v13519_v29 }
 0xe7f   : > { %3175 = vmax.xlane.f32.xlu0 %v3174_v55  ;;  %v11375_v57 = vpop.f32.mrf.mxu0 }
 0xe80   : > { %v3167_v46 = vadd.f32 %v3159_v34, %v13517_v54  ;;  %v3164_v16 = vmul.f32 0.07216878, %v11375_v57  ;;  %v3183_v55 = vsel %vm611_vm1, %v3169_v25, -inf }
 0xe81   : > { %v3143_v52 = vpop.f32.mrf.mxu0 }
 0xe82   : > { %v3162_v3 = vmul.f32 0.07216878, %v3143_v52  ;;  %v3177_v39 = vsel %vm611_vm1, %v3167_v46, -inf  ;;  %v3172_v38 = vadd.f32 %v3164_v16, %v13537_v37 }
 0xe83   : > { %3181 = vmax.xlane.f32.xlu0 %v3180_v56  ;;  %3178 = vmax.xlane.f32.xlu1 %v3177_v39  ;;  %v11376_v17 = vpop.f32.mrf.mxu0 }
 0xe84   : > { %v3170_v6 = vadd.f32 %v3162_v3, %v13532_v51  ;;  %v3165_v34 = vmul.f32 0.07216878, %v11376_v17  ;;  %v3192_v56 = vsel %vm611_vm1, %v3172_v38, -inf }
 0xe85   : > { %v3146_v7 = vpop.f32.mrf.mxu0 }
 0xe86   : > { %v3163_v8 = vmul.f32 0.07216878, %v3146_v7  ;;  %v3186_v32 = vsel %vm611_vm1, %v3170_v6, -inf  ;;  %v3173_v57 = vadd.f32 %v3165_v34, %v13546_v0 }
 0xe87   : > { %3184 = vmax.xlane.f32.xlu1 %v3183_v55  ;;  %3187 = vmax.xlane.f32.xlu0 %v3186_v32 }
 0xe88   : > { %v3171_v52 = vadd.f32 %v3163_v8, %v13542_v12  ;;  %v3195_v3 = vsel %vm611_vm1, %v3173_v57, -inf }
 0xe8a   : > { %v3189_v39 = vsel %vm611_vm1, %v3171_v52, -inf }
 0xe8b   : > { %3193 = vmax.xlane.f32.xlu0 %v3192_v56  ;;  %3190 = vmax.xlane.f32.xlu1 %v3189_v39 }
 0xe8f   : > { %3196 = vmax.xlane.f32.xlu1 %v3195_v3 }
 0xf08   : > { %v3176_v16 = vpop.xlane.xlu0 %3175 }
 0xf09   : > { %v3198_v17 = vsub.f32 %v3166_v18, %v3176_v16 }
 0xf0b   : > { %v3206_v7 = vmul.f32 1.442695, %v3198_v17 }
 0xf0c   : > { %v3182_v48 = vpop.xlane.xlu0 %3181  ;;  %v3179_v53 = vpop.xlane.xlu1 %3178 }
 0xf0d   : > { %12232 = vpow2.f32 %v3206_v7  ;;  %v3200_v55 = vsub.f32 %v3168_v47, %v3182_v48  ;;  %v3199_v32 = vsub.f32 %v3167_v46, %v3179_v53 }
 0xf0f   : > { %v3210_v8 = vmul.f32 1.442695, %v3200_v55  ;;  %v3208_v59 = vmul.f32 1.442695, %v3199_v32 }
 0xf10   : > { %v3185_v34 = vpop.xlane.xlu1 %3184  ;;  %v3188_v61 = vpop.xlane.xlu0 %3187 }
 0xf11   : > { %12234 = vpow2.f32 %v3210_v8  ;;  %v3201_v13 = vsub.f32 %v3169_v25, %v3185_v34  ;;  %v3202_v33 = vsub.f32 %v3170_v6, %v3188_v61 }
 0xf12   : > { %12236 = vpow2.f32 %v3208_v59 }
 0xf13   : > { %v3212_v56 = vmul.f32 1.442695, %v3201_v13  ;;  %v3214_v39 = vmul.f32 1.442695, %v3202_v33 }
 0xf14   : > { %v3194_v50 = vpop.xlane.xlu0 %3193  ;;  %v3191_v3 = vpop.xlane.xlu1 %3190 }
 0xf15   : > { %12238 = vpow2.f32 %v3212_v56  ;;  %v3204_v18 = vsub.f32 %v3172_v38, %v3194_v50  ;;  %v3203_v16 = vsub.f32 %v3171_v52, %v3191_v3 }
 0xf16   : > { %12240 = vpow2.f32 %v3214_v39  ;;  %v14088_v39 = vld [vmem:[%s12818_s16 + $0x54] ss:$8 sps:$4 sm:$0xff]  }
 0xf17   : > { %v3218_v17 = vmul.f32 1.442695, %v3204_v18  ;;  %v3216_v7 = vmul.f32 1.442695, %v3203_v16  ;;  %3391 = vmatprep.subr.bf16.mxu0 %v14088_v39 }
 0xf18   : > { %v3197_v48 = vpop.xlane.xlu1 %3196 }
 0xf19   : > { %12242 = vpow2.f32 %v3218_v17  ;;  %v3205_v53 = vsub.f32 %v3173_v57, %v3197_v48 }
 0xf1a   : > { %v12233_v47 = vpop.eup %12232  ;;  %12244 = vpow2.f32 %v3216_v7 }
 0xf1b   : > { %v3220_v46 = vmul.f32 1.442695, %v3205_v53  ;;  %v3222_v25 = vsel %vm611_vm1, %v12233_v47, 0.0 }
 0xf1c   : > { %3223 = vadd.xlane.f32.xlu0 %v3222_v25 }
 0xf1d   : > { %12246 = vpow2.f32 %v3220_v46 }
 0xf1e   : > { %v12235_v13 = vpop.eup %12234 }
 0xf1f   : > { %v12237_v33 = vpop.eup %12236  ;;  %v3228_v61 = vsel %vm611_vm1, %v12235_v13, 0.0 }
 0xf20   : > { %3229 = vadd.xlane.f32.xlu0 %v3228_v61  ;;  %v3225_v50 = vsel %vm611_vm1, %v12237_v33, 0.0 }
 0xf21   : > { %3226 = vadd.xlane.f32.xlu1 %v3225_v50 }
 0xf22   : > { %v12239_v59 = vpop.eup %12238 }
 0xf23   : > { %v12241_v38 = vpop.eup %12240  ;;  %v3231_v6 = vsel %vm611_vm1, %v12239_v59, 0.0 }
 0xf24   : > { %v3234_v52 = vsel %vm611_vm1, %v12241_v38, 0.0 }
 0xf25   : > { %3235 = vadd.xlane.f32.xlu0 %v3234_v52  ;;  %3232 = vadd.xlane.f32.xlu1 %v3231_v6 }
 0xf26   : > { %v12243_v57 = vpop.eup %12242 }
 0xf27   : > { %v12245_v55 = vpop.eup %12244  ;;  %v3240_v32 = vsel %vm611_vm1, %v12243_v57, 0.0 }
 0xf28   : > { %v3237_v8 = vsel %vm611_vm1, %v12245_v55, 0.0 }
 0xf29   : > { %3241 = vadd.xlane.f32.xlu0 %v3240_v32  ;;  %3238 = vadd.xlane.f32.xlu1 %v3237_v8 }
 0xf2a   : > { %v12247_v34 = vpop.eup %12246 }
 0xf2b   : > { %v3243_v56 = vsel %vm611_vm1, %v12247_v34, 0.0 }
 0xf2d   : > { %3244 = vadd.xlane.f32.xlu1 %v3243_v56 }
 0xfa5   : > { %v3224_v3 = vpop.xlane.xlu0 %3223 }
 0xfa6   : > { %12248 = vrcp.f32 %v3224_v3 }
 0xfa9   : > { %v3230_v18 = vpop.xlane.xlu0 %3229 }
 0xfaa   : > { %v3227_v16 = vpop.xlane.xlu1 %3226 }
 0xfab   : > { %12250 = vrcp.f32 %v3227_v16  ;;  %v11760_v16 = vld [vmem:[%s12818_s16 + $0x50] ss:$8 sps:$4 sm:$0xff]  }
 0xfac   : > { %12252 = vrcp.f32 %v3230_v18 }
 0xfae   : > { %v3236_v17 = vpop.xlane.xlu0 %3235  ;;  %v3233_v7 = vpop.xlane.xlu1 %3232 }
 0xfaf   : > { %12254 = vrcp.f32 %v3233_v7  ;;  %v11765_v7 = vld [vmem:[%s12818_s16 + $0x44] ss:$8 sps:$4 sm:$0xff]  }
 0xfb0   : > { %12256 = vrcp.f32 %v3236_v17 }
 0xfb2   : > { %v3242_v48 = vpop.xlane.xlu0 %3241  ;;  %v3239_v53 = vpop.xlane.xlu1 %3238 }
 0xfb3   : > { %12258 = vrcp.f32 %v3239_v53  ;;  %v12249_v46 = vpop.eup %12248 }
 0xfb4   : > { %12260 = vrcp.f32 %v3242_v48  ;;  %v3254_v50 = vmul.f32 %v12249_v46, %v12233_v47  ;;  %v11763_v47 = vld [vmem:[%s12818_s16 + $0x40] ss:$8 sps:$4 sm:$0xff]  }
 0xfb6   : > { %v3245_v25 = vpop.xlane.xlu1 %3244 }
 0xfb7   : > { %12262 = vrcp.f32 %v3245_v25 }
 0xfb8   : > { %v12251_v61 = vpop.eup %12250 }
 0xfb9   : > { %v3255_v6 = vmul.f32 %v12251_v61, %v12237_v33  ;;  %v12253_v52 = vpop.eup %12252 }
 0xfba   : > { %v3256_v56 = vmul.f32 %v12253_v52, %v12235_v13 }
 0xfbb   : > { %v3262_v32 = vpack.c.bf16 %v3255_v6, %v3254_v50 }
 0xfbc   : > { %v12255_v8 = vpop.eup %12254 }
 0xfbd   : > { %11385 = vmatprep.mubr.msk.bf16.mxu0 %vm611_vm1, %v3262_v32  ;;  %v3257_v3 = vmul.f32 %v12255_v8, %v12239_v59  ;;  %v12257_v18 = vpop.eup %12256 }
 0xfbe   : > { %v3258_v25 = vmul.f32 %v12257_v18, %v12241_v38 }
 0xfbf   : > { %v3263_v17 = vpack.c.bf16 %v3257_v3, %v3256_v56  ;;  %v3479_v56 = vsel %vm1222_vm2, %v14013_v1, 0 }
 0xfc0   : > { %v12259_v48 = vpop.eup %12258 }
 0xfc1   : > { %v12261_v53 = vpop.eup %12260  ;;  %11386 = vmatmul.mubr.msk.bf16.vlgmr.msra.gmra.mxu0 %vm611_vm1, %v3263_v17  ;;  %v3259_v21 = vmul.f32 %v12259_v48, %v12245_v55  ;;  %v3476_v17 = vsel %vm1222_vm2, %v14018_v2, 0 }
 0xfc2   : > { %3392 = vmatpush1.bf16.msra.mxu0 %v11760_v16  ;;  %v3260_v61 = vmul.f32 %v12261_v53, %v12243_v57  ;;  %v3473_v53 = vsel %vm1222_vm2, %v14023_v20, 0 }
 0xfc3   : > { %3393 = vmatprep.subr.bf16.mxu0 %v11765_v7  ;;  %v3264_v46 = vpack.c.bf16 %v3259_v21, %v3258_v25  ;;  %v3482_v21 = vsel %vm1222_vm2, %v14009_v22, 0  ;;  %v2400_v25 = vadd.f32 %v13877_v36, %v13791_v23 }
 0xfc4   : > { %v12263_v33 = vpop.eup %12262 }
 0xfc5   : > { %v3261_v50 = vmul.f32 %v12263_v33, %v12247_v34  ;;  %11389 = vmatprep.mubr.msk.bf16.mxu0 %vm611_vm1, %v3264_v46  ;;  %v17059_v46 = vld [vmem:[#allocation18_spill] sm:$0xff] }
 0xfc6   : > { %3394 = vmatpush1.bf16.msra.mxu0 %v11763_v47  ;;  %v2410_v23 = vadd.f32 %v13885_v30, %v17059_v46 }
 0xfc7   : > { %v3265_v13 = vpack.c.bf16 %v3261_v50, %v3260_v61  ;;  %11645 = vmatprep.subr.msk.bf16.mxu0 %vm1222_vm2, %v14009_v22  ;;  %v17060_v61 = vld [vmem:[#allocation19_spill] sm:$0xff] }
 0xfc9   : > { %11390 = vmatmul.mubr.msk.bf16.gmra.mxu0 %vm611_vm1, %v3265_v13  ;;  %v17061_v13 = vld [vmem:[#allocation20_spill] sm:$0xff] }
 0xfca   : > { %3411 = vmatprep.mubr.bf16.mxu0 %v17006_v60 }
0x1081   : > { %v11387_v59 = vpop.f32.mrf.mxu0 }
0x1083   : > { %v3312_v38 = vpop.f32.mrf.mxu0 }
0x1085   : > { %v11388_v55 = vpop.f32.mrf.mxu0 }
0x1086   : > { %v3344_v34 = vpack.c.bf16 %v11388_v55, %v11387_v59 }
0x1087   : > { %v3315_v6 = vpop.f32.mrf.mxu0 }
0x1088   : > { %v3343_v52 = vpack.c.bf16 %v3315_v6, %v3312_v38  ;;  %v17063_v6 = vld [vmem:[#allocation22_spill] sm:$0xff] }
0x1089   : > { %v11391_v32 = vpop.f32.mrf.mxu0  ;;  %v2420_v30 = vadd.f32 %v13893_v35, %v17063_v6 }
0x108a   : > { %10535 = vmatmul.mubr.msk.bf16.vlgmr.msra.gmra.mxu0 %vm1222_vm2, %v3343_v52 }
0x108b   : > { %11394 = vmatpush3.bf16.xpose.msra.mxu0 %v3482_v21  ;;  %3421 = vmatprep.mubr.bf16.mxu0 %v17006_v60  ;;  %v3328_v57 = vpop.f32.mrf.mxu0 }
0x108c   : > { %11646 = vmatprep.subr.msk.bf16.mxu0 %vm1222_vm2, %v14013_v1 }
0x108d   : > { %v11392_v8 = vpop.f32.mrf.mxu0 }
0x108e   : > { %v3346_v48 = vpack.c.bf16 %v11392_v8, %v11391_v32  ;;  %v17064_v32 = vld [vmem:[#allocation23_spill] sm:$0xff] }
0x108f   : > { %v3331_v3 = vpop.f32.mrf.mxu0 }
0x1090   : > { %v3345_v18 = vpack.c.bf16 %v3331_v3, %v3328_v57 }
0x1092   : > { %10536 = vmatmul.mubr.msk.bf16.gmra.mxu0 %vm1222_vm2, %v3344_v34  ;;  %v17065_v34 = vld [vmem:[#allocation24_spill] sm:$0xff] }
0x1093   : > { %11396 = vmatpush3.bf16.xpose.msra.mxu0 %v3479_v56  ;;  %3431 = vmatprep.mubr.bf16.mxu0 %v17006_v60 }
0x1094   : > { %11647 = vmatprep.subr.msk.bf16.mxu0 %vm1222_vm2, %v14018_v2 }
0x109a   : > { %10537 = vmatmul.mubr.msk.bf16.gmra.mxu0 %vm1222_vm2, %v3345_v18 }
0x109b   : > { %11398 = vmatpush3.bf16.xpose.msra.mxu0 %v3476_v17  ;;  %3441 = vmatprep.mubr.bf16.mxu0 %v17006_v60  ;;  %v17067_v17 = vld [vmem:[#allocation26_spill] sm:$0xff] }
0x109c   : > { %11648 = vmatprep.subr.msk.bf16.mxu0 %vm1222_vm2, %v14023_v20  ;;  %v2430_v35 = vadd.f32 %v13901_v31, %v17067_v17 }
0x10a2   : > { %10538 = vmatmul.mubr.msk.bf16.gmra.mxu0 %vm1222_vm2, %v3346_v48 }
0x10a3   : > { %11400 = vmatpush3.bf16.xpose.msra.mxu0 %v3473_v53  ;;  %11401 = vmatprep.mubr.msk.bf16.mxu0 %vm1222_vm2, %v14023_v20  ;;  %v17068_v53 = vld [vmem:[#allocation27_spill] sm:$0xff] }
0x10a4   : > { %3762 = vmatprep.subr.bf16.mxu0 %v14088_v39  ;;  %v2402_v39 = vadd.f32 %v13879_v58, %v13793_v19  ;;  %v2412_v19 = vadd.f32 %v13887_v28, %v17060_v61  ;;  %v2422_v28 = vadd.f32 %v13895_v5, %v17064_v32  ;;  %v2432_v5 = vadd.f32 %v13903_v10, %v17068_v53 }
0x10aa   : > { %11402 = vmatmul.mubr.msk.bf16.vlgmr.msra.gmra.mxu0 %vm1222_vm2, %v14018_v2 }
0x10ab   : > { %11405 = vmatprep.mubr.msk.bf16.mxu0 %vm1222_vm2, %v14013_v1  ;;  %3763 = vmatpush1.bf16.msra.mxu0 %v11760_v16  ;;  %v2404_v1 = vadd.f32 %v13881_v63, %v13795_v15  ;;  %v2414_v15 = vadd.f32 %v13889_v43, %v17061_v13  ;;  %v2424_v43 = vadd.f32 %v13897_v45, %v17065_v34 }
0x10ac   : > { %3764 = vmatprep.subr.bf16.mxu0 %v11765_v7 }
0x10af   : > { %3765 = vmatpush1.bf16.msra.mxu0 %v11763_v47 }
0x10b2   : > { %11406 = vmatmul.mubr.msk.bf16.gmra.mxu0 %vm1222_vm2, %v14009_v22 }
0x10b3   : > { %3782 = vmatprep.mubr.bf16.mxu0 %v17006_v60 }
0x114a   : > { %v3413_v20 = vpop.f32.mrf.mxu0 }
0x114b   : > { %v14136_v33 = vadd.f32 %v3413_v20, %v2400_v25 }
0x114c   : > { %v3415_v2 = vpop.f32.mrf.mxu0 }
0x114d   : > { %v14140_v16 = vadd.f32 %v3415_v2, %v2402_v39  ;;  %v17069_v39 = vld [vmem:[#allocation28_spill] sm:$0xff] }
0x114e   : > { %v3417_v7 = vpop.f32.mrf.mxu0  ;;  %v2434_v45 = vadd.f32 %v13905_v11, %v17069_v39 }
0x114f   : > { %v14142_v47 = vadd.f32 %v3417_v7, %v2404_v1 }
0x1150   : > { %v14144_v22 = vpop.f32.mrf.mxu0 }
0x1151   : > { %17058 = vst [vmem:[#allocation66_spill] sm:$0xff] %v14144_v22  ;;  %v17100_v22 = vld [vmem:[#allocation59_spill] sm:$0xff] }
0x1152   : > { %v3423_v36 = vpop.f32.mrf.mxu0 }
0x1153   : > { %v14150_v58 = vadd.f32 %v3423_v36, %v2410_v23 }
0x1154   : > { %v3425_v50 = vpop.f32.mrf.mxu0 }
0x1155   : > { %v14154_v63 = vadd.f32 %v3425_v50, %v2412_v19 }
0x1156   : > { %v3427_v59 = vpop.f32.mrf.mxu0 }
0x1157   : > { %v14156_v38 = vadd.f32 %v3427_v59, %v2414_v15 }
0x1158   : > { %v14158_v55 = vpop.f32.mrf.mxu0 }
0x1159   : > { %17062 = vst [vmem:[#allocation18_spill] sm:$0xff] %v14158_v55  ;;  %v17099_v55 = vld [vmem:[#allocation43_spill] sm:$0xff] }
0x115a   : > { %v3433_v52 = vpop.f32.mrf.mxu0 }
0x115b   : > { %v14164_v21 = vadd.f32 %v3433_v52, %v2420_v30 }
0x115c   : > { %v3435_v57 = vpop.f32.mrf.mxu0 }
0x115d   : > { %v14168_v8 = vadd.f32 %v3435_v57, %v2422_v28 }
0x115e   : > { %v3437_v56 = vpop.f32.mrf.mxu0 }
0x115f   : > { %v14170_v3 = vadd.f32 %v3437_v56, %v2424_v43 }
0x1160   : > { %v14172_v18 = vpop.f32.mrf.mxu0 }
0x1161   : > { %17066 = vst [vmem:[#allocation19_spill] sm:$0xff] %v14172_v18  ;;  %v17093_v18 = vld [vmem:[#allocation56_spill] sm:$0xff] }
0x1162   : > { %v3443_v48 = vpop.f32.mrf.mxu0 }
0x1163   : > { %v14178_v25 = vadd.f32 %v3443_v48, %v2430_v35 }
0x1164   : > { %v3445_v20 = vpop.f32.mrf.mxu0 }
0x1165   : > { %v14182_v2 = vadd.f32 %v3445_v20, %v2432_v5 }
0x1166   : > { %v3447_v1 = vpop.f32.mrf.mxu0 }
0x1167   : > { %v14184_v7 = vadd.f32 %v3447_v1, %v2434_v45 }
0x1168   : > { %v14186_v46 = vpop.f32.mrf.mxu0 }
0x1169   : > { %17070 = vst [vmem:[#allocation20_spill] sm:$0xff] %v14186_v46  ;;  %v17090_v46 = vld [vmem:[#allocation55_spill] sm:$0xff] }
0x116a   : > { %v11403_v23 = vpop.f32.mrf.mxu0 }
0x116b   : > { %v3551_v31 = vmul.f32 0.07216878, %v11403_v23 }
0x116c   : > { %v3518_v36 = vpop.f32.mrf.mxu0 }
0x116d   : > { %v3549_v61 = vmul.f32 0.07216878, %v3518_v36  ;;  %v3559_v15 = vadd.f32 %v3551_v31, %v13511_v62 }
0x116e   : > { %v11404_v19 = vpop.f32.mrf.mxu0 }
0x116f   : > { %v3557_v10 = vadd.f32 %v3549_v61, %v13508_v44  ;;  %v3552_v50 = vmul.f32 0.07216878, %v11404_v19  ;;  %v3571_v34 = vsel %vm611_vm1, %v3559_v15, -inf }
0x1170   : > { %v3521_v13 = vpop.f32.mrf.mxu0 }
0x1171   : > { %v3550_v59 = vmul.f32 0.07216878, %v3521_v13  ;;  %v3565_v11 = vsel %vm611_vm1, %v3557_v10, -inf  ;;  %v3560_v52 = vadd.f32 %v3552_v50, %v13519_v29 }
0x1172   : > { %3566 = vmax.xlane.f32.xlu0 %v3565_v11  ;;  %v11407_v6 = vpop.f32.mrf.mxu0 }
0x1173   : > { %v3558_v30 = vadd.f32 %v3550_v59, %v13517_v54  ;;  %v3555_v28 = vmul.f32 0.07216878, %v11407_v6  ;;  %v3574_v48 = vsel %vm611_vm1, %v3560_v52, -inf }
0x1174   : > { %v3534_v32 = vpop.f32.mrf.mxu0 }
0x1175   : > { %v3553_v57 = vmul.f32 0.07216878, %v3534_v32  ;;  %v3568_v43 = vsel %vm611_vm1, %v3558_v30, -inf  ;;  %v3563_v53 = vadd.f32 %v3555_v28, %v13537_v37 }
0x1176   : > { %3572 = vmax.xlane.f32.xlu0 %v3571_v34  ;;  %3569 = vmax.xlane.f32.xlu1 %v3568_v43  ;;  %v11408_v56 = vpop.f32.mrf.mxu0 }
0x1177   : > { %v3561_v17 = vadd.f32 %v3553_v57, %v13532_v51  ;;  %v3556_v5 = vmul.f32 0.07216878, %v11408_v56  ;;  %v3583_v23 = vsel %vm611_vm1, %v3563_v53, -inf }
0x1178   : > { %v3537_v35 = vpop.f32.mrf.mxu0 }
0x1179   : > { %v3554_v20 = vmul.f32 0.07216878, %v3537_v35  ;;  %v3577_v39 = vsel %vm611_vm1, %v3561_v17, -inf  ;;  %v3564_v1 = vadd.f32 %v3556_v5, %v13546_v0 }
0x117a   : > { %3575 = vmax.xlane.f32.xlu1 %v3574_v48  ;;  %3578 = vmax.xlane.f32.xlu0 %v3577_v39 }
0x117b   : > { %v3562_v45 = vadd.f32 %v3554_v20, %v13542_v12  ;;  %v3586_v31 = vsel %vm611_vm1, %v3564_v1, -inf }
0x117d   : > { %v3580_v36 = vsel %vm611_vm1, %v3562_v45, -inf }
0x117e   : > { %3584 = vmax.xlane.f32.xlu0 %v3583_v23  ;;  %3581 = vmax.xlane.f32.xlu1 %v3580_v36 }
0x1182   : > { %3587 = vmax.xlane.f32.xlu1 %v3586_v31 }
0x11fb   : > { %v3567_v61 = vpop.xlane.xlu0 %3566 }
0x11fc   : > { %v3589_v19 = vsub.f32 %v3557_v10, %v3567_v61 }
0x11fe   : > { %v3597_v50 = vmul.f32 1.442695, %v3589_v19 }
0x11ff   : > { %v3573_v13 = vpop.xlane.xlu0 %3572  ;;  %v3570_v59 = vpop.xlane.xlu1 %3569 }
0x1200   : > { %12264 = vpow2.f32 %v3597_v50  ;;  %v3591_v11 = vsub.f32 %v3559_v15, %v3573_v13  ;;  %v3590_v6 = vsub.f32 %v3558_v30, %v3570_v59 }
0x1202   : > { %v3601_v32 = vmul.f32 1.442695, %v3591_v11  ;;  %v3599_v28 = vmul.f32 1.442695, %v3590_v6 }
0x1203   : > { %v3576_v57 = vpop.xlane.xlu1 %3575  ;;  %v3579_v34 = vpop.xlane.xlu0 %3578 }
0x1204   : > { %12266 = vpow2.f32 %v3601_v32  ;;  %v3592_v43 = vsub.f32 %v3560_v52, %v3576_v57  ;;  %v3593_v56 = vsub.f32 %v3561_v17, %v3579_v34 }
0x1205   : > { %12268 = vpow2.f32 %v3599_v28 }
0x1206   : > { %v3603_v35 = vmul.f32 1.442695, %v3592_v43  ;;  %v3605_v48 = vmul.f32 1.442695, %v3593_v56 }
0x1207   : > { %v3585_v5 = vpop.xlane.xlu0 %3584  ;;  %v3582_v20 = vpop.xlane.xlu1 %3581 }
0x1208   : > { %12270 = vpow2.f32 %v3603_v35  ;;  %v3595_v10 = vsub.f32 %v3563_v53, %v3585_v5  ;;  %v3594_v39 = vsub.f32 %v3562_v45, %v3582_v20 }
0x1209   : > { %12272 = vpow2.f32 %v3605_v48 }
0x120a   : > { %v3609_v23 = vmul.f32 1.442695, %v3595_v10  ;;  %v3607_v36 = vmul.f32 1.442695, %v3594_v39 }
0x120b   : > { %v3588_v15 = vpop.xlane.xlu1 %3587 }
0x120c   : > { %12274 = vpow2.f32 %v3609_v23  ;;  %v3596_v30 = vsub.f32 %v3564_v1, %v3588_v15 }
0x120d   : > { %v12265_v31 = vpop.eup %12264  ;;  %12276 = vpow2.f32 %v3607_v36 }
0x120e   : > { %v3611_v61 = vmul.f32 1.442695, %v3596_v30  ;;  %v3613_v52 = vsel %vm611_vm1, %v12265_v31, 0.0 }
0x120f   : > { %3614 = vadd.xlane.f32.xlu0 %v3613_v52 }
0x1210   : > { %12278 = vpow2.f32 %v3611_v61 }
0x1211   : > { %v12267_v17 = vpop.eup %12266 }
0x1212   : > { %v12269_v19 = vpop.eup %12268  ;;  %v3619_v50 = vsel %vm611_vm1, %v12267_v17, 0.0 }
0x1213   : > { %3620 = vadd.xlane.f32.xlu0 %v3619_v50  ;;  %v3616_v53 = vsel %vm611_vm1, %v12269_v19, 0.0 }
0x1214   : > { %3617 = vadd.xlane.f32.xlu1 %v3616_v53 }
0x1215   : > { %v12271_v45 = vpop.eup %12270 }
0x1216   : > { %v12273_v13 = vpop.eup %12272  ;;  %v3622_v59 = vsel %vm611_vm1, %v12271_v45, 0.0 }
0x1217   : > { %v3625_v1 = vsel %vm611_vm1, %v12273_v13, 0.0 }
0x1218   : > { %3626 = vadd.xlane.f32.xlu0 %v3625_v1  ;;  %3623 = vadd.xlane.f32.xlu1 %v3622_v59 }
0x1219   : > { %v12275_v11 = vpop.eup %12274 }
0x121a   : > { %v12277_v6 = vpop.eup %12276  ;;  %v3631_v32 = vsel %vm611_vm1, %v12275_v11, 0.0 }
0x121b   : > { %v3628_v28 = vsel %vm611_vm1, %v12277_v6, 0.0 }
0x121c   : > { %3632 = vadd.xlane.f32.xlu0 %v3631_v32  ;;  %3629 = vadd.xlane.f32.xlu1 %v3628_v28  ;;  %v11766_v32 = vld [vmem:[%s12808_s27 + $0x158] sm:$0xff]  }
0x121d   : > { %v12279_v57 = vpop.eup %12278 }
0x121e   : > { %v3634_v34 = vsel %vm611_vm1, %v12279_v57, 0.0 }
0x1220   : > { %3635 = vadd.xlane.f32.xlu1 %v3634_v34 }
0x1298   : > { %v3615_v43 = vpop.xlane.xlu0 %3614 }
0x1299   : > { %12280 = vrcp.f32 %v3615_v43 }
0x129c   : > { %v3621_v56 = vpop.xlane.xlu0 %3620 }
0x129d   : > { %v3618_v35 = vpop.xlane.xlu1 %3617 }
0x129e   : > { %12282 = vrcp.f32 %v3618_v35 }
0x129f   : > { %12284 = vrcp.f32 %v3621_v56 }
0x12a1   : > { %v3627_v48 = vpop.xlane.xlu0 %3626  ;;  %v3624_v5 = vpop.xlane.xlu1 %3623 }
0x12a2   : > { %12286 = vrcp.f32 %v3624_v5 }
0x12a3   : > { %12288 = vrcp.f32 %v3627_v48 }
0x12a5   : > { %v3633_v20 = vpop.xlane.xlu0 %3632  ;;  %v3630_v10 = vpop.xlane.xlu1 %3629 }
0x12a6   : > { %12290 = vrcp.f32 %v3630_v10  ;;  %v12281_v39 = vpop.eup %12280  ;;  %v11773_v10 = vld [vmem:[%s12808_s27 + $0x120] sm:$0xff]  }
0x12a7   : > { %12292 = vrcp.f32 %v3633_v20  ;;  %v3645_v15 = vmul.f32 %v12281_v39, %v12265_v31  ;;  %v11767_v31 = vld [vmem:[%s12808_s27 + $0x150] sm:$0xff]   ;;  %v11768_v20 = vld [vmem:[%s12808_s27 + $0x148] sm:$0xff]   ;;  %v11774_v39 = vld [vmem:[%s12808_s27 + $0x178] sm:$0xff]  }
0x12a9   : > { %v3636_v23 = vpop.xlane.xlu1 %3635 }
0x12aa   : > { %12294 = vrcp.f32 %v3636_v23  ;;  %v11775_v23 = vld [vmem:[%s12808_s27 + $0x170] sm:$0xff]  }
0x12ab   : > { %v12283_v36 = vpop.eup %12282 }
0x12ac   : > { %v3646_v30 = vmul.f32 %v12283_v36, %v12269_v19  ;;  %v12285_v61 = vpop.eup %12284  ;;  %v11776_v36 = vld [vmem:[%s12808_s27 + $0x168] sm:$0xff]  }
0x12ad   : > { %v3647_v53 = vmul.f32 %v12285_v61, %v12267_v17  ;;  %v17072_v61 = vld [vmem:[#allocation12_spill] sm:$0xff] }
0x12ae   : > { %v3653_v52 = vpack.c.bf16 %v3646_v30, %v3645_v15  ;;  %v11777_v15 = vld [vmem:[%s12808_s27 + $0x160] sm:$0xff]   ;;  %v17071_v30 = vld [vmem:[#allocation11_spill] sm:$0xff] }
0x12af   : > { %v12287_v50 = vpop.eup %12286 }
0x12b0   : > { %11417 = vmatprep.mubr.msk.bf16.mxu1 %vm611_vm1, %v3653_v52  ;;  %v3648_v59 = vmul.f32 %v12287_v50, %v12271_v45  ;;  %v12289_v1 = vpop.eup %12288  ;;  %v17073_v52 = vld [vmem:[#allocation13_spill] sm:$0xff]  ;;  %v17074_v50 = vld [vmem:[#allocation14_spill] sm:$0xff] }
0x12b1   : > { %v3649_v56 = vmul.f32 %v12289_v1, %v12273_v13  ;;  %v11769_v13 = vld [vmem:[%s12808_s27 + $0x140] sm:$0xff]  }
0x12b2   : > { %v3654_v28 = vpack.c.bf16 %v3648_v59, %v3647_v53  ;;  %v17075_v53 = vld [vmem:[#allocation15_spill] sm:$0xff]  ;;  %v17076_v59 = vld [vmem:[#allocation16_spill] sm:$0xff] }
0x12b3   : > { %v12291_v34 = vpop.eup %12290 }
0x12b4   : > { %v12293_v43 = vpop.eup %12292  ;;  %11418 = vmatmul.mubr.msk.bf16.vlgmr.msra.gmra.mxu1 %vm611_vm1, %v3654_v28  ;;  %v3650_v35 = vmul.f32 %v12291_v34, %v12277_v6  ;;  %v11771_v6 = vld [vmem:[%s12808_s27 + $0x130] sm:$0xff]  }
0x12b5   : > { %3937 = vmatpush1.bf16.msra.mxu1 %v11766_v32  ;;  %v3651_v17 = vmul.f32 %v12293_v43, %v12275_v11  ;;  %v11770_v11 = vld [vmem:[%s12808_s27 + $0x138] sm:$0xff]  }
0x12b6   : > { %3938 = vmatprep.subr.bf16.mxu1 %v17006_v60  ;;  %v3655_v48 = vpack.c.bf16 %v3650_v35, %v3649_v56 }
0x12b7   : > { %v12295_v19 = vpop.eup %12294 }
0x12b8   : > { %v3652_v45 = vmul.f32 %v12295_v19, %v12279_v57  ;;  %11421 = vmatprep.mubr.msk.bf16.mxu1 %vm611_vm1, %v3655_v48  ;;  %v11772_v57 = vld [vmem:[%s12808_s27 + $0x128] sm:$0xff]  }
0x12b9   : > { %3939 = vmatpush1.bf16.msra.mxu1 %v11767_v31 }
0x12ba   : > { %v3656_v5 = vpack.c.bf16 %v3652_v45, %v3651_v17  ;;  %3940 = vmatprep.subr.bf16.mxu1 %v17006_v60 }
0x12bc   : > { %11422 = vmatmul.mubr.msk.bf16.gmra.mxu1 %vm611_vm1, %v3656_v5 }
0x12bd   : > { %3941 = vmatpush1.bf16.msra.mxu1 %v11768_v20  ;;  %10587 = vmatprep.mubr.msk.bf16.mxu1 %vm611_vm1, %v13233_v9 }
0x12be   : > { %3942 = vmatprep.subr.bf16.mxu1 %v17006_v60 }
0x12c1   : > { %3943 = vmatpush1.bf16.msra.mxu1 %v11769_v13 }
0x12c2   : > { %3944 = vmatprep.subr.bf16.mxu1 %v17006_v60 }
0x12c5   : > { %3945 = vmatpush1.bf16.msra.mxu1 %v11770_v11 }
0x12c6   : > { %3946 = vmatprep.subr.bf16.mxu1 %v17006_v60 }
0x12c9   : > { %3947 = vmatpush1.bf16.msra.mxu1 %v11771_v6 }
0x12ca   : > { %3948 = vmatprep.subr.bf16.mxu1 %v17006_v60 }
0x12cd   : > { %3949 = vmatpush1.bf16.msra.mxu1 %v11772_v57 }
0x12ce   : > { %3950 = vmatprep.subr.bf16.mxu1 %v17006_v60 }
0x12d1   : > { %3951 = vmatpush1.bf16.msra.mxu1 %v11773_v10 }
0x12d2   : > { %3960 = vmatprep.subr.bf16.mxu1 %v17006_v60 }
0x12d5   : > { %3961 = vmatpush2.bf16.msra.mxu1 %v11774_v39 }
0x12d6   : > { %3962 = vmatprep.subr.bf16.mxu1 %v17006_v60 }
0x12d9   : > { %3963 = vmatpush2.bf16.msra.mxu1 %v11775_v23 }
0x12da   : > { %3964 = vmatprep.subr.bf16.mxu1 %v17006_v60 }
0x12dd   : > { %3965 = vmatpush2.bf16.msra.mxu1 %v11776_v36 }
0x12de   : > { %3966 = vmatprep.subr.bf16.mxu1 %v17006_v60 }
0x12e1   : > { %3967 = vmatpush2.bf16.msra.mxu1 %v11777_v15 }
0x12e4   : > { %3969 = vmatmul.mubr.bf16.vlgmr.msra.gmra.mxu1 %v13239_v41 }
0x12e5   : > { %10588 = vmatprep.mubr.msk.bf16.mxu1 %vm611_vm1, %v13246_v49 }
0x12ec   : > { %3977 = vmatmul.mubr.bf16.gmra.mxu1 %v13281_v24 }
0x12ed   : > { %10589 = vmatprep.mubr.msk.bf16.mxu1 %vm611_vm1, %v13285_v42 }
0x12f4   : > { %3985 = vmatmul.mubr.bf16.gmra.mxu1 %v13330_v4 }
0x12f5   : > { %10590 = vmatprep.mubr.msk.bf16.mxu1 %vm611_vm1, %v13332_v14 }
0x12fc   : > { %3993 = vmatmul.mubr.bf16.gmra.mxu1 %v13340_v27 }
0x12fd   : > { %10591 = vmatprep.mubr.msk.bf16.mxu1 %vm611_vm1, %v13378_v40 }
0x1304   : > { %4001 = vmatmul.mubr.bf16.gmra.mxu1 %v13380_v26 }
0x1305   : > { %10592 = vmatprep.mubr.msk.bf16.mxu1 %vm611_vm1, %v17071_v30 }
0x130c   : > { %4009 = vmatmul.mubr.bf16.gmra.mxu1 %v17072_v61 }
0x130d   : > { %10593 = vmatprep.mubr.msk.bf16.mxu1 %vm611_vm1, %v17073_v52 }
0x1314   : > { %4017 = vmatmul.mubr.bf16.gmra.mxu1 %v17074_v50 }
0x1315   : > { %10594 = vmatprep.mubr.msk.bf16.mxu1 %vm611_vm1, %v17075_v53 }
0x131c   : > { %4025 = vmatmul.mubr.bf16.gmra.mxu1 %v17076_v59 }
0x1374   : > { %v11419_v1 = vpop.f32.mrf.mxu1 }
0x1376   : > { %v3703_v32 = vpop.f32.mrf.mxu1 }
0x1378   : > { %v11420_v28 = vpop.f32.mrf.mxu1 }
0x1379   : > { %v3735_v31 = vpack.c.bf16 %v11420_v28, %v11419_v1 }
0x137a   : > { %v3706_v34 = vpop.f32.mrf.mxu1 }
0x137b   : > { %v3734_v43 = vpack.c.bf16 %v3706_v34, %v3703_v32 }
0x137c   : > { %v11423_v56 = vpop.f32.mrf.mxu1 }
0x137d   : > { %10547 = vmatmul.mubr.msk.bf16.vlgmr.msra.gmra.mxu0 %vm1222_vm2, %v3734_v43 }
0x137e   : > { %3792 = vmatprep.mubr.bf16.mxu0 %v17006_v60  ;;  %v3719_v35 = vpop.f32.mrf.mxu1 }
0x1380   : > { %v11424_v19 = vpop.f32.mrf.mxu1 }
0x1381   : > { %v3737_v45 = vpack.c.bf16 %v11424_v19, %v11423_v56 }
0x1382   : > { %v3722_v48 = vpop.f32.mrf.mxu1 }
0x1383   : > { %v3736_v17 = vpack.c.bf16 %v3722_v48, %v3719_v35 }
0x1385   : > { %10548 = vmatmul.mubr.msk.bf16.gmra.mxu0 %vm1222_vm2, %v3735_v31 }
0x1386   : > { %3802 = vmatprep.mubr.bf16.mxu0 %v17006_v60 }
0x138d   : > { %10549 = vmatmul.mubr.msk.bf16.gmra.mxu0 %vm1222_vm2, %v3736_v17 }
0x138e   : > { %3812 = vmatprep.mubr.bf16.mxu0 %v17006_v60 }
0x1395   : > { %10550 = vmatmul.mubr.msk.bf16.gmra.mxu0 %vm1222_vm2, %v3737_v45 }
0x13a4   : > { %v3970_v5 = vpop.f32.mrf.mxu1 }
0x13a6   : > { %v3972_v20 = vpop.f32.mrf.mxu1 }
0x13a8   : > { %v3973_v13 = vpop.f32.mrf.mxu1 }
0x13a9   : > { %v14270_v11 = vpack.c.bf16 %v3973_v13, %v3970_v5 }
0x13aa   : > { %v3975_v6 = vpop.f32.mrf.mxu1 }
0x13ab   : > { %11433 = vmatprep.mubr.msk.bf16.mxu0 %vm1222_vm2, %v14270_v11 }
0x13ac   : > { %v3978_v57 = vpop.f32.mrf.mxu1 }
0x13ae   : > { %v3980_v10 = vpop.f32.mrf.mxu1 }
0x13b0   : > { %v3981_v39 = vpop.f32.mrf.mxu1 }
0x13b1   : > { %v4039_v20 = vpack.c.bf16 %v3981_v39, %v3978_v57  ;;  %v4043_v57 = vsel %vm1222_vm2, %v14270_v11, 0 }
0x13b2   : > { %v3983_v23 = vpop.f32.mrf.mxu1 }
0x13b4   : > { %v3986_v36 = vpop.f32.mrf.mxu1 }
0x13b6   : > { %v3988_v15 = vpop.f32.mrf.mxu1 }
0x13b7   : > { %v4046_v15 = vsel %vm1222_vm2, %v4039_v20, 0 }
0x13b8   : > { %v3989_v1 = vpop.f32.mrf.mxu1 }
0x13b9   : > { %v4040_v31 = vpack.c.bf16 %v3989_v1, %v3986_v36 }
0x13ba   : > { %v3991_v32 = vpop.f32.mrf.mxu1 }
0x13bb   : > { %v4049_v13 = vsel %vm1222_vm2, %v4040_v31, 0 }
0x13bc   : > { %v3994_v28 = vpop.f32.mrf.mxu1 }
0x13be   : > { %v3996_v34 = vpop.f32.mrf.mxu1 }
0x13c0   : > { %v3997_v43 = vpop.f32.mrf.mxu1 }
0x13c1   : > { %v4041_v56 = vpack.c.bf16 %v3997_v43, %v3994_v28 }
0x13c2   : > { %v3999_v35 = vpop.f32.mrf.mxu1 }
0x13c3   : > { %11649 = vmatprep.subr.msk.bf16.mxu0 %vm1222_vm2, %v4041_v56  ;;  %v4052_v19 = vsel %vm1222_vm2, %v4041_v56, 0 }
0x13c4   : > { %v4002_v48 = vpop.f32.mrf.mxu1  ;;  %11426 = vmatpush3.bf16.xpose.msra.mxu0 %v4052_v19 }
0x13c5   : > { %11650 = vmatprep.subr.msk.bf16.mxu0 %vm1222_vm2, %v4040_v31 }
0x13c6   : > { %v4004_v17 = vpop.f32.mrf.mxu1 }
0x13c8   : > { %v4005_v45 = vpop.f32.mrf.mxu1 }
0x13ca   : > { %v4007_v5 = vpop.f32.mrf.mxu1 }
0x13cc   : > { %v4010_v6 = vpop.f32.mrf.mxu1  ;;  %11428 = vmatpush3.bf16.xpose.msra.mxu0 %v4049_v13 }
0x13cd   : > { %11651 = vmatprep.subr.msk.bf16.mxu0 %vm1222_vm2, %v4039_v20 }
0x13ce   : > { %v4012_v10 = vpop.f32.mrf.mxu1 }
0x13cf   : > { %v14298_v10 = vpack.c.bf16 %v4005_v45, %v4002_v48  ;;  %v17080_v48 = vld [vmem:[#allocation51_spill] sm:$0xff] }
0x13d0   : > { %v4013_v23 = vpop.f32.mrf.mxu1 }
0x13d1   : > { %v14293_v13 = vpack.c.bf16 %v4013_v23, %v4010_v6  ;;  %v17078_v6 = vld [vmem:[#allocation50_spill] sm:$0xff] }
0x13d2   : > { %v4015_v36 = vpop.f32.mrf.mxu1 }
0x13d4   : > { %v4018_v1 = vpop.f32.mrf.mxu1  ;;  %11430 = vmatpush3.bf16.xpose.msra.mxu0 %v4046_v15 }
0x13d5   : > { %11652 = vmatprep.subr.msk.bf16.mxu0 %vm1222_vm2, %v14270_v11 }
0x13d6   : > { %v4020_v32 = vpop.f32.mrf.mxu1 }
0x13d7   : > { %v17083_v32 = vld [vmem:[#allocation52_spill] sm:$0xff] }
0x13d8   : > { %v4021_v28 = vpop.f32.mrf.mxu1 }
0x13d9   : > { %v14288_v5 = vpack.c.bf16 %v4021_v28, %v4018_v1  ;;  %v17082_v1 = vld [vmem:[#allocation36_spill] sm:$0xff] }
0x13da   : > { %v4023_v34 = vpop.f32.mrf.mxu1  ;;  %v2844_v28 = vadd.f32 %v17083_v32, %v17082_v1 }
0x13dc   : > { %v4026_v39 = vpop.f32.mrf.mxu1  ;;  %11432 = vmatpush3.bf16.xpose.msra.mxu0 %v4043_v57 }
0x13dd   : > { %11441 = vmatprep.subr.bf16.mxu0 %v4041_v56 }
0x13de   : > { %v4028_v43 = vpop.f32.mrf.mxu1 }
0x13df   : > { %v17087_v43 = vld [vmem:[#allocation38_spill] sm:$0xff] }
0x13e0   : > { %v4029_v35 = vpop.f32.mrf.mxu1 }
0x13e1   : > { %v14284_v19 = vpack.c.bf16 %v4029_v35, %v4026_v39  ;;  %v17088_v35 = vld [vmem:[#allocation54_spill] sm:$0xff] }
0x13e2   : > { %v4031_v17 = vpop.f32.mrf.mxu1 }
0x13e3   : > { %11434 = vmatmul.mubr.msk.bf16.vlgmr.msra.gmra.mxu0 %vm1222_vm2, %v4039_v20  ;;  %11473 = vmatprep.subr.bf16.mxu1 %v14284_v19  ;;  %v2850_v17 = vadd.f32 %v17088_v35, %v17087_v43 }
0x13e4   : > { %11437 = vmatprep.mubr.msk.bf16.mxu0 %vm1222_vm2, %v4040_v31  ;;  %11442 = vmatpush3.bf16.msra.mxu0 %v4041_v56 }
0x13e5   : > { %11474 = vmatpush3.bf16.msra.mxu1 %v14284_v19  ;;  %11443 = vmatprep.subr.bf16.mxu0 %v4040_v31 }
0x13e6   : > { %11475 = vmatprep.subr.bf16.mxu1 %v14288_v5 }
0x13e8   : > { %11444 = vmatpush3.bf16.msra.mxu0 %v4040_v31  ;;  %v17077_v31 = vld [vmem:[#allocation34_spill] sm:$0xff] }
0x13e9   : > { %11476 = vmatpush3.bf16.msra.mxu1 %v14288_v5  ;;  %11445 = vmatprep.subr.bf16.mxu0 %v4039_v20  ;;  %v2840_v23 = vadd.f32 %v17078_v6, %v17077_v31  ;;  %v17089_v6 = vld [vmem:[#allocation39_spill] sm:$0xff] }
0x13ea   : > { %11477 = vmatprep.subr.bf16.mxu1 %v14293_v13 }
0x13eb   : > { %11438 = vmatmul.mubr.msk.bf16.gmra.mxu0 %vm1222_vm2, %v4041_v56  ;;  %v17079_v56 = vld [vmem:[#allocation35_spill] sm:$0xff] }
0x13ec   : > { %11446 = vmatpush3.bf16.msra.mxu0 %v4039_v20  ;;  %v2842_v45 = vadd.f32 %v17080_v48, %v17079_v56  ;;  %v2852_v56 = vadd.f32 %v17090_v46, %v17089_v6  ;;  %v17092_v48 = vld [vmem:[#allocation40_spill] sm:$0xff]  ;;  %v2862_v46 = vadd.f32 %v17100_v22, %v17099_v55 }
0x13ed   : > { %11478 = vmatpush3.bf16.msra.mxu1 %v14293_v13  ;;  %11447 = vmatprep.subr.bf16.mxu0 %v14270_v11  ;;  %v2854_v1 = vadd.f32 %v17093_v18, %v17092_v48  ;;  %v17102_v6 = vld [vmem:[#allocation44_spill] sm:$0xff] }
0x13ee   : > { %11479 = vmatprep.subr.bf16.mxu1 %v14298_v10 }
0x13f0   : > { %11448 = vmatpush3.bf16.msra.mxu0 %v14270_v11 }
0x13f1   : > { %11480 = vmatpush3.bf16.msra.mxu1 %v14298_v10 }
0x13f2   : > { %4897 = vmatprep.subr.bf16.mxu1 %v17006_v60 }
0x143d   : > { %v3784_v36 = vpop.f32.mrf.mxu0 }
0x143e   : > { %v14310_v20 = vadd.f32 %v3784_v36, %v2840_v23 }
0x143f   : > { %v3786_v15 = vpop.f32.mrf.mxu0 }
0x1440   : > { %17081 = vst [vmem:[#allocation22_spill] sm:$0xff] %v14310_v20  ;;  %v14314_v34 = vadd.f32 %v3786_v15, %v2842_v45 }
0x1441   : > { %v3788_v11 = vpop.f32.mrf.mxu0 }
0x1442   : > { %17084 = vst [vmem:[#allocation23_spill] sm:$0xff] %v14314_v34  ;;  %v14316_v57 = vadd.f32 %v3788_v11, %v2844_v28  ;;  %v17097_v11 = vld [vmem:[#allocation42_spill] sm:$0xff] }
0x1443   : > { %v14318_v39 = vpop.f32.mrf.mxu0 }
0x1444   : > { %17085 = vst [vmem:[#allocation24_spill] sm:$0xff] %v14316_v57  ;;  %17086 = vst [vmem:[#allocation26_spill] sm:$0xff] %v14318_v39  ;;  %v17098_v39 = vld [vmem:[#allocation58_spill] sm:$0xff] }
0x1445   : > { %v3794_v31 = vpop.f32.mrf.mxu0  ;;  %v2860_v43 = vadd.f32 %v17098_v39, %v17097_v11 }
0x1446   : > { %v14324_v23 = vadd.f32 %v3794_v31, %v2850_v17 }
0x1447   : > { %v3796_v36 = vpop.f32.mrf.mxu0 }
0x1448   : > { %17091 = vst [vmem:[#allocation27_spill] sm:$0xff] %v14324_v23  ;;  %v14328_v45 = vadd.f32 %v3796_v36, %v2852_v56  ;;  %v17103_v23 = vld [vmem:[#allocation60_spill] sm:$0xff] }
0x1449   : > { %v3798_v15 = vpop.f32.mrf.mxu0  ;;  %v2864_v18 = vadd.f32 %v17103_v23, %v17102_v6 }
0x144a   : > { %17094 = vst [vmem:[#allocation28_spill] sm:$0xff] %v14328_v45  ;;  %v14330_v32 = vadd.f32 %v3798_v15, %v2854_v1  ;;  %v17107_v15 = vld [vmem:[#allocation46_spill] sm:$0xff]  ;;  %v17110_v45 = vld [vmem:[#allocation63_spill] sm:$0xff] }
0x144b   : > { %v14332_v28 = vpop.f32.mrf.mxu0 }
0x144c   : > { %17095 = vst [vmem:[#allocation11_spill] sm:$0xff] %v14330_v32  ;;  %17096 = vst [vmem:[#allocation12_spill] sm:$0xff] %v14332_v28  ;;  %v17108_v28 = vld [vmem:[#allocation62_spill] sm:$0xff]  ;;  %v17109_v32 = vld [vmem:[#allocation47_spill] sm:$0xff] }
0x144d   : > { %v3804_v35 = vpop.f32.mrf.mxu0  ;;  %v2870_v39 = vadd.f32 %v17108_v28, %v17107_v15  ;;  %v2872_v22 = vadd.f32 %v17110_v45, %v17109_v32 }
0x144e   : > { %v14338_v17 = vadd.f32 %v3804_v35, %v2860_v43  ;;  %v17112_v35 = vld [vmem:[#allocation48_spill] sm:$0xff] }
0x144f   : > { %v3806_v31 = vpop.f32.mrf.mxu0 }
0x1450   : > { %17101 = vst [vmem:[#allocation13_spill] sm:$0xff] %v14338_v17  ;;  %v14342_v56 = vadd.f32 %v3806_v31, %v2862_v46  ;;  %v17113_v17 = vld [vmem:[#allocation64_spill] sm:$0xff] }
0x1451   : > { %v3808_v36 = vpop.f32.mrf.mxu0  ;;  %v2874_v23 = vadd.f32 %v17113_v17, %v17112_v35 }
0x1452   : > { %17104 = vst [vmem:[#allocation34_spill] sm:$0xff] %v14342_v56  ;;  %v14344_v48 = vadd.f32 %v3808_v36, %v2864_v18 }
0x1453   : > { %v14346_v1 = vpop.f32.mrf.mxu0 }
0x1454   : > { %17105 = vst [vmem:[#allocation50_spill] sm:$0xff] %v14344_v48  ;;  %17106 = vst [vmem:[#allocation35_spill] sm:$0xff] %v14346_v1 }
0x1455   : > { %v3814_v11 = vpop.f32.mrf.mxu0 }
0x1456   : > { %v14352_v55 = vadd.f32 %v3814_v11, %v2870_v39 }
0x1457   : > { %v3816_v43 = vpop.f32.mrf.mxu0 }
0x1458   : > { %17111 = vst [vmem:[#allocation51_spill] sm:$0xff] %v14352_v55  ;;  %v14356_v46 = vadd.f32 %v3816_v43, %v2872_v22 }
0x1459   : > { %v3818_v31 = vpop.f32.mrf.mxu0 }
0x145a   : > { %17114 = vst [vmem:[#allocation36_spill] sm:$0xff] %v14356_v46  ;;  %v14358_v6 = vadd.f32 %v3818_v31, %v2874_v23 }
0x145b   : > { %v14360_v18 = vpop.f32.mrf.mxu0 }
0x145c   : > { %17115 = vst [vmem:[#allocation52_spill] sm:$0xff] %v14358_v6  ;;  %17116 = vst [vmem:[#allocation38_spill] sm:$0xff] %v14360_v18 }
0x14a3   : > { %v11435_v36 = vpop.f32.mrf.mxu0 }
0x14a4   : > { %v4121_v28 = vmul.f32 0.07216878, %v11435_v36 }
0x14a5   : > { %v4088_v1 = vpop.f32.mrf.mxu0 }
0x14a6   : > { %v4119_v15 = vmul.f32 0.07216878, %v4088_v1  ;;  %v4129_v11 = vadd.f32 %v4121_v28, %v13511_v62 }
0x14a7   : > { %v11436_v48 = vpop.f32.mrf.mxu0 }
0x14a8   : > { %v4127_v45 = vadd.f32 %v4119_v15, %v13508_v44  ;;  %v4122_v32 = vmul.f32 0.07216878, %v11436_v48  ;;  %v4141_v1 = vsel %vm611_vm1, %v4129_v11, -inf }
0x14a9   : > { %v4091_v39 = vpop.f32.mrf.mxu0 }
0x14aa   : > { %v4120_v55 = vmul.f32 0.07216878, %v4091_v39  ;;  %v4135_v17 = vsel %vm611_vm1, %v4127_v45, -inf  ;;  %v4130_v35 = vadd.f32 %v4122_v32, %v13519_v29 }
0x14ab   : > { %4136 = vmax.xlane.f32.xlu0 %v4135_v17  ;;  %v11439_v22 = vpop.f32.mrf.mxu0 }
0x14ac   : > { %v4128_v43 = vadd.f32 %v4120_v55, %v13517_v54  ;;  %v4125_v31 = vmul.f32 0.07216878, %v11439_v22  ;;  %v4144_v17 = vsel %vm611_vm1, %v4130_v35, -inf }
0x14ad   : > { %v4104_v23 = vpop.f32.mrf.mxu0 }
0x14ae   : > { %v4123_v36 = vmul.f32 0.07216878, %v4104_v23  ;;  %v4138_v15 = vsel %vm611_vm1, %v4128_v43, -inf  ;;  %v4133_v18 = vadd.f32 %v4125_v31, %v13537_v37 }
0x14af   : > { %4142 = vmax.xlane.f32.xlu0 %v4141_v1  ;;  %4139 = vmax.xlane.f32.xlu1 %v4138_v15  ;;  %v11440_v48 = vpop.f32.mrf.mxu0 }
0x14b0   : > { %v4131_v28 = vadd.f32 %v4123_v36, %v13532_v51  ;;  %v4126_v55 = vmul.f32 0.07216878, %v11440_v48  ;;  %v4153_v1 = vsel %vm611_vm1, %v4133_v18, -inf }
0x14b1   : > { %v4107_v39 = vpop.f32.mrf.mxu0 }
0x14b2   : > { %v4124_v6 = vmul.f32 0.07216878, %v4107_v39  ;;  %v4147_v32 = vsel %vm611_vm1, %v4131_v28, -inf  ;;  %v4134_v23 = vadd.f32 %v4126_v55, %v13546_v0 }
0x14b3   : > { %4145 = vmax.xlane.f32.xlu1 %v4144_v17  ;;  %4148 = vmax.xlane.f32.xlu0 %v4147_v32 }
0x14b4   : > { %v4132_v22 = vadd.f32 %v4124_v6, %v13542_v12  ;;  %v4156_v36 = vsel %vm611_vm1, %v4134_v23, -inf }
0x14b6   : > { %v4150_v15 = vsel %vm611_vm1, %v4132_v22, -inf }
0x14b7   : > { %4154 = vmax.xlane.f32.xlu0 %v4153_v1  ;;  %4151 = vmax.xlane.f32.xlu1 %v4150_v15 }
0x14bb   : > { %4157 = vmax.xlane.f32.xlu1 %v4156_v36 }
0x1534   : > { %v4137_v31 = vpop.xlane.xlu0 %4136 }
0x1535   : > { %v4159_v48 = vsub.f32 %v4127_v45, %v4137_v31 }
0x1537   : > { %v4167_v39 = vmul.f32 1.442695, %v4159_v48 }
0x1538   : > { %v4143_v46 = vpop.xlane.xlu0 %4142  ;;  %v4140_v56 = vpop.xlane.xlu1 %4139 }
0x1539   : > { %12296 = vpow2.f32 %v4167_v39  ;;  %v4161_v17 = vsub.f32 %v4129_v11, %v4143_v46  ;;  %v4160_v32 = vsub.f32 %v4128_v43, %v4140_v56 }
0x153b   : > { %v4171_v6 = vmul.f32 1.442695, %v4161_v17  ;;  %v4169_v57 = vmul.f32 1.442695, %v4160_v32 }
0x153c   : > { %v4146_v55 = vpop.xlane.xlu1 %4145  ;;  %v4149_v34 = vpop.xlane.xlu0 %4148 }
0x153d   : > { %12298 = vpow2.f32 %v4171_v6  ;;  %v4162_v20 = vsub.f32 %v4130_v35, %v4146_v55  ;;  %v4163_v59 = vsub.f32 %v4131_v28, %v4149_v34 }
0x153e   : > { %12300 = vpow2.f32 %v4169_v57 }
0x153f   : > { %v4173_v1 = vmul.f32 1.442695, %v4162_v20  ;;  %v4175_v15 = vmul.f32 1.442695, %v4163_v59 }
0x1540   : > { %v4155_v53 = vpop.xlane.xlu0 %4154  ;;  %v4152_v36 = vpop.xlane.xlu1 %4151 }
0x1541   : > { %12302 = vpow2.f32 %v4173_v1  ;;  %v4165_v45 = vsub.f32 %v4133_v18, %v4155_v53  ;;  %v4164_v31 = vsub.f32 %v4132_v22, %v4152_v36 }
0x1542   : > { %12304 = vpow2.f32 %v4175_v15  ;;  %v14387_v15 = vld [vmem:[%s12818_s16 + $0x74] ss:$8 sps:$4 sm:$0xff]  }
0x1543   : > { %v4179_v48 = vmul.f32 1.442695, %v4165_v45  ;;  %v4177_v39 = vmul.f32 1.442695, %v4164_v31  ;;  %4352 = vmatprep.subr.bf16.mxu0 %v14387_v15 }
0x1544   : > { %v4158_v46 = vpop.xlane.xlu1 %4157 }
0x1545   : > { %12306 = vpow2.f32 %v4179_v48  ;;  %v4166_v56 = vsub.f32 %v4134_v23, %v4158_v46 }
0x1546   : > { %v12297_v11 = vpop.eup %12296  ;;  %12308 = vpow2.f32 %v4177_v39 }
0x1547   : > { %v4181_v43 = vmul.f32 1.442695, %v4166_v56  ;;  %v4183_v35 = vsel %vm611_vm1, %v12297_v11, 0.0 }
0x1548   : > { %4184 = vadd.xlane.f32.xlu0 %v4183_v35 }
0x1549   : > { %12310 = vpow2.f32 %v4181_v43 }
0x154a   : > { %v12299_v20 = vpop.eup %12298 }
0x154b   : > { %v12301_v59 = vpop.eup %12300  ;;  %v4189_v34 = vsel %vm611_vm1, %v12299_v20, 0.0 }
0x154c   : > { %4190 = vadd.xlane.f32.xlu0 %v4189_v34  ;;  %v4186_v53 = vsel %vm611_vm1, %v12301_v59, 0.0 }
0x154d   : > { %4187 = vadd.xlane.f32.xlu1 %v4186_v53 }
0x154e   : > { %v12303_v57 = vpop.eup %12302 }
0x154f   : > { %v12305_v18 = vpop.eup %12304  ;;  %v4192_v28 = vsel %vm611_vm1, %v12303_v57, 0.0 }
0x1550   : > { %v4195_v22 = vsel %vm611_vm1, %v12305_v18, 0.0 }
0x1551   : > { %4196 = vadd.xlane.f32.xlu0 %v4195_v22  ;;  %4193 = vadd.xlane.f32.xlu1 %v4192_v28 }
0x1552   : > { %v12307_v23 = vpop.eup %12306 }
0x1553   : > { %v12309_v17 = vpop.eup %12308  ;;  %v4201_v32 = vsel %vm611_vm1, %v12307_v23, 0.0 }
0x1554   : > { %v4198_v6 = vsel %vm611_vm1, %v12309_v17, 0.0 }
0x1555   : > { %4202 = vadd.xlane.f32.xlu0 %v4201_v32  ;;  %4199 = vadd.xlane.f32.xlu1 %v4198_v6 }
0x1556   : > { %v12311_v55 = vpop.eup %12310 }
0x1557   : > { %v4204_v1 = vsel %vm611_vm1, %v12311_v55, 0.0 }
0x1559   : > { %4205 = vadd.xlane.f32.xlu1 %v4204_v1 }
0x15d1   : > { %v4185_v36 = vpop.xlane.xlu0 %4184 }
0x15d2   : > { %12312 = vrcp.f32 %v4185_v36 }
0x15d5   : > { %v4191_v45 = vpop.xlane.xlu0 %4190 }
0x15d6   : > { %v4188_v31 = vpop.xlane.xlu1 %4187 }
0x15d7   : > { %12314 = vrcp.f32 %v4188_v31  ;;  %v11778_v31 = vld [vmem:[%s12818_s16 + $0x70] ss:$8 sps:$4 sm:$0xff]  }
0x15d8   : > { %12316 = vrcp.f32 %v4191_v45 }
0x15da   : > { %v4197_v48 = vpop.xlane.xlu0 %4196  ;;  %v4194_v39 = vpop.xlane.xlu1 %4193 }
0x15db   : > { %12318 = vrcp.f32 %v4194_v39  ;;  %v11783_v39 = vld [vmem:[%s12818_s16 + $0x64] ss:$8 sps:$4 sm:$0xff]  }
0x15dc   : > { %12320 = vrcp.f32 %v4197_v48 }
0x15de   : > { %v4203_v46 = vpop.xlane.xlu0 %4202  ;;  %v4200_v56 = vpop.xlane.xlu1 %4199 }
0x15df   : > { %12322 = vrcp.f32 %v4200_v56  ;;  %v12313_v43 = vpop.eup %12312 }
0x15e0   : > { %12324 = vrcp.f32 %v4203_v46  ;;  %v4215_v53 = vmul.f32 %v12313_v43, %v12297_v11  ;;  %v11781_v11 = vld [vmem:[%s12818_s16 + $0x60] ss:$8 sps:$4 sm:$0xff]  }
0x15e2   : > { %v4206_v35 = vpop.xlane.xlu1 %4205 }
0x15e3   : > { %12326 = vrcp.f32 %v4206_v35 }
0x15e4   : > { %v12315_v34 = vpop.eup %12314 }
0x15e5   : > { %v4216_v28 = vmul.f32 %v12315_v34, %v12301_v59  ;;  %v12317_v22 = vpop.eup %12316 }
0x15e6   : > { %v4217_v1 = vmul.f32 %v12317_v22, %v12299_v20 }
0x15e7   : > { %v4223_v32 = vpack.c.bf16 %v4216_v28, %v4215_v53 }
0x15e8   : > { %v12319_v6 = vpop.eup %12318 }
0x15e9   : > { %11449 = vmatprep.mubr.msk.bf16.mxu0 %vm611_vm1, %v4223_v32  ;;  %v4218_v36 = vmul.f32 %v12319_v6, %v12303_v57  ;;  %v12321_v45 = vpop.eup %12320 }
0x15ea   : > { %v4219_v35 = vmul.f32 %v12321_v45, %v12305_v18 }
0x15eb   : > { %v4224_v48 = vpack.c.bf16 %v4218_v36, %v4217_v1  ;;  %v4440_v1 = vsel %vm1222_vm2, %v14288_v5, 0 }
0x15ec   : > { %v12323_v46 = vpop.eup %12322 }
0x15ed   : > { %v12325_v56 = vpop.eup %12324  ;;  %11450 = vmatmul.mubr.msk.bf16.vlgmr.msra.gmra.mxu0 %vm611_vm1, %v4224_v48  ;;  %v4220_v50 = vmul.f32 %v12323_v46, %v12309_v17  ;;  %v4437_v48 = vsel %vm1222_vm2, %v14293_v13, 0 }
0x15ee   : > { %4353 = vmatpush1.bf16.msra.mxu0 %v11778_v31  ;;  %v4221_v34 = vmul.f32 %v12325_v56, %v12307_v23  ;;  %v4434_v56 = vsel %vm1222_vm2, %v14298_v10, 0 }
0x15ef   : > { %4354 = vmatprep.subr.bf16.mxu0 %v11783_v39  ;;  %v4225_v43 = vpack.c.bf16 %v4220_v50, %v4219_v35  ;;  %v4443_v50 = vsel %vm1222_vm2, %v14284_v19, 0 }
0x15f0   : > { %v12327_v59 = vpop.eup %12326 }
0x15f1   : > { %v4222_v53 = vmul.f32 %v12327_v59, %v12311_v55  ;;  %11453 = vmatprep.mubr.msk.bf16.mxu0 %vm611_vm1, %v4225_v43 }
0x15f2   : > { %4355 = vmatpush1.bf16.msra.mxu0 %v11781_v11 }
0x15f3   : > { %v4226_v20 = vpack.c.bf16 %v4222_v53, %v4221_v34  ;;  %11653 = vmatprep.subr.msk.bf16.mxu0 %vm1222_vm2, %v14284_v19 }
0x15f5   : > { %11454 = vmatmul.mubr.msk.bf16.gmra.mxu0 %vm611_vm1, %v4226_v20 }
0x15f6   : > { %4372 = vmatprep.mubr.bf16.mxu0 %v17006_v60 }
0x16ad   : > { %v11451_v57 = vpop.f32.mrf.mxu0 }
0x16af   : > { %v4273_v18 = vpop.f32.mrf.mxu0 }
0x16b1   : > { %v11452_v17 = vpop.f32.mrf.mxu0 }
0x16b2   : > { %v4305_v55 = vpack.c.bf16 %v11452_v17, %v11451_v57 }
0x16b3   : > { %v4276_v28 = vpop.f32.mrf.mxu0 }
0x16b4   : > { %v4304_v22 = vpack.c.bf16 %v4276_v28, %v4273_v18 }
0x16b5   : > { %v11455_v32 = vpop.f32.mrf.mxu0 }
0x16b6   : > { %10611 = vmatmul.mubr.msk.bf16.vlgmr.msra.gmra.mxu0 %vm1222_vm2, %v4304_v22 }
0x16b7   : > { %11458 = vmatpush3.bf16.xpose.msra.mxu0 %v4443_v50  ;;  %4382 = vmatprep.mubr.bf16.mxu0 %v17006_v60  ;;  %v4289_v23 = vpop.f32.mrf.mxu0 }
0x16b8   : > { %11654 = vmatprep.subr.msk.bf16.mxu0 %vm1222_vm2, %v14288_v5 }
0x16b9   : > { %v11456_v6 = vpop.f32.mrf.mxu0 }
0x16ba   : > { %v4307_v46 = vpack.c.bf16 %v11456_v6, %v11455_v32 }
0x16bb   : > { %v4292_v36 = vpop.f32.mrf.mxu0 }
0x16bc   : > { %v4306_v45 = vpack.c.bf16 %v4292_v36, %v4289_v23 }
0x16be   : > { %10612 = vmatmul.mubr.msk.bf16.gmra.mxu0 %vm1222_vm2, %v4305_v55 }
0x16bf   : > { %11460 = vmatpush3.bf16.xpose.msra.mxu0 %v4440_v1  ;;  %4392 = vmatprep.mubr.bf16.mxu0 %v17006_v60 }
0x16c0   : > { %11655 = vmatprep.subr.msk.bf16.mxu0 %vm1222_vm2, %v14293_v13 }
0x16c6   : > { %10613 = vmatmul.mubr.msk.bf16.gmra.mxu0 %vm1222_vm2, %v4306_v45 }
0x16c7   : > { %11462 = vmatpush3.bf16.xpose.msra.mxu0 %v4437_v48  ;;  %4402 = vmatprep.mubr.bf16.mxu0 %v17006_v60 }
0x16c8   : > { %11656 = vmatprep.subr.msk.bf16.mxu0 %vm1222_vm2, %v14298_v10 }
0x16ce   : > { %10614 = vmatmul.mubr.msk.bf16.gmra.mxu0 %vm1222_vm2, %v4307_v46 }
0x16cf   : > { %11464 = vmatpush3.bf16.xpose.msra.mxu0 %v4434_v56  ;;  %11465 = vmatprep.mubr.msk.bf16.mxu0 %vm1222_vm2, %v14298_v10 }
0x16d0   : > { %4723 = vmatprep.subr.bf16.mxu0 %v14387_v15 }
0x16d6   : > { %11466 = vmatmul.mubr.msk.bf16.vlgmr.msra.gmra.mxu0 %vm1222_vm2, %v14293_v13 }
0x16d7   : > { %11469 = vmatprep.mubr.msk.bf16.mxu0 %vm1222_vm2, %v14288_v5  ;;  %4724 = vmatpush1.bf16.msra.mxu0 %v11778_v31 }
0x16d8   : > { %4725 = vmatprep.subr.bf16.mxu0 %v11783_v39 }
0x16db   : > { %4726 = vmatpush1.bf16.msra.mxu0 %v11781_v11 }
0x16de   : > { %11470 = vmatmul.mubr.msk.bf16.gmra.mxu0 %vm1222_vm2, %v14284_v19 }
0x16df   : > { %4743 = vmatprep.mubr.bf16.mxu0 %v17006_v60 }
0x1776   : > { %v4374_v35 = vpop.f32.mrf.mxu0 }
0x1777   : > { %v14432_v59 = vadd.f32 %v4374_v35, %v14136_v33 }
0x1778   : > { %v4376_v10 = vpop.f32.mrf.mxu0 }
0x1779   : > { %v14435_v15 = vadd.f32 %v4376_v10, %v14140_v16 }
0x177a   : > { %v4378_v13 = vpop.f32.mrf.mxu0 }
0x177b   : > { %v14438_v43 = vadd.f32 %v4378_v13, %v14142_v47 }
0x177c   : > { %v14440_v5 = vpop.f32.mrf.mxu0 }
0x177d   : > { %17117 = vst [vmem:[#allocation54_spill] sm:$0xff] %v14440_v5 }
0x177e   : > { %v4384_v31 = vpop.f32.mrf.mxu0 }
0x177f   : > { %v14443_v39 = vadd.f32 %v4384_v31, %v14150_v58 }
0x1780   : > { %v4386_v19 = vpop.f32.mrf.mxu0 }
0x1781   : > { %v14446_v11 = vadd.f32 %v4386_v19, %v14154_v63 }
0x1782   : > { %v4388_v33 = vpop.f32.mrf.mxu0 }
0x1783   : > { %v14449_v34 = vadd.f32 %v4388_v33, %v14156_v38 }
0x1784   : > { %v14451_v16 = vpop.f32.mrf.mxu0 }
0x1785   : > { %17118 = vst [vmem:[#allocation39_spill] sm:$0xff] %v14451_v16 }
0x1786   : > { %v4394_v53 = vpop.f32.mrf.mxu0 }
0x1787   : > { %v14454_v47 = vadd.f32 %v4394_v53, %v14164_v21 }
0x1788   : > { %v4396_v20 = vpop.f32.mrf.mxu0 }
0x1789   : > { %v14457_v57 = vadd.f32 %v4396_v20, %v14168_v8 }
0x178a   : > { %v4398_v58 = vpop.f32.mrf.mxu0 }
0x178b   : > { %v14460_v18 = vadd.f32 %v4398_v58, %v14170_v3 }
0x178c   : > { %v14462_v63 = vpop.f32.mrf.mxu0 }
0x178d   : > { %17119 = vst [vmem:[#allocation55_spill] sm:$0xff] %v14462_v63  ;;  %v17145_v63 = vld [vmem:[#allocation51_spill] sm:$0xff] }
0x178e   : > { %v4404_v17 = vpop.f32.mrf.mxu0 }
0x178f   : > { %v14465_v38 = vadd.f32 %v4404_v17, %v14178_v25 }
0x1790   : > { %v4406_v28 = vpop.f32.mrf.mxu0 }
0x1791   : > { %v14468_v22 = vadd.f32 %v4406_v28, %v14182_v2 }
0x1792   : > { %v4408_v21 = vpop.f32.mrf.mxu0 }
0x1793   : > { %v14471_v32 = vadd.f32 %v4408_v21, %v14184_v7 }
0x1794   : > { %v14473_v8 = vpop.f32.mrf.mxu0 }
0x1795   : > { %17120 = vst [vmem:[#allocation40_spill] sm:$0xff] %v14473_v8 }
0x1796   : > { %v11467_v50 = vpop.f32.mrf.mxu0 }
0x1797   : > { %v4512_v3 = vmul.f32 0.07216878, %v11467_v50 }
0x1798   : > { %v4479_v23 = vpop.f32.mrf.mxu0 }
0x1799   : > { %v4510_v55 = vmul.f32 0.07216878, %v4479_v23  ;;  %v4520_v45 = vadd.f32 %v4512_v3, %v13511_v62 }
0x179a   : > { %v11468_v6 = vpop.f32.mrf.mxu0 }
0x179b   : > { %v4518_v1 = vadd.f32 %v4510_v55, %v13508_v44  ;;  %v4513_v36 = vmul.f32 0.07216878, %v11468_v6  ;;  %v4532_v31 = vsel %vm611_vm1, %v4520_v45, -inf }
0x179c   : > { %v4482_v25 = vpop.f32.mrf.mxu0 }
0x179d   : > { %v4511_v48 = vmul.f32 0.07216878, %v4482_v25  ;;  %v4526_v2 = vsel %vm611_vm1, %v4518_v1, -inf  ;;  %v4521_v56 = vadd.f32 %v4513_v36, %v13519_v29 }
0x179e   : > { %4527 = vmax.xlane.f32.xlu0 %v4526_v2  ;;  %v11471_v46 = vpop.f32.mrf.mxu0 }
0x179f   : > { %v4519_v7 = vadd.f32 %v4511_v48, %v13517_v54  ;;  %v4516_v10 = vmul.f32 0.07216878, %v11471_v46  ;;  %v4535_v58 = vsel %vm611_vm1, %v4521_v56, -inf }
0x17a0   : > { %v4495_v35 = vpop.f32.mrf.mxu0 }
0x17a1   : > { %v4514_v13 = vmul.f32 0.07216878, %v4495_v35  ;;  %v4529_v19 = vsel %vm611_vm1, %v4519_v7, -inf  ;;  %v4524_v17 = vadd.f32 %v4516_v10, %v13537_v37 }
0x17a2   : > { %4533 = vmax.xlane.f32.xlu0 %v4532_v31  ;;  %4530 = vmax.xlane.f32.xlu1 %v4529_v19  ;;  %v11472_v33 = vpop.f32.mrf.mxu0 }
0x17a3   : > { %v4522_v53 = vadd.f32 %v4514_v13, %v13532_v51  ;;  %v4517_v28 = vmul.f32 0.07216878, %v11472_v33  ;;  %v4544_v55 = vsel %vm611_vm1, %v4524_v17, -inf }
0x17a4   : > { %v4498_v20 = vpop.f32.mrf.mxu0 }
0x17a5   : > { %v4515_v21 = vmul.f32 0.07216878, %v4498_v20  ;;  %v4538_v50 = vsel %vm611_vm1, %v4522_v53, -inf  ;;  %v4525_v3 = vadd.f32 %v4517_v28, %v13546_v0 }
0x17a6   : > { %4536 = vmax.xlane.f32.xlu1 %v4535_v58  ;;  %4539 = vmax.xlane.f32.xlu0 %v4538_v50 }
0x17a7   : > { %v4523_v23 = vadd.f32 %v4515_v21, %v13542_v12  ;;  %v4547_v36 = vsel %vm611_vm1, %v4525_v3, -inf }
0x17a9   : > { %v4541_v6 = vsel %vm611_vm1, %v4523_v23, -inf }
0x17aa   : > { %4545 = vmax.xlane.f32.xlu0 %v4544_v55  ;;  %4542 = vmax.xlane.f32.xlu1 %v4541_v6 }
0x17ae   : > { %4548 = vmax.xlane.f32.xlu1 %v4547_v36 }
0x1827   : > { %v4528_v25 = vpop.xlane.xlu0 %4527 }
0x1828   : > { %v4550_v48 = vsub.f32 %v4518_v1, %v4528_v25 }
0x182a   : > { %v4558_v2 = vmul.f32 1.442695, %v4550_v48 }
0x182b   : > { %v4534_v46 = vpop.xlane.xlu0 %4533  ;;  %v4531_v35 = vpop.xlane.xlu1 %4530 }
0x182c   : > { %12328 = vpow2.f32 %v4558_v2  ;;  %v4552_v10 = vsub.f32 %v4520_v45, %v4534_v46  ;;  %v4551_v13 = vsub.f32 %v4519_v7, %v4531_v35 }
0x182e   : > { %v4562_v31 = vmul.f32 1.442695, %v4552_v10  ;;  %v4560_v19 = vmul.f32 1.442695, %v4551_v13 }
0x182f   : > { %v4537_v33 = vpop.xlane.xlu1 %4536  ;;  %v4540_v20 = vpop.xlane.xlu0 %4539 }
0x1830   : > { %12330 = vpow2.f32 %v4562_v31  ;;  %v4553_v58 = vsub.f32 %v4521_v56, %v4537_v33  ;;  %v4554_v28 = vsub.f32 %v4522_v53, %v4540_v20 }
0x1831   : > { %12332 = vpow2.f32 %v4560_v19 }
0x1832   : > { %v4564_v21 = vmul.f32 1.442695, %v4553_v58  ;;  %v4566_v50 = vmul.f32 1.442695, %v4554_v28 }
0x1833   : > { %v4546_v55 = vpop.xlane.xlu0 %4545  ;;  %v4543_v6 = vpop.xlane.xlu1 %4542 }
0x1834   : > { %12334 = vpow2.f32 %v4564_v21  ;;  %v4556_v1 = vsub.f32 %v4524_v17, %v4546_v55  ;;  %v4555_v36 = vsub.f32 %v4523_v23, %v4543_v6 }
0x1835   : > { %12336 = vpow2.f32 %v4566_v50 }
0x1836   : > { %v4570_v25 = vmul.f32 1.442695, %v4556_v1  ;;  %v4568_v48 = vmul.f32 1.442695, %v4555_v36 }
0x1837   : > { %v4549_v45 = vpop.xlane.xlu1 %4548 }
0x1838   : > { %12338 = vpow2.f32 %v4570_v25  ;;  %v4557_v7 = vsub.f32 %v4525_v3, %v4549_v45 }
0x1839   : > { %v12329_v2 = vpop.eup %12328  ;;  %12340 = vpow2.f32 %v4568_v48 }
0x183a   : > { %v4572_v46 = vmul.f32 1.442695, %v4557_v7  ;;  %v4574_v56 = vsel %vm611_vm1, %v12329_v2, 0.0 }
0x183b   : > { %4575 = vadd.xlane.f32.xlu0 %v4574_v56 }
0x183c   : > { %12342 = vpow2.f32 %v4572_v46 }
0x183d   : > { %v12331_v53 = vpop.eup %12330 }
0x183e   : > { %v12333_v35 = vpop.eup %12332  ;;  %v4580_v10 = vsel %vm611_vm1, %v12331_v53, 0.0 }
0x183f   : > { %4581 = vadd.xlane.f32.xlu0 %v4580_v10  ;;  %v4577_v17 = vsel %vm611_vm1, %v12333_v35, 0.0 }
0x1840   : > { %4578 = vadd.xlane.f32.xlu1 %v4577_v17 }
0x1841   : > { %v12335_v23 = vpop.eup %12334 }
0x1842   : > { %v12337_v13 = vpop.eup %12336  ;;  %v4583_v31 = vsel %vm611_vm1, %v12335_v23, 0.0 }
0x1843   : > { %v4586_v3 = vsel %vm611_vm1, %v12337_v13, 0.0 }
0x1844   : > { %4587 = vadd.xlane.f32.xlu0 %v4586_v3  ;;  %4584 = vadd.xlane.f32.xlu1 %v4583_v31 }
0x1845   : > { %v12339_v19 = vpop.eup %12338 }
0x1846   : > { %v12341_v33 = vpop.eup %12340  ;;  %v4592_v20 = vsel %vm611_vm1, %v12339_v19, 0.0 }
0x1847   : > { %v4589_v58 = vsel %vm611_vm1, %v12341_v33, 0.0 }
0x1848   : > { %4593 = vadd.xlane.f32.xlu0 %v4592_v20  ;;  %4590 = vadd.xlane.f32.xlu1 %v4589_v58 }
0x1849   : > { %v12343_v28 = vpop.eup %12342 }
0x184a   : > { %v4595_v21 = vsel %vm611_vm1, %v12343_v28, 0.0 }
0x184c   : > { %4596 = vadd.xlane.f32.xlu1 %v4595_v21 }
0x18c4   : > { %v4576_v50 = vpop.xlane.xlu0 %4575 }
0x18c5   : > { %12344 = vrcp.f32 %v4576_v50  ;;  %v11784_v50 = vld [vmem:[%s12808_s27 + $0x1b8] sm:$0xff]  }
0x18c8   : > { %v4582_v55 = vpop.xlane.xlu0 %4581 }
0x18c9   : > { %v4579_v6 = vpop.xlane.xlu1 %4578 }
0x18ca   : > { %12346 = vrcp.f32 %v4579_v6 }
0x18cb   : > { %12348 = vrcp.f32 %v4582_v55 }
0x18cd   : > { %v4588_v1 = vpop.xlane.xlu0 %4587  ;;  %v4585_v36 = vpop.xlane.xlu1 %4584 }
0x18ce   : > { %12350 = vrcp.f32 %v4585_v36 }
0x18cf   : > { %12352 = vrcp.f32 %v4588_v1 }
0x18d1   : > { %v4594_v25 = vpop.xlane.xlu0 %4593  ;;  %v4591_v48 = vpop.xlane.xlu1 %4590 }
0x18d2   : > { %12354 = vrcp.f32 %v4591_v48  ;;  %v12345_v45 = vpop.eup %12344 }
0x18d3   : > { %12356 = vrcp.f32 %v4594_v25  ;;  %v4606_v56 = vmul.f32 %v12345_v45, %v12329_v2  ;;  %v11785_v2 = vld [vmem:[%s12808_s27 + $0x1b0] sm:$0xff]  }
0x18d5   : > { %v4597_v7 = vpop.xlane.xlu1 %4596 }
0x18d6   : > { %12358 = vrcp.f32 %v4597_v7  ;;  %v11786_v7 = vld [vmem:[%s12808_s27 + $0x1a8] sm:$0xff]  }
0x18d7   : > { %v12347_v46 = vpop.eup %12346 }
0x18d8   : > { %v4607_v10 = vmul.f32 %v12347_v46, %v12333_v35  ;;  %v12349_v17 = vpop.eup %12348  ;;  %v11791_v46 = vld [vmem:[%s12808_s27 + $0x180] sm:$0xff]  }
0x18d9   : > { %v4608_v20 = vmul.f32 %v12349_v17, %v12331_v53  ;;  %v11794_v17 = vld [vmem:[%s12808_s27 + $0x1c8] sm:$0xff]  }
0x18da   : > { %v4614_v31 = vpack.c.bf16 %v4607_v10, %v4606_v56  ;;  %v11792_v56 = vld [vmem:[%s12808_s27 + $0x1d8] sm:$0xff]   ;;  %v11793_v10 = vld [vmem:[%s12808_s27 + $0x1d0] sm:$0xff]  }
0x18db   : > { %v12351_v3 = vpop.eup %12350 }
0x18dc   : > { %11481 = vmatprep.mubr.msk.bf16.mxu1 %vm611_vm1, %v4614_v31  ;;  %v4609_v58 = vmul.f32 %v12351_v3, %v12335_v23  ;;  %v12353_v21 = vpop.eup %12352  ;;  %v11795_v31 = vld [vmem:[%s12808_s27 + $0x1c0] sm:$0xff]   ;;  %v17121_v3 = vld [vmem:[#allocation14_spill] sm:$0xff] }
0x18dd   : > { %v4610_v36 = vmul.f32 %v12353_v21, %v12337_v13  ;;  %v11787_v13 = vld [vmem:[%s12808_s27 + $0x1a0] sm:$0xff]  }
0x18de   : > { %v4615_v55 = vpack.c.bf16 %v4609_v58, %v4608_v20  ;;  %v17122_v20 = vld [vmem:[#allocation15_spill] sm:$0xff]  ;;  %v17123_v58 = vld [vmem:[#allocation16_spill] sm:$0xff] }
0x18df   : > { %v12355_v6 = vpop.eup %12354 }
0x18e0   : > { %v12357_v1 = vpop.eup %12356  ;;  %11482 = vmatmul.mubr.msk.bf16.vlgmr.msra.gmra.mxu1 %vm611_vm1, %v4615_v55  ;;  %v4611_v25 = vmul.f32 %v12355_v6, %v12341_v33  ;;  %v11789_v33 = vld [vmem:[%s12808_s27 + $0x190] sm:$0xff]  }
0x18e1   : > { %4898 = vmatpush1.bf16.msra.mxu1 %v11784_v50  ;;  %v4612_v53 = vmul.f32 %v12357_v1, %v12339_v19  ;;  %v11788_v19 = vld [vmem:[%s12808_s27 + $0x198] sm:$0xff]  }
0x18e2   : > { %4899 = vmatprep.subr.bf16.mxu1 %v17006_v60  ;;  %v4616_v48 = vpack.c.bf16 %v4611_v25, %v4610_v36 }
0x18e3   : > { %v12359_v35 = vpop.eup %12358 }
0x18e4   : > { %v4613_v23 = vmul.f32 %v12359_v35, %v12343_v28  ;;  %11485 = vmatprep.mubr.msk.bf16.mxu1 %vm611_vm1, %v4616_v48  ;;  %v11790_v28 = vld [vmem:[%s12808_s27 + $0x188] sm:$0xff]  }
0x18e5   : > { %4900 = vmatpush1.bf16.msra.mxu1 %v11785_v2 }
0x18e6   : > { %v4617_v45 = vpack.c.bf16 %v4613_v23, %v4612_v53  ;;  %4901 = vmatprep.subr.bf16.mxu1 %v17006_v60 }
0x18e8   : > { %11486 = vmatmul.mubr.msk.bf16.gmra.mxu1 %vm611_vm1, %v4617_v45 }
0x18e9   : > { %4902 = vmatpush1.bf16.msra.mxu1 %v11786_v7  ;;  %10663 = vmatprep.mubr.msk.bf16.mxu1 %vm611_vm1, %v13233_v9 }
0x18ea   : > { %4903 = vmatprep.subr.bf16.mxu1 %v17006_v60 }
0x18ed   : > { %4904 = vmatpush1.bf16.msra.mxu1 %v11787_v13 }
0x18ee   : > { %4905 = vmatprep.subr.bf16.mxu1 %v17006_v60 }
0x18f1   : > { %4906 = vmatpush1.bf16.msra.mxu1 %v11788_v19 }
0x18f2   : > { %4907 = vmatprep.subr.bf16.mxu1 %v17006_v60 }
0x18f5   : > { %4908 = vmatpush1.bf16.msra.mxu1 %v11789_v33 }
0x18f6   : > { %4909 = vmatprep.subr.bf16.mxu1 %v17006_v60 }
0x18f9   : > { %4910 = vmatpush1.bf16.msra.mxu1 %v11790_v28 }
0x18fa   : > { %4911 = vmatprep.subr.bf16.mxu1 %v17006_v60 }
0x18fd   : > { %4912 = vmatpush1.bf16.msra.mxu1 %v11791_v46 }
0x18fe   : > { %4921 = vmatprep.subr.bf16.mxu1 %v17006_v60 }
0x1901   : > { %4922 = vmatpush2.bf16.msra.mxu1 %v11792_v56 }
0x1902   : > { %4923 = vmatprep.subr.bf16.mxu1 %v17006_v60 }
0x1905   : > { %4924 = vmatpush2.bf16.msra.mxu1 %v11793_v10 }
0x1906   : > { %4925 = vmatprep.subr.bf16.mxu1 %v17006_v60 }
0x1909   : > { %4926 = vmatpush2.bf16.msra.mxu1 %v11794_v17 }
0x190a   : > { %4927 = vmatprep.subr.bf16.mxu1 %v17006_v60 }
0x190d   : > { %4928 = vmatpush2.bf16.msra.mxu1 %v11795_v31 }
0x1910   : > { %4930 = vmatmul.mubr.bf16.vlgmr.msra.gmra.mxu1 %v13239_v41 }
0x1911   : > { %10664 = vmatprep.mubr.msk.bf16.mxu1 %vm611_vm1, %v13246_v49 }
0x1918   : > { %4938 = vmatmul.mubr.bf16.gmra.mxu1 %v13281_v24 }
0x1919   : > { %10665 = vmatprep.mubr.msk.bf16.mxu1 %vm611_vm1, %v13285_v42 }
0x1920   : > { %4946 = vmatmul.mubr.bf16.gmra.mxu1 %v13330_v4 }
0x1921   : > { %10666 = vmatprep.mubr.msk.bf16.mxu1 %vm611_vm1, %v13332_v14 }
0x1928   : > { %4954 = vmatmul.mubr.bf16.gmra.mxu1 %v13340_v27 }
0x1929   : > { %10667 = vmatprep.mubr.msk.bf16.mxu1 %vm611_vm1, %v13378_v40 }
0x1930   : > { %4962 = vmatmul.mubr.bf16.gmra.mxu1 %v13380_v26 }
0x1931   : > { %10668 = vmatprep.mubr.msk.bf16.mxu1 %vm611_vm1, %v17071_v30 }
0x1938   : > { %4970 = vmatmul.mubr.bf16.gmra.mxu1 %v17072_v61 }
0x1939   : > { %10669 = vmatprep.mubr.msk.bf16.mxu1 %vm611_vm1, %v17073_v52 }
0x1940   : > { %4978 = vmatmul.mubr.bf16.gmra.mxu1 %v17121_v3 }
0x1941   : > { %10670 = vmatprep.mubr.msk.bf16.mxu1 %vm611_vm1, %v17122_v20 }
0x1948   : > { %4986 = vmatmul.mubr.bf16.gmra.mxu1 %v17123_v58 }
0x19a0   : > { %v11483_v21 = vpop.f32.mrf.mxu1 }
0x19a2   : > { %v4664_v50 = vpop.f32.mrf.mxu1 }
0x19a4   : > { %v11484_v55 = vpop.f32.mrf.mxu1 }
0x19a5   : > { %v4696_v2 = vpack.c.bf16 %v11484_v55, %v11483_v21 }
0x19a6   : > { %v4667_v6 = vpop.f32.mrf.mxu1 }
0x19a7   : > { %v4695_v1 = vpack.c.bf16 %v4667_v6, %v4664_v50 }
0x19a8   : > { %v11487_v36 = vpop.f32.mrf.mxu1 }
0x19a9   : > { %10623 = vmatmul.mubr.msk.bf16.vlgmr.msra.gmra.mxu0 %vm1222_vm2, %v4695_v1 }
0x19aa   : > { %4753 = vmatprep.mubr.bf16.mxu0 %v17006_v60  ;;  %v4680_v25 = vpop.f32.mrf.mxu1 }
0x19ac   : > { %v11488_v35 = vpop.f32.mrf.mxu1 }
0x19ad   : > { %v4698_v23 = vpack.c.bf16 %v11488_v35, %v11487_v36 }
0x19ae   : > { %v4683_v48 = vpop.f32.mrf.mxu1 }
0x19af   : > { %v4697_v53 = vpack.c.bf16 %v4683_v48, %v4680_v25 }
0x19b1   : > { %10624 = vmatmul.mubr.msk.bf16.gmra.mxu0 %vm1222_vm2, %v4696_v2 }
0x19b2   : > { %4763 = vmatprep.mubr.bf16.mxu0 %v17006_v60 }
0x19b9   : > { %10625 = vmatmul.mubr.msk.bf16.gmra.mxu0 %vm1222_vm2, %v4697_v53 }
0x19ba   : > { %4773 = vmatprep.mubr.bf16.mxu0 %v17006_v60 }
0x19c1   : > { %10626 = vmatmul.mubr.msk.bf16.gmra.mxu0 %vm1222_vm2, %v4698_v23 }
0x19d0   : > { %v4931_v45 = vpop.f32.mrf.mxu1 }
0x19d2   : > { %v4933_v7 = vpop.f32.mrf.mxu1 }
0x19d4   : > { %v4934_v13 = vpop.f32.mrf.mxu1 }
0x19d5   : > { %v14557_v19 = vpack.c.bf16 %v4934_v13, %v4931_v45 }
0x19d6   : > { %v4936_v33 = vpop.f32.mrf.mxu1 }
0x19d7   : > { %11497 = vmatprep.mubr.msk.bf16.mxu0 %vm1222_vm2, %v14557_v19 }
0x19d8   : > { %v4939_v28 = vpop.f32.mrf.mxu1 }
0x19da   : > { %v4941_v46 = vpop.f32.mrf.mxu1 }
0x19dc   : > { %v4942_v56 = vpop.f32.mrf.mxu1 }
0x19dd   : > { %v5000_v7 = vpack.c.bf16 %v4942_v56, %v4939_v28  ;;  %v5004_v28 = vsel %vm1222_vm2, %v14557_v19, 0 }
0x19de   : > { %v4944_v10 = vpop.f32.mrf.mxu1 }
0x19e0   : > { %v4947_v17 = vpop.f32.mrf.mxu1 }
0x19e2   : > { %v4949_v31 = vpop.f32.mrf.mxu1 }
0x19e3   : > { %v5007_v31 = vsel %vm1222_vm2, %v5000_v7, 0 }
0x19e4   : > { %v4950_v21 = vpop.f32.mrf.mxu1 }
0x19e5   : > { %v5001_v2 = vpack.c.bf16 %v4950_v21, %v4947_v17 }
0x19e6   : > { %v4952_v50 = vpop.f32.mrf.mxu1 }
0x19e7   : > { %v5010_v13 = vsel %vm1222_vm2, %v5001_v2, 0 }
0x19e8   : > { %v4955_v55 = vpop.f32.mrf.mxu1 }
0x19ea   : > { %v4957_v6 = vpop.f32.mrf.mxu1 }
0x19ec   : > { %v4958_v1 = vpop.f32.mrf.mxu1 }
0x19ed   : > { %v5002_v36 = vpack.c.bf16 %v4958_v1, %v4955_v55 }
0x19ee   : > { %v4960_v25 = vpop.f32.mrf.mxu1 }
0x19ef   : > { %11657 = vmatprep.subr.msk.bf16.mxu0 %vm1222_vm2, %v5002_v36  ;;  %v5013_v35 = vsel %vm1222_vm2, %v5002_v36, 0 }
0x19f0   : > { %v4963_v48 = vpop.f32.mrf.mxu1  ;;  %11490 = vmatpush3.bf16.xpose.msra.mxu0 %v5013_v35 }
0x19f1   : > { %11658 = vmatprep.subr.msk.bf16.mxu0 %vm1222_vm2, %v5001_v2 }
0x19f2   : > { %v4965_v53 = vpop.f32.mrf.mxu1 }
0x19f4   : > { %v4966_v23 = vpop.f32.mrf.mxu1 }
0x19f6   : > { %v4968_v45 = vpop.f32.mrf.mxu1 }
0x19f8   : > { %v4971_v33 = vpop.f32.mrf.mxu1  ;;  %11492 = vmatpush3.bf16.xpose.msra.mxu0 %v5010_v13 }
0x19f9   : > { %11659 = vmatprep.subr.msk.bf16.mxu0 %vm1222_vm2, %v5000_v7 }
0x19fa   : > { %v4973_v46 = vpop.f32.mrf.mxu1 }
0x19fb   : > { %v14585_v46 = vpack.c.bf16 %v4966_v23, %v4963_v48  ;;  %v17126_v48 = vld [vmem:[#allocation23_spill] sm:$0xff] }
0x19fc   : > { %v4974_v10 = vpop.f32.mrf.mxu1 }
0x19fd   : > { %v14580_v13 = vpack.c.bf16 %v4974_v10, %v4971_v33  ;;  %v17124_v33 = vld [vmem:[#allocation22_spill] sm:$0xff] }
0x19fe   : > { %v4976_v17 = vpop.f32.mrf.mxu1 }
0x19ff   : > { %v17128_v17 = vld [vmem:[#allocation24_spill] sm:$0xff] }
0x1a00   : > { %v4979_v21 = vpop.f32.mrf.mxu1  ;;  %11494 = vmatpush3.bf16.xpose.msra.mxu0 %v5007_v31 }
0x1a01   : > { %11660 = vmatprep.subr.msk.bf16.mxu0 %vm1222_vm2, %v14557_v19 }
0x1a02   : > { %v4981_v50 = vpop.f32.mrf.mxu1 }
0x1a04   : > { %v4982_v55 = vpop.f32.mrf.mxu1 }
0x1a05   : > { %v14575_v45 = vpack.c.bf16 %v4982_v55, %v4979_v21 }
0x1a06   : > { %v4984_v6 = vpop.f32.mrf.mxu1 }
0x1a08   : > { %v4987_v56 = vpop.f32.mrf.mxu1  ;;  %11496 = vmatpush3.bf16.xpose.msra.mxu0 %v5004_v28  ;;  %v17133_v28 = vld [vmem:[#allocation28_spill] sm:$0xff] }
0x1a09   : > { %11505 = vmatprep.subr.bf16.mxu0 %v5002_v36 }
0x1a0a   : > { %v4989_v1 = vpop.f32.mrf.mxu1 }
0x1a0c   : > { %v4990_v25 = vpop.f32.mrf.mxu1 }
0x1a0d   : > { %v14571_v35 = vpack.c.bf16 %v4990_v25, %v4987_v56  ;;  %v17135_v25 = vld [vmem:[#allocation11_spill] sm:$0xff] }
0x1a0e   : > { %v4992_v53 = vpop.f32.mrf.mxu1 }
0x1a0f   : > { %11498 = vmatmul.mubr.msk.bf16.vlgmr.msra.gmra.mxu0 %vm1222_vm2, %v5000_v7  ;;  %11537 = vmatprep.subr.bf16.mxu1 %v14571_v35 }
0x1a10   : > { %11501 = vmatprep.mubr.msk.bf16.mxu0 %vm1222_vm2, %v5001_v2  ;;  %11506 = vmatpush3.bf16.msra.mxu0 %v5002_v36 }
0x1a11   : > { %11538 = vmatpush3.bf16.msra.mxu1 %v14571_v35  ;;  %11507 = vmatprep.subr.bf16.mxu0 %v5001_v2 }
0x1a12   : > { %11539 = vmatprep.subr.bf16.mxu1 %v14575_v45 }
0x1a14   : > { %11508 = vmatpush3.bf16.msra.mxu0 %v5001_v2 }
0x1a15   : > { %11540 = vmatpush3.bf16.msra.mxu1 %v14575_v45  ;;  %11509 = vmatprep.subr.bf16.mxu0 %v5000_v7 }
0x1a16   : > { %11541 = vmatprep.subr.bf16.mxu1 %v14580_v13 }
0x1a17   : > { %11502 = vmatmul.mubr.msk.bf16.gmra.mxu0 %vm1222_vm2, %v5002_v36 }
0x1a18   : > { %11510 = vmatpush3.bf16.msra.mxu0 %v5000_v7 }
0x1a19   : > { %11542 = vmatpush3.bf16.msra.mxu1 %v14580_v13  ;;  %11511 = vmatprep.subr.bf16.mxu0 %v14557_v19 }
0x1a1a   : > { %11543 = vmatprep.subr.bf16.mxu1 %v14585_v46 }
0x1a1c   : > { %11512 = vmatpush3.bf16.msra.mxu0 %v14557_v19  ;;  %v17131_v19 = vld [vmem:[#allocation27_spill] sm:$0xff] }
0x1a1d   : > { %11544 = vmatpush3.bf16.msra.mxu1 %v14585_v46 }
0x1a1e   : > { %5858 = vmatprep.subr.bf16.mxu1 %v17006_v60 }
0x1a69   : > { %v4745_v2 = vpop.f32.mrf.mxu0 }
0x1a6a   : > { %v14594_v10 = vadd.f32 %v4745_v2, %v17124_v33 }
0x1a6b   : > { %v4747_v36 = vpop.f32.mrf.mxu0 }
0x1a6c   : > { %17125 = vst [vmem:[#allocation56_spill] sm:$0xff] %v14594_v10  ;;  %v14597_v23 = vadd.f32 %v4747_v36, %v17126_v48  ;;  %v17138_v36 = vld [vmem:[#allocation13_spill] sm:$0xff] }
0x1a6d   : > { %v4749_v7 = vpop.f32.mrf.mxu0 }
0x1a6e   : > { %17127 = vst [vmem:[#allocation42_spill] sm:$0xff] %v14597_v23  ;;  %v14600_v31 = vadd.f32 %v4749_v7, %v17128_v17  ;;  %v17140_v17 = vld [vmem:[#allocation34_spill] sm:$0xff] }
0x1a6f   : > { %v14602_v21 = vpop.f32.mrf.mxu0 }
0x1a70   : > { %17129 = vst [vmem:[#allocation58_spill] sm:$0xff] %v14600_v31  ;;  %17130 = vst [vmem:[#allocation43_spill] sm:$0xff] %v14602_v21 }
0x1a71   : > { %v4755_v50 = vpop.f32.mrf.mxu0 }
0x1a72   : > { %v14605_v55 = vadd.f32 %v4755_v50, %v17131_v19  ;;  %v17142_v19 = vld [vmem:[#allocation50_spill] sm:$0xff] }
0x1a73   : > { %v4757_v6 = vpop.f32.mrf.mxu0 }
0x1a74   : > { %17132 = vst [vmem:[#allocation59_spill] sm:$0xff] %v14605_v55  ;;  %v14608_v56 = vadd.f32 %v4757_v6, %v17133_v28 }
0x1a75   : > { %v4759_v1 = vpop.f32.mrf.mxu0 }
0x1a76   : > { %17134 = vst [vmem:[#allocation44_spill] sm:$0xff] %v14608_v56  ;;  %v14611_v53 = vadd.f32 %v4759_v1, %v17135_v25 }
0x1a77   : > { %v14613_v2 = vpop.f32.mrf.mxu0 }
0x1a78   : > { %17136 = vst [vmem:[#allocation60_spill] sm:$0xff] %v14611_v53  ;;  %17137 = vst [vmem:[#allocation46_spill] sm:$0xff] %v14613_v2  ;;  %v17147_v2 = vld [vmem:[#allocation36_spill] sm:$0xff] }
0x1a79   : > { %v4765_v33 = vpop.f32.mrf.mxu0 }
0x1a7a   : > { %v14616_v48 = vadd.f32 %v4765_v33, %v17138_v36  ;;  %v17149_v36 = vld [vmem:[#allocation52_spill] sm:$0xff] }
0x1a7b   : > { %v4767_v7 = vpop.f32.mrf.mxu0 }
0x1a7c   : > { %17139 = vst [vmem:[#allocation62_spill] sm:$0xff] %v14616_v48  ;;  %v14619_v21 = vadd.f32 %v4767_v7, %v17140_v17 }
0x1a7d   : > { %v4769_v50 = vpop.f32.mrf.mxu0 }
0x1a7e   : > { %17141 = vst [vmem:[#allocation47_spill] sm:$0xff] %v14619_v21  ;;  %v14622_v8 = vadd.f32 %v4769_v50, %v17142_v19 }
0x1a7f   : > { %v14624_v6 = vpop.f32.mrf.mxu0 }
0x1a80   : > { %17143 = vst [vmem:[#allocation63_spill] sm:$0xff] %v14622_v8  ;;  %17144 = vst [vmem:[#allocation48_spill] sm:$0xff] %v14624_v6 }
0x1a81   : > { %v4775_v28 = vpop.f32.mrf.mxu0 }
0x1a82   : > { %v14627_v1 = vadd.f32 %v4775_v28, %v17145_v63 }
0x1a83   : > { %v4777_v25 = vpop.f32.mrf.mxu0 }
0x1a84   : > { %17146 = vst [vmem:[#allocation64_spill] sm:$0xff] %v14627_v1  ;;  %v14630_v16 = vadd.f32 %v4777_v25, %v17147_v2 }
0x1a85   : > { %v4779_v33 = vpop.f32.mrf.mxu0 }
0x1a86   : > { %17148 = vst [vmem:[#allocation22_spill] sm:$0xff] %v14630_v16  ;;  %v14633_v5 = vadd.f32 %v4779_v33, %v17149_v36 }
0x1a87   : > { %v14635_v7 = vpop.f32.mrf.mxu0 }
0x1a88   : > { %17150 = vst [vmem:[#allocation23_spill] sm:$0xff] %v14633_v5  ;;  %17151 = vst [vmem:[#allocation24_spill] sm:$0xff] %v14635_v7 }
0x1acf   : > { %v11499_v17 = vpop.f32.mrf.mxu0 }
0x1ad0   : > { %v5082_v50 = vmul.f32 0.07216878, %v11499_v17 }
0x1ad1   : > { %v5049_v21 = vpop.f32.mrf.mxu0 }
0x1ad2   : > { %v5080_v19 = vmul.f32 0.07216878, %v5049_v21  ;;  %v5090_v28 = vadd.f32 %v5082_v50, %v13511_v62 }
0x1ad3   : > { %v11500_v8 = vpop.f32.mrf.mxu0 }
0x1ad4   : > { %v5088_v6 = vadd.f32 %v5080_v19, %v13508_v44  ;;  %v5083_v48 = vmul.f32 0.07216878, %v11500_v8  ;;  %v5102_v21 = vsel %vm611_vm1, %v5090_v28, -inf }
0x1ad5   : > { %v5052_v63 = vpop.f32.mrf.mxu0 }
0x1ad6   : > { %v5081_v1 = vmul.f32 0.07216878, %v5052_v63  ;;  %v5096_v2 = vsel %vm611_vm1, %v5088_v6, -inf  ;;  %v5091_v36 = vadd.f32 %v5083_v48, %v13519_v29 }
0x1ad7   : > { %5097 = vmax.xlane.f32.xlu0 %v5096_v2  ;;  %v11503_v25 = vpop.f32.mrf.mxu0 }
0x1ad8   : > { %v5089_v33 = vadd.f32 %v5081_v1, %v13517_v54  ;;  %v5086_v5 = vmul.f32 0.07216878, %v11503_v25  ;;  %v5105_v2 = vsel %vm611_vm1, %v5091_v36, -inf }
0x1ad9   : > { %v5065_v7 = vpop.f32.mrf.mxu0 }
0x1ada   : > { %v5084_v17 = vmul.f32 0.07216878, %v5065_v7  ;;  %v5099_v19 = vsel %vm611_vm1, %v5089_v33, -inf  ;;  %v5094_v16 = vadd.f32 %v5086_v5, %v13537_v37 }
0x1adb   : > { %5103 = vmax.xlane.f32.xlu0 %v5102_v21  ;;  %5100 = vmax.xlane.f32.xlu1 %v5099_v19  ;;  %v11504_v8 = vpop.f32.mrf.mxu0 }
0x1adc   : > { %v5092_v50 = vadd.f32 %v5084_v17, %v13532_v51  ;;  %v5087_v1 = vmul.f32 0.07216878, %v11504_v8  ;;  %v5114_v21 = vsel %vm611_vm1, %v5094_v16, -inf }
0x1add   : > { %v5068_v63 = vpop.f32.mrf.mxu0 }
0x1ade   : > { %v5085_v53 = vmul.f32 0.07216878, %v5068_v63  ;;  %v5108_v48 = vsel %vm611_vm1, %v5092_v50, -inf  ;;  %v5095_v25 = vadd.f32 %v5087_v1, %v13546_v0 }
0x1adf   : > { %5106 = vmax.xlane.f32.xlu1 %v5105_v2  ;;  %5109 = vmax.xlane.f32.xlu0 %v5108_v48 }
0x1ae0   : > { %v5093_v7 = vadd.f32 %v5085_v53, %v13542_v12  ;;  %v5117_v17 = vsel %vm611_vm1, %v5095_v25, -inf }
0x1ae2   : > { %v5111_v19 = vsel %vm611_vm1, %v5093_v7, -inf }
0x1ae3   : > { %5115 = vmax.xlane.f32.xlu0 %v5114_v21  ;;  %5112 = vmax.xlane.f32.xlu1 %v5111_v19 }
0x1ae7   : > { %5118 = vmax.xlane.f32.xlu1 %v5117_v17 }
0x1b60   : > { %v5098_v5 = vpop.xlane.xlu0 %5097 }
0x1b61   : > { %v5120_v8 = vsub.f32 %v5088_v6, %v5098_v5 }
0x1b63   : > { %v5128_v63 = vmul.f32 1.442695, %v5120_v8 }
0x1b64   : > { %v5104_v56 = vpop.xlane.xlu0 %5103  ;;  %v5101_v55 = vpop.xlane.xlu1 %5100 }
0x1b65   : > { %12360 = vpow2.f32 %v5128_v63  ;;  %v5122_v2 = vsub.f32 %v5090_v28, %v5104_v56  ;;  %v5121_v48 = vsub.f32 %v5089_v33, %v5101_v55 }
0x1b67   : > { %v5132_v53 = vmul.f32 1.442695, %v5122_v2  ;;  %v5130_v31 = vmul.f32 1.442695, %v5121_v48 }
0x1b68   : > { %v5107_v1 = vpop.xlane.xlu1 %5106  ;;  %v5110_v23 = vpop.xlane.xlu0 %5109 }
0x1b69   : > { %12362 = vpow2.f32 %v5132_v53  ;;  %v5123_v10 = vsub.f32 %v5091_v36, %v5107_v1  ;;  %v5124_v58 = vsub.f32 %v5092_v50, %v5110_v23 }
0x1b6a   : > { %12364 = vpow2.f32 %v5130_v31 }
0x1b6b   : > { %v5134_v21 = vmul.f32 1.442695, %v5123_v10  ;;  %v5136_v19 = vmul.f32 1.442695, %v5124_v58 }
0x1b6c   : > { %v5116_v20 = vpop.xlane.xlu0 %5115  ;;  %v5113_v17 = vpop.xlane.xlu1 %5112 }
0x1b6d   : > { %12366 = vpow2.f32 %v5134_v21  ;;  %v5126_v6 = vsub.f32 %v5094_v16, %v5116_v20  ;;  %v5125_v5 = vsub.f32 %v5093_v7, %v5113_v17 }
0x1b6e   : > { %12368 = vpow2.f32 %v5136_v19  ;;  %v14662_v19 = vld [vmem:[%s12818_s16 + $0x94] ss:$8 sps:$4 sm:$0xff]  }
0x1b6f   : > { %v5140_v8 = vmul.f32 1.442695, %v5126_v6  ;;  %v5138_v63 = vmul.f32 1.442695, %v5125_v5  ;;  %5313 = vmatprep.subr.bf16.mxu0 %v14662_v19 }
0x1b70   : > { %v5119_v56 = vpop.xlane.xlu1 %5118 }
0x1b71   : > { %12370 = vpow2.f32 %v5140_v8  ;;  %v5127_v55 = vsub.f32 %v5095_v25, %v5119_v56 }
0x1b72   : > { %v12361_v28 = vpop.eup %12360  ;;  %12372 = vpow2.f32 %v5138_v63 }
0x1b73   : > { %v5142_v33 = vmul.f32 1.442695, %v5127_v55  ;;  %v5144_v36 = vsel %vm611_vm1, %v12361_v28, 0.0 }
0x1b74   : > { %5145 = vadd.xlane.f32.xlu0 %v5144_v36 }
0x1b75   : > { %12374 = vpow2.f32 %v5142_v33 }
0x1b76   : > { %v12363_v10 = vpop.eup %12362 }
0x1b77   : > { %v12365_v58 = vpop.eup %12364  ;;  %v5150_v23 = vsel %vm611_vm1, %v12363_v10, 0.0 }
0x1b78   : > { %5151 = vadd.xlane.f32.xlu0 %v5150_v23  ;;  %v5147_v16 = vsel %vm611_vm1, %v12365_v58, 0.0 }
0x1b79   : > { %5148 = vadd.xlane.f32.xlu1 %v5147_v16 }
0x1b7a   : > { %v12367_v20 = vpop.eup %12366 }
0x1b7b   : > { %v12369_v31 = vpop.eup %12368  ;;  %v5153_v50 = vsel %vm611_vm1, %v12367_v20, 0.0 }
0x1b7c   : > { %v5156_v7 = vsel %vm611_vm1, %v12369_v31, 0.0 }
0x1b7d   : > { %5157 = vadd.xlane.f32.xlu0 %v5156_v7  ;;  %5154 = vadd.xlane.f32.xlu1 %v5153_v50 }
0x1b7e   : > { %v12371_v25 = vpop.eup %12370 }
0x1b7f   : > { %v12373_v2 = vpop.eup %12372  ;;  %v5162_v48 = vsel %vm611_vm1, %v12371_v25, 0.0 }
0x1b80   : > { %v5159_v53 = vsel %vm611_vm1, %v12373_v2, 0.0 }
0x1b81   : > { %5163 = vadd.xlane.f32.xlu0 %v5162_v48  ;;  %5160 = vadd.xlane.f32.xlu1 %v5159_v53 }
0x1b82   : > { %v12375_v1 = vpop.eup %12374 }
0x1b83   : > { %v5165_v21 = vsel %vm611_vm1, %v12375_v1, 0.0 }
0x1b85   : > { %5166 = vadd.xlane.f32.xlu1 %v5165_v21 }
0x1bfd   : > { %v5146_v17 = vpop.xlane.xlu0 %5145 }
0x1bfe   : > { %12376 = vrcp.f32 %v5146_v17 }
0x1c01   : > { %v5152_v6 = vpop.xlane.xlu0 %5151 }
0x1c02   : > { %v5149_v5 = vpop.xlane.xlu1 %5148 }
0x1c03   : > { %12378 = vrcp.f32 %v5149_v5  ;;  %v11796_v5 = vld [vmem:[%s12818_s16 + $0x90] ss:$8 sps:$4 sm:$0xff]  }
0x1c04   : > { %12380 = vrcp.f32 %v5152_v6 }
0x1c06   : > { %v5158_v8 = vpop.xlane.xlu0 %5157  ;;  %v5155_v63 = vpop.xlane.xlu1 %5154 }
0x1c07   : > { %12382 = vrcp.f32 %v5155_v63  ;;  %v11801_v63 = vld [vmem:[%s12818_s16 + $0x84] ss:$8 sps:$4 sm:$0xff]  }
0x1c08   : > { %12384 = vrcp.f32 %v5158_v8 }
0x1c0a   : > { %v5164_v56 = vpop.xlane.xlu0 %5163  ;;  %v5161_v55 = vpop.xlane.xlu1 %5160 }
0x1c0b   : > { %12386 = vrcp.f32 %v5161_v55  ;;  %v12377_v33 = vpop.eup %12376 }
0x1c0c   : > { %12388 = vrcp.f32 %v5164_v56  ;;  %v5176_v16 = vmul.f32 %v12377_v33, %v12361_v28  ;;  %v11799_v28 = vld [vmem:[%s12818_s16 + $0x80] ss:$8 sps:$4 sm:$0xff]  }
0x1c0e   : > { %v5167_v36 = vpop.xlane.xlu1 %5166 }
0x1c0f   : > { %12390 = vrcp.f32 %v5167_v36 }
0x1c10   : > { %v12379_v23 = vpop.eup %12378 }
0x1c11   : > { %v5177_v50 = vmul.f32 %v12379_v23, %v12365_v58  ;;  %v12381_v7 = vpop.eup %12380 }
0x1c12   : > { %v5178_v21 = vmul.f32 %v12381_v7, %v12363_v10 }
0x1c13   : > { %v5184_v48 = vpack.c.bf16 %v5177_v50, %v5176_v16 }
0x1c14   : > { %v12383_v53 = vpop.eup %12382 }
0x1c15   : > { %11513 = vmatprep.mubr.msk.bf16.mxu0 %vm611_vm1, %v5184_v48  ;;  %v5179_v17 = vmul.f32 %v12383_v53, %v12367_v20  ;;  %v12385_v6 = vpop.eup %12384 }
0x1c16   : > { %v5180_v36 = vmul.f32 %v12385_v6, %v12369_v31 }
0x1c17   : > { %v5185_v8 = vpack.c.bf16 %v5179_v17, %v5178_v21  ;;  %v5401_v21 = vsel %vm1222_vm2, %v14575_v45, 0 }
0x1c18   : > { %v12387_v56 = vpop.eup %12386 }
0x1c19   : > { %v12389_v55 = vpop.eup %12388  ;;  %11514 = vmatmul.mubr.msk.bf16.vlgmr.msra.gmra.mxu0 %vm611_vm1, %v5185_v8  ;;  %v5181_v3 = vmul.f32 %v12387_v56, %v12373_v2  ;;  %v5398_v8 = vsel %vm1222_vm2, %v14580_v13, 0 }
0x1c1a   : > { %5314 = vmatpush1.bf16.msra.mxu0 %v11796_v5  ;;  %v5182_v23 = vmul.f32 %v12389_v55, %v12371_v25  ;;  %v5395_v55 = vsel %vm1222_vm2, %v14585_v46, 0 }
0x1c1b   : > { %5315 = vmatprep.subr.bf16.mxu0 %v11801_v63  ;;  %v5186_v33 = vpack.c.bf16 %v5181_v3, %v5180_v36  ;;  %v5404_v3 = vsel %vm1222_vm2, %v14571_v35, 0 }
0x1c1c   : > { %v12391_v58 = vpop.eup %12390 }
0x1c1d   : > { %v5183_v16 = vmul.f32 %v12391_v58, %v12375_v1  ;;  %11517 = vmatprep.mubr.msk.bf16.mxu0 %vm611_vm1, %v5186_v33 }
0x1c1e   : > { %5316 = vmatpush1.bf16.msra.mxu0 %v11799_v28 }
0x1c1f   : > { %v5187_v10 = vpack.c.bf16 %v5183_v16, %v5182_v23  ;;  %11661 = vmatprep.subr.msk.bf16.mxu0 %vm1222_vm2, %v14571_v35 }
0x1c21   : > { %11518 = vmatmul.mubr.msk.bf16.gmra.mxu0 %vm611_vm1, %v5187_v10 }
0x1c22   : > { %5333 = vmatprep.mubr.bf16.mxu0 %v17006_v60 }
0x1cd9   : > { %v11515_v20 = vpop.f32.mrf.mxu0 }
0x1cdb   : > { %v5234_v31 = vpop.f32.mrf.mxu0 }
0x1cdd   : > { %v11516_v2 = vpop.f32.mrf.mxu0 }
0x1cde   : > { %v5266_v1 = vpack.c.bf16 %v11516_v2, %v11515_v20 }
0x1cdf   : > { %v5237_v50 = vpop.f32.mrf.mxu0 }
0x1ce0   : > { %v5265_v7 = vpack.c.bf16 %v5237_v50, %v5234_v31 }
0x1ce1   : > { %v11519_v48 = vpop.f32.mrf.mxu0 }
0x1ce2   : > { %10687 = vmatmul.mubr.msk.bf16.vlgmr.msra.gmra.mxu0 %vm1222_vm2, %v5265_v7 }
0x1ce3   : > { %11522 = vmatpush3.bf16.xpose.msra.mxu0 %v5404_v3  ;;  %5343 = vmatprep.mubr.bf16.mxu0 %v17006_v60  ;;  %v5250_v25 = vpop.f32.mrf.mxu0 }
0x1ce4   : > { %11662 = vmatprep.subr.msk.bf16.mxu0 %vm1222_vm2, %v14575_v45 }
0x1ce5   : > { %v11520_v53 = vpop.f32.mrf.mxu0 }
0x1ce6   : > { %v5268_v56 = vpack.c.bf16 %v11520_v53, %v11519_v48 }
0x1ce7   : > { %v5253_v17 = vpop.f32.mrf.mxu0 }
0x1ce8   : > { %v5267_v6 = vpack.c.bf16 %v5253_v17, %v5250_v25 }
0x1cea   : > { %10688 = vmatmul.mubr.msk.bf16.gmra.mxu0 %vm1222_vm2, %v5266_v1 }
0x1ceb   : > { %11524 = vmatpush3.bf16.xpose.msra.mxu0 %v5401_v21  ;;  %5353 = vmatprep.mubr.bf16.mxu0 %v17006_v60 }
0x1cec   : > { %11663 = vmatprep.subr.msk.bf16.mxu0 %vm1222_vm2, %v14580_v13 }
0x1cf2   : > { %10689 = vmatmul.mubr.msk.bf16.gmra.mxu0 %vm1222_vm2, %v5267_v6 }
0x1cf3   : > { %11526 = vmatpush3.bf16.xpose.msra.mxu0 %v5398_v8  ;;  %5363 = vmatprep.mubr.bf16.mxu0 %v17006_v60 }
0x1cf4   : > { %11664 = vmatprep.subr.msk.bf16.mxu0 %vm1222_vm2, %v14585_v46 }
0x1cfa   : > { %10690 = vmatmul.mubr.msk.bf16.gmra.mxu0 %vm1222_vm2, %v5268_v56 }
0x1cfb   : > { %11528 = vmatpush3.bf16.xpose.msra.mxu0 %v5395_v55  ;;  %11529 = vmatprep.mubr.msk.bf16.mxu0 %vm1222_vm2, %v14585_v46 }
0x1cfc   : > { %5684 = vmatprep.subr.bf16.mxu0 %v14662_v19 }
0x1d02   : > { %11530 = vmatmul.mubr.msk.bf16.vlgmr.msra.gmra.mxu0 %vm1222_vm2, %v14580_v13 }
0x1d03   : > { %11533 = vmatprep.mubr.msk.bf16.mxu0 %vm1222_vm2, %v14575_v45  ;;  %5685 = vmatpush1.bf16.msra.mxu0 %v11796_v5 }
0x1d04   : > { %5686 = vmatprep.subr.bf16.mxu0 %v11801_v63 }
0x1d07   : > { %5687 = vmatpush1.bf16.msra.mxu0 %v11799_v28 }
0x1d0a   : > { %11534 = vmatmul.mubr.msk.bf16.gmra.mxu0 %vm1222_vm2, %v14571_v35 }
0x1d0b   : > { %5704 = vmatprep.mubr.bf16.mxu0 %v17006_v60 }
0x1da2   : > { %v5335_v36 = vpop.f32.mrf.mxu0 }
0x1da3   : > { %v14707_v58 = vadd.f32 %v5335_v36, %v14432_v59 }
0x1da4   : > { %v5337_v46 = vpop.f32.mrf.mxu0 }
0x1da5   : > { %v14710_v19 = vadd.f32 %v5337_v46, %v14435_v15 }
0x1da6   : > { %v5339_v13 = vpop.f32.mrf.mxu0 }
0x1da7   : > { %v14713_v33 = vadd.f32 %v5339_v13, %v14438_v43 }
0x1da8   : > { %v14715_v45 = vpop.f32.mrf.mxu0 }
0x1daa   : > { %v5345_v5 = vpop.f32.mrf.mxu0 }
0x1dab   : > { %v14718_v63 = vadd.f32 %v5345_v5, %v14443_v39 }
0x1dac   : > { %v5347_v35 = vpop.f32.mrf.mxu0 }
0x1dad   : > { %v14721_v28 = vadd.f32 %v5347_v35, %v14446_v11 }
0x1dae   : > { %v5349_v59 = vpop.f32.mrf.mxu0 }
0x1daf   : > { %v14724_v23 = vadd.f32 %v5349_v59, %v14449_v34 }
0x1db0   : > { %v14726_v15 = vpop.f32.mrf.mxu0 }
0x1db2   : > { %v5355_v16 = vpop.f32.mrf.mxu0 }
0x1db3   : > { %v14729_v43 = vadd.f32 %v5355_v16, %v14454_v47 }
0x1db4   : > { %v5357_v10 = vpop.f32.mrf.mxu0 }
0x1db5   : > { %v14732_v20 = vadd.f32 %v5357_v10, %v14457_v57 }
0x1db6   : > { %v5359_v39 = vpop.f32.mrf.mxu0 }
0x1db7   : > { %v14735_v31 = vadd.f32 %v5359_v39, %v14460_v18 }
0x1db8   : > { %v14737_v11 = vpop.f32.mrf.mxu0 }
0x1dba   : > { %v5365_v2 = vpop.f32.mrf.mxu0 }
0x1dbb   : > { %v14740_v34 = vadd.f32 %v5365_v2, %v14465_v38 }
0x1dbc   : > { %v5367_v50 = vpop.f32.mrf.mxu0 }
0x1dbd   : > { %v14743_v7 = vadd.f32 %v5367_v50, %v14468_v22 }
0x1dbe   : > { %v5369_v47 = vpop.f32.mrf.mxu0 }
0x1dbf   : > { %v14746_v48 = vadd.f32 %v5369_v47, %v14471_v32 }
0x1dc0   : > { %v14748_v57 = vpop.f32.mrf.mxu0 }
0x1dc2   : > { %v11531_v3 = vpop.f32.mrf.mxu0 }
0x1dc3   : > { %v5473_v18 = vmul.f32 0.07216878, %v11531_v3 }
0x1dc4   : > { %v5440_v25 = vpop.f32.mrf.mxu0 }
0x1dc5   : > { %v5471_v1 = vmul.f32 0.07216878, %v5440_v25  ;;  %v5481_v6 = vadd.f32 %v5473_v18, %v13511_v62 }
0x1dc6   : > { %v11532_v53 = vpop.f32.mrf.mxu0 }
0x1dc7   : > { %v5479_v21 = vadd.f32 %v5471_v1, %v13508_v44  ;;  %v5474_v17 = vmul.f32 0.07216878, %v11532_v53  ;;  %v5493_v5 = vsel %vm611_vm1, %v5481_v6, -inf }
0x1dc8   : > { %v5443_v38 = vpop.f32.mrf.mxu0 }
0x1dc9   : > { %v5472_v8 = vmul.f32 0.07216878, %v5443_v38  ;;  %v5487_v22 = vsel %vm611_vm1, %v5479_v21, -inf  ;;  %v5482_v55 = vadd.f32 %v5474_v17, %v13519_v29 }
0x1dca   : > { %5488 = vmax.xlane.f32.xlu0 %v5487_v22  ;;  %v11535_v56 = vpop.f32.mrf.mxu0 }
0x1dcb   : > { %v5480_v32 = vadd.f32 %v5472_v8, %v13517_v54  ;;  %v5477_v46 = vmul.f32 0.07216878, %v11535_v56  ;;  %v5496_v39 = vsel %vm611_vm1, %v5482_v55, -inf }
0x1dcc   : > { %v5456_v36 = vpop.f32.mrf.mxu0 }
0x1dcd   : > { %v5475_v13 = vmul.f32 0.07216878, %v5456_v36  ;;  %v5490_v35 = vsel %vm611_vm1, %v5480_v32, -inf  ;;  %v5485_v2 = vadd.f32 %v5477_v46, %v13537_v37 }
0x1dce   : > { %5494 = vmax.xlane.f32.xlu0 %v5493_v5  ;;  %5491 = vmax.xlane.f32.xlu1 %v5490_v35  ;;  %v11536_v59 = vpop.f32.mrf.mxu0 }
0x1dcf   : > { %v5483_v16 = vadd.f32 %v5475_v13, %v13532_v51  ;;  %v5478_v50 = vmul.f32 0.07216878, %v11536_v59  ;;  %v5505_v1 = vsel %vm611_vm1, %v5485_v2, -inf }
0x1dd0   : > { %v5459_v10 = vpop.f32.mrf.mxu0 }
0x1dd1   : > { %v5476_v47 = vmul.f32 0.07216878, %v5459_v10  ;;  %v5499_v3 = vsel %vm611_vm1, %v5483_v16, -inf  ;;  %v5486_v18 = vadd.f32 %v5478_v50, %v13546_v0 }
0x1dd2   : > { %5497 = vmax.xlane.f32.xlu1 %v5496_v39  ;;  %5500 = vmax.xlane.f32.xlu0 %v5499_v3 }
0x1dd3   : > { %v5484_v25 = vadd.f32 %v5476_v47, %v13542_v12  ;;  %v5508_v17 = vsel %vm611_vm1, %v5486_v18, -inf }
0x1dd5   : > { %v5502_v53 = vsel %vm611_vm1, %v5484_v25, -inf }
0x1dd6   : > { %5506 = vmax.xlane.f32.xlu0 %v5505_v1  ;;  %5503 = vmax.xlane.f32.xlu1 %v5502_v53 }
0x1dda   : > { %5509 = vmax.xlane.f32.xlu1 %v5508_v17 }
0x1e53   : > { %v5489_v38 = vpop.xlane.xlu0 %5488 }
0x1e54   : > { %v5511_v8 = vsub.f32 %v5479_v21, %v5489_v38 }
0x1e56   : > { %v5519_v22 = vmul.f32 1.442695, %v5511_v8 }
0x1e57   : > { %v5495_v56 = vpop.xlane.xlu0 %5494  ;;  %v5492_v36 = vpop.xlane.xlu1 %5491 }
0x1e58   : > { %12392 = vpow2.f32 %v5519_v22  ;;  %v5513_v46 = vsub.f32 %v5481_v6, %v5495_v56  ;;  %v5512_v13 = vsub.f32 %v5480_v32, %v5492_v36 }
0x1e5a   : > { %v5523_v5 = vmul.f32 1.442695, %v5513_v46  ;;  %v5521_v35 = vmul.f32 1.442695, %v5512_v13 }
0x1e5b   : > { %v5498_v59 = vpop.xlane.xlu1 %5497  ;;  %v5501_v10 = vpop.xlane.xlu0 %5500 }
0x1e5c   : > { %12394 = vpow2.f32 %v5523_v5  ;;  %v5514_v39 = vsub.f32 %v5482_v55, %v5498_v59  ;;  %v5515_v50 = vsub.f32 %v5483_v16, %v5501_v10 }
0x1e5d   : > { %12396 = vpow2.f32 %v5521_v35 }
0x1e5e   : > { %v5525_v47 = vmul.f32 1.442695, %v5514_v39  ;;  %v5527_v3 = vmul.f32 1.442695, %v5515_v50 }
0x1e5f   : > { %v5507_v1 = vpop.xlane.xlu0 %5506  ;;  %v5504_v53 = vpop.xlane.xlu1 %5503 }
0x1e60   : > { %12398 = vpow2.f32 %v5525_v47  ;;  %v5517_v21 = vsub.f32 %v5485_v2, %v5507_v1  ;;  %v5516_v17 = vsub.f32 %v5484_v25, %v5504_v53 }
0x1e61   : > { %12400 = vpow2.f32 %v5527_v3 }
0x1e62   : > { %v5531_v38 = vmul.f32 1.442695, %v5517_v21  ;;  %v5529_v8 = vmul.f32 1.442695, %v5516_v17 }
0x1e63   : > { %v5510_v6 = vpop.xlane.xlu1 %5509 }
0x1e64   : > { %12402 = vpow2.f32 %v5531_v38  ;;  %v5518_v32 = vsub.f32 %v5486_v18, %v5510_v6 }
0x1e65   : > { %v12393_v22 = vpop.eup %12392  ;;  %12404 = vpow2.f32 %v5529_v8 }
0x1e66   : > { %v5533_v56 = vmul.f32 1.442695, %v5518_v32  ;;  %v5535_v55 = vsel %vm611_vm1, %v12393_v22, 0.0 }
0x1e67   : > { %5536 = vadd.xlane.f32.xlu0 %v5535_v55 }
0x1e68   : > { %12406 = vpow2.f32 %v5533_v56 }
0x1e69   : > { %v12395_v16 = vpop.eup %12394 }
0x1e6a   : > { %v12397_v36 = vpop.eup %12396  ;;  %v5541_v46 = vsel %vm611_vm1, %v12395_v16, 0.0 }
0x1e6b   : > { %5542 = vadd.xlane.f32.xlu0 %v5541_v46  ;;  %v5538_v2 = vsel %vm611_vm1, %v12397_v36, 0.0 }
0x1e6c   : > { %5539 = vadd.xlane.f32.xlu1 %v5538_v2 }
0x1e6d   : > { %v12399_v25 = vpop.eup %12398 }
0x1e6e   : > { %v12401_v13 = vpop.eup %12400  ;;  %v5544_v5 = vsel %vm611_vm1, %v12399_v25, 0.0 }
0x1e6f   : > { %v5547_v18 = vsel %vm611_vm1, %v12401_v13, 0.0 }
0x1e70   : > { %5548 = vadd.xlane.f32.xlu0 %v5547_v18  ;;  %5545 = vadd.xlane.f32.xlu1 %v5544_v5 }
0x1e71   : > { %v12403_v35 = vpop.eup %12402 }
0x1e72   : > { %v12405_v59 = vpop.eup %12404  ;;  %v5553_v10 = vsel %vm611_vm1, %v12403_v35, 0.0 }
0x1e73   : > { %v5550_v39 = vsel %vm611_vm1, %v12405_v59, 0.0 }
0x1e74   : > { %5554 = vadd.xlane.f32.xlu0 %v5553_v10  ;;  %5551 = vadd.xlane.f32.xlu1 %v5550_v39 }
0x1e75   : > { %v12407_v50 = vpop.eup %12406 }
0x1e76   : > { %v5556_v47 = vsel %vm611_vm1, %v12407_v50, 0.0 }
0x1e78   : > { %5557 = vadd.xlane.f32.xlu1 %v5556_v47 }
0x1ef0   : > { %v5537_v3 = vpop.xlane.xlu0 %5536 }
0x1ef1   : > { %12408 = vrcp.f32 %v5537_v3  ;;  %v11802_v3 = vld [vmem:[%s12808_s27 + $0x218] sm:$0xff]  }
0x1ef4   : > { %v5543_v1 = vpop.xlane.xlu0 %5542 }
0x1ef5   : > { %v5540_v53 = vpop.xlane.xlu1 %5539 }
0x1ef6   : > { %12410 = vrcp.f32 %v5540_v53 }
0x1ef7   : > { %12412 = vrcp.f32 %v5543_v1 }
0x1ef9   : > { %v5549_v21 = vpop.xlane.xlu0 %5548  ;;  %v5546_v17 = vpop.xlane.xlu1 %5545 }
0x1efa   : > { %12414 = vrcp.f32 %v5546_v17 }
0x1efb   : > { %12416 = vrcp.f32 %v5549_v21 }
0x1efd   : > { %v5555_v38 = vpop.xlane.xlu0 %5554  ;;  %v5552_v8 = vpop.xlane.xlu1 %5551 }
0x1efe   : > { %12418 = vrcp.f32 %v5552_v8  ;;  %v12409_v6 = vpop.eup %12408 }
0x1eff   : > { %12420 = vrcp.f32 %v5555_v38  ;;  %v5567_v55 = vmul.f32 %v12409_v6, %v12393_v22  ;;  %v11803_v22 = vld [vmem:[%s12808_s27 + $0x210] sm:$0xff]  }
0x1f01   : > { %v5558_v32 = vpop.xlane.xlu1 %5557 }
0x1f02   : > { %12422 = vrcp.f32 %v5558_v32  ;;  %v11804_v32 = vld [vmem:[%s12808_s27 + $0x208] sm:$0xff]  }
0x1f03   : > { %v12411_v56 = vpop.eup %12410 }
0x1f04   : > { %v5568_v46 = vmul.f32 %v12411_v56, %v12397_v36  ;;  %v12413_v2 = vpop.eup %12412  ;;  %v11810_v56 = vld [vmem:[%s12808_s27 + $0x238] sm:$0xff]  }
0x1f05   : > { %v5569_v10 = vmul.f32 %v12413_v2, %v12395_v16  ;;  %v11813_v2 = vld [vmem:[%s12808_s27 + $0x220] sm:$0xff]  }
0x1f06   : > { %v5575_v5 = vpack.c.bf16 %v5568_v46, %v5567_v55  ;;  %v11811_v55 = vld [vmem:[%s12808_s27 + $0x230] sm:$0xff]   ;;  %v11812_v46 = vld [vmem:[%s12808_s27 + $0x228] sm:$0xff]  }
0x1f07   : > { %v12415_v18 = vpop.eup %12414 }
0x1f08   : > { %11545 = vmatprep.mubr.msk.bf16.mxu1 %vm611_vm1, %v5575_v5  ;;  %v5570_v39 = vmul.f32 %v12415_v18, %v12399_v25  ;;  %v12417_v47 = vpop.eup %12416 }
0x1f09   : > { %v5571_v17 = vmul.f32 %v12417_v47, %v12401_v13  ;;  %v11805_v13 = vld [vmem:[%s12808_s27 + $0x200] sm:$0xff]  }
0x1f0a   : > { %v5576_v1 = vpack.c.bf16 %v5570_v39, %v5569_v10 }
0x1f0b   : > { %v12419_v53 = vpop.eup %12418 }
0x1f0c   : > { %v12421_v21 = vpop.eup %12420  ;;  %11546 = vmatmul.mubr.msk.bf16.vlgmr.msra.gmra.mxu1 %vm611_vm1, %v5576_v1  ;;  %v5572_v38 = vmul.f32 %v12419_v53, %v12405_v59  ;;  %v11807_v59 = vld [vmem:[%s12808_s27 + $0x1f0] sm:$0xff]  }
0x1f0d   : > { %5859 = vmatpush1.bf16.msra.mxu1 %v11802_v3  ;;  %v5573_v16 = vmul.f32 %v12421_v21, %v12403_v35  ;;  %v11806_v35 = vld [vmem:[%s12808_s27 + $0x1f8] sm:$0xff]  }
0x1f0e   : > { %5860 = vmatprep.subr.bf16.mxu1 %v17006_v60  ;;  %v5577_v8 = vpack.c.bf16 %v5572_v38, %v5571_v17 }
0x1f0f   : > { %v12423_v36 = vpop.eup %12422 }
0x1f10   : > { %v5574_v25 = vmul.f32 %v12423_v36, %v12407_v50  ;;  %11549 = vmatprep.mubr.msk.bf16.mxu1 %vm611_vm1, %v5577_v8  ;;  %v11808_v50 = vld [vmem:[%s12808_s27 + $0x1e8] sm:$0xff]  }
0x1f11   : > { %5861 = vmatpush1.bf16.msra.mxu1 %v11803_v22 }
0x1f12   : > { %v5578_v6 = vpack.c.bf16 %v5574_v25, %v5573_v16  ;;  %5862 = vmatprep.subr.bf16.mxu1 %v17006_v60 }
0x1f14   : > { %11550 = vmatmul.mubr.msk.bf16.gmra.mxu1 %vm611_vm1, %v5578_v6 }
0x1f15   : > { %5863 = vmatpush1.bf16.msra.mxu1 %v11804_v32  ;;  %10739 = vmatprep.mubr.msk.bf16.mxu1 %vm611_vm1, %v13233_v9  ;;  %v11809_v9 = vld [vmem:[%s12808_s27 + $0x1e0] sm:$0xff]  }
0x1f16   : > { %5864 = vmatprep.subr.bf16.mxu1 %v17006_v60 }
0x1f19   : > { %5865 = vmatpush1.bf16.msra.mxu1 %v11805_v13 }
0x1f1a   : > { %5866 = vmatprep.subr.bf16.mxu1 %v17006_v60 }
0x1f1d   : > { %5867 = vmatpush1.bf16.msra.mxu1 %v11806_v35 }
0x1f1e   : > { %5868 = vmatprep.subr.bf16.mxu1 %v17006_v60 }
0x1f21   : > { %5869 = vmatpush1.bf16.msra.mxu1 %v11807_v59 }
0x1f22   : > { %5870 = vmatprep.subr.bf16.mxu1 %v17006_v60 }
0x1f25   : > { %5871 = vmatpush1.bf16.msra.mxu1 %v11808_v50 }
0x1f26   : > { %5872 = vmatprep.subr.bf16.mxu1 %v17006_v60 }
0x1f29   : > { %5873 = vmatpush1.bf16.msra.mxu1 %v11809_v9 }
0x1f2a   : > { %5882 = vmatprep.subr.bf16.mxu1 %v17006_v60 }
0x1f2d   : > { %5883 = vmatpush2.bf16.msra.mxu1 %v11810_v56 }
0x1f2e   : > { %5884 = vmatprep.subr.bf16.mxu1 %v17006_v60 }
0x1f31   : > { %5885 = vmatpush2.bf16.msra.mxu1 %v11811_v55 }
0x1f32   : > { %5886 = vmatprep.subr.bf16.mxu1 %v17006_v60 }
0x1f35   : > { %5887 = vmatpush2.bf16.msra.mxu1 %v11812_v46 }
0x1f36   : > { %5888 = vmatprep.subr.bf16.mxu1 %v17006_v60 }
0x1f39   : > { %5889 = vmatpush2.bf16.msra.mxu1 %v11813_v2 }
0x1f3c   : > { %5891 = vmatmul.mubr.bf16.vlgmr.msra.gmra.mxu1 %v13239_v41  ;;  %v17152_v41 = vld [vmem:[#allocation14_spill] sm:$0xff] }
0x1f3d   : > { %10740 = vmatprep.mubr.msk.bf16.mxu1 %vm611_vm1, %v13246_v49  ;;  %v17153_v49 = vld [vmem:[#allocation15_spill] sm:$0xff] }
0x1f44   : > { %5899 = vmatmul.mubr.bf16.gmra.mxu1 %v13281_v24  ;;  %v17154_v24 = vld [vmem:[#allocation16_spill] sm:$0xff] }
0x1f45   : > { %10741 = vmatprep.mubr.msk.bf16.mxu1 %vm611_vm1, %v13285_v42 }
0x1f4c   : > { %5907 = vmatmul.mubr.bf16.gmra.mxu1 %v13330_v4 }
0x1f4d   : > { %10742 = vmatprep.mubr.msk.bf16.mxu1 %vm611_vm1, %v13332_v14 }
0x1f54   : > { %5915 = vmatmul.mubr.bf16.gmra.mxu1 %v13340_v27 }
0x1f55   : > { %10743 = vmatprep.mubr.msk.bf16.mxu1 %vm611_vm1, %v13378_v40 }
0x1f5c   : > { %5923 = vmatmul.mubr.bf16.gmra.mxu1 %v13380_v26 }
0x1f5d   : > { %10744 = vmatprep.mubr.msk.bf16.mxu1 %vm611_vm1, %v17071_v30 }
0x1f64   : > { %5931 = vmatmul.mubr.bf16.gmra.mxu1 %v17072_v61 }
0x1f65   : > { %10745 = vmatprep.mubr.msk.bf16.mxu1 %vm611_vm1, %v17073_v52 }
0x1f6c   : > { %5939 = vmatmul.mubr.bf16.gmra.mxu1 %v17152_v41 }
0x1f6d   : > { %10746 = vmatprep.mubr.msk.bf16.mxu1 %vm611_vm1, %v17153_v49 }
0x1f74   : > { %5947 = vmatmul.mubr.bf16.gmra.mxu1 %v17154_v24 }
0x1fcc   : > { %v11547_v42 = vpop.f32.mrf.mxu1 }
0x1fce   : > { %v5625_v4 = vpop.f32.mrf.mxu1 }
0x1fd0   : > { %v11548_v14 = vpop.f32.mrf.mxu1 }
0x1fd1   : > { %v5657_v61 = vpack.c.bf16 %v11548_v14, %v11547_v42 }
0x1fd2   : > { %v5628_v27 = vpop.f32.mrf.mxu1 }
0x1fd3   : > { %v5656_v40 = vpack.c.bf16 %v5628_v27, %v5625_v4 }
0x1fd4   : > { %v11551_v26 = vpop.f32.mrf.mxu1 }
0x1fd5   : > { %10699 = vmatmul.mubr.msk.bf16.vlgmr.msra.gmra.mxu0 %vm1222_vm2, %v5656_v40 }
0x1fd6   : > { %5714 = vmatprep.mubr.bf16.mxu0 %v17006_v60  ;;  %v5641_v30 = vpop.f32.mrf.mxu1 }
0x1fd8   : > { %v11552_v52 = vpop.f32.mrf.mxu1 }
0x1fd9   : > { %v5659_v10 = vpack.c.bf16 %v11552_v52, %v11551_v26 }
0x1fda   : > { %v5644_v5 = vpop.f32.mrf.mxu1 }
0x1fdb   : > { %v5658_v18 = vpack.c.bf16 %v5644_v5, %v5641_v30 }
0x1fdd   : > { %10700 = vmatmul.mubr.msk.bf16.gmra.mxu0 %vm1222_vm2, %v5657_v61 }
0x1fde   : > { %5724 = vmatprep.mubr.bf16.mxu0 %v17006_v60 }
0x1fe5   : > { %10701 = vmatmul.mubr.msk.bf16.gmra.mxu0 %vm1222_vm2, %v5658_v18 }
0x1fe6   : > { %5734 = vmatprep.mubr.bf16.mxu0 %v17006_v60 }
0x1fed   : > { %10702 = vmatmul.mubr.msk.bf16.gmra.mxu0 %vm1222_vm2, %v5659_v10 }
0x1ffc   : > { %v5892_v39 = vpop.f32.mrf.mxu1 }
0x1ffe   : > { %v5894_v47 = vpop.f32.mrf.mxu1 }
0x2000   : > { %v5895_v3 = vpop.f32.mrf.mxu1 }
0x2001   : > { %v14832_v1 = vpack.c.bf16 %v5895_v3, %v5892_v39 }
0x2002   : > { %v5897_v53 = vpop.f32.mrf.mxu1 }
0x2003   : > { %11561 = vmatprep.mubr.msk.bf16.mxu0 %vm1222_vm2, %v14832_v1  ;;  %v5965_v52 = vsel %vm1222_vm2, %v14832_v1, 0 }
0x2004   : > { %v5900_v21 = vpop.f32.mrf.mxu1 }
0x2006   : > { %v5902_v17 = vpop.f32.mrf.mxu1 }
0x2008   : > { %v5903_v38 = vpop.f32.mrf.mxu1 }
0x2009   : > { %v5961_v41 = vpack.c.bf16 %v5903_v38, %v5900_v21  ;;  %v17155_v38 = vld [vmem:[#allocation56_spill] sm:$0xff] }
0x200a   : > { %v5905_v22 = vpop.f32.mrf.mxu1 }
0x200b   : > { %v5968_v27 = vsel %vm1222_vm2, %v5961_v41, 0 }
0x200c   : > { %v5908_v36 = vpop.f32.mrf.mxu1 }
0x200e   : > { %v5910_v8 = vpop.f32.mrf.mxu1 }
0x200f   : > { %v17156_v8 = vld [vmem:[#allocation42_spill] sm:$0xff] }
0x2010   : > { %v5911_v16 = vpop.f32.mrf.mxu1 }
0x2011   : > { %v5962_v50 = vpack.c.bf16 %v5911_v16, %v5908_v36 }
0x2012   : > { %v5913_v25 = vpop.f32.mrf.mxu1 }
0x2013   : > { %v5971_v49 = vsel %vm1222_vm2, %v5962_v50, 0 }
0x2014   : > { %v5916_v6 = vpop.f32.mrf.mxu1 }
0x2016   : > { %v5918_v32 = vpop.f32.mrf.mxu1 }
0x2018   : > { %v5919_v13 = vpop.f32.mrf.mxu1 }
0x2019   : > { %v5963_v35 = vpack.c.bf16 %v5919_v13, %v5916_v6  ;;  %v17157_v6 = vld [vmem:[#allocation58_spill] sm:$0xff] }
0x201a   : > { %v5921_v59 = vpop.f32.mrf.mxu1 }
0x201b   : > { %11665 = vmatprep.subr.msk.bf16.mxu0 %vm1222_vm2, %v5963_v35  ;;  %v5974_v9 = vsel %vm1222_vm2, %v5963_v35, 0  ;;  %v17158_v59 = vld [vmem:[#allocation59_spill] sm:$0xff] }
0x201c   : > { %v5924_v56 = vpop.f32.mrf.mxu1  ;;  %11554 = vmatpush3.bf16.xpose.msra.mxu0 %v5974_v9  ;;  %v17159_v9 = vld [vmem:[#allocation44_spill] sm:$0xff] }
0x201d   : > { %11666 = vmatprep.subr.msk.bf16.mxu0 %vm1222_vm2, %v5962_v50 }
0x201e   : > { %v5926_v55 = vpop.f32.mrf.mxu1 }
0x2020   : > { %v5927_v46 = vpop.f32.mrf.mxu1 }
0x2021   : > { %v14860_v21 = vpack.c.bf16 %v5927_v46, %v5924_v56  ;;  %v17160_v46 = vld [vmem:[#allocation60_spill] sm:$0xff] }
0x2022   : > { %v5929_v2 = vpop.f32.mrf.mxu1 }
0x2024   : > { %v5932_v24 = vpop.f32.mrf.mxu1  ;;  %11556 = vmatpush3.bf16.xpose.msra.mxu0 %v5971_v49 }
0x2025   : > { %11667 = vmatprep.subr.msk.bf16.mxu0 %vm1222_vm2, %v5961_v41 }
0x2026   : > { %v5934_v42 = vpop.f32.mrf.mxu1 }
0x2028   : > { %v5935_v4 = vpop.f32.mrf.mxu1 }
0x2029   : > { %v14855_v53 = vpack.c.bf16 %v5935_v4, %v5932_v24  ;;  %v17161_v24 = vld [vmem:[#allocation62_spill] sm:$0xff] }
0x202a   : > { %v5937_v14 = vpop.f32.mrf.mxu1 }
0x202b   : > { %v17162_v14 = vld [vmem:[#allocation47_spill] sm:$0xff] }
0x202c   : > { %v5940_v40 = vpop.f32.mrf.mxu1  ;;  %11558 = vmatpush3.bf16.xpose.msra.mxu0 %v5968_v27 }
0x202d   : > { %11668 = vmatprep.subr.msk.bf16.mxu0 %vm1222_vm2, %v14832_v1 }
0x202e   : > { %v5942_v26 = vpop.f32.mrf.mxu1 }
0x202f   : > { %v17164_v26 = vld [vmem:[#allocation63_spill] sm:$0xff] }
0x2030   : > { %v5943_v30 = vpop.f32.mrf.mxu1 }
0x2031   : > { %v14850_v3 = vpack.c.bf16 %v5943_v30, %v5940_v40 }
0x2032   : > { %v5945_v61 = vpop.f32.mrf.mxu1 }
0x2034   : > { %v5948_v5 = vpop.f32.mrf.mxu1  ;;  %11560 = vmatpush3.bf16.xpose.msra.mxu0 %v5965_v52 }
0x2035   : > { %11569 = vmatprep.subr.bf16.mxu0 %v5963_v35 }
0x2036   : > { %v5950_v18 = vpop.f32.mrf.mxu1 }
0x2038   : > { %v5951_v10 = vpop.f32.mrf.mxu1 }
0x2039   : > { %v14846_v39 = vpack.c.bf16 %v5951_v10, %v5948_v5  ;;  %v17167_v5 = vld [vmem:[#allocation64_spill] sm:$0xff] }
0x203a   : > { %v5953_v47 = vpop.f32.mrf.mxu1 }
0x203b   : > { %11562 = vmatmul.mubr.msk.bf16.vlgmr.msra.gmra.mxu0 %vm1222_vm2, %v5961_v41  ;;  %11601 = vmatprep.subr.bf16.mxu1 %v14846_v39  ;;  %v17169_v47 = vld [vmem:[#allocation22_spill] sm:$0xff] }
0x203c   : > { %11565 = vmatprep.mubr.msk.bf16.mxu0 %vm1222_vm2, %v5962_v50  ;;  %11570 = vmatpush3.bf16.msra.mxu0 %v5963_v35 }
0x203d   : > { %11602 = vmatpush3.bf16.msra.mxu1 %v14846_v39  ;;  %11571 = vmatprep.subr.bf16.mxu0 %v5962_v50 }
0x203e   : > { %11603 = vmatprep.subr.bf16.mxu1 %v14850_v3 }
0x2040   : > { %11572 = vmatpush3.bf16.msra.mxu0 %v5962_v50 }
0x2041   : > { %11604 = vmatpush3.bf16.msra.mxu1 %v14850_v3  ;;  %11573 = vmatprep.subr.bf16.mxu0 %v5961_v41 }
0x2042   : > { %11605 = vmatprep.subr.bf16.mxu1 %v14855_v53 }
0x2043   : > { %11566 = vmatmul.mubr.msk.bf16.gmra.mxu0 %vm1222_vm2, %v5963_v35 }
0x2044   : > { %11574 = vmatpush3.bf16.msra.mxu0 %v5961_v41 }
0x2045   : > { %11606 = vmatpush3.bf16.msra.mxu1 %v14855_v53  ;;  %11575 = vmatprep.subr.bf16.mxu0 %v14832_v1 }
0x2046   : > { %11607 = vmatprep.subr.bf16.mxu1 %v14860_v21 }
0x2048   : > { %11576 = vmatpush3.bf16.msra.mxu0 %v14832_v1 }
0x2049   : > { %11608 = vmatpush3.bf16.msra.mxu1 %v14860_v21 }
0x2095   : > { %v5706_v17 = vpop.f32.mrf.mxu0 }
0x2096   : > { %v14868_v22 = vadd.f32 %v5706_v17, %v17155_v38 }
0x2097   : > { %v5708_v36 = vpop.f32.mrf.mxu0 }
0x2098   : > { %v14871_v16 = vadd.f32 %v5708_v36, %v17156_v8  ;;  %v17171_v36 = vld [vmem:[#allocation23_spill] sm:$0xff] }
0x2099   : > { %v5710_v25 = vpop.f32.mrf.mxu0 }
0x209a   : > { %v14874_v32 = vadd.f32 %v5710_v25, %v17157_v6 }
0x209b   : > { %v14876_v13 = vpop.f32.mrf.mxu0 }
0x209d   : > { %v5716_v35 = vpop.f32.mrf.mxu0 }
0x209e   : > { %v14879_v50 = vadd.f32 %v5716_v35, %v17158_v59 }
0x209f   : > { %v5718_v1 = vpop.f32.mrf.mxu0 }
0x20a0   : > { %v14882_v56 = vadd.f32 %v5718_v1, %v17159_v9 }
0x20a1   : > { %v5720_v55 = vpop.f32.mrf.mxu0 }
0x20a2   : > { %v14885_v2 = vadd.f32 %v5720_v55, %v17160_v46 }
0x20a3   : > { %v14887_v41 = vpop.f32.mrf.mxu0 }
0x20a5   : > { %v5726_v49 = vpop.f32.mrf.mxu0 }
0x20a6   : > { %v14890_v42 = vadd.f32 %v5726_v49, %v17161_v24 }
0x20a7   : > { %v5728_v4 = vpop.f32.mrf.mxu0 }
0x20a8   : > { %v14893_v27 = vadd.f32 %v5728_v4, %v17162_v14 }
0x20a9   : > { %v5730_v40 = vpop.f32.mrf.mxu0 }
0x20aa   : > { %17163 = vst [vmem:[#allocation27_spill] sm:$0xff] %v14893_v27  ;;  %v14896_v30 = vadd.f32 %v5730_v40, %v17164_v26 }
0x20ab   : > { %v14898_v61 = vpop.f32.mrf.mxu0 }
0x20ac   : > { %17165 = vst [vmem:[#allocation28_spill] sm:$0xff] %v14896_v30  ;;  %17166 = vst [vmem:[#allocation11_spill] sm:$0xff] %v14898_v61 }
0x20ad   : > { %v5736_v52 = vpop.f32.mrf.mxu0 }
0x20ae   : > { %v14901_v18 = vadd.f32 %v5736_v52, %v17167_v5 }
0x20af   : > { %v5738_v10 = vpop.f32.mrf.mxu0 }
0x20b0   : > { %17168 = vst [vmem:[#allocation13_spill] sm:$0xff] %v14901_v18  ;;  %v14904_v17 = vadd.f32 %v5738_v10, %v17169_v47 }
0x20b1   : > { %v5740_v38 = vpop.f32.mrf.mxu0 }
0x20b2   : > { %17170 = vst [vmem:[#allocation34_spill] sm:$0xff] %v14904_v17  ;;  %v14907_v8 = vadd.f32 %v5740_v38, %v17171_v36 }
0x20b3   : > { %v14909_v25 = vpop.f32.mrf.mxu0 }
0x20b4   : > { %17172 = vst [vmem:[#allocation50_spill] sm:$0xff] %v14907_v8  ;;  %17173 = vst [vmem:[#allocation51_spill] sm:$0xff] %v14909_v25 }
0x20fb   : > { %v11563_v6 = vpop.f32.mrf.mxu0 }
0x20fc   : > { %v6043_v59 = vmul.f32 0.07216878, %v11563_v6 }
0x20fd   : > { %v6010_v35 = vpop.f32.mrf.mxu0 }
0x20fe   : > { %v6041_v1 = vmul.f32 0.07216878, %v6010_v35  ;;  %v6051_v24 = vadd.f32 %v6043_v59, %v13511_v62 }
0x20ff   : > { %v11564_v9 = vpop.f32.mrf.mxu0 }
0x2100   : > { %v6049_v55 = vadd.f32 %v6041_v1, %v13508_v44  ;;  %v6044_v46 = vmul.f32 0.07216878, %v11564_v9  ;;  %v6063_v38 = vsel %vm611_vm1, %v6051_v24, -inf }
0x2101   : > { %v6013_v49 = vpop.f32.mrf.mxu0 }
0x2102   : > { %v6042_v4 = vmul.f32 0.07216878, %v6013_v49  ;;  %v6057_v14 = vsel %vm611_vm1, %v6049_v55, -inf  ;;  %v6052_v52 = vadd.f32 %v6044_v46, %v13519_v29 }
0x2103   : > { %6058 = vmax.xlane.f32.xlu0 %v6057_v14  ;;  %v11567_v40 = vpop.f32.mrf.mxu0 }
0x2104   : > { %v6050_v26 = vadd.f32 %v6042_v4, %v13517_v54  ;;  %v6047_v10 = vmul.f32 0.07216878, %v11567_v40  ;;  %v6066_v1 = vsel %vm611_vm1, %v6052_v52, -inf }
0x2105   : > { %v6026_v5 = vpop.f32.mrf.mxu0 }
0x2106   : > { %v6045_v47 = vmul.f32 0.07216878, %v6026_v5  ;;  %v6060_v36 = vsel %vm611_vm1, %v6050_v26, -inf  ;;  %v6055_v9 = vadd.f32 %v6047_v10, %v13537_v37 }
0x2107   : > { %6064 = vmax.xlane.f32.xlu0 %v6063_v38  ;;  %6061 = vmax.xlane.f32.xlu1 %v6060_v36  ;;  %v11568_v6 = vpop.f32.mrf.mxu0 }
0x2108   : > { %v6053_v35 = vadd.f32 %v6045_v47, %v13532_v51  ;;  %v6048_v49 = vmul.f32 0.07216878, %v11568_v6  ;;  %v6075_v5 = vsel %vm611_vm1, %v6055_v9, -inf }
0x2109   : > { %v6029_v59 = vpop.f32.mrf.mxu0 }
0x210a   : > { %v6046_v4 = vmul.f32 0.07216878, %v6029_v59  ;;  %v6069_v46 = vsel %vm611_vm1, %v6053_v35, -inf  ;;  %v6056_v40 = vadd.f32 %v6048_v49, %v13546_v0 }
0x210b   : > { %6067 = vmax.xlane.f32.xlu1 %v6066_v1  ;;  %6070 = vmax.xlane.f32.xlu0 %v6069_v46 }
0x210c   : > { %v6054_v14 = vadd.f32 %v6046_v4, %v13542_v12  ;;  %v6078_v47 = vsel %vm611_vm1, %v6056_v40, -inf }
0x210e   : > { %v6072_v38 = vsel %vm611_vm1, %v6054_v14, -inf }
0x210f   : > { %6076 = vmax.xlane.f32.xlu0 %v6075_v5  ;;  %6073 = vmax.xlane.f32.xlu1 %v6072_v38 }
0x2113   : > { %6079 = vmax.xlane.f32.xlu1 %v6078_v47 }
0x218c   : > { %v6059_v10 = vpop.xlane.xlu0 %6058 }
0x218d   : > { %v6081_v36 = vsub.f32 %v6049_v55, %v6059_v10 }
0x218f   : > { %v6089_v6 = vmul.f32 1.442695, %v6081_v36 }
0x2190   : > { %v6065_v59 = vpop.xlane.xlu0 %6064  ;;  %v6062_v8 = vpop.xlane.xlu1 %6061 }
0x2191   : > { %12424 = vpow2.f32 %v6089_v6  ;;  %v6083_v1 = vsub.f32 %v6051_v24, %v6065_v59  ;;  %v6082_v46 = vsub.f32 %v6050_v26, %v6062_v8 }
0x2193   : > { %v6093_v4 = vmul.f32 1.442695, %v6083_v1  ;;  %v6091_v17 = vmul.f32 1.442695, %v6082_v46 }
0x2194   : > { %v6068_v49 = vpop.xlane.xlu1 %6067  ;;  %v6071_v25 = vpop.xlane.xlu0 %6070 }
0x2195   : > { %12426 = vpow2.f32 %v6093_v4  ;;  %v6084_v18 = vsub.f32 %v6052_v52, %v6068_v49  ;;  %v6085_v30 = vsub.f32 %v6053_v35, %v6071_v25 }
0x2196   : > { %12428 = vpow2.f32 %v6091_v17 }
0x2197   : > { %v6095_v5 = vmul.f32 1.442695, %v6084_v18  ;;  %v6097_v38 = vmul.f32 1.442695, %v6085_v30 }
0x2198   : > { %v6077_v61 = vpop.xlane.xlu0 %6076  ;;  %v6074_v47 = vpop.xlane.xlu1 %6073 }
0x2199   : > { %12430 = vpow2.f32 %v6095_v5  ;;  %v6087_v55 = vsub.f32 %v6055_v9, %v6077_v61  ;;  %v6086_v10 = vsub.f32 %v6054_v14, %v6074_v47 }
0x219a   : > { %12432 = vpow2.f32 %v6097_v38  ;;  %v14936_v38 = vld [vmem:[%s12818_s16 + $0xb4] ss:$8 sps:$4 sm:$0xff]  }
0x219b   : > { %v6101_v36 = vmul.f32 1.442695, %v6087_v55  ;;  %v6099_v6 = vmul.f32 1.442695, %v6086_v10  ;;  %6274 = vmatprep.subr.bf16.mxu0 %v14936_v38 }
0x219c   : > { %v6080_v24 = vpop.xlane.xlu1 %6079 }
0x219d   : > { %12434 = vpow2.f32 %v6101_v36  ;;  %v6088_v8 = vsub.f32 %v6056_v40, %v6080_v24 }
0x219e   : > { %v12425_v26 = vpop.eup %12424  ;;  %12436 = vpow2.f32 %v6099_v6 }
0x219f   : > { %v6103_v59 = vmul.f32 1.442695, %v6088_v8  ;;  %v6105_v52 = vsel %vm611_vm1, %v12425_v26, 0.0 }
0x21a0   : > { %6106 = vadd.xlane.f32.xlu0 %v6105_v52 }
0x21a1   : > { %12438 = vpow2.f32 %v6103_v59 }
0x21a2   : > { %v12427_v18 = vpop.eup %12426 }
0x21a3   : > { %v12429_v30 = vpop.eup %12428  ;;  %v6111_v17 = vsel %vm611_vm1, %v12427_v18, 0.0 }
0x21a4   : > { %6112 = vadd.xlane.f32.xlu0 %v6111_v17  ;;  %v6108_v61 = vsel %vm611_vm1, %v12429_v30, 0.0 }
0x21a5   : > { %6109 = vadd.xlane.f32.xlu1 %v6108_v61 }
0x21a6   : > { %v12431_v25 = vpop.eup %12430 }
0x21a7   : > { %v12433_v35 = vpop.eup %12432  ;;  %v6114_v9 = vsel %vm611_vm1, %v12431_v25, 0.0 }
0x21a8   : > { %v6117_v14 = vsel %vm611_vm1, %v12433_v35, 0.0 }
0x21a9   : > { %6118 = vadd.xlane.f32.xlu0 %v6117_v14  ;;  %6115 = vadd.xlane.f32.xlu1 %v6114_v9 }
0x21aa   : > { %v12435_v40 = vpop.eup %12434 }
0x21ab   : > { %v12437_v1 = vpop.eup %12436  ;;  %v6123_v46 = vsel %vm611_vm1, %v12435_v40, 0.0 }
0x21ac   : > { %v6120_v4 = vsel %vm611_vm1, %v12437_v1, 0.0 }
0x21ad   : > { %6124 = vadd.xlane.f32.xlu0 %v6123_v46  ;;  %6121 = vadd.xlane.f32.xlu1 %v6120_v4 }
0x21ae   : > { %v12439_v49 = vpop.eup %12438 }
0x21af   : > { %v6126_v5 = vsel %vm611_vm1, %v12439_v49, 0.0 }
0x21b1   : > { %6127 = vadd.xlane.f32.xlu1 %v6126_v5 }
0x2229   : > { %v6107_v47 = vpop.xlane.xlu0 %6106 }
0x222a   : > { %12440 = vrcp.f32 %v6107_v47 }
0x222d   : > { %v6113_v55 = vpop.xlane.xlu0 %6112 }
0x222e   : > { %v6110_v10 = vpop.xlane.xlu1 %6109 }
0x222f   : > { %12442 = vrcp.f32 %v6110_v10  ;;  %v11814_v10 = vld [vmem:[%s12818_s16 + $0xb0] ss:$8 sps:$4 sm:$0xff]  }
0x2230   : > { %12444 = vrcp.f32 %v6113_v55 }
0x2232   : > { %v6119_v36 = vpop.xlane.xlu0 %6118  ;;  %v6116_v6 = vpop.xlane.xlu1 %6115 }
0x2233   : > { %12446 = vrcp.f32 %v6116_v6  ;;  %v11819_v6 = vld [vmem:[%s12818_s16 + $0xa4] ss:$8 sps:$4 sm:$0xff]  }
0x2234   : > { %12448 = vrcp.f32 %v6119_v36 }
0x2236   : > { %v6125_v24 = vpop.xlane.xlu0 %6124  ;;  %v6122_v8 = vpop.xlane.xlu1 %6121 }
0x2237   : > { %12450 = vrcp.f32 %v6122_v8  ;;  %v12441_v59 = vpop.eup %12440 }
0x2238   : > { %12452 = vrcp.f32 %v6125_v24  ;;  %v6137_v61 = vmul.f32 %v12441_v59, %v12425_v26  ;;  %v11817_v26 = vld [vmem:[%s12818_s16 + $0xa0] ss:$8 sps:$4 sm:$0xff]  }
0x223a   : > { %v6128_v52 = vpop.xlane.xlu1 %6127 }
0x223b   : > { %12454 = vrcp.f32 %v6128_v52 }
0x223c   : > { %v12443_v17 = vpop.eup %12442 }
0x223d   : > { %v6138_v9 = vmul.f32 %v12443_v17, %v12429_v30  ;;  %v12445_v14 = vpop.eup %12444 }
0x223e   : > { %v6139_v5 = vmul.f32 %v12445_v14, %v12427_v18 }
0x223f   : > { %v6145_v46 = vpack.c.bf16 %v6138_v9, %v6137_v61 }
0x2240   : > { %v12447_v4 = vpop.eup %12446 }
0x2241   : > { %11577 = vmatprep.mubr.msk.bf16.mxu0 %vm611_vm1, %v6145_v46  ;;  %v6140_v47 = vmul.f32 %v12447_v4, %v12431_v25  ;;  %v12449_v55 = vpop.eup %12448 }
0x2242   : > { %v6141_v52 = vmul.f32 %v12449_v55, %v12433_v35 }
0x2243   : > { %v6146_v36 = vpack.c.bf16 %v6140_v47, %v6139_v5  ;;  %v6362_v5 = vsel %vm1222_vm2, %v14850_v3, 0 }
0x2244   : > { %v12451_v24 = vpop.eup %12450 }
0x2245   : > { %v12453_v8 = vpop.eup %12452  ;;  %11578 = vmatmul.mubr.msk.bf16.vlgmr.msra.gmra.mxu0 %vm611_vm1, %v6146_v36  ;;  %v6142_v27 = vmul.f32 %v12451_v24, %v12437_v1  ;;  %v6359_v36 = vsel %vm1222_vm2, %v14855_v53, 0 }
0x2246   : > { %6275 = vmatpush1.bf16.msra.mxu0 %v11814_v10  ;;  %v6143_v17 = vmul.f32 %v12453_v8, %v12435_v40  ;;  %v6356_v8 = vsel %vm1222_vm2, %v14860_v21, 0 }
0x2247   : > { %6276 = vmatprep.subr.bf16.mxu0 %v11819_v6  ;;  %v6147_v59 = vpack.c.bf16 %v6142_v27, %v6141_v52  ;;  %v6365_v27 = vsel %vm1222_vm2, %v14846_v39, 0 }
0x2248   : > { %v12455_v30 = vpop.eup %12454 }
0x2249   : > { %v6144_v61 = vmul.f32 %v12455_v30, %v12439_v49  ;;  %11581 = vmatprep.mubr.msk.bf16.mxu0 %vm611_vm1, %v6147_v59 }
0x224a   : > { %6277 = vmatpush1.bf16.msra.mxu0 %v11817_v26 }
0x224b   : > { %v6148_v18 = vpack.c.bf16 %v6144_v61, %v6143_v17  ;;  %11669 = vmatprep.subr.msk.bf16.mxu0 %vm1222_vm2, %v14846_v39 }
0x224d   : > { %11582 = vmatmul.mubr.msk.bf16.gmra.mxu0 %vm611_vm1, %v6148_v18 }
0x224e   : > { %6294 = vmatprep.mubr.bf16.mxu0 %v17006_v60 }
0x2305   : > { %v11579_v25 = vpop.f32.mrf.mxu0 }
0x2307   : > { %v6195_v35 = vpop.f32.mrf.mxu0 }
0x2309   : > { %v11580_v1 = vpop.f32.mrf.mxu0 }
0x230a   : > { %v6227_v49 = vpack.c.bf16 %v11580_v1, %v11579_v25 }
0x230b   : > { %v6198_v9 = vpop.f32.mrf.mxu0 }
0x230c   : > { %v6226_v14 = vpack.c.bf16 %v6198_v9, %v6195_v35 }
0x230d   : > { %v11583_v46 = vpop.f32.mrf.mxu0 }
0x230e   : > { %10763 = vmatmul.mubr.msk.bf16.vlgmr.msra.gmra.mxu0 %vm1222_vm2, %v6226_v14 }
0x230f   : > { %11586 = vmatpush3.bf16.xpose.msra.mxu0 %v6365_v27  ;;  %6304 = vmatprep.mubr.bf16.mxu0 %v17006_v60  ;;  %v6211_v40 = vpop.f32.mrf.mxu0 }
0x2310   : > { %11670 = vmatprep.subr.msk.bf16.mxu0 %vm1222_vm2, %v14850_v3 }
0x2311   : > { %v11584_v4 = vpop.f32.mrf.mxu0 }
0x2312   : > { %v6229_v24 = vpack.c.bf16 %v11584_v4, %v11583_v46 }
0x2313   : > { %v6214_v47 = vpop.f32.mrf.mxu0 }
0x2314   : > { %v6228_v55 = vpack.c.bf16 %v6214_v47, %v6211_v40 }
0x2316   : > { %10764 = vmatmul.mubr.msk.bf16.gmra.mxu0 %vm1222_vm2, %v6227_v49 }
0x2317   : > { %11588 = vmatpush3.bf16.xpose.msra.mxu0 %v6362_v5  ;;  %6314 = vmatprep.mubr.bf16.mxu0 %v17006_v60 }
0x2318   : > { %11671 = vmatprep.subr.msk.bf16.mxu0 %vm1222_vm2, %v14855_v53 }
0x231e   : > { %10765 = vmatmul.mubr.msk.bf16.gmra.mxu0 %vm1222_vm2, %v6228_v55 }
0x231f   : > { %11590 = vmatpush3.bf16.xpose.msra.mxu0 %v6359_v36  ;;  %6324 = vmatprep.mubr.bf16.mxu0 %v17006_v60 }
0x2320   : > { %11672 = vmatprep.subr.msk.bf16.mxu0 %vm1222_vm2, %v14860_v21 }
0x2326   : > { %10766 = vmatmul.mubr.msk.bf16.gmra.mxu0 %vm1222_vm2, %v6229_v24 }
0x2327   : > { %11592 = vmatpush3.bf16.xpose.msra.mxu0 %v6356_v8  ;;  %11593 = vmatprep.mubr.msk.bf16.mxu0 %vm1222_vm2, %v14860_v21 }
0x2328   : > { %6645 = vmatprep.subr.bf16.mxu0 %v14936_v38 }
0x232e   : > { %11594 = vmatmul.mubr.msk.bf16.vlgmr.msra.gmra.mxu0 %vm1222_vm2, %v14855_v53 }
0x232f   : > { %11597 = vmatprep.mubr.msk.bf16.mxu0 %vm1222_vm2, %v14850_v3  ;;  %6646 = vmatpush1.bf16.msra.mxu0 %v11814_v10 }
0x2330   : > { %6647 = vmatprep.subr.bf16.mxu0 %v11819_v6 }
0x2333   : > { %6648 = vmatpush1.bf16.msra.mxu0 %v11817_v26 }
0x2336   : > { %11598 = vmatmul.mubr.msk.bf16.gmra.mxu0 %vm1222_vm2, %v14846_v39 }
0x2337   : > { %6665 = vmatprep.mubr.bf16.mxu0 %v17006_v60 }
0x23ce   : > { %v6296_v52 = vpop.f32.mrf.mxu0 }
0x23cf   : > { %v14981_v30 = vadd.f32 %v6296_v52, %v14707_v58 }
0x23d0   : > { %v6298_v21 = vpop.f32.mrf.mxu0 }
0x23d1   : > { %v14984_v38 = vadd.f32 %v6298_v21, %v14710_v19 }
0x23d2   : > { %v6300_v53 = vpop.f32.mrf.mxu0 }
0x23d3   : > { %v14987_v59 = vadd.f32 %v6300_v53, %v14713_v33 }
0x23d4   : > { %v14989_v3 = vpop.f32.mrf.mxu0 }
0x23d6   : > { %v6306_v10 = vpop.f32.mrf.mxu0 }
0x23d7   : > { %v14992_v6 = vadd.f32 %v6306_v10, %v14718_v63 }
0x23d8   : > { %v6308_v39 = vpop.f32.mrf.mxu0 }
0x23d9   : > { %v14995_v26 = vadd.f32 %v6308_v39, %v14721_v28 }
0x23da   : > { %v6310_v58 = vpop.f32.mrf.mxu0 }
0x23db   : > { %v14998_v17 = vadd.f32 %v6310_v58, %v14724_v23 }
0x23dc   : > { %v15000_v19 = vpop.f32.mrf.mxu0 }
0x23de   : > { %v6316_v61 = vpop.f32.mrf.mxu0 }
0x23df   : > { %v15003_v33 = vadd.f32 %v6316_v61, %v14729_v43 }
0x23e0   : > { %v6318_v18 = vpop.f32.mrf.mxu0 }
0x23e1   : > { %v15006_v25 = vadd.f32 %v6318_v18, %v14732_v20 }
0x23e2   : > { %v6320_v63 = vpop.f32.mrf.mxu0 }
0x23e3   : > { %v15009_v35 = vadd.f32 %v6320_v63, %v14735_v31 }
0x23e4   : > { %v15011_v28 = vpop.f32.mrf.mxu0 }
0x23e6   : > { %v6326_v1 = vpop.f32.mrf.mxu0 }
0x23e7   : > { %v15014_v23 = vadd.f32 %v6326_v1, %v14740_v34 }
0x23e8   : > { %v6328_v9 = vpop.f32.mrf.mxu0 }
0x23e9   : > { %v15017_v14 = vadd.f32 %v6328_v9, %v14743_v7 }
0x23ea   : > { %v6330_v43 = vpop.f32.mrf.mxu0 }
0x23eb   : > { %v15020_v46 = vadd.f32 %v6330_v43, %v14746_v48 }
0x23ec   : > { %v15022_v20 = vpop.f32.mrf.mxu0 }
0x23ee   : > { %v11595_v27 = vpop.f32.mrf.mxu0 }
0x23ef   : > { %v6434_v31 = vmul.f32 0.07216878, %v11595_v27 }
0x23f0   : > { %v6401_v40 = vpop.f32.mrf.mxu0 }
0x23f1   : > { %v6432_v49 = vmul.f32 0.07216878, %v6401_v40  ;;  %v6442_v55 = vadd.f32 %v6434_v31, %v13511_v62 }
0x23f2   : > { %v11596_v4 = vpop.f32.mrf.mxu0 }
0x23f3   : > { %v6440_v5 = vadd.f32 %v6432_v49, %v13508_v44  ;;  %v6435_v47 = vmul.f32 0.07216878, %v11596_v4  ;;  %v6454_v10 = vsel %vm611_vm1, %v6442_v55, -inf }
0x23f4   : > { %v6404_v34 = vpop.f32.mrf.mxu0 }
0x23f5   : > { %v6433_v36 = vmul.f32 0.07216878, %v6404_v34  ;;  %v6448_v7 = vsel %vm611_vm1, %v6440_v5, -inf  ;;  %v6443_v8 = vadd.f32 %v6435_v47, %v13519_v29 }
0x23f6   : > { %6449 = vmax.xlane.f32.xlu0 %v6448_v7  ;;  %v11599_v24 = vpop.f32.mrf.mxu0 }
0x23f7   : > { %v6441_v48 = vadd.f32 %v6433_v36, %v13517_v54  ;;  %v6438_v21 = vmul.f32 0.07216878, %v11599_v24  ;;  %v6457_v61 = vsel %vm611_vm1, %v6443_v8, -inf }
0x23f8   : > { %v6417_v52 = vpop.f32.mrf.mxu0 }
0x23f9   : > { %v6436_v53 = vmul.f32 0.07216878, %v6417_v52  ;;  %v6451_v44 = vsel %vm611_vm1, %v6441_v48, -inf  ;;  %v6446_v18 = vadd.f32 %v6438_v21, %v13537_v37 }
0x23fa   : > { %6455 = vmax.xlane.f32.xlu0 %v6454_v10  ;;  %6452 = vmax.xlane.f32.xlu1 %v6451_v44  ;;  %v11600_v39 = vpop.f32.mrf.mxu0 }
0x23fb   : > { %v6444_v62 = vadd.f32 %v6436_v53, %v13532_v51  ;;  %v6439_v54 = vmul.f32 0.07216878, %v11600_v39  ;;  %v6466_v43 = vsel %vm611_vm1, %v6446_v18, -inf }
0x23fc   : > { %v6420_v58 = vpop.f32.mrf.mxu0 }
0x23fd   : > { %v6437_v63 = vmul.f32 0.07216878, %v6420_v58  ;;  %v6460_v29 = vsel %vm611_vm1, %v6444_v62, -inf  ;;  %v6447_v9 = vadd.f32 %v6439_v54, %v13546_v0  ;;  %v17174_v58 = vld [vmem:[#allocation17_spill] sm:$0xff] }
0x23fe   : > { %6458 = vmax.xlane.f32.xlu1 %v6457_v61  ;;  %6461 = vmax.xlane.f32.xlu0 %v6460_v29  ;;  %v17175_v61 = vld [vmem:[#allocation30_spill] sm:$0xff] }
0x23ff   : > { %v6445_v1 = vadd.f32 %v6437_v63, %v13542_v12  ;;  %v6469_v51 = vsel %vm611_vm1, %v6447_v9, -inf  ;;  %v2406_v54 = vadd.f32 %v17175_v61, %v17174_v58  ;;  %v17176_v63 = vld [vmem:[#allocation66_spill] sm:$0xff]  ;;  %v17186_v58 = vld [vmem:[#allocation29_spill] sm:$0xff] }
0x2400   : > { %v17187_v61 = vld [vmem:[#allocation33_spill] sm:$0xff] }
0x2401   : > { %v6463_v27 = vsel %vm611_vm1, %v6445_v1, -inf  ;;  %v3455_v29 = vadd.f32 %v17176_v63, %v2406_v54 }
0x2402   : > { %6467 = vmax.xlane.f32.xlu0 %v6466_v43  ;;  %6464 = vmax.xlane.f32.xlu1 %v6463_v27  ;;  %v17177_v27 = vld [vmem:[#allocation54_spill] sm:$0xff] }
0x2406   : > { %6470 = vmax.xlane.f32.xlu1 %v6469_v51  ;;  %v4416_v51 = vadd.f32 %v17177_v27, %v3455_v29  ;;  %v17189_v29 = vld [vmem:[#allocation20_spill] sm:$0xff] }
0x247f   : > { %v6450_v37 = vpop.xlane.xlu0 %6449 }
0x2480   : > { %v6472_v40 = vsub.f32 %v6440_v5, %v6450_v37  ;;  %v17178_v37 = vld [vmem:[#allocation21_spill] sm:$0xff] }
0x2482   : > { %v6480_v31 = vmul.f32 1.442695, %v6472_v40 }
0x2483   : > { %v6456_v49 = vpop.xlane.xlu0 %6455  ;;  %v6453_v4 = vpop.xlane.xlu1 %6452 }
0x2484   : > { %12456 = vpow2.f32 %v6480_v31  ;;  %v6474_v47 = vsub.f32 %v6442_v55, %v6456_v49  ;;  %v6473_v34 = vsub.f32 %v6441_v48, %v6453_v4  ;;  %v5377_v49 = vadd.f32 %v14715_v45, %v4416_v51  ;;  %v17180_v4 = vld [vmem:[#allocation18_spill] sm:$0xff] }
0x2486   : > { %v6484_v12 = vmul.f32 1.442695, %v6474_v47  ;;  %v6482_v36 = vmul.f32 1.442695, %v6473_v34  ;;  %v17181_v34 = vld [vmem:[#allocation8_spill] sm:$0xff] }
0x2487   : > { %v6459_v0 = vpop.xlane.xlu1 %6458  ;;  %v6462_v7 = vpop.xlane.xlu0 %6461 }
0x2488   : > { %12458 = vpow2.f32 %v6484_v12  ;;  %v6475_v24 = vsub.f32 %v6443_v8, %v6459_v0  ;;  %v6476_v52 = vsub.f32 %v6444_v62, %v6462_v7  ;;  %v17183_v7 = vld [vmem:[#allocation39_spill] sm:$0xff] }
0x2489   : > { %12460 = vpow2.f32 %v6482_v36  ;;  %v6338_v36 = vadd.f32 %v14989_v3, %v5377_v49  ;;  %v2436_v3 = vadd.f32 %v17187_v61, %v17186_v58 }
0x248a   : > { %v6486_v21 = vmul.f32 1.442695, %v6475_v24  ;;  %v6488_v53 = vmul.f32 1.442695, %v6476_v52  ;;  %v12523_v52 = vld [vmem:[#allocation2 + $0x8] sm:$0xff] }
0x248b   : > { %v6468_v10 = vpop.xlane.xlu0 %6467  ;;  %v6465_v44 = vpop.xlane.xlu1 %6464 }
0x248c   : > { %12462 = vpow2.f32 %v6486_v21  ;;  %v6478_v5 = vsub.f32 %v6446_v18, %v6468_v10  ;;  %v6477_v39 = vsub.f32 %v6445_v1, %v6465_v44  ;;  %v17179_v18 = vld [vmem:[#allocation31_spill] sm:$0xff]  ;;  %v6723_v21 = vadd.f32 %v12523_v52, %v14984_v38  ;;  %v17184_v44 = vld [vmem:[#allocation25_spill] sm:$0xff] }
0x248d   : > { %12464 = vpow2.f32 %v6488_v53  ;;  %v2416_v1 = vadd.f32 %v17179_v18, %v17178_v37  ;;  %v12524_v53 = vld [vmem:[%s12803_s24 + $0x8] sm:$0xff] }
0x248e   : > { %v6492_v55 = vmul.f32 1.442695, %v6478_v5  ;;  %v6490_v48 = vmul.f32 1.442695, %v6477_v39  ;;  %v17185_v5 = vld [vmem:[#allocation32_spill] sm:$0xff]  ;;  %v12526_v18 = vld [vmem:[#allocation2 + $0x28] sm:$0xff] }
0x248f   : > { %v6471_v43 = vpop.xlane.xlu1 %6470  ;;  %v3459_v47 = vadd.f32 %v17180_v4, %v2416_v1  ;;  %v2426_v39 = vadd.f32 %v17185_v5, %v17184_v44  ;;  %v6727_v1 = vadd.f32 %v12526_v18, %v14995_v26  ;;  %v12527_v4 = vld [vmem:[#allocation2] sm:$0xff]  ;;  %v12529_v44 = vld [vmem:[#allocation2 + $0x38] sm:$0xff] }
0x2490   : > { %12466 = vpow2.f32 %v6492_v55  ;;  %v6479_v8 = vsub.f32 %v6447_v9, %v6471_v43  ;;  %v15053_v9 = vsub.s32 2, %v17181_v34  ;;  %v3467_v43 = vadd.f32 %v17189_v29, %v2436_v3  ;;  %v12532_v29 = vld [vmem:[#allocation2 + $0x20] sm:$0xff] }
0x2491   : > { %v15043_v62 = vpop.eup %12456  ;;  %12468 = vpow2.f32 %v6490_v48  ;;  %v4420_v24 = vadd.f32 %v17183_v7, %v3459_v47  ;;  %v17188_v48 = vld [vmem:[#allocation19_spill] sm:$0xff]  ;;  %v6722_v47 = vadd.f32 %v12527_v4, %v14981_v30  ;;  %v15091_v7 = vld [vmem:[%s12803_s24] sm:$0xff] }
0x2492   : > { %v6494_v40 = vmul.f32 1.442695, %v6479_v8  ;;  %v6496_v31 = vsel %vm611_vm1, %v15043_v62, 0.0  ;;  %17182 = vst [vmem:[#allocation36_spill] sm:$0xff] %v15053_v9  ;;  %v15064_v45 = vrot.slane %v12524_v53, %v15053_v9  ;;  %v3463_v63 = vadd.f32 %v17188_v48, %v2426_v39  ;;  %v12525_v8 = vld [vmem:[#allocation2 + $0x18] sm:$0xff]  ;;  %v12531_v48 = vld [vmem:[#allocation2 + $0x10] sm:$0xff] }
0x2493   : > { %6497 = vadd.xlane.f32.xlu0 %v6496_v31  ;;  %v5381_v55 = vadd.f32 %v14726_v15, %v4420_v24  ;;  %v6725_v27 = vadd.f32 %v12525_v8, %v6338_v36  ;;  %v17190_v31 = vld [vmem:[#allocation55_spill] sm:$0xff]  ;;  %v15095_v36 = vrot.slane %v15091_v7, %v15053_v9 }
0x2494   : > { %12470 = vpow2.f32 %v6494_v40  ;;  %v15082_v37 = vadd.f32 %v15064_v45, %v6723_v21  ;;  %v4424_v49 = vadd.f32 %v17190_v31, %v3463_v63  ;;  %v6724_v63 = vadd.f32 %v12531_v48, %v14987_v59  ;;  %v12539_v48 = vld [vmem:[#allocation2 + $0x60] sm:$0xff] }
0x2495   : > { %v15055_v12 = vpop.eup %12458  ;;  %v6342_v15 = vadd.f32 %v15000_v19, %v5381_v55  ;;  %v17191_v19 = vld [vmem:[#allocation40_spill] sm:$0xff]  ;;  %v15104_v53 = vadd.f32 %v15064_v45, %v6725_v27  ;;  %v15116_v61 = vadd.f32 %v15095_v36, %v6722_v47 }
0x2496   : > { %v15058_v0 = vpop.eup %12460  ;;  %v6502_v10 = vsel %vm611_vm1, %v15055_v12, 0.0  ;;  %v4428_v52 = vadd.f32 %v17191_v19, %v3467_v43  ;;  %v5385_v21 = vadd.f32 %v14737_v11, %v4424_v49  ;;  %v6794_v58 = vsel %vm611_vm1, %v15082_v37, 0.0  ;;  %v12530_v11 = vld [vmem:[#allocation2 + $0x48] sm:$0xff]  ;;  %v12536_v19 = vld [vmem:[#allocation2 + $0x40] sm:$0xff] }
0x2497   : > { %6503 = vadd.xlane.f32.xlu0 %v6502_v10  ;;  %v6499_v54 = vsel %vm611_vm1, %v15058_v0, 0.0  ;;  %v15109_v10 = vadd.f32 %v15064_v45, %v6727_v1  ;;  %v6729_v5 = vadd.f32 %v12529_v44, %v6342_v15  ;;  %v6731_v3 = vadd.f32 %v12530_v11, %v15006_v25  ;;  %v12535_v49 = vld [vmem:[#allocation2 + $0x68] sm:$0xff] }
0x2498   : > { %6500 = vadd.xlane.f32.xlu1 %v6499_v54  ;;  %v6346_v54 = vadd.f32 %v15011_v28, %v5385_v21  ;;  %v6726_v43 = vadd.f32 %v12532_v29, %v14992_v6  ;;  %v5389_v27 = vadd.f32 %v14748_v57, %v4428_v52  ;;  %v6795_v18 = vadd.f32 %v6794_v58, %v15116_v61  ;;  %v12533_v28 = vld [vmem:[#allocation2 + $0x30] sm:$0xff]  ;;  %v12534_v57 = vld [vmem:[#allocation2 + $0x58] sm:$0xff] }
0x2499   : > { %v15075_v38 = vpop.eup %12462  ;;  %17192 = vst [vmem:[#allocation52_spill] sm:$0xff] %v15109_v10  ;;  %v6798_v25 = vsel %vm611_vm1, %v15104_v53, 0.0  ;;  %v6728_v1 = vadd.f32 %v12533_v28, %v14998_v17  ;;  %v15132_v15 = vadd.f32 %v15064_v45, %v6729_v5  ;;  %v6802_v6 = vsel %vm611_vm1, %v15109_v10, 0.0  ;;  %v12537_v58 = vld [vmem:[#allocation2 + $0x78] sm:$0xff]  ;;  %v12540_v28 = vld [vmem:[#allocation2 + $0x70] sm:$0xff] }
0x249a   : > { %v15079_v51 = vpop.eup %12464  ;;  %v6505_v40 = vsel %vm611_vm1, %v15075_v38, 0.0  ;;  %v6733_v31 = vadd.f32 %v12534_v57, %v6346_v54  ;;  %v6735_v4 = vadd.f32 %v12535_v49, %v15017_v14  ;;  %v6350_v47 = vadd.f32 %v15022_v20, %v5389_v27  ;;  %v12538_v54 = vld [vmem:[#allocation2 + $0x50] sm:$0xff] }
0x249b   : > { %v6508_v24 = vsel %vm611_vm1, %v15079_v51, 0.0  ;;  %17193 = vst [vmem:[#allocation14_spill] sm:$0xff] %v15132_v15  ;;  %v15144_v17 = vadd.f32 %v15095_v36, %v6724_v63  ;;  %v6730_v52 = vadd.f32 %v12536_v19, %v15003_v33  ;;  %v15151_v21 = vadd.f32 %v15095_v36, %v6728_v1 }
0x249c   : > { %6509 = vadd.xlane.f32.xlu0 %v6508_v24  ;;  %6506 = vadd.xlane.f32.xlu1 %v6505_v40  ;;  %v15139_v40 = vadd.f32 %v15064_v45, %v6731_v3  ;;  %v15147_v24 = vadd.f32 %v15095_v36, %v6726_v43  ;;  %v6806_v20 = vsel %vm611_vm1, %v15132_v15, 0.0  ;;  %v15158_v5 = vadd.f32 %v15064_v45, %v6733_v31 }
0x249d   : > { %v15099_v26 = vpop.eup %12466  ;;  %v6799_v14 = vadd.f32 %v6798_v25, %v15144_v17  ;;  %v6737_v33 = vadd.f32 %v12537_v58, %v6350_v47  ;;  %v15166_v3 = vadd.f32 %v15095_v36, %v6730_v52  ;;  %v6734_v63 = vadd.f32 %v12539_v48, %v15014_v23 }
0x249e   : > { %v15106_v30 = vpop.eup %12468  ;;  %v6514_v39 = vsel %vm611_vm1, %v15099_v26, 0.0  ;;  %17194 = vst [vmem:[#allocation15_spill] sm:$0xff] %v15139_v40  ;;  %17195 = vst [vmem:[#allocation16_spill] sm:$0xff] %v15147_v24  ;;  %v6803_v44 = vadd.f32 %v6802_v6, %v15147_v24  ;;  %v6810_v11 = vsel %vm611_vm1, %v15139_v40, 0.0  ;;  %v6807_v29 = vadd.f32 %v6806_v20, %v15151_v21 }
0x249f   : > { %v6511_v55 = vsel %vm611_vm1, %v15106_v30, 0.0  ;;  %v6811_v43 = vadd.f32 %v6810_v11, %v15166_v3  ;;  %v15173_v27 = vadd.f32 %v15064_v45, %v6737_v33  ;;  %v15183_v23 = vadd.f32 %v15095_v36, %v6734_v63 }
0x24a0   : > { %6515 = vadd.xlane.f32.xlu0 %v6514_v39  ;;  %6512 = vadd.xlane.f32.xlu1 %v6511_v55  ;;  %v15161_v39 = vadd.f32 %v15064_v45, %v6735_v4  ;;  %v6732_v55 = vadd.f32 %v12538_v54, %v15009_v35  ;;  %v6736_v1 = vadd.f32 %v12540_v28, %v15020_v46 }
0x24a1   : > { %v15124_v8 = vpop.eup %12470  ;;  %17197 = vst [vmem:[#allocation42_spill] sm:$0xff] %v15173_v27  ;;  %17198 = vst [vmem:[#allocation58_spill] sm:$0xff] %v15183_v23  ;;  %v6822_v57 = vsel %vm611_vm1, %v15173_v27, 0.0 }
0x24a2   : > { %v6517_v59 = vsel %vm611_vm1, %v15124_v8, 0.0  ;;  %17196 = vst [vmem:[#allocation56_spill] sm:$0xff] %v15161_v39  ;;  %v6818_v25 = vsel %vm611_vm1, %v15161_v39, 0.0  ;;  %v15180_v35 = vadd.f32 %v15095_v36, %v6732_v55  ;;  %v15191_v31 = vadd.f32 %v15095_v36, %v6736_v1 }
0x24a3   : > { %v6819_v6 = vadd.f32 %v6818_v25, %v15183_v23 }
0x24a4   : > { %6796 = vadd.xlane.f32.xlu0 %v6795_v18  ;;  %6518 = vadd.xlane.f32.xlu1 %v6517_v59  ;;  %v6814_v18 = vsel %vm611_vm1, %v15158_v5, 0.0  ;;  %v6823_v49 = vadd.f32 %v6822_v57, %v15191_v31 }
0x24a5   : > { %v6815_v59 = vadd.f32 %v6814_v18, %v15180_v35 }
0x24a8   : > { %6804 = vadd.xlane.f32.xlu0 %v6803_v44  ;;  %6800 = vadd.xlane.f32.xlu1 %v6799_v14 }
0x24ac   : > { %6808 = vadd.xlane.f32.xlu1 %v6807_v29  ;;  %6812 = vadd.xlane.f32.xlu0 %v6811_v43 }
0x24b0   : > { %6816 = vadd.xlane.f32.xlu1 %v6815_v59  ;;  %6820 = vadd.xlane.f32.xlu0 %v6819_v6 }
0x24b4   : > { %6824 = vadd.xlane.f32.xlu1 %v6823_v49 }
0x251c   : > { %v6498_v4 = vpop.xlane.xlu0 %6497 }
0x251d   : > { %12472 = vrcp.f32 %v6498_v4 }
0x2520   : > { %v6504_v47 = vpop.xlane.xlu0 %6503 }
0x2521   : > { %v6501_v46 = vpop.xlane.xlu1 %6500 }
0x2522   : > { %12474 = vrcp.f32 %v6501_v46 }
0x2523   : > { %12476 = vrcp.f32 %v6504_v47 }
0x2525   : > { %v6510_v19 = vpop.xlane.xlu0 %6509  ;;  %v6507_v52 = vpop.xlane.xlu1 %6506 }
0x2526   : > { %12478 = vrcp.f32 %v6507_v52 }
0x2527   : > { %12480 = vrcp.f32 %v6510_v19 }
0x2529   : > { %v6513_v44 = vpop.xlane.xlu1 %6512  ;;  %v6516_v14 = vpop.xlane.xlu0 %6515 }
0x252a   : > { %12482 = vrcp.f32 %v6513_v44  ;;  %v12473_v58 = vpop.eup %12472 }
0x252b   : > { %12484 = vrcp.f32 %v6516_v14  ;;  %v6528_v54 = vmul.f32 %v12473_v58, %v15043_v62  ;;  %v17200_v58 = vld [vmem:[#allocation53_spill] sm:$0xff] }
0x252d   : > { %v6519_v20 = vpop.xlane.xlu1 %6518 }
0x252e   : > { %12486 = vrcp.f32 %v6519_v20  ;;  %v17199_v20 = vld [vmem:[#allocation37_spill] sm:$0xff] }
0x252f   : > { %v12475_v33 = vpop.eup %12474 }
0x2530   : > { %v6529_v11 = vmul.f32 %v12475_v33, %v15058_v0  ;;  %v12477_v55 = vpop.eup %12476  ;;  %v2846_v33 = vadd.f32 %v17200_v58, %v17199_v20 }
0x2531   : > { %v6530_v29 = vmul.f32 %v12477_v55, %v15055_v12 }
0x2532   : > { %v6536_v48 = vpack.c.bf16 %v6529_v11, %v6528_v54  ;;  %v17201_v54 = vld [vmem:[#allocation26_spill] sm:$0xff] }
0x2533   : > { %v12479_v63 = vpop.eup %12478  ;;  %v3826_v55 = vadd.f32 %v17201_v54, %v2846_v33 }
0x2534   : > { %v6531_v43 = vmul.f32 %v12479_v63, %v15075_v38  ;;  %11609 = vmatprep.mubr.msk.bf16.mxu1 %vm611_vm1, %v6536_v48  ;;  %v12481_v18 = vpop.eup %12480 }
0x2535   : > { %v6532_v62 = vmul.f32 %v12481_v18, %v15079_v51 }
0x2536   : > { %v6537_v25 = vpack.c.bf16 %v6531_v43, %v6530_v29  ;;  %v17202_v29 = vld [vmem:[#allocation43_spill] sm:$0xff] }
0x2537   : > { %v12483_v28 = vpop.eup %12482  ;;  %v4787_v43 = vadd.f32 %v17202_v29, %v3826_v55 }
0x2538   : > { %11610 = vmatmul.mubr.msk.bf16.vlgmr.msra.gmra.mxu1 %vm611_vm1, %v6537_v25  ;;  %v12485_v1 = vpop.eup %12484  ;;  %v6533_v59 = vmul.f32 %v12483_v28, %v15106_v30  ;;  %v12541_v25 = vld [vmem:[#allocation2 + $0x80] sm:$0xff] }
0x2539   : > { %v6534_v57 = vmul.f32 %v12485_v1, %v15099_v26 }
0x253a   : > { %v6538_v6 = vpack.c.bf16 %v6533_v59, %v6532_v62  ;;  %v12542_v59 = vld [vmem:[#allocation2 + $0x88] sm:$0xff] }
0x253b   : > { %v12487_v0 = vpop.eup %12486 }
0x253c   : > { %v6535_v12 = vmul.f32 %v12487_v0, %v15124_v8  ;;  %11613 = vmatprep.mubr.msk.bf16.mxu1 %vm611_vm1, %v6538_v6 }
0x253e   : > { %v6539_v38 = vpack.c.bf16 %v6535_v12, %v6534_v57  ;;  %v17203_v57 = vld [vmem:[#allocation41_spill] sm:$0xff] }
0x253f   : > { %v17204_v12 = vld [vmem:[#allocation57_spill] sm:$0xff] }
0x2540   : > { %11614 = vmatmul.mubr.msk.bf16.gmra.mxu1 %vm611_vm1, %v6539_v38  ;;  %v2856_v38 = vadd.f32 %v17204_v12, %v17203_v57  ;;  %v17214_v57 = vld [vmem:[#allocation35_spill] sm:$0xff] }
0x25f8   : > { %v11611_v49 = vpop.f32.mrf.mxu1 }
0x25fa   : > { %v6586_v4 = vpop.f32.mrf.mxu1 }
0x25fc   : > { %v11612_v47 = vpop.f32.mrf.mxu1 }
0x25fd   : > { %v6618_v30 = vpack.c.bf16 %v11612_v47, %v11611_v49 }
0x25fe   : > { %v6589_v46 = vpop.f32.mrf.mxu1 }
0x25ff   : > { %v6617_v19 = vpack.c.bf16 %v6589_v46, %v6586_v4 }
0x2600   : > { %v11615_v52 = vpop.f32.mrf.mxu1 }
0x2601   : > { %10775 = vmatmul.mubr.msk.bf16.vlgmr.msra.gmra.mxu0 %vm1222_vm2, %v6617_v19  ;;  %v17206_v19 = vld [vmem:[#allocation12_spill] sm:$0xff] }
0x2602   : > { %6675 = vmatprep.mubr.bf16.mxu0 %v17006_v60  ;;  %v6602_v51 = vpop.f32.mrf.mxu1 }
0x2604   : > { %v11616_v26 = vpop.f32.mrf.mxu1 }
0x2605   : > { %v6620_v14 = vpack.c.bf16 %v11616_v26, %v11615_v52  ;;  %v12544_v52 = vld [vmem:[#allocation2 + $0x98] sm:$0xff] }
0x2606   : > { %v6605_v8 = vpop.f32.mrf.mxu1 }
0x2607   : > { %v6619_v44 = vpack.c.bf16 %v6605_v8, %v6602_v51 }
0x2609   : > { %10776 = vmatmul.mubr.msk.bf16.gmra.mxu0 %vm1222_vm2, %v6618_v30 }
0x260a   : > { %6685 = vmatprep.mubr.bf16.mxu0 %v17006_v60 }
0x2611   : > { %10777 = vmatmul.mubr.msk.bf16.gmra.mxu0 %vm1222_vm2, %v6619_v44  ;;  %v17207_v44 = vld [vmem:[#allocation46_spill] sm:$0xff] }
0x2612   : > { %6695 = vmatprep.mubr.bf16.mxu0 %v17006_v60  ;;  %v5748_v60 = vadd.f32 %v14876_v13, %v4787_v43  ;;  %v3830_v13 = vadd.f32 %v17206_v19, %v2856_v38  ;;  %v12548_v38 = vld [vmem:[#allocation2 + $0xb8] sm:$0xff] }
0x2619   : > { %10778 = vmatmul.mubr.msk.bf16.gmra.mxu0 %vm1222_vm2, %v6620_v14  ;;  %v4791_v14 = vadd.f32 %v17207_v44, %v3830_v13  ;;  %v17218_v44 = vld [vmem:[#allocation49_spill] sm:$0xff] }
0x26c1   : > { %v6667_v11 = vpop.f32.mrf.mxu0 }
0x26c2   : > { %v6706_v48 = vadd.f32 %v6667_v11, %v14868_v22  ;;  %v12545_v11 = vld [vmem:[#allocation2 + $0xa0] sm:$0xff] }
0x26c3   : > { %v6669_v63 = vpop.f32.mrf.mxu0 }
0x26c4   : > { %v6707_v18 = vadd.f32 %v6669_v63, %v14871_v16  ;;  %v6738_v28 = vadd.f32 %v12541_v25, %v6706_v48  ;;  %v12543_v16 = vld [vmem:[#allocation2 + $0x90] sm:$0xff]  ;;  %v12546_v48 = vld [vmem:[#allocation2 + $0xa8] sm:$0xff] }
0x26c5   : > { %v6671_v1 = vpop.f32.mrf.mxu0 }
0x26c6   : > { %v6739_v0 = vadd.f32 %v12542_v59, %v6707_v18  ;;  %v6708_v62 = vadd.f32 %v6671_v1, %v14874_v32  ;;  %v15227_v4 = vadd.f32 %v15095_v36, %v6738_v28  ;;  %v6797_v18 = vpop.xlane.xlu0 %6796  ;;  %v17210_v28 = vld [vmem:[#allocation45_spill] sm:$0xff] }
0x26c7   : > { %v6673_v6 = vpop.f32.mrf.mxu0  ;;  %v17211_v1 = vld [vmem:[#allocation61_spill] sm:$0xff] }
0x26c8   : > { %v15224_v22 = vadd.f32 %v15064_v45, %v6739_v0  ;;  %v6709_v49 = vadd.f32 %v6673_v6, %v5748_v60  ;;  %v6740_v47 = vadd.f32 %v12543_v16, %v6708_v62  ;;  %v2866_v60 = vadd.f32 %v17211_v1, %v17210_v28  ;;  %v12547_v62 = vld [vmem:[#allocation2 + $0xb0] sm:$0xff] }
0x26c9   : > { %v6677_v46 = vpop.f32.mrf.mxu0 }
0x26ca   : > { %17205 = vst [vmem:[#allocation59_spill] sm:$0xff] %v15224_v22  ;;  %v6741_v51 = vadd.f32 %v12544_v52, %v6709_v49  ;;  %v6710_v32 = vadd.f32 %v6677_v46, %v14879_v50  ;;  %v6826_v30 = vsel %vm611_vm1, %v15224_v22, 0.0  ;;  %v15240_v33 = vadd.f32 %v15095_v36, %v6740_v47  ;;  %v6801_v46 = vpop.xlane.xlu1 %6800  ;;  %v17215_v52 = vld [vmem:[#allocation48_spill] sm:$0xff] }
0x26cb   : > { %v6679_v26 = vpop.f32.mrf.mxu0  ;;  %v6827_v8 = vadd.f32 %v6826_v30, %v15227_v4  ;;  %v5752_v50 = vadd.f32 %v14887_v41, %v4791_v14  ;;  %v3834_v12 = vadd.f32 %v17214_v57, %v2866_v60  ;;  %v17219_v14 = vld [vmem:[#allocation65_spill] sm:$0xff]  ;;  %v17223_v60 = vld [vmem:[#allocation38_spill] sm:$0xff] }
0x26cc   : > { %v15236_v20 = vadd.f32 %v15064_v45, %v6741_v51  ;;  %v6711_v58 = vadd.f32 %v6679_v26, %v14882_v56  ;;  %17209 = vst [vmem:[#allocation60_spill] sm:$0xff] %v15240_v33  ;;  %v6742_v54 = vadd.f32 %v12545_v11, %v6710_v32  ;;  %v6858_v32 = vmul.f32 0.0052083335, %v6797_v18  ;;  %v17217_v26 = vld [vmem:[#allocation27_spill] sm:$0xff]  ;;  %v6805_v11 = vpop.xlane.xlu0 %6804  ;;  %v17222_v18 = vld [vmem:[#allocation28_spill] sm:$0xff] }
0x26cd   : > { %v6681_v55 = vpop.f32.mrf.mxu0  ;;  %6828 = vadd.xlane.f32.xlu0 %v6827_v8  ;;  %v4795_v51 = vadd.f32 %v17215_v52, %v3834_v12  ;;  %v6860_v57 = vmul.f32 0.0052083335, %v6805_v11  ;;  %v6859_v12 = vmul.f32 0.0052083335, %v6801_v46 }
0x26ce   : > { %17208 = vst [vmem:[#allocation44_spill] sm:$0xff] %v15236_v20  ;;  %v6743_v63 = vadd.f32 %v12546_v48, %v6711_v58  ;;  %v6712_v29 = vadd.f32 %v6681_v55, %v14885_v2  ;;  %v6830_v43 = vsel %vm611_vm1, %v15236_v20, 0.0  ;;  %v15253_v41 = vadd.f32 %v15095_v36, %v6742_v54  ;;  %v12549_v54 = vld [vmem:[#allocation2 + $0xc0] sm:$0xff]  ;;  %v17221_v48 = vld [vmem:[#allocation11_spill] sm:$0xff] }
0x26cf   : > { %v6683_v25 = vpop.f32.mrf.mxu0  ;;  %v6831_v56 = vadd.f32 %v6830_v43, %v15240_v33  ;;  %v2876_v58 = vadd.f32 %v17219_v14, %v17218_v44 }
0x26d0   : > { %v15250_v59 = vadd.f32 %v15064_v45, %v6743_v63  ;;  %v6713_v0 = vadd.f32 %v6683_v25, %v5752_v50  ;;  %17213 = vst [vmem:[#allocation47_spill] sm:$0xff] %v15253_v41  ;;  %v6744_v6 = vadd.f32 %v12547_v62, %v6712_v29  ;;  %v5756_v63 = vadd.f32 %v17221_v48, %v4795_v51  ;;  %v12550_v29 = vld [vmem:[#allocation2 + $0xc8] sm:$0xff]  ;;  %v12552_v51 = vld [vmem:[#allocation2 + $0xd8] sm:$0xff] }
0x26d1   : > { %v6687_v2 = vpop.f32.mrf.mxu0  ;;  %6832 = vadd.xlane.f32.xlu1 %v6831_v56  ;;  %v15277_v62 = vsub.f32 %v15082_v37, %v6858_v32 }
0x26d2   : > { %17212 = vst [vmem:[#allocation62_spill] sm:$0xff] %v15250_v59  ;;  %v6745_v49 = vadd.f32 %v12548_v38, %v6713_v0  ;;  %v6714_v16 = vadd.f32 %v6687_v2, %v14890_v42  ;;  %v6834_v47 = vsel %vm611_vm1, %v15250_v59, 0.0  ;;  %v15268_v42 = vadd.f32 %v15095_v36, %v6744_v6  ;;  %v6809_v38 = vpop.xlane.xlu1 %6808 }
0x26d3   : > { %v6689_v19 = vpop.f32.mrf.mxu0  ;;  %v6835_v13 = vadd.f32 %v6834_v47, %v15253_v41  ;;  %v3838_v0 = vadd.f32 %v17223_v60, %v2876_v58  ;;  %v6813_v58 = vpop.xlane.xlu0 %6812  ;;  %v6861_v60 = vmul.f32 0.0052083335, %v6809_v38 }
0x26d4   : > { %v15262_v30 = vadd.f32 %v15064_v45, %v6745_v49  ;;  %v6715_v8 = vadd.f32 %v6689_v19, %v17217_v26  ;;  %17220 = vst [vmem:[#allocation64_spill] sm:$0xff] %v15268_v42  ;;  %v6746_v55 = vadd.f32 %v12549_v54, %v6714_v16  ;;  %v12551_v16 = vld [vmem:[#allocation2 + $0xd0] sm:$0xff]  ;;  %v17228_v54 = vld [vmem:[#allocation51_spill] sm:$0xff]  ;;  %v6862_v38 = vmul.f32 0.0052083335, %v6813_v58 }
0x26d5   : > { %v6691_v50 = vpop.f32.mrf.mxu0  ;;  %6836 = vadd.xlane.f32.xlu0 %v6835_v13  ;;  %v17226_v13 = vld [vmem:[#allocation24_spill] sm:$0xff] }
0x26d6   : > { %17216 = vst [vmem:[#allocation63_spill] sm:$0xff] %v15262_v30  ;;  %v6747_v43 = vadd.f32 %v12550_v29, %v6715_v8  ;;  %v6716_v25 = vadd.f32 %v6691_v50, %v17222_v18  ;;  %v6838_v56 = vsel %vm611_vm1, %v15262_v30, 0.0  ;;  %v15283_v49 = vadd.f32 %v15095_v36, %v6746_v55  ;;  %v17227_v8 = vld [vmem:[#allocation13_spill] sm:$0xff] }
0x26d7   : > { %v6693_v28 = vpop.f32.mrf.mxu0  ;;  %v6839_v1 = vadd.f32 %v6838_v56, %v15268_v42  ;;  %v4799_v52 = vadd.f32 %v17226_v13, %v3838_v0  ;;  %v6907_v50 = vmul.f32 %v15277_v62, %v15277_v62  ;;  %v15301_v18 = vsub.f32 %v15104_v53, %v6859_v12  ;;  %v12553_v56 = vld [vmem:[#allocation2 + $0xe0] sm:$0xff]  ;;  %v12554_v0 = vld [vmem:[#allocation2 + $0xe8] sm:$0xff] }
0x26d8   : > { %v15280_v6 = vadd.f32 %v15064_v45, %v6747_v43  ;;  %v6717_v2 = vadd.f32 %v6693_v28, %v5756_v63  ;;  %17225 = vst [vmem:[#allocation23_spill] sm:$0xff] %v15283_v49  ;;  %v6748_v47 = vadd.f32 %v12551_v16, %v6716_v25  ;;  %v17230_v63 = vld [vmem:[#allocation34_spill] sm:$0xff]  ;;  %v15298_v43 = vsub.f32 %v15109_v10, %v6860_v57  ;;  %v11828_v10 = vld [vmem:[%s12813_s30 + $0x124] ss:$24 sps:$4 sm:$0xff]  }
0x26d9   : > { %v6697_v19 = vpop.f32.mrf.mxu0  ;;  %6840 = vadd.xlane.f32.xlu1 %v6839_v1  ;;  %v5760_v55 = vadd.f32 %v17228_v54, %v4799_v52  ;;  %v17232_v16 = vld [vmem:[#allocation50_spill] sm:$0xff]  ;;  %v15310_v52 = vsub.f32 %v15116_v61, %v6858_v32  ;;  %v6909_v58 = vmul.f32 %v15301_v18, %v15301_v18 }
0x26da   : > { %17224 = vst [vmem:[#allocation22_spill] sm:$0xff] %v15280_v6  ;;  %v6749_v26 = vadd.f32 %v12552_v51, %v6717_v2  ;;  %v6718_v44 = vadd.f32 %v6697_v19, %v17227_v8  ;;  %v6842_v14 = vsel %vm611_vm1, %v15280_v6, 0.0  ;;  %v15304_v25 = vadd.f32 %v15095_v36, %v6748_v47  ;;  %v6817_v47 = vpop.xlane.xlu1 %6816  ;;  %v12555_v54 = vld [vmem:[#allocation2 + $0xf0] sm:$0xff] }
0x26db   : > { %v6699_v11 = vpop.f32.mrf.mxu0  ;;  %v6843_v46 = vadd.f32 %v6842_v14, %v15283_v49  ;;  %v15313_v51 = vsub.f32 %v15147_v24, %v6860_v57  ;;  %v6911_v32 = vmul.f32 %v15298_v43, %v15298_v43  ;;  %v6821_v57 = vpop.xlane.xlu0 %6820  ;;  %v11829_v24 = vld [vmem:[%s12813_s30 + $0x128] ss:$24 sps:$4 sm:$0xff]  }
0x26dc   : > { %v15294_v48 = vadd.f32 %v15064_v45, %v6749_v26  ;;  %v6719_v29 = vadd.f32 %v6699_v11, %v17230_v63  ;;  %17231 = vst [vmem:[#allocation30_spill] sm:$0xff] %v15304_v25  ;;  %v6750_v28 = vadd.f32 %v12553_v56, %v6718_v44  ;;  %v15317_v44 = vsub.f32 %v15144_v17, %v6859_v12 }
0x26dd   : > { %v6701_v1 = vpop.f32.mrf.mxu0  ;;  %6844 = vadd.xlane.f32.xlu0 %v6843_v46  ;;  %v6938_v12 = vsel %vm611_vm1, %v6907_v50, 0.0  ;;  %v15342_v50 = vsub.f32 %v15139_v40, %v6862_v38  ;;  %v15362_v40 = vsub.f32 %v15151_v21, %v6861_v60 }
0x26de   : > { %17229 = vst [vmem:[#allocation17_spill] sm:$0xff] %v15294_v48  ;;  %v6751_v2 = vadd.f32 %v12554_v0, %v6719_v29  ;;  %v6720_v19 = vadd.f32 %v6701_v1, %v17232_v16  ;;  %v6846_v13 = vsel %vm611_vm1, %v15294_v48, 0.0  ;;  %v15325_v46 = vadd.f32 %v15095_v36, %v6750_v28  ;;  %v12556_v29 = vld [vmem:[#allocation2 + $0xf8] sm:$0xff]  ;;  %v11822_v16 = vld [vmem:[%s12813_s30 + $0x154] ss:$24 sps:$4 sm:$0xff]  }
0x26df   : > { %v6703_v26 = vpop.f32.mrf.mxu0  ;;  %v6847_v8 = vadd.f32 %v6846_v13, %v15304_v25  ;;  %v6906_v28 = vmul.f32 %v15310_v52, %v15310_v52  ;;  %v6863_v13 = vmul.f32 0.0052083335, %v6817_v47  ;;  %7666 = vmatprep.subr.bf16.mxu1 %v11822_v16  ;;  %v11826_v16 = vld [vmem:[%s12813_s30 + $0x120] ss:$24 sps:$4 sm:$0xff]  }
0x26e0   : > { %v15320_v14 = vadd.f32 %v15064_v45, %v6751_v2  ;;  %v6721_v11 = vadd.f32 %v6703_v26, %v5760_v55  ;;  %17234 = vst [vmem:[#allocation54_spill] sm:$0xff] %v15325_v46  ;;  %v6752_v63 = vadd.f32 %v12555_v54, %v6720_v19  ;;  %v15331_v55 = vsub.f32 %v15132_v15, %v6861_v60  ;;  %v11820_v2 = vld [vmem:[%s12813_s30 + $0x150] ss:$24 sps:$4 sm:$0xff]  }
0x26e1   : > { %6848 = vadd.xlane.f32.xlu1 %v6847_v8  ;;  %v11823_v19 = vld [vmem:[%s12813_s30 + $0x158] ss:$24 sps:$4 sm:$0xff]   ;;  %v6864_v26 = vmul.f32 0.0052083335, %v6821_v57  ;;  %v6910_v54 = vmul.f32 %v15313_v51, %v15313_v51  ;;  %v6942_v57 = vsel %vm611_vm1, %v6909_v58, 0.0  ;;  %7667 = vmatpush1.bf16.msra.mxu1 %v11820_v2  ;;  %v6915_v58 = vmul.f32 %v15342_v50, %v15342_v50 }
0x26e2   : > { %17233 = vst [vmem:[#allocation66_spill] sm:$0xff] %v15320_v14  ;;  %v6753_v56 = vadd.f32 %v12556_v29, %v6721_v11  ;;  %v6850_v1 = vsel %vm611_vm1, %v15320_v14, 0.0  ;;  %v11825_v11 = vld [vmem:[%s12813_s30 + $0x15c] ss:$24 sps:$4 sm:$0xff]   ;;  %v6908_v29 = vmul.f32 %v15317_v44, %v15317_v44  ;;  %v15353_v15 = vadd.f32 %v15095_v36, %v6752_v63  ;;  %7668 = vmatprep.subr.bf16.mxu1 %v11828_v10 }
0x26e3   : > { %v6851_v0 = vadd.f32 %v6850_v1, %v15325_v46  ;;  %v6825_v1 = vpop.xlane.xlu1 %6824  ;;  %7779 = vmatprep.subr.bf16.mxu0 %v11825_v11  ;;  %v15365_v36 = vsub.f32 %v15166_v3, %v6862_v38  ;;  %v15377_v2 = vsub.f32 %v15161_v39, %v6864_v26  ;;  %v11831_v38 = vld [vmem:[%s12813_s30 + $0x12c] ss:$24 sps:$4 sm:$0xff]   ;;  %v11835_v39 = vld [vmem:[%s12813_s30 + $0xf8] ss:$24 sps:$4 sm:$0xff]  }
0x26e4   : > { %v15345_v8 = vadd.f32 %v15064_v45, %v6753_v56  ;;  %17236 = vst [vmem:[#allocation31_spill] sm:$0xff] %v15353_v15  ;;  %v6913_v45 = vmul.f32 %v15331_v55, %v15331_v55  ;;  %v6946_v56 = vsel %vm611_vm1, %v6911_v32, 0.0  ;;  %7780 = vmatpush1.bf16.msra.mxu0 %v11823_v19  ;;  %v15374_v32 = vsub.f32 %v15158_v5, %v6863_v13 }
0x26e5   : > { %6852 = vadd.xlane.f32.xlu0 %v6851_v0  ;;  %v6939_v0 = vadd.f32 %v6938_v12, %v6906_v28  ;;  %v6865_v60 = vmul.f32 0.0052083335, %v6825_v1  ;;  %v15381_v12 = vsub.f32 %v15180_v35, %v6863_v13  ;;  %v15384_v28 = vsub.f32 %v15183_v23, %v6864_v26  ;;  %7781 = vmatprep.subr.bf16.mxu0 %v11831_v38  ;;  %v11832_v13 = vld [vmem:[%s12813_s30 + $0xf0] ss:$24 sps:$4 sm:$0xff]  }
0x26e6   : > { %17235 = vst [vmem:[#allocation21_spill] sm:$0xff] %v15345_v8  ;;  %v6854_v47 = vsel %vm611_vm1, %v15345_v8, 0.0  ;;  %v6943_v19 = vadd.f32 %v6942_v57, %v6908_v29  ;;  %v6950_v11 = vsel %vm611_vm1, %v6913_v45, 0.0  ;;  %v6912_v1 = vmul.f32 %v15362_v40, %v15362_v40  ;;  %7669 = vmatpush1.bf16.msra.mxu1 %v11826_v16 }
0x26e7   : > { %v6855_v63 = vadd.f32 %v6854_v47, %v15353_v15  ;;  %v6914_v47 = vmul.f32 %v15365_v36, %v15365_v36  ;;  %v6917_v26 = vmul.f32 %v15374_v32, %v15374_v32  ;;  %v6919_v10 = vmul.f32 %v15377_v2, %v15377_v2 }
0x26e8   : > { %7782 = vmatpush1.bf16.msra.mxu0 %v11829_v24  ;;  %v15399_v29 = vsub.f32 %v15173_v27, %v6865_v60  ;;  %v6954_v45 = vsel %vm611_vm1, %v6915_v58, 0.0  ;;  %v6916_v24 = vmul.f32 %v15381_v12, %v15381_v12  ;;  %v6918_v57 = vmul.f32 %v15384_v28, %v15384_v28  ;;  %v11838_v58 = vld [vmem:[%s12813_s30 + $0xc0] ss:$24 sps:$4 sm:$0xff]  }
0x26e9   : > { %6856 = vadd.xlane.f32.xlu1 %v6855_v63  ;;  %6940 = vadd.xlane.f32.xlu0 %v6939_v0  ;;  %v6947_v63 = vadd.f32 %v6946_v56, %v6910_v54  ;;  %v11834_v0 = vld [vmem:[%s12813_s30 + $0xf4] ss:$24 sps:$4 sm:$0xff]   ;;  %v15408_v56 = vsub.f32 %v15191_v31, %v6865_v60  ;;  %v6951_v16 = vadd.f32 %v6950_v11, %v6912_v1  ;;  %v6958_v23 = vsel %vm611_vm1, %v6917_v26, 0.0  ;;  %v11847_v26 = vld [vmem:[%s12813_s30 + $0x98] ss:$24 sps:$4 sm:$0xff]  }
0x26ea   : > { %v11837_v54 = vld [vmem:[%s12813_s30 + $0xfc] ss:$24 sps:$4 sm:$0xff]   ;;  %7670 = vmatprep.subr.bf16.mxu1 %v11834_v0  ;;  %v6955_v38 = vadd.f32 %v6954_v45, %v6914_v47  ;;  %v6921_v27 = vmul.f32 %v15399_v29, %v15399_v29  ;;  %v6962_v0 = vsel %vm611_vm1, %v6919_v10, 0.0  ;;  %v11843_v60 = vld [vmem:[%s12813_s30 + $0xcc] ss:$24 sps:$4 sm:$0xff]   ;;  %v6959_v11 = vadd.f32 %v6958_v23, %v6916_v24 }
0x26eb   : > { %7783 = vmatprep.subr.bf16.mxu0 %v11837_v54  ;;  %7671 = vmatpush1.bf16.msra.mxu1 %v11832_v13  ;;  %v6963_v1 = vadd.f32 %v6962_v0, %v6918_v57  ;;  %v11844_v47 = vld [vmem:[%s12813_s30 + $0x90] ss:$24 sps:$4 sm:$0xff]   ;;  %v11846_v13 = vld [vmem:[%s12813_s30 + $0x94] ss:$24 sps:$4 sm:$0xff]   ;;  %v11852_v54 = vld [vmem:[%s12813_s30 + $0x64] ss:$24 sps:$4 sm:$0xff]  }
0x26ec   : > { %7784 = vmatpush1.bf16.msra.mxu0 %v11835_v39  ;;  %v6920_v39 = vmul.f32 %v15408_v56, %v15408_v56  ;;  %v6966_v10 = vsel %vm611_vm1, %v6921_v27, 0.0  ;;  %v11849_v45 = vld [vmem:[%s12813_s30 + $0x9c] ss:$24 sps:$4 sm:$0xff]   ;;  %v11855_v24 = vld [vmem:[%s12813_s30 + $0x6c] ss:$24 sps:$4 sm:$0xff]  }
0x26ed   : > { %6944 = vadd.xlane.f32.xlu1 %v6943_v19  ;;  %6948 = vadd.xlane.f32.xlu0 %v6947_v63  ;;  %v11840_v19 = vld [vmem:[%s12813_s30 + $0xc4] ss:$24 sps:$4 sm:$0xff]   ;;  %v11841_v63 = vld [vmem:[%s12813_s30 + $0xc8] ss:$24 sps:$4 sm:$0xff]   ;;  %v11858_v27 = vld [vmem:[%s12813_s30 + $0x34] ss:$24 sps:$4 sm:$0xff]  }
0x26ee   : > { %7672 = vmatprep.subr.bf16.mxu1 %v11840_v19  ;;  %7785 = vmatprep.subr.bf16.mxu0 %v11843_v60  ;;  %v6967_v23 = vadd.f32 %v6966_v10, %v6920_v39  ;;  %v11850_v57 = vld [vmem:[%s12813_s30 + $0x60] ss:$24 sps:$4 sm:$0xff]   ;;  %v11867_v0 = vld [vmem:[%s12813_s30 + $0xc] ss:$24 sps:$4 sm:$0xff]  }
0x26ef   : > { %7673 = vmatpush1.bf16.msra.mxu1 %v11838_v58  ;;  %v11856_v58 = vld [vmem:[%s12813_s30 + $0x30] ss:$24 sps:$4 sm:$0xff]   ;;  %v11862_v60 = vld [vmem:[%s12813_s30] ss:$24 sps:$4 sm:$0xff]   ;;  %v11879_v10 = vld [vmem:[%s12813_s30 + $0x1ec] ss:$24 sps:$4 sm:$0xff]  }
0x26f0   : > { %7786 = vmatpush1.bf16.msra.mxu0 %v11841_v63  ;;  %7674 = vmatprep.subr.bf16.mxu1 %v11846_v13  ;;  %v11859_v19 = vld [vmem:[%s12813_s30 + $0x38] ss:$24 sps:$4 sm:$0xff]   ;;  %v11864_v63 = vld [vmem:[%s12813_s30 + $0x4] ss:$24 sps:$4 sm:$0xff]   ;;  %v11865_v39 = vld [vmem:[%s12813_s30 + $0x8] ss:$24 sps:$4 sm:$0xff]  }
0x26f1   : > { %6952 = vadd.xlane.f32.xlu1 %v6951_v16  ;;  %6956 = vadd.xlane.f32.xlu0 %v6955_v38  ;;  %v11853_v16 = vld [vmem:[%s12813_s30 + $0x68] ss:$24 sps:$4 sm:$0xff]   ;;  %v11861_v38 = vld [vmem:[%s12813_s30 + $0x3c] ss:$24 sps:$4 sm:$0xff]   ;;  %v11871_v13 = vld [vmem:[%s12813_s30 + $0x218] ss:$24 sps:$4 sm:$0xff]  }
0x26f2   : > { %7787 = vmatprep.subr.bf16.mxu0 %v11849_v45  ;;  %v11874_v45 = vld [vmem:[%s12813_s30 + $0x1e0] ss:$24 sps:$4 sm:$0xff]  }
0x26f3   : > { %7675 = vmatpush1.bf16.msra.mxu1 %v11844_v47  ;;  %v11868_v47 = vld [vmem:[%s12813_s30 + $0x210] ss:$24 sps:$4 sm:$0xff]  }
0x26f4   : > { %7788 = vmatpush1.bf16.msra.mxu0 %v11847_v26  ;;  %7676 = vmatprep.subr.bf16.mxu1 %v11852_v54  ;;  %v11876_v26 = vld [vmem:[%s12813_s30 + $0x1e4] ss:$24 sps:$4 sm:$0xff]   ;;  %v11880_v54 = vld [vmem:[%s12813_s30 + $0x1b0] ss:$24 sps:$4 sm:$0xff]  }
0x26f5   : > { %6960 = vadd.xlane.f32.xlu1 %v6959_v11  ;;  %6964 = vadd.xlane.f32.xlu0 %v6963_v1  ;;  %v11870_v11 = vld [vmem:[%s12813_s30 + $0x214] ss:$24 sps:$4 sm:$0xff]  }
0x26f6   : > { %7789 = vmatprep.subr.bf16.mxu0 %v11855_v24  ;;  %v11873_v1 = vld [vmem:[%s12813_s30 + $0x21c] ss:$24 sps:$4 sm:$0xff]  }
0x26f7   : > { %7677 = vmatpush1.bf16.msra.mxu1 %v11850_v57  ;;  %v11882_v24 = vld [vmem:[%s12813_s30 + $0x1b4] ss:$24 sps:$4 sm:$0xff]   ;;  %v11883_v57 = vld [vmem:[%s12813_s30 + $0x1b8] ss:$24 sps:$4 sm:$0xff]  }
0x26f8   : > { %7790 = vmatpush1.bf16.msra.mxu0 %v11853_v16  ;;  %7678 = vmatprep.subr.bf16.mxu1 %v11858_v27  ;;  %v11885_v16 = vld [vmem:[%s12813_s30 + $0x1bc] ss:$24 sps:$4 sm:$0xff]  }
0x26f9   : > { %6968 = vadd.xlane.f32.xlu1 %v6967_v23  ;;  %7791 = vmatprep.subr.bf16.mxu0 %v11861_v38  ;;  %v11877_v23 = vld [vmem:[%s12813_s30 + $0x1e8] ss:$24 sps:$4 sm:$0xff]   ;;  %v11888_v27 = vld [vmem:[%s12813_s30 + $0x184] ss:$24 sps:$4 sm:$0xff]  }
0x26fa   : > { %v11891_v38 = vld [vmem:[%s12813_s30 + $0x18c] ss:$24 sps:$4 sm:$0xff]  }
0x26fb   : > { %7679 = vmatpush1.bf16.msra.mxu1 %v11856_v58  ;;  %v11886_v58 = vld [vmem:[%s12813_s30 + $0x180] ss:$24 sps:$4 sm:$0xff]  }
0x26fc   : > { %7792 = vmatpush1.bf16.msra.mxu0 %v11859_v19  ;;  %7680 = vmatprep.subr.bf16.mxu1 %v11864_v63  ;;  %v11889_v19 = vld [vmem:[%s12813_s30 + $0x188] ss:$24 sps:$4 sm:$0xff]   ;;  %v11894_v63 = vld [vmem:[%s12813_s30 + $0x164] ss:$24 sps:$4 sm:$0xff]  }
0x26fd   : > { %7793 = vmatprep.subr.bf16.mxu0 %v11867_v0 }
0x26ff   : > { %7681 = vmatpush1.bf16.msra.mxu1 %v11862_v60 }
0x2700   : > { %7794 = vmatpush1.bf16.msra.mxu0 %v11865_v39  ;;  %7690 = vmatprep.subr.bf16.mxu1 %v11870_v11 }
0x2701   : > { %7803 = vmatprep.subr.bf16.mxu0 %v11873_v1 }
0x2703   : > { %7691 = vmatpush2.bf16.msra.mxu1 %v11868_v47 }
0x2704   : > { %7804 = vmatpush2.bf16.msra.mxu0 %v11871_v13  ;;  %7692 = vmatprep.subr.bf16.mxu1 %v11876_v26 }
0x2705   : > { %7805 = vmatprep.subr.bf16.mxu0 %v11879_v10 }
0x2707   : > { %7693 = vmatpush2.bf16.msra.mxu1 %v11874_v45 }
0x2708   : > { %7806 = vmatpush2.bf16.msra.mxu0 %v11877_v23  ;;  %7694 = vmatprep.subr.bf16.mxu1 %v11882_v24 }
0x2709   : > { %7807 = vmatprep.subr.bf16.mxu0 %v11885_v16 }
0x270b   : > { %7695 = vmatpush2.bf16.msra.mxu1 %v11880_v54 }
0x270c   : > { %7808 = vmatpush2.bf16.msra.mxu0 %v11883_v57  ;;  %7696 = vmatprep.subr.bf16.mxu1 %v11888_v27 }
0x270d   : > { %7809 = vmatprep.subr.bf16.mxu0 %v11891_v38 }
0x270f   : > { %7697 = vmatpush2.bf16.msra.mxu1 %v11886_v58 }
0x2710   : > { %7810 = vmatpush2.bf16.msra.mxu0 %v11889_v19  ;;  %7892 = vmatprep.subr.bf16.mxu1 %v11894_v63 }
0x2756   : > { %v6829_v0 = vpop.xlane.xlu0 %6828 }
0x2757   : > { %v6866_v60 = vmul.f32 0.0052083335, %v6829_v0 }
0x2759   : > { %v15455_v39 = vsub.f32 %v15227_v4, %v6866_v60  ;;  %v15458_v11 = vsub.f32 %v15224_v22, %v6866_v60 }
0x275a   : > { %v6833_v1 = vpop.xlane.xlu1 %6832 }
0x275b   : > { %v6922_v47 = vmul.f32 %v15455_v39, %v15455_v39  ;;  %v6923_v13 = vmul.f32 %v15458_v11, %v15458_v11  ;;  %v6867_v26 = vmul.f32 0.0052083335, %v6833_v1 }
0x275d   : > { %v15465_v10 = vsub.f32 %v15240_v33, %v6867_v26  ;;  %v15468_v45 = vsub.f32 %v15236_v20, %v6867_v26  ;;  %v6970_v23 = vsel %vm611_vm1, %v6923_v13, 0.0 }
0x275e   : > { %v6837_v54 = vpop.xlane.xlu0 %6836  ;;  %v6971_v24 = vadd.f32 %v6970_v23, %v6922_v47 }
0x275f   : > { %v6924_v57 = vmul.f32 %v15465_v10, %v15465_v10  ;;  %v6925_v16 = vmul.f32 %v15468_v45, %v15468_v45  ;;  %v6868_v27 = vmul.f32 0.0052083335, %v6837_v54 }
0x2760   : > { %6972 = vadd.xlane.f32.xlu0 %v6971_v24 }
0x2761   : > { %v15476_v38 = vsub.f32 %v15253_v41, %v6868_v27  ;;  %v15479_v58 = vsub.f32 %v15250_v59, %v6868_v27  ;;  %v6974_v19 = vsel %vm611_vm1, %v6925_v16, 0.0 }
0x2762   : > { %v6841_v63 = vpop.xlane.xlu1 %6840  ;;  %v6975_v0 = vadd.f32 %v6974_v19, %v6924_v57 }
0x2763   : > { %v6926_v60 = vmul.f32 %v15476_v38, %v15476_v38  ;;  %v6927_v1 = vmul.f32 %v15479_v58, %v15479_v58  ;;  %v6869_v47 = vmul.f32 0.0052083335, %v6841_v63 }
0x2764   : > { %6976 = vadd.xlane.f32.xlu1 %v6975_v0 }
0x2765   : > { %v15487_v13 = vsub.f32 %v15268_v42, %v6869_v47  ;;  %v15490_v26 = vsub.f32 %v15262_v30, %v6869_v47  ;;  %v6978_v23 = vsel %vm611_vm1, %v6927_v1, 0.0 }
0x2766   : > { %v6845_v54 = vpop.xlane.xlu0 %6844  ;;  %v6979_v24 = vadd.f32 %v6978_v23, %v6926_v60 }
0x2767   : > { %v6928_v57 = vmul.f32 %v15487_v13, %v15487_v13  ;;  %v6929_v16 = vmul.f32 %v15490_v26, %v15490_v26  ;;  %v6870_v27 = vmul.f32 0.0052083335, %v6845_v54 }
0x2768   : > { %6980 = vadd.xlane.f32.xlu0 %v6979_v24 }
0x2769   : > { %v15498_v19 = vsub.f32 %v15283_v49, %v6870_v27  ;;  %v15501_v63 = vsub.f32 %v15280_v6, %v6870_v27  ;;  %v6982_v0 = vsel %vm611_vm1, %v6929_v16, 0.0 }
0x276a   : > { %v6849_v47 = vpop.xlane.xlu1 %6848  ;;  %v6983_v1 = vadd.f32 %v6982_v0, %v6928_v57 }
0x276b   : > { %v6930_v60 = vmul.f32 %v15498_v19, %v15498_v19  ;;  %v6931_v23 = vmul.f32 %v15501_v63, %v15501_v63  ;;  %v6871_v30 = vmul.f32 0.0052083335, %v6849_v47 }
0x276c   : > { %6984 = vadd.xlane.f32.xlu1 %v6983_v1 }
0x276d   : > { %v15509_v54 = vsub.f32 %v15304_v25, %v6871_v30  ;;  %v15512_v24 = vsub.f32 %v15294_v48, %v6871_v30  ;;  %v6986_v27 = vsel %vm611_vm1, %v6931_v23, 0.0 }
0x276e   : > { %v6853_v6 = vpop.xlane.xlu0 %6852  ;;  %v6987_v16 = vadd.f32 %v6986_v27, %v6930_v60 }
0x276f   : > { %v6932_v57 = vmul.f32 %v15509_v54, %v15509_v54  ;;  %v6933_v0 = vmul.f32 %v15512_v24, %v15512_v24  ;;  %v6872_v49 = vmul.f32 0.0052083335, %v6853_v6 }
0x2770   : > { %6988 = vadd.xlane.f32.xlu0 %v6987_v16 }
0x2771   : > { %v15520_v47 = vsub.f32 %v15325_v46, %v6872_v49  ;;  %v15523_v1 = vsub.f32 %v15320_v14, %v6872_v49  ;;  %v6990_v30 = vsel %vm611_vm1, %v6933_v0, 0.0 }
0x2772   : > { %v6857_v48 = vpop.xlane.xlu1 %6856  ;;  %v6941_v23 = vpop.xlane.xlu0 %6940  ;;  %v6991_v25 = vadd.f32 %v6990_v30, %v6932_v57 }
0x2773   : > { %v6934_v60 = vmul.f32 %v15520_v47, %v15520_v47  ;;  %v6935_v27 = vmul.f32 %v15523_v1, %v15523_v1  ;;  %v6873_v42 = vmul.f32 0.0052083335, %v6857_v48  ;;  %v7002_v6 = vmul.f32 0.0052083335, %v6941_v23 }
0x2774   : > { %6992 = vadd.xlane.f32.xlu1 %v6991_v25 }
0x2775   : > { %v15531_v16 = vsub.f32 %v15353_v15, %v6873_v42  ;;  %v15534_v49 = vsub.f32 %v15345_v8, %v6873_v42  ;;  %v7018_v14 = vadd.f32 1e-05, %v7002_v6  ;;  %v6994_v0 = vsel %vm611_vm1, %v6935_v27, 0.0 }
0x2776   : > { %v6945_v46 = vpop.xlane.xlu1 %6944  ;;  %v6949_v57 = vpop.xlane.xlu0 %6948  ;;  %v6995_v30 = vadd.f32 %v6994_v0, %v6934_v60 }
0x2777   : > { %v6936_v59 = vmul.f32 %v15531_v16, %v15531_v16  ;;  %v6937_v48 = vmul.f32 %v15534_v49, %v15534_v49  ;;  %12488 = vrsqrt.f32 %v7018_v14  ;;  %v7003_v25 = vmul.f32 0.0052083335, %v6945_v46 }
0x2778   : > { %v7004_v23 = vmul.f32 0.0052083335, %v6949_v57  ;;  %6996 = vadd.xlane.f32.xlu0 %v6995_v30  ;;  %v15543_v30 = vsub.s32 3, %v17181_v34 }
0x2779   : > { %v7019_v15 = vadd.f32 1e-05, %v7003_v25  ;;  %v6998_v42 = vsel %vm611_vm1, %v6937_v48, 0.0 }
0x277a   : > { %v7020_v8 = vadd.f32 1e-05, %v7004_v23  ;;  %v6953_v6 = vpop.xlane.xlu1 %6952  ;;  %v6957_v41 = vpop.xlane.xlu0 %6956  ;;  %v6999_v27 = vadd.f32 %v6998_v42, %v6936_v59  ;;  %17237 = vst [vmem:[#allocation18_spill] sm:$0xff] %v15543_v30 }
0x277b   : > { %12490 = vrsqrt.f32 %v7019_v15  ;;  %v7005_v20 = vmul.f32 0.0052083335, %v6953_v6  ;;  %v7006_v60 = vmul.f32 0.0052083335, %v6957_v41 }
0x277c   : > { %12492 = vrsqrt.f32 %v7020_v8  ;;  %7000 = vadd.xlane.f32.xlu1 %v6999_v27  ;;  %v12557_v8 = vld [vmem:[%s12803_s24 + $0x8] sm:$0xff] }
0x277d   : > { %v7021_v0 = vadd.f32 1e-05, %v7005_v20  ;;  %v7022_v33 = vadd.f32 1e-05, %v7006_v60  ;;  %v15547_v20 = vrot.slane %v15091_v7, %v15543_v30  ;;  %v15551_v23 = vrot.slane %v12557_v8, %v15543_v30 }
0x277e   : > { %v6961_v22 = vpop.xlane.xlu1 %6960  ;;  %v6965_v14 = vpop.xlane.xlu0 %6964 }
0x277f   : > { %12494 = vrsqrt.f32 %v7021_v0  ;;  %v7007_v46 = vmul.f32 0.0052083335, %v6961_v22  ;;  %v7008_v57 = vmul.f32 0.0052083335, %v6965_v14  ;;  %v15554_v22 = vsub.s32 4, %v17181_v34  ;;  %v12558_v0 = vld [vmem:[%s12803_s24] sm:$0xff] }
0x2780   : > { %12496 = vrsqrt.f32 %v7022_v33 }
0x2781   : > { %v7023_v48 = vadd.f32 1e-05, %v7007_v46  ;;  %v7024_v25 = vadd.f32 1e-05, %v7008_v57  ;;  %v15562_v14 = vrot.slane %v12558_v0, %v15554_v22  ;;  %v15565_v46 = vrot.slane %v12557_v8, %v15554_v22 }
0x2782   : > { %v6969_v59 = vpop.xlane.xlu1 %6968 }
0x2783   : > { %12498 = vrsqrt.f32 %v7023_v48  ;;  %v7009_v15 = vmul.f32 0.0052083335, %v6969_v59 }
0x2784   : > { %v12489_v41 = vpop.eup %12488  ;;  %12500 = vrsqrt.f32 %v7024_v25 }
0x2785   : > { %v7050_v33 = vmul.f32 %v12489_v41, %v15310_v52  ;;  %v7025_v42 = vadd.f32 1e-05, %v7009_v15  ;;  %v7051_v6 = vmul.f32 %v12489_v41, %v15277_v62 }
0x2787   : > { %12502 = vrsqrt.f32 %v7025_v42  ;;  %v7090_v60 = vmul.f32 %v15547_v20, %v7050_v33  ;;  %v7091_v7 = vmul.f32 %v15551_v23, %v7051_v6 }
0x2788   : > { %v12491_v27 = vpop.eup %12490 }
0x2789   : > { %v12493_v57 = vpop.eup %12492  ;;  %v7052_v52 = vmul.f32 %v12491_v27, %v15317_v44  ;;  %v7053_v48 = vmul.f32 %v12491_v27, %v15301_v18  ;;  %v7131_v41 = vadd.f32 %v15565_v46, %v7091_v7  ;;  %v7130_v33 = vadd.f32 %v15562_v14, %v7090_v60 }
0x278a   : > { %v7055_v62 = vmul.f32 %v12493_v57, %v15298_v43  ;;  %v7054_v27 = vmul.f32 %v12493_v57, %v15313_v51 }
0x278b   : > { %v7092_v25 = vmul.f32 %v15547_v20, %v7052_v52  ;;  %v7093_v59 = vmul.f32 %v15551_v23, %v7053_v48  ;;  %v11892_v48 = vld [vmem:[%s12813_s30 + $0x160] ss:$24 sps:$4 sm:$0xff]  }
0x278c   : > { %v12495_v15 = vpop.eup %12494  ;;  %v7095_v8 = vmul.f32 %v15551_v23, %v7055_v62 }
0x278d   : > { %v12497_v42 = vpop.eup %12496  ;;  %v7133_v44 = vadd.f32 %v15565_v46, %v7093_v59  ;;  %v7132_v18 = vadd.f32 %v15562_v14, %v7092_v25  ;;  %v7057_v43 = vmul.f32 %v12495_v15, %v15331_v55  ;;  %v7056_v6 = vmul.f32 %v12495_v15, %v15362_v40  ;;  %v11897_v25 = vld [vmem:[%s12813_s30 + $0x134] ss:$24 sps:$4 sm:$0xff]  }
0x278e   : > { %v7059_v60 = vmul.f32 %v12497_v42, %v15342_v50  ;;  %v7135_v40 = vadd.f32 %v15565_v46, %v7095_v8  ;;  %v7094_v50 = vmul.f32 %v15547_v20, %v7054_v27  ;;  %v11895_v8 = vld [vmem:[%s12813_s30 + $0x130] ss:$24 sps:$4 sm:$0xff]  }
0x278f   : > { %v15580_v0 = vpack.c.bf16 %v7133_v44, %v7131_v41  ;;  %v15582_v52 = vpack.c.bf16 %v7132_v18, %v7130_v33  ;;  %v7097_v7 = vmul.f32 %v15551_v23, %v7057_v43  ;;  %v7096_v59 = vmul.f32 %v15547_v20, %v7056_v6  ;;  %v11900_v43 = vld [vmem:[%s12813_s30 + $0x104] ss:$24 sps:$4 sm:$0xff]  }
0x2790   : > { %v12499_v62 = vpop.eup %12498  ;;  %v7099_v41 = vmul.f32 %v15551_v23, %v7059_v60  ;;  %v7058_v60 = vmul.f32 %v12497_v42, %v15365_v36 }
0x2791   : > { %10851 = vmatprep.mubr.msk.bf16.mxu1 %vm611_vm1, %v15580_v0  ;;  %10859 = vmatprep.mubr.msk.bf16.mxu0 %vm611_vm1, %v15580_v0  ;;  %v7137_v51 = vadd.f32 %v15565_v46, %v7097_v7  ;;  %v7061_v55 = vmul.f32 %v12499_v62, %v15374_v32  ;;  %v12501_v57 = vpop.eup %12500  ;;  %v7136_v18 = vadd.f32 %v15562_v14, %v7096_v59 }
0x2792   : > { %7699 = vmatmul.mubr.bf16.vlgmr.msra.gmra.mxu1 %v15582_v52  ;;  %7812 = vmatmul.mubr.bf16.vlgmr.msra.gmra.mxu0 %v15582_v52  ;;  %v7060_v32 = vmul.f32 %v12499_v62, %v15381_v12  ;;  %v7134_v7 = vadd.f32 %v15562_v14, %v7094_v50  ;;  %v7063_v12 = vmul.f32 %v12501_v57, %v15377_v2  ;;  %v11901_v50 = vld [vmem:[%s12813_s30 + $0xd0] ss:$24 sps:$4 sm:$0xff]  }
0x2793   : > { %v15599_v15 = vpack.c.bf16 %v7137_v51, %v7135_v40  ;;  %v7101_v33 = vmul.f32 %v15551_v23, %v7061_v55  ;;  %7893 = vmatpush1.bf16.msra.mxu1 %v11892_v48  ;;  %v7139_v48 = vadd.f32 %v15565_v46, %v7099_v41  ;;  %v11903_v51 = vld [vmem:[%s12813_s30 + $0xd4] ss:$24 sps:$4 sm:$0xff]   ;;  %v7098_v36 = vmul.f32 %v15547_v20, %v7058_v60  ;;  %v11925_v60 = vld [vmem:[%s12823_s23 + $0x70] ss:$8 sps:$4 sm:$0xff]  }
0x2794   : > { %v12503_v44 = vpop.eup %12502  ;;  %7894 = vmatprep.subr.bf16.mxu1 %v11897_v25  ;;  %v15617_v62 = vpack.c.bf16 %v7136_v18, %v7134_v7  ;;  %v7100_v59 = vmul.f32 %v15547_v20, %v7060_v32  ;;  %v11898_v25 = vld [vmem:[%s12813_s30 + $0x100] ss:$24 sps:$4 sm:$0xff]   ;;  %v7103_v2 = vmul.f32 %v15551_v23, %v7063_v12  ;;  %v7062_v18 = vmul.f32 %v12501_v57, %v15384_v28  ;;  %v11909_v7 = vld [vmem:[%s12813_s30 + $0x74] ss:$24 sps:$4 sm:$0xff]   ;;  %v11907_v12 = vld [vmem:[%s12813_s30 + $0x70] ss:$24 sps:$4 sm:$0xff]  }
0x2795   : > { %10852 = vmatprep.mubr.msk.bf16.mxu1 %vm611_vm1, %v15599_v15  ;;  %10860 = vmatprep.mubr.msk.bf16.mxu0 %vm611_vm1, %v15599_v15  ;;  %v7141_v6 = vadd.f32 %v15565_v46, %v7101_v33  ;;  %v7065_v27 = vmul.f32 %v12503_v44, %v15399_v29  ;;  %v7064_v55 = vmul.f32 %v12503_v44, %v15408_v56  ;;  %v11906_v33 = vld [vmem:[%s12813_s30 + $0xa4] ss:$24 sps:$4 sm:$0xff]   ;;  %v11904_v56 = vld [vmem:[%s12813_s30 + $0xa0] ss:$24 sps:$4 sm:$0xff]  }
0x2796   : > { %v7140_v42 = vadd.f32 %v15562_v14, %v7100_v59  ;;  %v7143_v32 = vadd.f32 %v15565_v46, %v7103_v2  ;;  %v11927_v44 = vld [vmem:[%s12823_s23 + $0x74] ss:$8 sps:$4 sm:$0xff]   ;;  %v7102_v28 = vmul.f32 %v15547_v20, %v7062_v18  ;;  %v11933_v57 = vld [vmem:[%s12823_s23 + $0x64] ss:$8 sps:$4 sm:$0xff]   ;;  %v11910_v2 = vld [vmem:[%s12813_s30 + $0x40] ss:$24 sps:$4 sm:$0xff]  }
0x2797   : > { %7895 = vmatpush1.bf16.msra.mxu1 %v11895_v8  ;;  %v15621_v40 = vpack.c.bf16 %v7141_v6, %v7139_v48  ;;  %v7105_v29 = vmul.f32 %v15551_v23, %v7065_v27  ;;  %v7138_v8 = vadd.f32 %v15562_v14, %v7098_v36  ;;  %v7104_v6 = vmul.f32 %v15547_v20, %v7064_v55  ;;  %v11912_v59 = vld [vmem:[%s12813_s30 + $0x44] ss:$24 sps:$4 sm:$0xff]   ;;  %v11934_v55 = vld [vmem:[%s12823_s23 + $0x50] ss:$8 sps:$4 sm:$0xff]  }
0x2798   : > { %7896 = vmatprep.subr.bf16.mxu1 %v11900_v43  ;;  %8725 = vmatprep.subr.bf16.mxu0 %v11927_v44  ;;  %v11948_v18 = vld [vmem:[%s12823_s23 + $0x34] ss:$8 sps:$4 sm:$0xff]   ;;  %v11954_v44 = vld [vmem:[%s12823_s23 + $0x24] ss:$8 sps:$4 sm:$0xff]  }
0x2799   : > { %v7145_v41 = vadd.f32 %v15565_v46, %v7105_v29  ;;  %v15641_v43 = vpack.c.bf16 %v7140_v42, %v7138_v8  ;;  %v7144_v48 = vadd.f32 %v15562_v14, %v7104_v6  ;;  %8726 = vmatpush1.bf16.msra.mxu0 %v11925_v60  ;;  %v7142_v29 = vadd.f32 %v15562_v14, %v7102_v28  ;;  %v11915_v42 = vld [vmem:[%s12813_s30 + $0x14] ss:$24 sps:$4 sm:$0xff]   ;;  %v11940_v8 = vld [vmem:[%s12823_s23 + $0x40] ss:$8 sps:$4 sm:$0xff]   ;;  %v11924_v60 = vld [vmem:[%s12813_s30 + $0x1c4] ss:$24 sps:$4 sm:$0xff]  }
0x279a   : > { %7709 = vmatmul.mubr.bf16.gmra.mxu1 %v15617_v62  ;;  %7822 = vmatmul.mubr.bf16.gmra.mxu0 %v15617_v62  ;;  %v11921_v6 = vld [vmem:[%s12813_s30 + $0x1f4] ss:$24 sps:$4 sm:$0xff]   ;;  %v11952_v28 = vld [vmem:[%s12823_s23 + $0x20] ss:$8 sps:$4 sm:$0xff]  }
0x279b   : > { %10853 = vmatprep.mubr.msk.bf16.mxu1 %vm611_vm1, %v15621_v40  ;;  %10861 = vmatprep.mubr.msk.bf16.mxu0 %vm611_vm1, %v15621_v40  ;;  %v15646_v27 = vpack.c.bf16 %v7145_v41, %v7143_v32  ;;  %v15664_v36 = vpack.c.bf16 %v7144_v48, %v7142_v29  ;;  %v11913_v41 = vld [vmem:[%s12813_s30 + $0x10] ss:$24 sps:$4 sm:$0xff]   ;;  %v11916_v32 = vld [vmem:[%s12813_s30 + $0x220] ss:$24 sps:$4 sm:$0xff]  }
0x279c   : > { %7897 = vmatpush1.bf16.msra.mxu1 %v11898_v25  ;;  %v11931_v25 = vld [vmem:[%s12823_s23 + $0x60] ss:$8 sps:$4 sm:$0xff]   ;;  %8727 = vmatprep.subr.bf16.mxu0 %v11933_v57  ;;  %v11960_v57 = vld [vmem:[%s12823_s23 + $0x14] ss:$8 sps:$4 sm:$0xff]  }
0x279d   : > { %7898 = vmatprep.subr.bf16.mxu1 %v11903_v51  ;;  %v11936_v51 = vld [vmem:[%s12823_s23 + $0x54] ss:$8 sps:$4 sm:$0xff]   ;;  %8728 = vmatpush1.bf16.msra.mxu0 %v11931_v25  ;;  %v11922_v48 = vld [vmem:[%s12813_s30 + $0x1c0] ss:$24 sps:$4 sm:$0xff]   ;;  %v11966_v25 = vld [vmem:[%s12823_s23 + $0x4] ss:$8 sps:$4 sm:$0xff]  }
0x279e   : > { %8729 = vmatprep.subr.bf16.mxu0 %v11936_v51  ;;  %v11928_v29 = vld [vmem:[%s12813_s30 + $0x190] ss:$24 sps:$4 sm:$0xff]   ;;  %v11939_v51 = vld [vmem:[%s12823_s23 + $0x174] ss:$8 sps:$4 sm:$0xff]  }
0x27a0   : > { %7899 = vmatpush1.bf16.msra.mxu1 %v11901_v50  ;;  %v11942_v50 = vld [vmem:[%s12823_s23 + $0x44] ss:$8 sps:$4 sm:$0xff]  }
0x27a1   : > { %7900 = vmatprep.subr.bf16.mxu1 %v11906_v33  ;;  %v11918_v33 = vld [vmem:[%s12813_s30 + $0x224] ss:$24 sps:$4 sm:$0xff]   ;;  %8730 = vmatpush1.bf16.msra.mxu0 %v11934_v55  ;;  %v11970_v55 = vld [vmem:[%s12823_s23 + $0xf0] ss:$8 sps:$4 sm:$0xff]  }
0x27a2   : > { %7719 = vmatmul.mubr.bf16.gmra.mxu1 %v15641_v43  ;;  %7832 = vmatmul.mubr.bf16.gmra.mxu0 %v15641_v43 }
0x27a3   : > { %10854 = vmatprep.mubr.msk.bf16.mxu1 %vm611_vm1, %v15646_v27  ;;  %10862 = vmatprep.mubr.msk.bf16.mxu0 %vm611_vm1, %v15646_v27 }
0x27a4   : > { %7901 = vmatpush1.bf16.msra.mxu1 %v11904_v56  ;;  %8731 = vmatprep.subr.bf16.mxu0 %v11942_v50  ;;  %v11946_v56 = vld [vmem:[%s12823_s23 + $0x30] ss:$8 sps:$4 sm:$0xff]   ;;  %v11978_v50 = vld [vmem:[%s12823_s23 + $0xe4] ss:$8 sps:$4 sm:$0xff]  }
0x27a5   : > { %7902 = vmatprep.subr.bf16.mxu1 %v11909_v7  ;;  %8732 = vmatpush1.bf16.msra.mxu0 %v11940_v8  ;;  %v11919_v7 = vld [vmem:[%s12813_s30 + $0x1f0] ss:$24 sps:$4 sm:$0xff]  }
0x27a6   : > { %8733 = vmatprep.subr.bf16.mxu0 %v11948_v18  ;;  %v11982_v8 = vld [vmem:[%s12823_s23 + $0xd0] ss:$8 sps:$4 sm:$0xff]   ;;  %v11990_v18 = vld [vmem:[%s12823_s23 + $0xc4] ss:$8 sps:$4 sm:$0xff]  }
0x27a8   : > { %7903 = vmatpush1.bf16.msra.mxu1 %v11907_v12  ;;  %v11930_v12 = vld [vmem:[%s12813_s30 + $0x194] ss:$24 sps:$4 sm:$0xff]  }
0x27a9   : > { %7904 = vmatprep.subr.bf16.mxu1 %v11912_v59  ;;  %8734 = vmatpush1.bf16.msra.mxu0 %v11946_v56  ;;  %v11958_v59 = vld [vmem:[%s12823_s23 + $0x10] ss:$8 sps:$4 sm:$0xff]  }
0x27aa   : > { %7729 = vmatmul.mubr.bf16.gmra.mxu1 %v15664_v36  ;;  %7842 = vmatmul.mubr.bf16.gmra.mxu0 %v15664_v36  ;;  %v11994_v56 = vld [vmem:[%s12823_s23 + $0xb0] ss:$8 sps:$4 sm:$0xff]  }
0x27ab   : > { %8735 = vmatprep.subr.bf16.mxu0 %v11954_v44  ;;  %v12002_v44 = vld [vmem:[%s12823_s23 + $0xa4] ss:$8 sps:$4 sm:$0xff]  }
0x27ac   : > { %7905 = vmatpush1.bf16.msra.mxu1 %v11910_v2  ;;  %v11964_v2 = vld [vmem:[%s12823_s23] ss:$8 sps:$4 sm:$0xff]  }
0x27ad   : > { %7906 = vmatprep.subr.bf16.mxu1 %v11915_v42  ;;  %8736 = vmatpush1.bf16.msra.mxu0 %v11952_v28  ;;  %v11972_v42 = vld [vmem:[%s12823_s23 + $0xf4] ss:$8 sps:$4 sm:$0xff]   ;;  %v12006_v28 = vld [vmem:[%s12823_s23 + $0x90] ss:$8 sps:$4 sm:$0xff]  }
0x27ae   : > { %8737 = vmatprep.subr.bf16.mxu0 %v11960_v57  ;;  %v12014_v57 = vld [vmem:[%s12823_s23 + $0x84] ss:$8 sps:$4 sm:$0xff]  }
0x27b0   : > { %7907 = vmatpush1.bf16.msra.mxu1 %v11913_v41  ;;  %v11976_v41 = vld [vmem:[%s12823_s23 + $0xe0] ss:$8 sps:$4 sm:$0xff]  }
0x27b1   : > { %7916 = vmatprep.subr.bf16.mxu1 %v11918_v33  ;;  %8738 = vmatpush1.bf16.msra.mxu0 %v11958_v59  ;;  %v11984_v33 = vld [vmem:[%s12823_s23 + $0xd4] ss:$8 sps:$4 sm:$0xff]  }
0x27b2   : > { %8739 = vmatprep.subr.bf16.mxu0 %v11966_v25 }
0x27b4   : > { %7917 = vmatpush2.bf16.msra.mxu1 %v11916_v32  ;;  %v11988_v32 = vld [vmem:[%s12823_s23 + $0xc0] ss:$8 sps:$4 sm:$0xff]  }
0x27b5   : > { %7918 = vmatprep.subr.bf16.mxu1 %v11921_v6  ;;  %8740 = vmatpush1.bf16.msra.mxu0 %v11964_v2  ;;  %v11996_v6 = vld [vmem:[%s12823_s23 + $0xb4] ss:$8 sps:$4 sm:$0xff]  }
0x27b6   : > { %8741 = vmatprep.subr.bf16.mxu0 %v11972_v42 }
0x27b8   : > { %7919 = vmatpush2.bf16.msra.mxu1 %v11919_v7  ;;  %v12000_v7 = vld [vmem:[%s12823_s23 + $0xa0] ss:$8 sps:$4 sm:$0xff]  }
0x27b9   : > { %7920 = vmatprep.subr.bf16.mxu1 %v11924_v60  ;;  %8742 = vmatpush2.bf16.msra.mxu0 %v11970_v55  ;;  %v12008_v60 = vld [vmem:[%s12823_s23 + $0x94] ss:$8 sps:$4 sm:$0xff]  }
0x27ba   : > { %8743 = vmatprep.subr.bf16.mxu0 %v11978_v50 }
0x27bc   : > { %7921 = vmatpush2.bf16.msra.mxu1 %v11922_v48  ;;  %v12012_v48 = vld [vmem:[%s12823_s23 + $0x80] ss:$8 sps:$4 sm:$0xff]  }
0x27bd   : > { %7922 = vmatprep.subr.bf16.mxu1 %v11930_v12  ;;  %8744 = vmatpush2.bf16.msra.mxu0 %v11976_v41 }
0x27be   : > { %8745 = vmatprep.subr.bf16.mxu0 %v11984_v33 }
0x27c0   : > { %7923 = vmatpush2.bf16.msra.mxu1 %v11928_v29 }
0x27c1   : > { %8838 = vmatprep.subr.bf16.mxu1 %v11939_v51  ;;  %8746 = vmatpush2.bf16.msra.mxu0 %v11982_v8 }
0x27c2   : > { %8747 = vmatprep.subr.bf16.mxu0 %v11990_v18 }
0x27c5   : > { %8748 = vmatpush2.bf16.msra.mxu0 %v11988_v32 }
0x27c6   : > { %8749 = vmatprep.subr.bf16.mxu0 %v11996_v6 }
0x27c9   : > { %8750 = vmatpush2.bf16.msra.mxu0 %v11994_v56 }
0x27ca   : > { %8751 = vmatprep.subr.bf16.mxu0 %v12002_v44 }
0x27cd   : > { %8752 = vmatpush2.bf16.msra.mxu0 %v12000_v7 }
0x27ce   : > { %8753 = vmatprep.subr.bf16.mxu0 %v12008_v60 }
0x27d1   : > { %8754 = vmatpush2.bf16.msra.mxu0 %v12006_v28 }
0x27d2   : > { %8755 = vmatprep.subr.bf16.mxu0 %v12014_v57 }
0x27d5   : > { %8756 = vmatpush2.bf16.msra.mxu0 %v12012_v48 }
0x27e9   : > { %v6973_v12 = vpop.xlane.xlu0 %6972 }
0x27ea   : > { %v7010_v59 = vmul.f32 0.0052083335, %v6973_v12 }
0x27ec   : > { %v7026_v25 = vadd.f32 1e-05, %v7010_v59 }
0x27ed   : > { %v6977_v29 = vpop.xlane.xlu1 %6976 }
0x27ee   : > { %12504 = vrsqrt.f32 %v7026_v25  ;;  %v7011_v51 = vmul.f32 0.0052083335, %v6977_v29 }
0x27f0   : > { %v7027_v2 = vadd.f32 1e-05, %v7011_v51 }
0x27f1   : > { %v6981_v42 = vpop.xlane.xlu0 %6980 }
0x27f2   : > { %12506 = vrsqrt.f32 %v7027_v2  ;;  %v7012_v55 = vmul.f32 0.0052083335, %v6981_v42  ;;  %v12026_v2 = vld [vmem:[%s12823_s23 + $0x274] ss:$8 sps:$4 sm:$0xff]  }
0x27f3   : > { %8951 = vmatprep.subr.bf16.mxu0 %v12026_v2 }
0x27f4   : > { %v7028_v50 = vadd.f32 1e-05, %v7012_v55 }
0x27f5   : > { %v6985_v41 = vpop.xlane.xlu1 %6984 }
0x27f6   : > { %12508 = vrsqrt.f32 %v7028_v50  ;;  %v7013_v33 = vmul.f32 0.0052083335, %v6985_v41 }
0x27f8   : > { %v7029_v8 = vadd.f32 1e-05, %v7013_v33 }
0x27f9   : > { %v6989_v18 = vpop.xlane.xlu0 %6988 }
0x27fa   : > { %12510 = vrsqrt.f32 %v7029_v8  ;;  %v7014_v32 = vmul.f32 0.0052083335, %v6989_v18 }
0x27fb   : > { %v12505_v6 = vpop.eup %12504 }
0x27fc   : > { %v7030_v56 = vadd.f32 1e-05, %v7014_v32  ;;  %v7067_v44 = vmul.f32 %v12505_v6, %v15458_v11  ;;  %v7066_v7 = vmul.f32 %v12505_v6, %v15455_v39 }
0x27fd   : > { %v6993_v60 = vpop.xlane.xlu1 %6992 }
0x27fe   : > { %12512 = vrsqrt.f32 %v7030_v56  ;;  %v7015_v28 = vmul.f32 0.0052083335, %v6993_v60  ;;  %v7107_v48 = vmul.f32 %v15551_v23, %v7067_v44  ;;  %v7106_v12 = vmul.f32 %v15547_v20, %v7066_v7 }
0x27ff   : > { %v12507_v57 = vpop.eup %12506 }
0x2800   : > { %v7031_v59 = vadd.f32 1e-05, %v7015_v28  ;;  %v7069_v25 = vmul.f32 %v12507_v57, %v15468_v45  ;;  %v7068_v29 = vmul.f32 %v12507_v57, %v15465_v10  ;;  %v7147_v50 = vadd.f32 %v15565_v46, %v7107_v48 }
0x2801   : > { %v6997_v51 = vpop.xlane.xlu0 %6996  ;;  %v7146_v41 = vadd.f32 %v15562_v14, %v7106_v12 }
0x2802   : > { %12514 = vrsqrt.f32 %v7031_v59  ;;  %v7016_v42 = vmul.f32 0.0052083335, %v6997_v51  ;;  %v7109_v11 = vmul.f32 %v15551_v23, %v7069_v25  ;;  %v7108_v39 = vmul.f32 %v15547_v20, %v7068_v29 }
0x2803   : > { %v12509_v55 = vpop.eup %12508 }
0x2804   : > { %v7032_v33 = vadd.f32 1e-05, %v7016_v42  ;;  %v7149_v8 = vadd.f32 %v15565_v46, %v7109_v11  ;;  %v7148_v45 = vadd.f32 %v15562_v14, %v7108_v39  ;;  %v7071_v10 = vmul.f32 %v12509_v55, %v15479_v58 }
0x2805   : > { %v7001_v18 = vpop.xlane.xlu1 %7000  ;;  %v7070_v32 = vmul.f32 %v12509_v55, %v15476_v38 }
0x2806   : > { %12516 = vrsqrt.f32 %v7032_v33  ;;  %v7017_v6 = vmul.f32 0.0052083335, %v7001_v18  ;;  %v15722_v56 = vpack.c.bf16 %v7149_v8, %v7147_v50  ;;  %v15724_v44 = vpack.c.bf16 %v7148_v45, %v7146_v41 }
0x2807   : > { %v12511_v7 = vpop.eup %12510  ;;  %v7111_v60 = vmul.f32 %v15551_v23, %v7071_v10  ;;  %v7110_v28 = vmul.f32 %v15547_v20, %v7070_v32 }
0x2808   : > { %v7033_v57 = vadd.f32 1e-05, %v7017_v6  ;;  %10855 = vmatprep.mubr.msk.bf16.mxu1 %vm611_vm1, %v15722_v56  ;;  %10863 = vmatprep.mubr.msk.bf16.mxu0 %vm611_vm1, %v15722_v56  ;;  %v7073_v38 = vmul.f32 %v12511_v7, %v15490_v26  ;;  %v7072_v58 = vmul.f32 %v12511_v7, %v15487_v13 }
0x2809   : > { %7739 = vmatmul.mubr.bf16.gmra.mxu1 %v15724_v44  ;;  %7852 = vmatmul.mubr.bf16.gmra.mxu0 %v15724_v44  ;;  %v7151_v25 = vadd.f32 %v15565_v46, %v7111_v60  ;;  %v7150_v29 = vadd.f32 %v15562_v14, %v7110_v28 }
0x280a   : > { %12518 = vrsqrt.f32 %v7033_v57  ;;  %v7113_v48 = vmul.f32 %v15551_v23, %v7073_v38  ;;  %v7112_v12 = vmul.f32 %v15547_v20, %v7072_v58 }
0x280b   : > { %v12513_v59 = vpop.eup %12512 }
0x280c   : > { %v7153_v51 = vadd.f32 %v15565_v46, %v7113_v48  ;;  %v7152_v26 = vadd.f32 %v15562_v14, %v7112_v12  ;;  %v7075_v13 = vmul.f32 %v12513_v59, %v15501_v63  ;;  %v7074_v2 = vmul.f32 %v12513_v59, %v15498_v19 }
0x280e   : > { %v15744_v42 = vpack.c.bf16 %v7153_v51, %v7151_v25  ;;  %v15746_v11 = vpack.c.bf16 %v7152_v26, %v7150_v29  ;;  %v7115_v55 = vmul.f32 %v15551_v23, %v7075_v13  ;;  %v7114_v50 = vmul.f32 %v15547_v20, %v7074_v2  ;;  %v11949_v29 = vld [vmem:[%s12823_s23 + $0x150] ss:$8 sps:$4 sm:$0xff]   ;;  %v11969_v26 = vld [vmem:[%s12823_s23 + $0x124] ss:$8 sps:$4 sm:$0xff]  }
0x280f   : > { %v12515_v39 = vpop.eup %12514  ;;  %v11961_v51 = vld [vmem:[%s12823_s23 + $0x130] ss:$8 sps:$4 sm:$0xff]   ;;  %v11981_v2 = vld [vmem:[%s12823_s23 + $0x104] ss:$8 sps:$4 sm:$0xff]  }
0x2810   : > { %10856 = vmatprep.mubr.msk.bf16.mxu1 %vm611_vm1, %v15744_v42  ;;  %10864 = vmatprep.mubr.msk.bf16.mxu0 %vm611_vm1, %v15744_v42  ;;  %v7077_v41 = vmul.f32 %v12515_v39, %v15512_v24  ;;  %v7076_v63 = vmul.f32 %v12515_v39, %v15509_v54  ;;  %v7155_v45 = vadd.f32 %v15565_v46, %v7115_v55  ;;  %v11973_v13 = vld [vmem:[%s12823_s23 + $0x110] ss:$8 sps:$4 sm:$0xff]   ;;  %v11993_v55 = vld [vmem:[%s12823_s23 + $0x1e4] ss:$8 sps:$4 sm:$0xff]  }
0x2811   : > { %7749 = vmatmul.mubr.bf16.gmra.mxu1 %v15746_v11  ;;  %7862 = vmatmul.mubr.bf16.gmra.mxu0 %v15746_v11  ;;  %v7154_v10 = vadd.f32 %v15562_v14, %v7114_v50  ;;  %v11985_v39 = vld [vmem:[%s12823_s23 + $0x1f0] ss:$8 sps:$4 sm:$0xff]  }
0x2812   : > { %v7117_v19 = vmul.f32 %v15551_v23, %v7077_v41  ;;  %v7116_v33 = vmul.f32 %v15547_v20, %v7076_v63  ;;  %v11997_v50 = vld [vmem:[%s12823_s23 + $0x1d0] ss:$8 sps:$4 sm:$0xff]   ;;  %v12005_v41 = vld [vmem:[%s12823_s23 + $0x1c4] ss:$8 sps:$4 sm:$0xff]  }
0x2813   : > { %v12517_v8 = vpop.eup %12516  ;;  %v15837_v63 = vld [vmem:[%s12828_s1] sm:$0x3f] }
0x2814   : > { %v7157_v18 = vadd.f32 %v15565_v46, %v7117_v19  ;;  %v7156_v32 = vadd.f32 %v15562_v14, %v7116_v33  ;;  %v7079_v24 = vmul.f32 %v12517_v8, %v15523_v1  ;;  %v7078_v54 = vmul.f32 %v12517_v8, %v15520_v47  ;;  %v17238_v33 = vld [vmem:[#allocation10_spill] sm:$0xff] }
0x2815   : > { %v15844_v8 = vrot.slane %v15837_v63, %v17238_v33 }
0x2816   : > { %v15766_v6 = vpack.c.bf16 %v7157_v18, %v7155_v45  ;;  %v15768_v7 = vpack.c.bf16 %v7156_v32, %v7154_v10  ;;  %v7119_v28 = vmul.f32 %v15551_v23, %v7079_v24  ;;  %v7118_v1 = vmul.f32 %v15547_v20, %v7078_v54  ;;  %v12011_v45 = vld [vmem:[%s12823_s23 + $0x1b4] ss:$8 sps:$4 sm:$0xff]   ;;  %v17239_v10 = vld [vmem:[#allocation9_spill] sm:$0xff] }
0x2817   : > { %v12519_v60 = vpop.eup %12518  ;;  %v15853_v24 = vrot.slane %v15837_v63, %v15543_v30 }
0x2818   : > { %10857 = vmatprep.mubr.msk.bf16.mxu1 %vm611_vm1, %v15766_v6  ;;  %10865 = vmatprep.mubr.msk.bf16.mxu0 %vm611_vm1, %v15766_v6  ;;  %v7081_v57 = vmul.f32 %v12519_v60, %v15534_v49  ;;  %v7080_v38 = vmul.f32 %v12519_v60, %v15531_v16  ;;  %v7159_v48 = vadd.f32 %v15565_v46, %v7119_v28  ;;  %v12009_v60 = vld [vmem:[%s12823_s23 + $0x1b0] ss:$8 sps:$4 sm:$0xff]  }
0x2819   : > { %7759 = vmatmul.mubr.bf16.gmra.mxu1 %v15768_v7  ;;  %7872 = vmatmul.mubr.bf16.gmra.mxu0 %v15768_v7  ;;  %v7158_v49 = vadd.f32 %v15562_v14, %v7118_v1 }
0x281a   : > { %v7121_v47 = vmul.f32 %v15551_v23, %v7081_v57  ;;  %v7120_v58 = vmul.f32 %v15547_v20, %v7080_v38  ;;  %v11937_v20 = vld [vmem:[%s12823_s23 + $0x170] ss:$8 sps:$4 sm:$0xff]   ;;  %v11945_v23 = vld [vmem:[%s12823_s23 + $0x164] ss:$8 sps:$4 sm:$0xff]  }
0x281b   : > { %v12017_v38 = vld [vmem:[%s12823_s23 + $0x1a4] ss:$8 sps:$4 sm:$0xff]  }
0x281c   : > { %v7161_v12 = vadd.f32 %v15565_v46, %v7121_v47  ;;  %v7160_v16 = vadd.f32 %v15562_v14, %v7120_v58  ;;  %v11943_v14 = vld [vmem:[%s12823_s23 + $0x160] ss:$8 sps:$4 sm:$0xff]   ;;  %v11951_v46 = vld [vmem:[%s12823_s23 + $0x154] ss:$8 sps:$4 sm:$0xff]  }
0x281e   : > { %v15786_v59 = vpack.c.bf16 %v7161_v12, %v7159_v48  ;;  %v15788_v25 = vpack.c.bf16 %v7160_v16, %v7158_v49 }
0x2820   : > { %10858 = vmatprep.mubr.msk.bf16.mxu1 %vm611_vm1, %v15786_v59  ;;  %10866 = vmatprep.mubr.msk.bf16.mxu0 %vm611_vm1, %v15786_v59 }
0x2821   : > { %7769 = vmatmul.mubr.bf16.gmra.mxu1 %v15788_v25  ;;  %7882 = vmatmul.mubr.bf16.gmra.mxu0 %v15788_v25 }
0x2822   : > { %10867 = vmatprep.mubr.msk.bf16.mxu1 %vm611_vm1, %v15580_v0  ;;  %v11957_v0 = vld [vmem:[%s12823_s23 + $0x144] ss:$8 sps:$4 sm:$0xff]  }
0x2829   : > { %7925 = vmatmul.mubr.bf16.vlgmr.msra.gmra.mxu1 %v15582_v52  ;;  %v11955_v52 = vld [vmem:[%s12823_s23 + $0x140] ss:$8 sps:$4 sm:$0xff]  }
0x282a   : > { %10868 = vmatprep.mubr.msk.bf16.mxu1 %vm611_vm1, %v15599_v15  ;;  %8839 = vmatpush1.bf16.msra.mxu1 %v11937_v20  ;;  %v11963_v15 = vld [vmem:[%s12823_s23 + $0x134] ss:$8 sps:$4 sm:$0xff]  }
0x282b   : > { %8840 = vmatprep.subr.bf16.mxu1 %v11945_v23 }
0x282e   : > { %8841 = vmatpush1.bf16.msra.mxu1 %v11943_v14  ;;  %v12015_v14 = vld [vmem:[%s12823_s23 + $0x1a0] ss:$8 sps:$4 sm:$0xff]  }
0x282f   : > { %8842 = vmatprep.subr.bf16.mxu1 %v11951_v46 }
0x2831   : > { %7935 = vmatmul.mubr.bf16.gmra.mxu1 %v15617_v62  ;;  %v11967_v62 = vld [vmem:[%s12823_s23 + $0x120] ss:$8 sps:$4 sm:$0xff]  }
0x2832   : > { %10869 = vmatprep.mubr.msk.bf16.mxu1 %vm611_vm1, %v15621_v40  ;;  %8843 = vmatpush1.bf16.msra.mxu1 %v11949_v29  ;;  %v11975_v40 = vld [vmem:[%s12823_s23 + $0x114] ss:$8 sps:$4 sm:$0xff]  }
0x2833   : > { %8844 = vmatprep.subr.bf16.mxu1 %v11957_v0  ;;  %v12020_v0 = vld [vmem:[%s12823_s23 + $0x194] ss:$8 sps:$4 sm:$0xff]  }
0x2836   : > { %8845 = vmatpush1.bf16.msra.mxu1 %v11955_v52 }
0x2837   : > { %8846 = vmatprep.subr.bf16.mxu1 %v11963_v15 }
0x2839   : > { %7945 = vmatmul.mubr.bf16.gmra.mxu1 %v15641_v43  ;;  %v11979_v43 = vld [vmem:[%s12823_s23 + $0x100] ss:$8 sps:$4 sm:$0xff]  }
0x283a   : > { %10870 = vmatprep.mubr.msk.bf16.mxu1 %vm611_vm1, %v15646_v27  ;;  %8847 = vmatpush1.bf16.msra.mxu1 %v11961_v51  ;;  %v11987_v27 = vld [vmem:[%s12823_s23 + $0x1f4] ss:$8 sps:$4 sm:$0xff]  }
0x283b   : > { %8848 = vmatprep.subr.bf16.mxu1 %v11969_v26  ;;  %v15872_v26 = vrot.slane %v15837_v63, %v15053_v9 }
0x283e   : > { %8849 = vmatpush1.bf16.msra.mxu1 %v11967_v62 }
0x283f   : > { %8850 = vmatprep.subr.bf16.mxu1 %v11975_v40  ;;  %v12024_v40 = vld [vmem:[%s12823_s23 + $0x270] ss:$8 sps:$4 sm:$0xff]  }
0x2841   : > { %7955 = vmatmul.mubr.bf16.gmra.mxu1 %v15664_v36  ;;  %v11991_v36 = vld [vmem:[%s12823_s23 + $0x1e0] ss:$8 sps:$4 sm:$0xff]  }
0x2842   : > { %10871 = vmatprep.mubr.msk.bf16.mxu1 %vm611_vm1, %v15722_v56  ;;  %8851 = vmatpush1.bf16.msra.mxu1 %v11973_v13  ;;  %v11999_v56 = vld [vmem:[%s12823_s23 + $0x1d4] ss:$8 sps:$4 sm:$0xff]  }
0x2843   : > { %8852 = vmatprep.subr.bf16.mxu1 %v11981_v2 }
0x2846   : > { %8853 = vmatpush1.bf16.msra.mxu1 %v11979_v43 }
0x2847   : > { %8854 = vmatprep.subr.bf16.mxu1 %v11987_v27  ;;  %v12018_v27 = vld [vmem:[%s12823_s23 + $0x190] ss:$8 sps:$4 sm:$0xff]  }
0x2849   : > { %7965 = vmatmul.mubr.bf16.gmra.mxu1 %v15724_v44 }
0x284a   : > { %10872 = vmatprep.mubr.msk.bf16.mxu1 %vm611_vm1, %v15744_v42  ;;  %8855 = vmatpush2.bf16.msra.mxu1 %v11985_v39  ;;  %v12003_v42 = vld [vmem:[%s12823_s23 + $0x1c0] ss:$8 sps:$4 sm:$0xff]  }
0x284b   : > { %8856 = vmatprep.subr.bf16.mxu1 %v11993_v55 }
0x284e   : > { %8857 = vmatpush2.bf16.msra.mxu1 %v11991_v36 }
0x284f   : > { %8858 = vmatprep.subr.bf16.mxu1 %v11999_v56  ;;  %v12023_v56 = vld [vmem:[%s12823_s23 + $0x184] ss:$8 sps:$4 sm:$0xff]  }
0x2851   : > { %7975 = vmatmul.mubr.bf16.gmra.mxu1 %v15746_v11  ;;  %v15849_v11 = vrot.slane %v15837_v63, %v17239_v10 }
0x2852   : > { %v7700_v19 = vpop.f32.mrf.mxu1  ;;  %v7813_v44 = vpop.f32.mrf.mxu0  ;;  %10873 = vmatprep.mubr.msk.bf16.mxu1 %vm611_vm1, %v15766_v6  ;;  %8859 = vmatpush2.bf16.msra.mxu1 %v11997_v50  ;;  %v12029_v50 = vld [vmem:[%s12823_s23 + $0x264] ss:$8 sps:$4 sm:$0xff]  }
0x2853   : > { %8860 = vmatprep.subr.bf16.mxu1 %v12005_v41  ;;  %v7701_v1 = vadd.f32 %v7700_v19, %v15849_v11 }
0x2854   : > { %v7702_v18 = vpop.f32.mrf.mxu1  ;;  %v7815_v32 = vpop.f32.mrf.mxu0 }
0x2855   : > { %v7703_v28 = vadd.f32 %v7702_v18, %v15844_v8  ;;  %v7816_v49 = vadd.f32 %v7815_v32, %v15853_v24  ;;  %v8005_v52 = vmax.f32 %v7701_v1, 0.0  ;;  %v12027_v32 = vld [vmem:[%s12823_s23 + $0x260] ss:$8 sps:$4 sm:$0xff]  }
0x2856   : > { %v7704_v54 = vpop.f32.mrf.mxu1  ;;  %v7817_v6 = vpop.f32.mrf.mxu0  ;;  %8861 = vmatpush2.bf16.msra.mxu1 %v12003_v42 }
0x2857   : > { %v7705_v57 = vadd.f32 %v7704_v54, %v15849_v11  ;;  %8862 = vmatprep.subr.bf16.mxu1 %v12011_v45  ;;  %v8006_v46 = vmax.f32 %v7703_v28, 0.0  ;;  %v7818_v39 = vadd.f32 %v7817_v6, %v15872_v26  ;;  %v7814_v45 = vadd.f32 %v7813_v44, %v15872_v26 }
0x2858   : > { %v7706_v47 = vpop.f32.mrf.mxu1  ;;  %v7819_v58 = vpop.f32.mrf.mxu0 }
0x2859   : > { %v7707_v48 = vadd.f32 %v7706_v47, %v15844_v8  ;;  %v7820_v12 = vadd.f32 %v7819_v58, %v15853_v24  ;;  %7985 = vmatmul.mubr.bf16.gmra.mxu1 %v15768_v7  ;;  %v8011_v16 = vmax.f32 %v7705_v57, 0.0  ;;  %v12021_v57 = vld [vmem:[%s12823_s23 + $0x180] ss:$8 sps:$4 sm:$0xff]   ;;  %v8013_v44 = vmax.f32 %v7818_v39, 0.0 }
0x285a   : > { %v7710_v20 = vpop.f32.mrf.mxu1  ;;  %v15864_v23 = vpop.f32.mrf.mxu0  ;;  %10874 = vmatprep.mubr.msk.bf16.mxu1 %vm611_vm1, %v15786_v59  ;;  %8863 = vmatpush2.bf16.msra.mxu1 %v12009_v60  ;;  %v8008_v59 = vmax.f32 %v7816_v49, 0.0  ;;  %v8007_v49 = vmax.f32 %v7814_v45, 0.0 }
0x285b   : > { %v8012_v29 = vmax.f32 %v7707_v48, 0.0  ;;  %8864 = vmatprep.subr.bf16.mxu1 %v12017_v38  ;;  %v8014_v15 = vmax.f32 %v7820_v12, 0.0  ;;  %v8101_v13 = vpack.c.bf16 %v8011_v16, %v8005_v52  ;;  %v7711_v19 = vadd.f32 %v7710_v20, %v15849_v11  ;;  %v12032_v38 = vld [vmem:[%s12823_s23 + $0x254] ss:$8 sps:$4 sm:$0xff]   ;;  %v12030_v20 = vld [vmem:[%s12823_s23 + $0x250] ss:$8 sps:$4 sm:$0xff]  }
0x285c   : > { %v7712_v7 = vpop.f32.mrf.mxu1  ;;  %v7825_v51 = vpop.f32.mrf.mxu0  ;;  %v12035_v52 = vld [vmem:[%s12823_s23 + $0x244] ss:$8 sps:$4 sm:$0xff]  }
0x285d   : > { %v8102_v62 = vpack.c.bf16 %v8012_v29, %v8006_v46  ;;  %v7713_v55 = vadd.f32 %v7712_v7, %v15844_v8  ;;  %v8104_v41 = vpack.c.bf16 %v8014_v15, %v8008_v59  ;;  %v7826_v54 = vadd.f32 %v7825_v51, %v15853_v24 }
0x285e   : > { %v7714_v2 = vpop.f32.mrf.mxu1  ;;  %v7827_v43 = vpop.f32.mrf.mxu0  ;;  %8865 = vmatpush2.bf16.msra.mxu1 %v12015_v14  ;;  %v8103_v15 = vpack.c.bf16 %v8013_v44, %v8007_v49 }
0x285f   : > { %v7715_v36 = vadd.f32 %v7714_v2, %v15849_v11  ;;  %8757 = vmatprep.mubr.bf16.mxu0 %v8102_v62  ;;  %8866 = vmatprep.subr.bf16.mxu1 %v12020_v0  ;;  %v8018_v1 = vmax.f32 %v7713_v55, 0.0  ;;  %v8020_v14 = vmax.f32 %v7826_v54, 0.0  ;;  %v7828_v7 = vadd.f32 %v7827_v43, %v15872_v26  ;;  %v12033_v43 = vld [vmem:[%s12823_s23 + $0x240] ss:$8 sps:$4 sm:$0xff]  }
0x2860   : > { %v7716_v42 = vpop.f32.mrf.mxu1  ;;  %v7829_v33 = vpop.f32.mrf.mxu0  ;;  %8758 = vmatmul.mubr.bf16.vlgmr.msra.gmra.mxu0 %v8101_v13 }
0x2861   : > { %v7717_v10 = vadd.f32 %v7716_v42, %v15844_v8  ;;  %v7830_v18 = vadd.f32 %v7829_v33, %v15853_v24  ;;  %7995 = vmatmul.mubr.bf16.gmra.mxu1 %v15788_v25  ;;  %8952 = vmatpush1.bf16.msra.mxu0 %v12024_v40  ;;  %v8023_v6 = vmax.f32 %v7715_v36, 0.0  ;;  %v8017_v25 = vmax.f32 %v7711_v19, 0.0  ;;  %v12038_v19 = vld [vmem:[%s12823_s23 + $0x234] ss:$8 sps:$4 sm:$0xff]  }
0x2862   : > { %v7720_v60 = vpop.f32.mrf.mxu1  ;;  %v15888_v28 = vpop.f32.mrf.mxu0  ;;  %8867 = vmatpush2.bf16.msra.mxu1 %v12018_v27  ;;  %8870 = vmatprep.mubr.bf16.mxu1 %v8104_v41  ;;  %v7824_v27 = vadd.f32 %v15864_v23, %v15872_v26  ;;  %v8025_v42 = vmax.f32 %v7828_v7, 0.0 }
0x2863   : > { %v8024_v47 = vmax.f32 %v7717_v10, 0.0  ;;  %8868 = vmatprep.subr.bf16.mxu1 %v12023_v56  ;;  %8953 = vmatprep.subr.bf16.mxu0 %v12029_v50  ;;  %v8026_v58 = vmax.f32 %v7830_v18, 0.0  ;;  %v8107_v46 = vpack.c.bf16 %v8023_v6, %v8017_v25  ;;  %v7721_v59 = vadd.f32 %v7720_v60, %v15849_v11  ;;  %v12036_v60 = vld [vmem:[%s12823_s23 + $0x230] ss:$8 sps:$4 sm:$0xff]  }
0x2864   : > { %v7722_v48 = vpop.f32.mrf.mxu1  ;;  %v7835_v12 = vpop.f32.mrf.mxu0  ;;  %v8019_v54 = vmax.f32 %v7824_v27, 0.0 }
0x2865   : > { %v8108_v16 = vpack.c.bf16 %v8024_v47, %v8018_v1  ;;  %8954 = vmatpush1.bf16.msra.mxu0 %v12027_v32  ;;  %v7723_v51 = vadd.f32 %v7722_v48, %v15844_v8  ;;  %v8110_v40 = vpack.c.bf16 %v8026_v58, %v8020_v14  ;;  %v7836_v36 = vadd.f32 %v7835_v12, %v15853_v24  ;;  %v12041_v47 = vld [vmem:[%s12823_s23 + $0x224] ss:$8 sps:$4 sm:$0xff]  }
0x2866   : > { %v7724_v29 = vpop.f32.mrf.mxu1  ;;  %v7837_v0 = vpop.f32.mrf.mxu0  ;;  %8869 = vmatpush2.bf16.msra.mxu1 %v12021_v57  ;;  %8955 = vmatprep.subr.bf16.mxu0 %v12032_v38  ;;  %v8029_v45 = vmax.f32 %v7721_v59, 0.0  ;;  %v8109_v25 = vpack.c.bf16 %v8025_v42, %v8019_v54  ;;  %v12051_v54 = vld [vmem:[%s12823_s23 + $0x2e0] ss:$8 sps:$4 sm:$0xff]  }
0x2867   : > { %v7725_v62 = vadd.f32 %v7724_v29, %v15849_v11  ;;  %8767 = vmatprep.mubr.bf16.mxu0 %v8108_v16  ;;  %v8030_v33 = vmax.f32 %v7723_v51, 0.0  ;;  %v8032_v57 = vmax.f32 %v7836_v36, 0.0  ;;  %v7838_v58 = vadd.f32 %v7837_v0, %v15872_v26  ;;  %v12039_v0 = vld [vmem:[%s12823_s23 + $0x220] ss:$8 sps:$4 sm:$0xff]   ;;  %v12044_v51 = vld [vmem:[%s12823_s23 + $0x214] ss:$8 sps:$4 sm:$0xff]  }
0x2868   : > { %v7726_v13 = vpop.f32.mrf.mxu1  ;;  %v7839_v2 = vpop.f32.mrf.mxu0  ;;  %8768 = vmatmul.mubr.bf16.gmra.mxu0 %v8107_v46  ;;  %v7834_v46 = vadd.f32 %v15888_v28, %v15872_v26  ;;  %v12047_v36 = vld [vmem:[%s12823_s23 + $0x204] ss:$8 sps:$4 sm:$0xff]  }
0x2869   : > { %v7727_v39 = vadd.f32 %v7726_v13, %v15844_v8  ;;  %v7840_v55 = vadd.f32 %v7839_v2, %v15853_v24  ;;  %8871 = vmatmul.mubr.bf16.vlgmr.msra.gmra.mxu1 %v8103_v15  ;;  %8956 = vmatpush1.bf16.msra.mxu0 %v12030_v20  ;;  %v8035_v56 = vmax.f32 %v7725_v62, 0.0  ;;  %v8037_v62 = vmax.f32 %v7838_v58, 0.0  ;;  %v12068_v58 = vld [vmem:[%s12823_s23 + $0x294] ss:$8 sps:$4 sm:$0xff]  }
0x286a   : > { %v7730_v50 = vpop.f32.mrf.mxu1  ;;  %v7843_v41 = vpop.f32.mrf.mxu0  ;;  %8880 = vmatprep.mubr.bf16.mxu1 %v8110_v40  ;;  %8957 = vmatprep.subr.bf16.mxu0 %v12035_v52  ;;  %v8031_v2 = vmax.f32 %v7834_v46, 0.0 }
0x286b   : > { %v8036_v23 = vmax.f32 %v7727_v39, 0.0  ;;  %v8038_v10 = vmax.f32 %v7840_v55, 0.0  ;;  %v8113_v38 = vpack.c.bf16 %v8035_v56, %v8029_v45  ;;  %v7731_v16 = vadd.f32 %v7730_v50, %v15849_v11  ;;  %v12042_v39 = vld [vmem:[%s12823_s23 + $0x210] ss:$8 sps:$4 sm:$0xff]  }
0x286c   : > { %v7732_v18 = vpop.f32.mrf.mxu1  ;;  %v7845_v32 = vpop.f32.mrf.mxu0  ;;  %v8115_v56 = vpack.c.bf16 %v8037_v62, %v8031_v2  ;;  %v7844_v42 = vadd.f32 %v7843_v41, %v15872_v26 }
0x286d   : > { %v8114_v6 = vpack.c.bf16 %v8036_v23, %v8030_v33  ;;  %8958 = vmatpush1.bf16.msra.mxu0 %v12033_v43  ;;  %v7733_v48 = vadd.f32 %v7732_v18, %v15844_v8  ;;  %v8116_v49 = vpack.c.bf16 %v8038_v10, %v8032_v57  ;;  %v7846_v15 = vadd.f32 %v7845_v32, %v15853_v24  ;;  %v12045_v33 = vld [vmem:[%s12823_s23 + $0x200] ss:$8 sps:$4 sm:$0xff]   ;;  %v12050_v23 = vld [vmem:[%s12823_s23 + $0x2f4] ss:$8 sps:$4 sm:$0xff]   ;;  %v12048_v18 = vld [vmem:[%s12823_s23 + $0x2f0] ss:$8 sps:$4 sm:$0xff]  }
0x286e   : > { %v7734_v44 = vpop.f32.mrf.mxu1  ;;  %v7847_v1 = vpop.f32.mrf.mxu0  ;;  %8959 = vmatprep.subr.bf16.mxu0 %v12038_v19  ;;  %v8041_v13 = vmax.f32 %v7731_v16, 0.0  ;;  %v8043_v10 = vmax.f32 %v7844_v42, 0.0  ;;  %v12053_v32 = vld [vmem:[%s12823_s23 + $0x2e4] ss:$8 sps:$4 sm:$0xff]  }
0x286f   : > { %v7735_v12 = vadd.f32 %v7734_v44, %v15849_v11  ;;  %8777 = vmatprep.mubr.bf16.mxu0 %v8114_v6  ;;  %v8042_v40 = vmax.f32 %v7733_v48, 0.0  ;;  %v8044_v55 = vmax.f32 %v7846_v15, 0.0  ;;  %v7848_v50 = vadd.f32 %v7847_v1, %v15872_v26  ;;  %v12056_v6 = vld [vmem:[%s12823_s23 + $0x2d4] ss:$8 sps:$4 sm:$0xff]   ;;  %v12059_v57 = vld [vmem:[%s12823_s23 + $0x2c4] ss:$8 sps:$4 sm:$0xff]  }
0x2870   : > { %v7736_v20 = vpop.f32.mrf.mxu1  ;;  %v7849_v14 = vpop.f32.mrf.mxu0  ;;  %8778 = vmatmul.mubr.bf16.gmra.mxu0 %v8113_v38  ;;  %v12057_v38 = vld [vmem:[%s12823_s23 + $0x2c0] ss:$8 sps:$4 sm:$0xff]   ;;  %v12062_v44 = vld [vmem:[%s12823_s23 + $0x2b4] ss:$8 sps:$4 sm:$0xff]   ;;  %v12060_v1 = vld [vmem:[%s12823_s23 + $0x2b0] ss:$8 sps:$4 sm:$0xff]  }
0x2871   : > { %v7737_v29 = vadd.f32 %v7736_v20, %v15844_v8  ;;  %v7850_v52 = vadd.f32 %v7849_v14, %v15853_v24  ;;  %8881 = vmatmul.mubr.bf16.gmra.mxu1 %v8109_v25  ;;  %8960 = vmatpush1.bf16.msra.mxu0 %v12036_v60  ;;  %v8047_v7 = vmax.f32 %v7735_v12, 0.0  ;;  %v8049_v45 = vmax.f32 %v7848_v50, 0.0  ;;  %v12054_v60 = vld [vmem:[%s12823_s23 + $0x2d0] ss:$8 sps:$4 sm:$0xff]   ;;  %v12063_v25 = vld [vmem:[%s12823_s23 + $0x2a0] ss:$8 sps:$4 sm:$0xff]  }
0x2872   : > { %8890 = vmatprep.mubr.bf16.mxu1 %v8116_v49  ;;  %8961 = vmatprep.subr.bf16.mxu0 %v12041_v47  ;;  %v12065_v47 = vld [vmem:[%s12823_s23 + $0x2a4] ss:$8 sps:$4 sm:$0xff]   ;;  %v12066_v48 = vld [vmem:[%s12823_s23 + $0x290] ss:$8 sps:$4 sm:$0xff]   ;;  %v12069_v49 = vld [vmem:[%s12823_s23 + $0x280] ss:$8 sps:$4 sm:$0xff]  }
0x2873   : > { %v8048_v59 = vmax.f32 %v7737_v29, 0.0  ;;  %v8050_v28 = vmax.f32 %v7850_v52, 0.0  ;;  %v8119_v43 = vpack.c.bf16 %v8047_v7, %v8041_v13  ;;  %v8121_v41 = vpack.c.bf16 %v8049_v45, %v8043_v10  ;;  %v12071_v12 = vld [vmem:[%s12823_s23 + $0x284] ss:$8 sps:$4 sm:$0xff]  }
0x2875   : > { %v8120_v27 = vpack.c.bf16 %v8048_v59, %v8042_v40  ;;  %8962 = vmatpush1.bf16.msra.mxu0 %v12039_v0  ;;  %v8122_v19 = vpack.c.bf16 %v8050_v28, %v8044_v55 }
0x2876   : > { %8963 = vmatprep.subr.bf16.mxu0 %v12044_v51 }
0x2877   : > { %8787 = vmatprep.mubr.bf16.mxu0 %v8120_v27 }
0x2878   : > { %8788 = vmatmul.mubr.bf16.gmra.mxu0 %v8119_v43 }
0x2879   : > { %8891 = vmatmul.mubr.bf16.gmra.mxu1 %v8115_v56  ;;  %8964 = vmatpush1.bf16.msra.mxu0 %v12042_v39 }
0x287a   : > { %8900 = vmatprep.mubr.bf16.mxu1 %v8122_v19  ;;  %8965 = vmatprep.subr.bf16.mxu0 %v12047_v36 }
0x287d   : > { %8966 = vmatpush1.bf16.msra.mxu0 %v12045_v33 }
0x287e   : > { %8967 = vmatprep.subr.bf16.mxu0 %v12050_v23 }
0x2881   : > { %8901 = vmatmul.mubr.bf16.gmra.mxu1 %v8121_v41  ;;  %8968 = vmatpush2.bf16.msra.mxu0 %v12048_v18 }
0x2882   : > { %8969 = vmatprep.subr.bf16.mxu0 %v12053_v32 }
0x2885   : > { %8970 = vmatpush2.bf16.msra.mxu0 %v12051_v54 }
0x2886   : > { %8971 = vmatprep.subr.bf16.mxu0 %v12056_v6 }
0x2889   : > { %8972 = vmatpush2.bf16.msra.mxu0 %v12054_v60 }
0x288a   : > { %8973 = vmatprep.subr.bf16.mxu0 %v12059_v57 }
0x288d   : > { %8974 = vmatpush2.bf16.msra.mxu0 %v12057_v38 }
0x288e   : > { %8975 = vmatprep.subr.bf16.mxu0 %v12062_v44 }
0x2891   : > { %8976 = vmatpush2.bf16.msra.mxu0 %v12060_v1 }
0x2892   : > { %8977 = vmatprep.subr.bf16.mxu0 %v12065_v47 }
0x2895   : > { %8978 = vmatpush2.bf16.msra.mxu0 %v12063_v25 }
0x2896   : > { %8979 = vmatprep.subr.bf16.mxu0 %v12068_v58 }
0x2899   : > { %8980 = vmatpush2.bf16.msra.mxu0 %v12066_v48 }
0x289a   : > { %8981 = vmatprep.subr.bf16.mxu0 %v12071_v12 }
0x289d   : > { %8982 = vmatpush2.bf16.msra.mxu0 %v12069_v49 }
0x28c9   : > { %v7740_v16 = vpop.f32.mrf.mxu1  ;;  %v7853_v20 = vpop.f32.mrf.mxu0 }
0x28ca   : > { %v7741_v62 = vadd.f32 %v7740_v16, %v15849_v11  ;;  %v7854_v40 = vadd.f32 %v7853_v20, %v15872_v26 }
0x28cb   : > { %v7742_v14 = vpop.f32.mrf.mxu1  ;;  %v7855_v46 = vpop.f32.mrf.mxu0 }
0x28cc   : > { %v7743_v0 = vadd.f32 %v7742_v14, %v15844_v8  ;;  %v7856_v15 = vadd.f32 %v7855_v46, %v15853_v24  ;;  %v8053_v42 = vmax.f32 %v7741_v62, 0.0  ;;  %v8055_v33 = vmax.f32 %v7854_v40, 0.0 }
0x28cd   : > { %v7744_v29 = vpop.f32.mrf.mxu1  ;;  %v7857_v52 = vpop.f32.mrf.mxu0 }
0x28ce   : > { %v7745_v7 = vadd.f32 %v7744_v29, %v15849_v11  ;;  %v7858_v51 = vadd.f32 %v7857_v52, %v15872_v26  ;;  %v8054_v36 = vmax.f32 %v7743_v0, 0.0  ;;  %v8056_v56 = vmax.f32 %v7856_v15, 0.0 }
0x28cf   : > { %v7746_v59 = vpop.f32.mrf.mxu1  ;;  %v7859_v13 = vpop.f32.mrf.mxu0 }
0x28d0   : > { %v7747_v28 = vadd.f32 %v7746_v59, %v15844_v8  ;;  %v7860_v2 = vadd.f32 %v7859_v13, %v15853_v24  ;;  %v8059_v27 = vmax.f32 %v7745_v7, 0.0  ;;  %v8061_v39 = vmax.f32 %v7858_v51, 0.0 }
0x28d1   : > { %v7750_v55 = vpop.f32.mrf.mxu1  ;;  %v7863_v43 = vpop.f32.mrf.mxu0 }
0x28d2   : > { %v8060_v50 = vmax.f32 %v7747_v28, 0.0  ;;  %v8062_v19 = vmax.f32 %v7860_v2, 0.0  ;;  %v8125_v32 = vpack.c.bf16 %v8059_v27, %v8053_v42  ;;  %v8127_v41 = vpack.c.bf16 %v8061_v39, %v8055_v33 }
0x28d3   : > { %v7752_v23 = vpop.f32.mrf.mxu1  ;;  %v7865_v45 = vpop.f32.mrf.mxu0  ;;  %v7751_v1 = vadd.f32 %v7750_v55, %v15849_v11  ;;  %v7864_v47 = vadd.f32 %v7863_v43, %v15872_v26 }
0x28d4   : > { %v8126_v10 = vpack.c.bf16 %v8060_v50, %v8054_v36  ;;  %v8128_v18 = vpack.c.bf16 %v8062_v19, %v8056_v56  ;;  %v7753_v54 = vadd.f32 %v7752_v23, %v15844_v8  ;;  %v7866_v57 = vadd.f32 %v7865_v45, %v15853_v24 }
0x28d5   : > { %v7754_v6 = vpop.f32.mrf.mxu1  ;;  %v7867_v60 = vpop.f32.mrf.mxu0  ;;  %v8065_v15 = vmax.f32 %v7751_v1, 0.0  ;;  %v8067_v7 = vmax.f32 %v7864_v47, 0.0 }
0x28d6   : > { %v7755_v38 = vadd.f32 %v7754_v6, %v15849_v11  ;;  %v7868_v44 = vadd.f32 %v7867_v60, %v15872_v26  ;;  %8797 = vmatprep.mubr.bf16.mxu0 %v8126_v10  ;;  %8910 = vmatprep.mubr.bf16.mxu1 %v8128_v18  ;;  %v8066_v46 = vmax.f32 %v7753_v54, 0.0  ;;  %v8068_v29 = vmax.f32 %v7866_v57, 0.0 }
0x28d7   : > { %v7756_v25 = vpop.f32.mrf.mxu1  ;;  %v7869_v58 = vpop.f32.mrf.mxu0  ;;  %8798 = vmatmul.mubr.bf16.gmra.mxu0 %v8125_v32  ;;  %8911 = vmatmul.mubr.bf16.gmra.mxu1 %v8127_v41 }
0x28d8   : > { %v7757_v48 = vadd.f32 %v7756_v25, %v15844_v8  ;;  %v7870_v12 = vadd.f32 %v7869_v58, %v15853_v24  ;;  %v8071_v49 = vmax.f32 %v7755_v38, 0.0  ;;  %v8073_v16 = vmax.f32 %v7868_v44, 0.0 }
0x28d9   : > { %v7760_v20 = vpop.f32.mrf.mxu1  ;;  %v7873_v14 = vpop.f32.mrf.mxu0 }
0x28da   : > { %v8072_v52 = vmax.f32 %v7757_v48, 0.0  ;;  %v8074_v0 = vmax.f32 %v7870_v12, 0.0  ;;  %v8131_v13 = vpack.c.bf16 %v8071_v49, %v8065_v15  ;;  %v8133_v28 = vpack.c.bf16 %v8073_v16, %v8067_v7 }
0x28db   : > { %v7762_v51 = vpop.f32.mrf.mxu1  ;;  %v7875_v62 = vpop.f32.mrf.mxu0  ;;  %v7761_v56 = vadd.f32 %v7760_v20, %v15849_v11  ;;  %v7874_v50 = vadd.f32 %v7873_v14, %v15872_v26  ;;  %v15965_v20 = vsub.s32 5, %v17181_v34 }
0x28dc   : > { %v8132_v40 = vpack.c.bf16 %v8072_v52, %v8066_v46  ;;  %v8134_v59 = vpack.c.bf16 %v8074_v0, %v8068_v29  ;;  %v7763_v2 = vadd.f32 %v7762_v51, %v15844_v8  ;;  %v7876_v55 = vadd.f32 %v7875_v62, %v15853_v24 }
0x28dd   : > { %v7764_v27 = vpop.f32.mrf.mxu1  ;;  %v7877_v39 = vpop.f32.mrf.mxu0  ;;  %v8077_v57 = vmax.f32 %v7761_v56, 0.0  ;;  %v8079_v38 = vmax.f32 %v7874_v50, 0.0 }
0x28de   : > { %v7765_v43 = vadd.f32 %v7764_v27, %v15849_v11  ;;  %v7878_v36 = vadd.f32 %v7877_v39, %v15872_v26  ;;  %8807 = vmatprep.mubr.bf16.mxu0 %v8132_v40  ;;  %8920 = vmatprep.mubr.bf16.mxu1 %v8134_v59  ;;  %v8078_v41 = vmax.f32 %v7763_v2, 0.0  ;;  %v8080_v54 = vmax.f32 %v7876_v55, 0.0 }
0x28df   : > { %v7766_v19 = vpop.f32.mrf.mxu1  ;;  %v7879_v42 = vpop.f32.mrf.mxu0  ;;  %8808 = vmatmul.mubr.bf16.gmra.mxu0 %v8131_v13  ;;  %8921 = vmatmul.mubr.bf16.gmra.mxu1 %v8133_v28  ;;  %v15976_v13 = vrot.slane %v15837_v63, %v15965_v20  ;;  %v15980_v55 = vrot.slane %v15837_v63, %v15554_v22 }
0x28e0   : > { %v7767_v33 = vadd.f32 %v7766_v19, %v15844_v8  ;;  %v7880_v23 = vadd.f32 %v7879_v42, %v15853_v24  ;;  %v8083_v45 = vmax.f32 %v7765_v43, 0.0  ;;  %v8085_v10 = vmax.f32 %v7878_v36, 0.0 }
0x28e1   : > { %v7770_v18 = vpop.f32.mrf.mxu1  ;;  %v7883_v32 = vpop.f32.mrf.mxu0 }
0x28e2   : > { %v8084_v6 = vmax.f32 %v7767_v33, 0.0  ;;  %v8086_v60 = vmax.f32 %v7880_v23, 0.0  ;;  %v8137_v58 = vpack.c.bf16 %v8083_v45, %v8077_v57  ;;  %v8139_v48 = vpack.c.bf16 %v8085_v10, %v8079_v38 }
0x28e3   : > { %v7772_v44 = vpop.f32.mrf.mxu1  ;;  %v7885_v1 = vpop.f32.mrf.mxu0  ;;  %v7771_v52 = vadd.f32 %v7770_v18, %v15849_v11  ;;  %v7884_v0 = vadd.f32 %v7883_v32, %v15872_v26 }
0x28e4   : > { %v8138_v47 = vpack.c.bf16 %v8084_v6, %v8078_v41  ;;  %v8140_v25 = vpack.c.bf16 %v8086_v60, %v8080_v54  ;;  %v7773_v12 = vadd.f32 %v7772_v44, %v15844_v8  ;;  %v7886_v14 = vadd.f32 %v7885_v1, %v15853_v24 }
0x28e5   : > { %v7774_v49 = vpop.f32.mrf.mxu1  ;;  %v7887_v16 = vpop.f32.mrf.mxu0  ;;  %v8091_v39 = vmax.f32 %v7884_v0, 0.0 }
0x28e6   : > { %v7775_v46 = vadd.f32 %v7774_v49, %v15849_v11  ;;  %v7888_v29 = vadd.f32 %v7887_v16, %v15872_v26  ;;  %8817 = vmatprep.mubr.bf16.mxu0 %v8138_v47  ;;  %8930 = vmatprep.mubr.bf16.mxu1 %v8140_v25  ;;  %v8090_v28 = vmax.f32 %v7773_v12, 0.0  ;;  %v8092_v2 = vmax.f32 %v7886_v14, 0.0 }
0x28e7   : > { %v7776_v15 = vpop.f32.mrf.mxu1  ;;  %v7889_v7 = vpop.f32.mrf.mxu0  ;;  %8818 = vmatmul.mubr.bf16.gmra.mxu0 %v8137_v58  ;;  %8931 = vmatmul.mubr.bf16.gmra.mxu1 %v8139_v48  ;;  %v8089_v26 = vmax.f32 %v7771_v52, 0.0 }
0x28e8   : > { %v7777_v51 = vadd.f32 %v7776_v15, %v15844_v8  ;;  %v7890_v34 = vadd.f32 %v7889_v7, %v15853_v24  ;;  %v8095_v62 = vmax.f32 %v7775_v46, 0.0  ;;  %v8097_v40 = vmax.f32 %v7888_v29, 0.0 }
0x28e9   : > { %v7926_v59 = vpop.f32.mrf.mxu1 }
0x28ea   : > { %v8096_v11 = vmax.f32 %v7777_v51, 0.0  ;;  %v8098_v27 = vmax.f32 %v7890_v34, 0.0  ;;  %v8143_v36 = vpack.c.bf16 %v8095_v62, %v8089_v26  ;;  %v8145_v56 = vpack.c.bf16 %v8097_v40, %v8091_v39 }
0x28eb   : > { %v7928_v8 = vpop.f32.mrf.mxu1  ;;  %v7927_v33 = vadd.f32 %v7926_v59, %v15980_v55 }
0x28ec   : > { %v8144_v43 = vpack.c.bf16 %v8096_v11, %v8090_v28  ;;  %v8146_v24 = vpack.c.bf16 %v8098_v27, %v8092_v2  ;;  %v7929_v19 = vadd.f32 %v7928_v8, %v15976_v13 }
0x28ed   : > { %v7930_v50 = vpop.f32.mrf.mxu1  ;;  %v8009_v32 = vmax.f32 %v7927_v33, 0.0 }
0x28ee   : > { %v7931_v42 = vadd.f32 %v7930_v50, %v15980_v55  ;;  %8827 = vmatprep.mubr.bf16.mxu0 %v8144_v43  ;;  %8940 = vmatprep.mubr.bf16.mxu1 %v8146_v24  ;;  %v8010_v10 = vmax.f32 %v7929_v19, 0.0 }
0x28ef   : > { %v7932_v23 = vpop.f32.mrf.mxu1  ;;  %8828 = vmatmul.mubr.bf16.gmra.mxu0 %v8143_v36  ;;  %8941 = vmatmul.mubr.bf16.gmra.mxu1 %v8145_v56 }
0x28f0   : > { %v7933_v22 = vadd.f32 %v7932_v23, %v15976_v13  ;;  %v8015_v63 = vmax.f32 %v7931_v42, 0.0 }
0x28f1   : > { %v7936_v45 = vpop.f32.mrf.mxu1 }
0x28f2   : > { %v8016_v18 = vmax.f32 %v7933_v22, 0.0  ;;  %v8105_v6 = vpack.c.bf16 %v8015_v63, %v8009_v32  ;;  %v7937_v44 = vadd.f32 %v7936_v45, %v15980_v55 }
0x28f3   : > { %v7938_v41 = vpop.f32.mrf.mxu1 }
0x28f4   : > { %v8106_v54 = vpack.c.bf16 %v8016_v18, %v8010_v10  ;;  %v7939_v57 = vadd.f32 %v7938_v41, %v15976_v13  ;;  %v8021_v49 = vmax.f32 %v7937_v44, 0.0 }
0x28f5   : > { %v7940_v60 = vpop.f32.mrf.mxu1 }
0x28f6   : > { %v7941_v38 = vadd.f32 %v7940_v60, %v15980_v55  ;;  %8983 = vmatprep.mubr.bf16.mxu0 %v8106_v54  ;;  %v8022_v48 = vmax.f32 %v7939_v57, 0.0 }
0x28f7   : > { %v7942_v1 = vpop.f32.mrf.mxu1  ;;  %8984 = vmatmul.mubr.bf16.vlgmr.msra.gmra.mxu0 %v8105_v6 }
0x28f8   : > { %v7943_v47 = vadd.f32 %v7942_v1, %v15976_v13  ;;  %v8027_v25 = vmax.f32 %v7941_v38, 0.0 }
0x28f9   : > { %v7946_v58 = vpop.f32.mrf.mxu1 }
0x28fa   : > { %v8028_v12 = vmax.f32 %v7943_v47, 0.0  ;;  %v8111_v46 = vpack.c.bf16 %v8027_v25, %v8021_v49  ;;  %v7947_v15 = vadd.f32 %v7946_v58, %v15980_v55 }
0x28fb   : > { %v7948_v16 = vpop.f32.mrf.mxu1 }
0x28fc   : > { %v8112_v14 = vpack.c.bf16 %v8028_v12, %v8022_v48  ;;  %v7949_v52 = vadd.f32 %v7948_v16, %v15976_v13  ;;  %v8033_v28 = vmax.f32 %v7947_v15, 0.0 }
0x28fd   : > { %v7950_v29 = vpop.f32.mrf.mxu1 }
0x28fe   : > { %v7951_v0 = vadd.f32 %v7950_v29, %v15980_v55  ;;  %8993 = vmatprep.mubr.bf16.mxu0 %v8112_v14  ;;  %v8034_v40 = vmax.f32 %v7949_v52, 0.0 }
0x28ff   : > { %v7952_v7 = vpop.f32.mrf.mxu1  ;;  %8994 = vmatmul.mubr.bf16.gmra.mxu0 %v8111_v46 }
0x2900   : > { %v7953_v51 = vadd.f32 %v7952_v7, %v15976_v13  ;;  %v8039_v34 = vmax.f32 %v7951_v0, 0.0 }
0x2901   : > { %v7956_v62 = vpop.f32.mrf.mxu1 }
0x2902   : > { %v8040_v59 = vmax.f32 %v7953_v51, 0.0  ;;  %v8117_v27 = vpack.c.bf16 %v8039_v34, %v8033_v28  ;;  %v7957_v43 = vadd.f32 %v7956_v62, %v15980_v55 }
0x2903   : > { %v7958_v2 = vpop.f32.mrf.mxu1 }
0x2904   : > { %v8118_v11 = vpack.c.bf16 %v8040_v59, %v8034_v40  ;;  %v7959_v39 = vadd.f32 %v7958_v2, %v15976_v13  ;;  %v8045_v33 = vmax.f32 %v7957_v43, 0.0 }
0x2905   : > { %v7960_v26 = vpop.f32.mrf.mxu1 }
0x2906   : > { %v7961_v8 = vadd.f32 %v7960_v26, %v15980_v55  ;;  %9003 = vmatprep.mubr.bf16.mxu0 %v8118_v11  ;;  %v8046_v19 = vmax.f32 %v7959_v39, 0.0 }
0x2907   : > { %v7962_v24 = vpop.f32.mrf.mxu1  ;;  %9004 = vmatmul.mubr.bf16.gmra.mxu0 %v8117_v27 }
0x2908   : > { %v7963_v36 = vadd.f32 %v7962_v24, %v15976_v13  ;;  %v8051_v56 = vmax.f32 %v7961_v8, 0.0 }
0x2909   : > { %v7966_v50 = vpop.f32.mrf.mxu1 }
0x290a   : > { %v8052_v42 = vmax.f32 %v7963_v36, 0.0  ;;  %v8123_v63 = vpack.c.bf16 %v8051_v56, %v8045_v33  ;;  %v7967_v32 = vadd.f32 %v7966_v50, %v15980_v55 }
0x290b   : > { %v7968_v23 = vpop.f32.mrf.mxu1 }
0x290c   : > { %v8124_v22 = vpack.c.bf16 %v8052_v42, %v8046_v19  ;;  %v7969_v10 = vadd.f32 %v7968_v23, %v15976_v13  ;;  %v8057_v44 = vmax.f32 %v7967_v32, 0.0 }
0x290d   : > { %v7970_v45 = vpop.f32.mrf.mxu1 }
0x290e   : > { %v7971_v18 = vadd.f32 %v7970_v45, %v15980_v55  ;;  %9013 = vmatprep.mubr.bf16.mxu0 %v8124_v22  ;;  %v8058_v57 = vmax.f32 %v7969_v10, 0.0 }
0x290f   : > { %v7972_v41 = vpop.f32.mrf.mxu1  ;;  %9014 = vmatmul.mubr.bf16.gmra.mxu0 %v8123_v63 }
0x2910   : > { %v7973_v54 = vadd.f32 %v7972_v41, %v15976_v13  ;;  %v8063_v6 = vmax.f32 %v7971_v18, 0.0 }
0x2911   : > { %v7976_v60 = vpop.f32.mrf.mxu1 }
0x2912   : > { %v8064_v38 = vmax.f32 %v7973_v54, 0.0  ;;  %v8129_v25 = vpack.c.bf16 %v8063_v6, %v8057_v44  ;;  %v7977_v49 = vadd.f32 %v7976_v60, %v15980_v55 }
0x2913   : > { %v7978_v1 = vpop.f32.mrf.mxu1 }
0x2914   : > { %v8130_v47 = vpack.c.bf16 %v8064_v38, %v8058_v57  ;;  %v7979_v48 = vadd.f32 %v7978_v1, %v15976_v13  ;;  %v8069_v15 = vmax.f32 %v7977_v49, 0.0 }
0x2915   : > { %v7980_v58 = vpop.f32.mrf.mxu1 }
0x2916   : > { %v7981_v12 = vadd.f32 %v7980_v58, %v15980_v55  ;;  %9023 = vmatprep.mubr.bf16.mxu0 %v8130_v47  ;;  %v8070_v52 = vmax.f32 %v7979_v48, 0.0 }
0x2917   : > { %v7982_v16 = vpop.f32.mrf.mxu1  ;;  %9024 = vmatmul.mubr.bf16.gmra.mxu0 %v8129_v25 }
0x2918   : > { %v7983_v14 = vadd.f32 %v7982_v16, %v15976_v13  ;;  %v8075_v46 = vmax.f32 %v7981_v12, 0.0 }
0x2919   : > { %v7986_v29 = vpop.f32.mrf.mxu1 }
0x291a   : > { %v8076_v0 = vmax.f32 %v7983_v14, 0.0  ;;  %v8135_v34 = vpack.c.bf16 %v8075_v46, %v8069_v15  ;;  %v7987_v28 = vadd.f32 %v7986_v29, %v15980_v55 }
0x291b   : > { %v7988_v7 = vpop.f32.mrf.mxu1 }
0x291c   : > { %v8136_v51 = vpack.c.bf16 %v8076_v0, %v8070_v52  ;;  %v7989_v40 = vadd.f32 %v7988_v7, %v15976_v13  ;;  %v8081_v43 = vmax.f32 %v7987_v28, 0.0 }
0x291d   : > { %v7990_v62 = vpop.f32.mrf.mxu1 }
0x291e   : > { %v7991_v59 = vadd.f32 %v7990_v62, %v15980_v55  ;;  %9033 = vmatprep.mubr.bf16.mxu0 %v8136_v51  ;;  %v8082_v39 = vmax.f32 %v7989_v40, 0.0 }
0x291f   : > { %v7992_v2 = vpop.f32.mrf.mxu1  ;;  %9034 = vmatmul.mubr.bf16.gmra.mxu0 %v8135_v34 }
0x2920   : > { %v7993_v11 = vadd.f32 %v7992_v2, %v15976_v13  ;;  %v8087_v27 = vmax.f32 %v7991_v59, 0.0  ;;  %v8759_v54 = vpop.f32.mrf.mxu0 }
0x2921   : > { %v7996_v26 = vpop.f32.mrf.mxu1 }
0x2922   : > { %v8088_v8 = vmax.f32 %v7993_v11, 0.0  ;;  %v8141_v56 = vpack.c.bf16 %v8087_v27, %v8081_v43  ;;  %v7997_v33 = vadd.f32 %v7996_v26, %v15980_v55  ;;  %v8761_v6 = vpop.f32.mrf.mxu0 }
0x2923   : > { %v7998_v24 = vpop.f32.mrf.mxu1 }
0x2924   : > { %v8142_v36 = vpack.c.bf16 %v8088_v8, %v8082_v39  ;;  %v7999_v19 = vadd.f32 %v7998_v24, %v15976_v13  ;;  %v8093_v18 = vmax.f32 %v7997_v33, 0.0  ;;  %v8763_v60 = vpop.f32.mrf.mxu0 }
0x2925   : > { %v8000_v50 = vpop.f32.mrf.mxu1 }
0x2926   : > { %v8001_v42 = vadd.f32 %v8000_v50, %v15980_v55  ;;  %9043 = vmatprep.mubr.bf16.mxu0 %v8142_v36  ;;  %v8094_v45 = vmax.f32 %v7999_v19, 0.0  ;;  %v8765_v57 = vpop.f32.mrf.mxu0 }
0x2927   : > { %v8002_v23 = vpop.f32.mrf.mxu1  ;;  %9044 = vmatmul.mubr.bf16.gmra.mxu0 %v8141_v56 }
0x2928   : > { %v8003_v22 = vadd.f32 %v8002_v23, %v15976_v13  ;;  %v8099_v63 = vmax.f32 %v8001_v42, 0.0  ;;  %v16014_v38 = vpop.f32.mrf.mxu0 }
0x2929   : > { %v8872_v13 = vpop.f32.mrf.mxu1 }
0x292a   : > { %v8100_v10 = vmax.f32 %v8003_v22, 0.0  ;;  %v8147_v41 = vpack.c.bf16 %v8099_v63, %v8093_v18  ;;  %v16016_v44 = vpop.f32.mrf.mxu0 }
0x292b   : > { %v8874_v25 = vpop.f32.mrf.mxu1 }
0x292c   : > { %v8148_v32 = vpack.c.bf16 %v8100_v10, %v8094_v45  ;;  %v16018_v55 = vpop.f32.mrf.mxu0  ;;  %v8875_v30 = vadd.f32 %v8874_v25, %v8761_v6 }
0x292d   : > { %v8876_v48 = vpop.f32.mrf.mxu1 }
0x292e   : > { %9053 = vmatprep.mubr.bf16.mxu0 %v8148_v32  ;;  %v16020_v1 = vpop.f32.mrf.mxu0  ;;  %v8873_v32 = vadd.f32 %v8872_v13, %v8759_v54 }
0x292f   : > { %9054 = vmatmul.mubr.bf16.gmra.mxu0 %v8147_v41  ;;  %v8878_v49 = vpop.f32.mrf.mxu1 }
0x2930   : > { %v16022_v47 = vpop.f32.mrf.mxu0  ;;  %v8879_v54 = vadd.f32 %v8878_v49, %v8765_v57 }
0x2931   : > { %v8882_v14 = vpop.f32.mrf.mxu1 }
0x2932   : > { %v16024_v58 = vpop.f32.mrf.mxu0 }
0x2933   : > { %v8884_v29 = vpop.f32.mrf.mxu1 }
0x2934   : > { %v16026_v12 = vpop.f32.mrf.mxu0  ;;  %v8885_v57 = vadd.f32 %v8884_v29, %v16016_v44  ;;  %v17250_v44 = vld [vmem:[#allocation16_spill] sm:$0xff] }
0x2935   : > { %v8886_v0 = vpop.f32.mrf.mxu1 }
0x2936   : > { %v16028_v16 = vpop.f32.mrf.mxu0 }
0x2937   : > { %v16036_v7 = vpop.f32.mrf.mxu1 }
0x2938   : > { %v16030_v46 = vpop.f32.mrf.mxu0 }
0x2939   : > { %v16040_v34 = vpop.f32.mrf.mxu1 }
0x293a   : > { %v16032_v52 = vpop.f32.mrf.mxu0 }
0x293b   : > { %v16046_v59 = vpop.f32.mrf.mxu1 }
0x293c   : > { %v16034_v15 = vpop.f32.mrf.mxu0 }
0x293d   : > { %v16052_v11 = vpop.f32.mrf.mxu1 }
0x293e   : > { %v16038_v51 = vpop.f32.mrf.mxu0 }
0x293f   : > { %v16058_v39 = vpop.f32.mrf.mxu1 }
0x2941   : > { %v16064_v24 = vpop.f32.mrf.mxu1 }
0x2943   : > { %v16070_v50 = vpop.f32.mrf.mxu1 }
0x2945   : > { %v16076_v33 = vpop.f32.mrf.mxu1 }
0x2947   : > { %v16082_v63 = vpop.f32.mrf.mxu1 }
0x2997   : > { %v16042_v62 = vpop.f32.mrf.mxu0  ;;  %v16086_v10 = vpop.f32.mrf.mxu1 }
0x2999   : > { %v16044_v40 = vpop.f32.mrf.mxu0 }
0x299b   : > { %v16048_v28 = vpop.f32.mrf.mxu0 }
0x299d   : > { %v16050_v2 = vpop.f32.mrf.mxu0 }
0x299f   : > { %v16054_v27 = vpop.f32.mrf.mxu0 }
0x29a1   : > { %v16056_v26 = vpop.f32.mrf.mxu0 }
0x29a3   : > { %v16060_v8 = vpop.f32.mrf.mxu0 }
0x29a4   : > { %17240 = vst [vmem:[#allocation8_spill] sm:$0xff] %v16060_v8 }
0x29a5   : > { %v16062_v43 = vpop.f32.mrf.mxu0 }
0x29a6   : > { %17241 = vst [vmem:[#allocation39_spill] sm:$0xff] %v16062_v43 }
0x29a7   : > { %v16066_v36 = vpop.f32.mrf.mxu0 }
0x29a8   : > { %17242 = vst [vmem:[#allocation25_spill] sm:$0xff] %v16066_v36 }
0x29a9   : > { %v16068_v56 = vpop.f32.mrf.mxu0 }
0x29aa   : > { %17243 = vst [vmem:[#allocation32_spill] sm:$0xff] %v16068_v56  ;;  %v8877_v56 = vadd.f32 %v8876_v48, %v8763_v60  ;;  %v8883_v60 = vadd.f32 %v8882_v14, %v16014_v38 }
0x29ab   : > { %v16072_v19 = vpop.f32.mrf.mxu0 }
0x29ac   : > { %17244 = vst [vmem:[#allocation29_spill] sm:$0xff] %v16072_v19 }
0x29ad   : > { %v16074_v42 = vpop.f32.mrf.mxu0 }
0x29ae   : > { %17245 = vst [vmem:[#allocation33_spill] sm:$0xff] %v16074_v42  ;;  %v12559_v42 = vld [vmem:[%s12803_s24] sm:$0xff] }
0x29af   : > { %v16078_v23 = vpop.f32.mrf.mxu0  ;;  %v16092_v19 = vrot.slane %v12559_v42, %v15965_v20 }
0x29b0   : > { %17246 = vst [vmem:[#allocation19_spill] sm:$0xff] %v16078_v23  ;;  %v16094_v23 = vpop.f32.mrf.mxu1 }
0x29b1   : > { %v16080_v22 = vpop.f32.mrf.mxu0 }
0x29b2   : > { %17247 = vst [vmem:[#allocation20_spill] sm:$0xff] %v16080_v22  ;;  %v16105_v42 = vpop.f32.mrf.mxu1 }
0x29b3   : > { %v16084_v45 = vpop.f32.mrf.mxu0 }
0x29b4   : > { %17248 = vst [vmem:[#allocation55_spill] sm:$0xff] %v16084_v45  ;;  %v12560_v45 = vld [vmem:[%s12803_s24 + $0x8] sm:$0xff]  ;;  %v16120_v49 = vpop.f32.mrf.mxu1 }
0x29b5   : > { %v16088_v18 = vpop.f32.mrf.mxu0  ;;  %v16099_v8 = vrot.slane %v12560_v45, %v15965_v20  ;;  %v17251_v45 = vld [vmem:[#allocation52_spill] sm:$0xff] }
0x29b6   : > { %17249 = vst [vmem:[#allocation40_spill] sm:$0xff] %v16088_v18 }
0x29b7   : > { %v8985_v41 = vpop.f32.mrf.mxu0 }
0x29b8   : > { %v8986_v9 = vadd.f32 %v8985_v41, %v8873_v32 }
0x29b9   : > { %v8987_v22 = vpop.f32.mrf.mxu0 }
0x29ba   : > { %v9064_v36 = vadd.f32 %v8986_v9, %v15116_v61  ;;  %v8988_v43 = vadd.f32 %v8987_v22, %v8875_v30  ;;  %v8889_v22 = vadd.f32 %v16036_v7, %v16020_v1 }
0x29bb   : > { %v8989_v18 = vpop.f32.mrf.mxu0 }
0x29bc   : > { %v16102_v6 = vadd.f32 %v16092_v19, %v9064_v36  ;;  %v9065_v13 = vadd.f32 %v8988_v43, %v15082_v37  ;;  %v8990_v25 = vadd.f32 %v8989_v18, %v8877_v56  ;;  %v8887_v43 = vadd.f32 %v8886_v0, %v16018_v55  ;;  %v16136_v18 = vpop.f32.mrf.mxu1 }
0x29bd   : > { %v8991_v32 = vpop.f32.mrf.mxu0 }
0x29be   : > { %9136 = vst [vmem:[#allocation2] sm:$0xff] %v16102_v6  ;;  %v16110_v9 = vadd.f32 %v16099_v8, %v9065_v13  ;;  %v9066_v61 = vadd.f32 %v8990_v25, %v15144_v17  ;;  %v8992_v30 = vadd.f32 %v8991_v32, %v8879_v54  ;;  %v8893_v54 = vadd.f32 %v16040_v34, %v16022_v47 }
0x29bf   : > { %v8995_v20 = vpop.f32.mrf.mxu0  ;;  %v8895_v32 = vadd.f32 %v16046_v59, %v16024_v58 }
0x29c0   : > { %9137 = vst.msk [vmem:[#allocation2 + $0x8] sm:$0xff] %vm611_vm1, %v16110_v9  ;;  %v16117_v37 = vadd.f32 %v16092_v19, %v9066_v61  ;;  %v9067_v48 = vadd.f32 %v8992_v30, %v15104_v53  ;;  %v8996_v38 = vadd.f32 %v8995_v20, %v8883_v60  ;;  %v17252_v61 = vld [vmem:[#allocation14_spill] sm:$0xff]  ;;  %v16153_v30 = vpop.f32.mrf.mxu1 }
0x29c1   : > { %v8997_v14 = vpop.f32.mrf.mxu0 }
0x29c2   : > { %9138 = vst [vmem:[#allocation2 + $0x10] sm:$0xff] %v16117_v37  ;;  %v16125_v17 = vadd.f32 %v16099_v8, %v9067_v48  ;;  %v9068_v29 = vadd.f32 %v8996_v38, %v17250_v44  ;;  %v8998_v36 = vadd.f32 %v8997_v14, %v8885_v57  ;;  %v8899_v38 = vadd.f32 %v16058_v39, %v16028_v16  ;;  %v16170_v44 = vpop.f32.mrf.mxu1 }
0x29c3   : > { %v8999_v56 = vpop.f32.mrf.mxu0 }
0x29c4   : > { %9139 = vst.msk [vmem:[#allocation2 + $0x18] sm:$0xff] %vm611_vm1, %v16125_v17  ;;  %v16133_v53 = vadd.f32 %v16092_v19, %v9068_v29  ;;  %v9069_v55 = vadd.f32 %v8998_v36, %v17251_v45  ;;  %v9000_v0 = vadd.f32 %v8999_v56, %v8887_v43  ;;  %v17253_v43 = vld [vmem:[#allocation15_spill] sm:$0xff] }
0x29c5   : > { %v9001_v41 = vpop.f32.mrf.mxu0 }
0x29c6   : > { %9140 = vst [vmem:[#allocation2 + $0x20] sm:$0xff] %v16133_v53  ;;  %v16142_v13 = vadd.f32 %v16099_v8, %v9069_v55  ;;  %v9070_v1 = vadd.f32 %v9000_v0, %v15151_v21  ;;  %v9002_v7 = vadd.f32 %v9001_v41, %v8889_v22  ;;  %v8897_v21 = vadd.f32 %v16052_v11, %v16026_v12  ;;  %v8928_v55 = vpop.f32.mrf.mxu1 }
0x29c7   : > { %v9005_v25 = vpop.f32.mrf.mxu0  ;;  %v8905_v22 = vadd.f32 %v16070_v50, %v16032_v52  ;;  %v8907_v41 = vadd.f32 %v16076_v33, %v16034_v15  ;;  %v17254_v52 = vld [vmem:[#allocation58_spill] sm:$0xff] }
0x29c8   : > { %9141 = vst.msk [vmem:[#allocation2 + $0x28] sm:$0xff] %vm611_vm1, %v16142_v13  ;;  %v16150_v60 = vadd.f32 %v16092_v19, %v9070_v1  ;;  %v9071_v47 = vadd.f32 %v9002_v7, %v17252_v61  ;;  %v9006_v34 = vadd.f32 %v9005_v25, %v8893_v54  ;;  %v8909_v7 = vadd.f32 %v16082_v63, %v16038_v51  ;;  %v17255_v25 = vld [vmem:[#allocation56_spill] sm:$0xff] }
0x29c9   : > { %v9007_v20 = vpop.f32.mrf.mxu0 }
0x29ca   : > { %9142 = vst [vmem:[#allocation2 + $0x30] sm:$0xff] %v16150_v60  ;;  %v16159_v57 = vadd.f32 %v16099_v8, %v9071_v47  ;;  %v9072_v58 = vadd.f32 %v9006_v34, %v15166_v3  ;;  %v9008_v59 = vadd.f32 %v9007_v20, %v8895_v32  ;;  %v8903_v3 = vadd.f32 %v16064_v24, %v16030_v46  ;;  %v8932_v32 = vpop.f32.mrf.mxu1 }
0x29cb   : > { %v9009_v48 = vpop.f32.mrf.mxu0  ;;  %v8913_v47 = vadd.f32 %v16086_v10, %v16042_v62 }
0x29cc   : > { %9143 = vst.msk [vmem:[#allocation2 + $0x38] sm:$0xff] %vm611_vm1, %v16159_v57  ;;  %v16167_v14 = vadd.f32 %v16092_v19, %v9072_v58  ;;  %v9073_v12 = vadd.f32 %v9008_v59, %v17253_v43  ;;  %v9010_v11 = vadd.f32 %v9009_v48, %v8897_v21  ;;  %v8915_v21 = vadd.f32 %v16094_v23, %v16044_v40  ;;  %v17256_v59 = vld [vmem:[#allocation42_spill] sm:$0xff]  ;;  %v8934_v48 = vpop.f32.mrf.mxu1 }
0x29cd   : > { %v9011_v29 = vpop.f32.mrf.mxu0  ;;  %v8917_v43 = vadd.f32 %v16105_v42, %v16048_v28 }
0x29ce   : > { %9144 = vst [vmem:[#allocation2 + $0x40] sm:$0xff] %v16167_v14  ;;  %v16176_v36 = vadd.f32 %v16099_v8, %v9073_v12  ;;  %v9074_v16 = vadd.f32 %v9010_v11, %v15180_v35  ;;  %v9012_v39 = vadd.f32 %v9011_v29, %v8899_v38  ;;  %v8919_v11 = vadd.f32 %v16120_v49, %v16050_v2  ;;  %v17258_v2 = vld [vmem:[#allocation60_spill] sm:$0xff] }
0x29cf   : > { %v9015_v56 = vpop.f32.mrf.mxu0 }
0x29d0   : > { %9145 = vst.msk [vmem:[#allocation2 + $0x48] sm:$0xff] %vm611_vm1, %v16176_v36  ;;  %v16184_v45 = vadd.f32 %v16092_v19, %v9074_v16  ;;  %v9075_v46 = vadd.f32 %v9012_v39, %v15158_v5  ;;  %v9016_v24 = vadd.f32 %v9015_v56, %v8903_v3  ;;  %v17257_v3 = vld [vmem:[#allocation59_spill] sm:$0xff]  ;;  %v8936_v16 = vpop.f32.mrf.mxu1  ;;  %v8923_v56 = vadd.f32 %v16136_v18, %v16054_v27 }
0x29d1   : > { %v9017_v0 = vpop.f32.mrf.mxu0 }
0x29d2   : > { %9146 = vst [vmem:[#allocation2 + $0x50] sm:$0xff] %v16184_v45  ;;  %v16191_v35 = vadd.f32 %v16099_v8, %v9075_v46  ;;  %v9076_v50 = vadd.f32 %v9016_v24, %v17254_v52  ;;  %v9018_v54 = vadd.f32 %v9017_v0, %v8905_v22  ;;  %v8925_v24 = vadd.f32 %v16153_v30, %v16056_v26  ;;  %v8938_v52 = vpop.f32.mrf.mxu1  ;;  %v17261_v26 = vld [vmem:[#allocation47_spill] sm:$0xff] }
0x29d3   : > { %v9019_v1 = vpop.f32.mrf.mxu0 }
0x29d4   : > { %9147 = vst.msk [vmem:[#allocation2 + $0x58] sm:$0xff] %vm611_vm1, %v16191_v35  ;;  %v16199_v5 = vadd.f32 %v16092_v19, %v9076_v50  ;;  %v9077_v15 = vadd.f32 %v9018_v54, %v17255_v25  ;;  %v9020_v33 = vadd.f32 %v9019_v1, %v8907_v41  ;;  %v17259_v41 = vld [vmem:[#allocation44_spill] sm:$0xff] }
0x29d5   : > { %v9021_v61 = vpop.f32.mrf.mxu0  ;;  %v17260_v54 = vld [vmem:[#allocation8_spill] sm:$0xff] }
0x29d6   : > { %9148 = vst [vmem:[#allocation2 + $0x60] sm:$0xff] %v16199_v5  ;;  %v16206_v34 = vadd.f32 %v16099_v8, %v9077_v15  ;;  %v9078_v51 = vadd.f32 %v9020_v33, %v15191_v31  ;;  %v9022_v63 = vadd.f32 %v9021_v61, %v8909_v7  ;;  %v8927_v1 = vadd.f32 %v16170_v44, %v17260_v54  ;;  %v17262_v33 = vld [vmem:[#allocation39_spill] sm:$0xff] }
0x29d7   : > { %v9025_v20 = vpop.f32.mrf.mxu0  ;;  %v8929_v61 = vadd.f32 %v8928_v55, %v17262_v33  ;;  %v17273_v33 = vld [vmem:[#allocation30_spill] sm:$0xff] }
0x29d8   : > { %9149 = vst.msk [vmem:[#allocation2 + $0x68] sm:$0xff] %vm611_vm1, %v16206_v34  ;;  %v16214_v58 = vadd.f32 %v16092_v19, %v9078_v51  ;;  %v9079_v62 = vadd.f32 %v9022_v63, %v17256_v59  ;;  %v9026_v10 = vadd.f32 %v9025_v20, %v8913_v47  ;;  %v17263_v51 = vld [vmem:[#allocation62_spill] sm:$0xff]  ;;  %v8942_v20 = vpop.f32.mrf.mxu1  ;;  %v17264_v59 = vld [vmem:[#allocation25_spill] sm:$0xff] }
0x29d9   : > { %v9027_v38 = vpop.f32.mrf.mxu0 }
0x29da   : > { %9150 = vst [vmem:[#allocation2 + $0x70] sm:$0xff] %v16214_v58  ;;  %v16221_v31 = vadd.f32 %v16099_v8, %v9079_v62  ;;  %v9080_v40 = vadd.f32 %v9026_v10, %v15227_v4  ;;  %v9028_v23 = vadd.f32 %v9027_v38, %v8915_v21  ;;  %v8933_v62 = vadd.f32 %v8932_v32, %v17264_v59  ;;  %v17265_v38 = vld [vmem:[#allocation64_spill] sm:$0xff]  ;;  %v17275_v59 = vld [vmem:[#allocation17_spill] sm:$0xff] }
0x29db   : > { %v9029_v12 = vpop.f32.mrf.mxu0 }
0x29dc   : > { %9151 = vst.msk [vmem:[#allocation2 + $0x78] sm:$0xff] %vm611_vm1, %v16221_v31  ;;  %v16229_v29 = vadd.f32 %v16092_v19, %v9080_v40  ;;  %v9081_v28 = vadd.f32 %v9028_v23, %v17257_v3  ;;  %v9030_v42 = vadd.f32 %v9029_v12, %v8917_v43  ;;  %v17266_v23 = vld [vmem:[#allocation32_spill] sm:$0xff]  ;;  %v17267_v3 = vld [vmem:[#allocation63_spill] sm:$0xff] }
0x29dd   : > { %v9031_v39 = vpop.f32.mrf.mxu0  ;;  %v8935_v12 = vadd.f32 %v8934_v48, %v17266_v23 }
0x29de   : > { %9152 = vst [vmem:[#allocation2 + $0x80] sm:$0xff] %v16229_v29  ;;  %v16236_v4 = vadd.f32 %v16099_v8, %v9081_v28  ;;  %v9082_v49 = vadd.f32 %v9030_v42, %v17258_v2  ;;  %v9032_v22 = vadd.f32 %v9031_v39, %v8919_v11  ;;  %v8944_v42 = vpop.f32.mrf.mxu1 }
0x29df   : > { %v9035_v46 = vpop.f32.mrf.mxu0 }
0x29e0   : > { %9153 = vst.msk [vmem:[#allocation2 + $0x88] sm:$0xff] %vm611_vm1, %v16236_v4  ;;  %v16244_v0 = vadd.f32 %v16092_v19, %v9082_v49  ;;  %v9083_v27 = vadd.f32 %v9032_v22, %v17259_v41  ;;  %v9036_v18 = vadd.f32 %v9035_v46, %v8923_v56  ;;  %v17268_v56 = vld [vmem:[#allocation29_spill] sm:$0xff]  ;;  %v17269_v22 = vld [vmem:[#allocation23_spill] sm:$0xff] }
0x29e1   : > { %v9037_v50 = vpop.f32.mrf.mxu0  ;;  %v8937_v2 = vadd.f32 %v8936_v16, %v17268_v56  ;;  %v17270_v41 = vld [vmem:[#allocation33_spill] sm:$0xff] }
0x29e2   : > { %9154 = vst [vmem:[#allocation2 + $0x90] sm:$0xff] %v16244_v0  ;;  %v16251_v7 = vadd.f32 %v16099_v8, %v9083_v27  ;;  %v9084_v30 = vadd.f32 %v9036_v18, %v17261_v26  ;;  %v9038_v25 = vadd.f32 %v9037_v50, %v8925_v24  ;;  %v8939_v27 = vadd.f32 %v8938_v52, %v17270_v41  ;;  %v17271_v50 = vld [vmem:[#allocation22_spill] sm:$0xff]  ;;  %v17280_v41 = vld [vmem:[#allocation31_spill] sm:$0xff] }
0x29e3   : > { %v9039_v15 = vpop.f32.mrf.mxu0 }
0x29e4   : > { %9155 = vst.msk [vmem:[#allocation2 + $0x98] sm:$0xff] %vm611_vm1, %v16251_v7  ;;  %v16258_v47 = vadd.f32 %v16092_v19, %v9084_v30  ;;  %v9085_v63 = vadd.f32 %v9038_v25, %v17263_v51  ;;  %v9040_v44 = vadd.f32 %v9039_v15, %v8927_v1  ;;  %v8946_v1 = vpop.f32.mrf.mxu1  ;;  %v17272_v30 = vld [vmem:[#allocation19_spill] sm:$0xff] }
0x29e5   : > { %v9041_v21 = vpop.f32.mrf.mxu0  ;;  %v8943_v25 = vadd.f32 %v8942_v20, %v17272_v30 }
0x29e6   : > { %9156 = vst [vmem:[#allocation2 + $0xa0] sm:$0xff] %v16258_v47  ;;  %v16264_v10 = vadd.f32 %v16099_v8, %v9085_v63  ;;  %v9086_v55 = vadd.f32 %v9040_v44, %v17265_v38  ;;  %v9042_v43 = vadd.f32 %v9041_v21, %v8929_v61  ;;  %v17274_v63 = vld [vmem:[#allocation20_spill] sm:$0xff]  ;;  %v8948_v38 = vpop.f32.mrf.mxu1 }
0x29e7   : > { %v9045_v40 = vpop.f32.mrf.mxu0  ;;  %v8945_v44 = vadd.f32 %v8944_v42, %v17274_v63  ;;  %v17278_v42 = vld [vmem:[#allocation40_spill] sm:$0xff] }
0x29e8   : > { %9157 = vst.msk [vmem:[#allocation2 + $0xa8] sm:$0xff] %vm611_vm1, %v16264_v10  ;;  %v16271_v11 = vadd.f32 %v16092_v19, %v9086_v55  ;;  %v9087_v28 = vadd.f32 %v9042_v43, %v17267_v3  ;;  %v9046_v32 = vadd.f32 %v9045_v40, %v8933_v62  ;;  %v17276_v43 = vld [vmem:[#allocation55_spill] sm:$0xff] }
0x29e9   : > { %v9047_v39 = vpop.f32.mrf.mxu0  ;;  %v8947_v40 = vadd.f32 %v8946_v1, %v17276_v43 }
0x29ea   : > { %9158 = vst [vmem:[#allocation2 + $0xb0] sm:$0xff] %v16271_v11  ;;  %v16277_v49 = vadd.f32 %v16099_v8, %v9087_v28  ;;  %v9088_v48 = vadd.f32 %v9046_v32, %v17269_v22  ;;  %v9048_v46 = vadd.f32 %v9047_v39, %v8935_v12  ;;  %v17277_v12 = vld [vmem:[#allocation54_spill] sm:$0xff]  ;;  %v8949_v39 = vadd.f32 %v8948_v38, %v17278_v42 }
0x29eb   : > { %v9049_v24 = vpop.f32.mrf.mxu0 }
0x29ec   : > { %9159 = vst.msk [vmem:[#allocation2 + $0xb8] sm:$0xff] %vm611_vm1, %v16277_v49  ;;  %v16284_v18 = vadd.f32 %v16092_v19, %v9088_v48  ;;  %v9089_v54 = vadd.f32 %v9048_v46, %v17271_v50  ;;  %v9050_v16 = vadd.f32 %v9049_v24, %v8937_v2  ;;  %v17279_v2 = vld [vmem:[#allocation66_spill] sm:$0xff] }
0x29ed   : > { %v9051_v26 = vpop.f32.mrf.mxu0 }
0x29ee   : > { %9160 = vst [vmem:[#allocation2 + $0xc0] sm:$0xff] %v16284_v18  ;;  %v16290_v15 = vadd.f32 %v16099_v8, %v9089_v54  ;;  %v9090_v52 = vadd.f32 %v9050_v16, %v17273_v33  ;;  %v9052_v61 = vadd.f32 %v9051_v26, %v8939_v27  ;;  %v17281_v16 = vld [vmem:[#allocation21_spill] sm:$0xff] }
0x29ef   : > { %v9055_v51 = vpop.f32.mrf.mxu0 }
0x29f0   : > { %9161 = vst.msk [vmem:[#allocation2 + $0xc8] sm:$0xff] %vm611_vm1, %v16290_v15  ;;  %v16297_v21 = vadd.f32 %v16092_v19, %v9090_v52  ;;  %v9091_v62 = vadd.f32 %v9052_v61, %v17275_v59  ;;  %v9056_v20 = vadd.f32 %v9055_v51, %v8943_v25 }
0x29f1   : > { %v9057_v55 = vpop.f32.mrf.mxu0 }
0x29f2   : > { %9162 = vst [vmem:[#allocation2 + $0xd0] sm:$0xff] %v16297_v21  ;;  %v16303_v23 = vadd.f32 %v16099_v8, %v9091_v62  ;;  %v9092_v3 = vadd.f32 %v9056_v20, %v17277_v12  ;;  %v9058_v28 = vadd.f32 %v9057_v55, %v8945_v44 }
0x29f3   : > { %v9059_v32 = vpop.f32.mrf.mxu0 }
0x29f4   : > { %9163 = vst.msk [vmem:[#allocation2 + $0xd8] sm:$0xff] %vm611_vm1, %v16303_v23  ;;  %v16310_v56 = vadd.f32 %v16092_v19, %v9092_v3  ;;  %v9093_v22 = vadd.f32 %v9058_v28, %v17279_v2  ;;  %v9060_v48 = vadd.f32 %v9059_v32, %v8947_v40 }
0x29f5   : > { %v9061_v46 = vpop.f32.mrf.mxu0 }
0x29f6   : > { %9164 = vst [vmem:[#allocation2 + $0xe0] sm:$0xff] %v16310_v56  ;;  %v16315_v24 = vadd.f32 %v16099_v8, %v9093_v22  ;;  %v9094_v27 = vadd.f32 %v9060_v48, %v17280_v41  ;;  %v9062_v50 = vadd.f32 %v9061_v46, %v8949_v39 }
0x29f8   : > { %9165 = vst.msk [vmem:[#allocation2 + $0xe8] sm:$0xff] %vm611_vm1, %v16315_v24  ;;  %v16321_v54 = vadd.f32 %v16092_v19, %v9094_v27  ;;  %v9095_v1 = vadd.f32 %v9062_v50, %v17281_v16  ;;  %9171 = sbr.rel (%p10971_p6) target bundleno = 11327 (0x2c3f), region = 68 }
0x29fa   : > { %9166 = vst [vmem:[#allocation2 + $0xf0] sm:$0xff] %v16321_v54  ;;  %v16326_v26 = vadd.f32 %v16099_v8, %v9095_v1 }
0x29fc   : > { %9167 = vst.msk [vmem:[#allocation2 + $0xf8] sm:$0xff] %vm611_vm1, %v16326_v26 }
0x29fd   : > { %v9173_v30 = vsel %vm611_vm1, %v16110_v9, 0.0  ;;  %v9181_v19 = vsel %vm611_vm1, %v16142_v13, 0.0  ;;  %v9177_v25 = vsel %vm611_vm1, %v16125_v17, 0.0  ;;  %v9185_v33 = vsel %vm611_vm1, %v16159_v57, 0.0 }
0x29fe   : > { %v9174_v8 = vadd.f32 %v9173_v30, %v16102_v6  ;;  %v9182_v52 = vadd.f32 %v9181_v19, %v16133_v53  ;;  %v9178_v61 = vadd.f32 %v9177_v25, %v16117_v37  ;;  %v9186_v51 = vadd.f32 %v9185_v33, %v16150_v60  ;;  %v12561_v30 = vld [vmem:[%s16943_s8 + $0xe4] ss:$16 sps:$4 sm:$0xff]   ;;  %v12563_v19 = vld [vmem:[%s16943_s8 + $0xec] ss:$16 sps:$4 sm:$0xff]   ;;  %v12565_v25 = vld [vmem:[%s16943_s8 + $0xe0] ss:$16 sps:$4 sm:$0xff]  }
0x29ff   : > { %v9189_v63 = vsel %vm611_vm1, %v16176_v36, 0.0  ;;  %v9193_v44 = vsel %vm611_vm1, %v16191_v35, 0.0  ;;  %v9197_v20 = vsel %vm611_vm1, %v16206_v34, 0.0  ;;  %v9201_v38 = vsel %vm611_vm1, %v16221_v31, 0.0  ;;  %v12566_v33 = vld [vmem:[%s16943_s8 + $0xe8] ss:$16 sps:$4 sm:$0xff]   ;;  %9912 = vmatprep.subr.bf16.mxu0 %v12561_v30  ;;  %10025 = vmatprep.subr.bf16.mxu1 %v12563_v19 }
0x2a00   : > { %9175 = vadd.xlane.f32.xlu0 %v9174_v8  ;;  %9183 = vadd.xlane.f32.xlu1 %v9182_v52  ;;  %v9190_v59 = vadd.f32 %v9189_v63, %v16167_v14  ;;  %v9194_v62 = vadd.f32 %v9193_v44, %v16184_v45  ;;  %v9198_v55 = vadd.f32 %v9197_v20, %v16199_v5  ;;  %v9205_v40 = vsel %vm611_vm1, %v16236_v4, 0.0  ;;  %v12567_v8 = vld [vmem:[%s16943_s8 + $0xc4] ss:$16 sps:$4 sm:$0xff]   ;;  %v12569_v52 = vld [vmem:[%s16943_s8 + $0xcc] ss:$16 sps:$4 sm:$0xff]  }
0x2a01   : > { %v9202_v43 = vadd.f32 %v9201_v38, %v16214_v58  ;;  %v9209_v12 = vsel %vm611_vm1, %v16251_v7, 0.0  ;;  %v9206_v3 = vadd.f32 %v9205_v40, %v16229_v29  ;;  %v9213_v32 = vsel %vm611_vm1, %v16264_v10, 0.0  ;;  %9913 = vmatpush1.bf16.msra.mxu0 %v12565_v25  ;;  %10026 = vmatpush1.bf16.msra.mxu1 %v12566_v33  ;;  %v12573_v63 = vld [vmem:[%s16943_s8 + $0xa4] ss:$16 sps:$4 sm:$0xff]   ;;  %v12575_v44 = vld [vmem:[%s16943_s8 + $0xac] ss:$16 sps:$4 sm:$0xff]  }
0x2a02   : > { %v9210_v28 = vadd.f32 %v9209_v12, %v16244_v0  ;;  %v9217_v42 = vsel %vm611_vm1, %v16277_v49, 0.0  ;;  %v9214_v39 = vadd.f32 %v9213_v32, %v16258_v47  ;;  %v9221_v22 = vsel %vm611_vm1, %v16290_v15, 0.0  ;;  %9914 = vmatprep.subr.bf16.mxu0 %v12567_v8  ;;  %10027 = vmatprep.subr.bf16.mxu1 %v12569_v52  ;;  %v12579_v20 = vld [vmem:[%s16943_s8 + $0x84] ss:$16 sps:$4 sm:$0xff]   ;;  %v12581_v38 = vld [vmem:[%s16943_s8 + $0x8c] ss:$16 sps:$4 sm:$0xff]  }
0x2a03   : > { %v9218_v2 = vadd.f32 %v9217_v42, %v16271_v11  ;;  %v9225_v48 = vsel %vm611_vm1, %v16303_v23, 0.0  ;;  %v9222_v46 = vadd.f32 %v9221_v22, %v16284_v18  ;;  %v9229_v27 = vsel %vm611_vm1, %v16315_v24, 0.0  ;;  %v12585_v40 = vld [vmem:[%s16943_s8 + $0x64] ss:$16 sps:$4 sm:$0xff]   ;;  %v12587_v12 = vld [vmem:[%s16943_s8 + $0x6c] ss:$16 sps:$4 sm:$0xff]  }
0x2a04   : > { %9179 = vadd.xlane.f32.xlu0 %v9178_v61  ;;  %9187 = vadd.xlane.f32.xlu1 %v9186_v51  ;;  %v9226_v41 = vadd.f32 %v9225_v48, %v16297_v21  ;;  %v9233_v50 = vsel %vm611_vm1, %v16326_v26, 0.0  ;;  %v9230_v16 = vadd.f32 %v9229_v27, %v16310_v56  ;;  %v12571_v61 = vld [vmem:[%s16943_s8 + $0xc0] ss:$16 sps:$4 sm:$0xff]   ;;  %v12572_v51 = vld [vmem:[%s16943_s8 + $0xc8] ss:$16 sps:$4 sm:$0xff]  }
0x2a05   : > { %v9234_v1 = vadd.f32 %v9233_v50, %v16321_v54  ;;  %9915 = vmatpush1.bf16.msra.mxu0 %v12571_v61  ;;  %10028 = vmatpush1.bf16.msra.mxu1 %v12572_v51 }
0x2a06   : > { %9916 = vmatprep.subr.bf16.mxu0 %v12573_v63  ;;  %10029 = vmatprep.subr.bf16.mxu1 %v12575_v44 }
0x2a08   : > { %9191 = vadd.xlane.f32.xlu0 %v9190_v59  ;;  %9195 = vadd.xlane.f32.xlu1 %v9194_v62  ;;  %v12577_v59 = vld [vmem:[%s16943_s8 + $0xa0] ss:$16 sps:$4 sm:$0xff]   ;;  %v12578_v62 = vld [vmem:[%s16943_s8 + $0xa8] ss:$16 sps:$4 sm:$0xff]  }
0x2a09   : > { %9917 = vmatpush1.bf16.msra.mxu0 %v12577_v59  ;;  %10030 = vmatpush1.bf16.msra.mxu1 %v12578_v62 }
0x2a0a   : > { %9918 = vmatprep.subr.bf16.mxu0 %v12579_v20  ;;  %10031 = vmatprep.subr.bf16.mxu1 %v12581_v38 }
0x2a0c   : > { %9199 = vadd.xlane.f32.xlu0 %v9198_v55  ;;  %9203 = vadd.xlane.f32.xlu1 %v9202_v43  ;;  %v12583_v55 = vld [vmem:[%s16943_s8 + $0x80] ss:$16 sps:$4 sm:$0xff]   ;;  %v12584_v43 = vld [vmem:[%s16943_s8 + $0x88] ss:$16 sps:$4 sm:$0xff]  }
0x2a0d   : > { %9919 = vmatpush1.bf16.msra.mxu0 %v12583_v55  ;;  %10032 = vmatpush1.bf16.msra.mxu1 %v12584_v43 }
0x2a0e   : > { %9920 = vmatprep.subr.bf16.mxu0 %v12585_v40  ;;  %10033 = vmatprep.subr.bf16.mxu1 %v12587_v12 }
0x2a10   : > { %9207 = vadd.xlane.f32.xlu0 %v9206_v3  ;;  %9211 = vadd.xlane.f32.xlu1 %v9210_v28 }
0x2a14   : > { %9215 = vadd.xlane.f32.xlu0 %v9214_v39  ;;  %9219 = vadd.xlane.f32.xlu1 %v9218_v2 }
0x2a18   : > { %9223 = vadd.xlane.f32.xlu0 %v9222_v46  ;;  %9227 = vadd.xlane.f32.xlu1 %v9226_v41 }
0x2a1c   : > { %9231 = vadd.xlane.f32.xlu0 %v9230_v16  ;;  %9235 = vadd.xlane.f32.xlu1 %v9234_v1 }
0x2a89   : > { %v9176_v3 = vpop.xlane.xlu0 %9175  ;;  %v9184_v28 = vpop.xlane.xlu1 %9183 }
0x2a8a   : > { %v9237_v32 = vmul.f32 0.0052083335, %v9176_v3  ;;  %v9239_v42 = vmul.f32 0.0052083335, %v9184_v28 }
0x2a8c   : > { %v16434_v39 = vsub.f32 %v16102_v6, %v9237_v32  ;;  %v16437_v2 = vsub.f32 %v16110_v9, %v9237_v32  ;;  %v16440_v22 = vsub.f32 %v16133_v53, %v9239_v42  ;;  %v16443_v48 = vsub.f32 %v16142_v13, %v9239_v42 }
0x2a8d   : > { %v9180_v46 = vpop.xlane.xlu0 %9179  ;;  %v9188_v41 = vpop.xlane.xlu1 %9187 }
0x2a8e   : > { %v9238_v27 = vmul.f32 0.0052083335, %v9180_v46  ;;  %v9240_v50 = vmul.f32 0.0052083335, %v9188_v41  ;;  %v9285_v16 = vmul.f32 %v16434_v39, %v16434_v39  ;;  %v9286_v6 = vmul.f32 %v16437_v2, %v16437_v2 }
0x2a8f   : > { %v9289_v9 = vmul.f32 %v16440_v22, %v16440_v22  ;;  %v9290_v53 = vmul.f32 %v16443_v48, %v16443_v48 }
0x2a90   : > { %v16454_v1 = vsub.f32 %v16117_v37, %v9238_v27  ;;  %v16457_v13 = vsub.f32 %v16125_v17, %v9238_v27  ;;  %v16460_v30 = vsub.f32 %v16150_v60, %v9240_v50  ;;  %v16463_v19 = vsub.f32 %v16159_v57, %v9240_v50 }
0x2a91   : > { %v9192_v25 = vpop.xlane.xlu0 %9191  ;;  %v9317_v33 = vsel %vm611_vm1, %v9286_v6, 0.0  ;;  %v9196_v8 = vpop.xlane.xlu1 %9195  ;;  %v9325_v52 = vsel %vm611_vm1, %v9290_v53, 0.0 }
0x2a92   : > { %v9241_v61 = vmul.f32 0.0052083335, %v9192_v25  ;;  %v9318_v51 = vadd.f32 %v9317_v33, %v9285_v16  ;;  %v9242_v63 = vmul.f32 0.0052083335, %v9196_v8  ;;  %v9326_v37 = vadd.f32 %v9325_v52, %v9289_v9 }
0x2a93   : > { %v9287_v17 = vmul.f32 %v16454_v1, %v16454_v1  ;;  %v9288_v60 = vmul.f32 %v16457_v13, %v16457_v13  ;;  %v9291_v57 = vmul.f32 %v16460_v30, %v16460_v30  ;;  %v9292_v44 = vmul.f32 %v16463_v19, %v16463_v19 }
0x2a94   : > { %v16476_v59 = vsub.f32 %v16167_v14, %v9241_v61  ;;  %v16479_v62 = vsub.f32 %v16176_v36, %v9241_v61  ;;  %9319 = vadd.xlane.f32.xlu0 %v9318_v51  ;;  %v16482_v20 = vsub.f32 %v16184_v45, %v9242_v63  ;;  %v16485_v38 = vsub.f32 %v16191_v35, %v9242_v63 }
0x2a95   : > { %v9200_v55 = vpop.xlane.xlu0 %9199  ;;  %v9321_v43 = vsel %vm611_vm1, %v9288_v60, 0.0  ;;  %v9204_v40 = vpop.xlane.xlu1 %9203  ;;  %v9329_v12 = vsel %vm611_vm1, %v9292_v44, 0.0 }
0x2a96   : > { %v9243_v3 = vmul.f32 0.0052083335, %v9200_v55  ;;  %v9322_v28 = vadd.f32 %v9321_v43, %v9287_v17  ;;  %v9244_v14 = vmul.f32 0.0052083335, %v9204_v40  ;;  %v9330_v32 = vadd.f32 %v9329_v12, %v9291_v57  ;;  %v12590_v17 = vld [vmem:[%s16943_s8 + $0x68] ss:$16 sps:$4 sm:$0xff]  }
0x2a97   : > { %v9293_v36 = vmul.f32 %v16476_v59, %v16476_v59  ;;  %v9294_v45 = vmul.f32 %v16479_v62, %v16479_v62  ;;  %v9295_v35 = vmul.f32 %v16482_v20, %v16482_v20  ;;  %v9296_v42 = vmul.f32 %v16485_v38, %v16485_v38  ;;  %10034 = vmatpush1.bf16.msra.mxu1 %v12590_v17  ;;  %v12597_v17 = vld [vmem:[%s16943_s8 + $0x24] ss:$16 sps:$4 sm:$0xff]  }
0x2a98   : > { %v16498_v46 = vsub.f32 %v16199_v5, %v9243_v3  ;;  %v16501_v41 = vsub.f32 %v16206_v34, %v9243_v3  ;;  %9327 = vadd.xlane.f32.xlu0 %v9326_v37  ;;  %9323 = vadd.xlane.f32.xlu1 %v9322_v28  ;;  %v16504_v27 = vsub.f32 %v16214_v58, %v9244_v14  ;;  %v12589_v37 = vld [vmem:[%s16943_s8 + $0x60] ss:$16 sps:$4 sm:$0xff]  }
0x2a99   : > { %v16507_v50 = vsub.f32 %v16221_v31, %v9244_v14  ;;  %v9208_v16 = vpop.xlane.xlu0 %9207  ;;  %v9333_v6 = vsel %vm611_vm1, %v9294_v45, 0.0  ;;  %v9212_v9 = vpop.xlane.xlu1 %9211  ;;  %v9337_v53 = vsel %vm611_vm1, %v9296_v42, 0.0  ;;  %9921 = vmatpush1.bf16.msra.mxu0 %v12589_v37  ;;  %v12591_v14 = vld [vmem:[%s16943_s8 + $0x44] ss:$16 sps:$4 sm:$0xff]  }
0x2a9a   : > { %v9245_v25 = vmul.f32 0.0052083335, %v9208_v16  ;;  %v9334_v5 = vadd.f32 %v9333_v6, %v9293_v36  ;;  %v9246_v33 = vmul.f32 0.0052083335, %v9212_v9  ;;  %v9338_v8 = vadd.f32 %v9337_v53, %v9295_v35  ;;  %9922 = vmatprep.subr.bf16.mxu0 %v12591_v14 }
0x2a9b   : > { %v9297_v34 = vmul.f32 %v16498_v46, %v16498_v46  ;;  %v9298_v58 = vmul.f32 %v16501_v41, %v16501_v41  ;;  %v9299_v31 = vmul.f32 %v16504_v27, %v16504_v27  ;;  %v9300_v52 = vmul.f32 %v16507_v50, %v16507_v50 }
0x2a9c   : > { %v16520_v61 = vsub.f32 %v16229_v29, %v9245_v25  ;;  %v16523_v51 = vsub.f32 %v16236_v4, %v9245_v25  ;;  %9331 = vadd.xlane.f32.xlu1 %v9330_v32  ;;  %9335 = vadd.xlane.f32.xlu0 %v9334_v5  ;;  %v16526_v63 = vsub.f32 %v16244_v0, %v9246_v33  ;;  %v12593_v32 = vld [vmem:[%s16943_s8 + $0x4c] ss:$16 sps:$4 sm:$0xff]  }
0x2a9d   : > { %v16535_v60 = vsub.f32 %v16251_v7, %v9246_v33  ;;  %v9216_v29 = vpop.xlane.xlu0 %9215  ;;  %v9341_v4 = vsel %vm611_vm1, %v9298_v58, 0.0  ;;  %v9220_v57 = vpop.xlane.xlu1 %9219  ;;  %v9345_v44 = vsel %vm611_vm1, %v9300_v52, 0.0  ;;  %10035 = vmatprep.subr.bf16.mxu1 %v12593_v32 }
0x2a9e   : > { %v9247_v55 = vmul.f32 0.0052083335, %v9216_v29  ;;  %v9342_v0 = vadd.f32 %v9341_v4, %v9297_v34  ;;  %v9248_v43 = vmul.f32 0.0052083335, %v9220_v57  ;;  %v9346_v40 = vadd.f32 %v9345_v44, %v9299_v31  ;;  %v12599_v29 = vld [vmem:[%s16943_s8 + $0x2c] ss:$16 sps:$4 sm:$0xff]  }
0x2a9f   : > { %v9301_v12 = vmul.f32 %v16520_v61, %v16520_v61  ;;  %v9302_v3 = vmul.f32 %v16523_v51, %v16523_v51  ;;  %v9303_v7 = vmul.f32 %v16526_v63, %v16526_v63  ;;  %v9304_v28 = vmul.f32 %v16535_v60, %v16535_v60 }
0x2aa0   : > { %v16554_v36 = vsub.f32 %v16258_v47, %v9247_v55  ;;  %v16557_v45 = vsub.f32 %v16264_v10, %v9247_v55  ;;  %9339 = vadd.xlane.f32.xlu1 %v9338_v8  ;;  %9343 = vadd.xlane.f32.xlu0 %v9342_v0  ;;  %v16560_v35 = vsub.f32 %v16271_v11, %v9248_v43  ;;  %v12595_v47 = vld [vmem:[%s16943_s8 + $0x40] ss:$16 sps:$4 sm:$0xff]   ;;  %v12596_v10 = vld [vmem:[%s16943_s8 + $0x48] ss:$16 sps:$4 sm:$0xff]  }
0x2aa1   : > { %v16563_v42 = vsub.f32 %v16277_v49, %v9248_v43  ;;  %v9224_v16 = vpop.xlane.xlu0 %9223  ;;  %v9349_v6 = vsel %vm611_vm1, %v9302_v3, 0.0  ;;  %v9228_v9 = vpop.xlane.xlu1 %9227  ;;  %v9353_v53 = vsel %vm611_vm1, %v9304_v28, 0.0  ;;  %9923 = vmatpush1.bf16.msra.mxu0 %v12595_v47  ;;  %10036 = vmatpush1.bf16.msra.mxu1 %v12596_v10  ;;  %v12602_v55 = vld [vmem:[%s16943_s8 + $0x28] ss:$16 sps:$4 sm:$0xff]  }
0x2aa2   : > { %v9249_v11 = vmul.f32 0.0052083335, %v9224_v16  ;;  %v9350_v25 = vadd.f32 %v9349_v6, %v9301_v12  ;;  %v9250_v49 = vmul.f32 0.0052083335, %v9228_v9  ;;  %v9354_v5 = vadd.f32 %v9353_v53, %v9303_v7  ;;  %9924 = vmatprep.subr.bf16.mxu0 %v12597_v17  ;;  %10037 = vmatprep.subr.bf16.mxu1 %v12599_v29  ;;  %v12603_v6 = vld [vmem:[%s16943_s8 + $0x4] ss:$16 sps:$4 sm:$0xff]  }
0x2aa3   : > { %v9305_v33 = vmul.f32 %v16554_v36, %v16554_v36  ;;  %v9306_v8 = vmul.f32 %v16557_v45, %v16557_v45  ;;  %v9307_v34 = vmul.f32 %v16560_v35, %v16560_v35  ;;  %v9308_v58 = vmul.f32 %v16563_v42, %v16563_v42  ;;  %v12605_v9 = vld [vmem:[%s16943_s8 + $0xc] ss:$16 sps:$4 sm:$0xff]   ;;  %v12608_v47 = vld [vmem:[%s16943_s8 + $0x8] ss:$16 sps:$4 sm:$0xff]   ;;  %v12613_v29 = vld [vmem:[%s16943_s8 + $0x160] ss:$16 sps:$4 sm:$0xff]  }
0x2aa4   : > { %v16582_v31 = vsub.f32 %v16284_v18, %v9249_v11  ;;  %v16585_v52 = vsub.f32 %v16290_v15, %v9249_v11  ;;  %9347 = vadd.xlane.f32.xlu1 %v9346_v40  ;;  %9351 = vadd.xlane.f32.xlu0 %v9350_v25  ;;  %v16588_v37 = vsub.f32 %v16297_v21, %v9250_v49  ;;  %v12601_v21 = vld [vmem:[%s16943_s8 + $0x20] ss:$16 sps:$4 sm:$0xff]  }
0x2aa5   : > { %v16597_v4 = vsub.f32 %v16303_v23, %v9250_v49  ;;  %v9232_v18 = vpop.xlane.xlu0 %9231  ;;  %v9357_v15 = vsel %vm611_vm1, %v9306_v8, 0.0  ;;  %v9236_v57 = vpop.xlane.xlu1 %9235  ;;  %v9361_v44 = vsel %vm611_vm1, %v9308_v58, 0.0  ;;  %9925 = vmatpush1.bf16.msra.mxu0 %v12601_v21  ;;  %10038 = vmatpush1.bf16.msra.mxu1 %v12602_v55  ;;  %v12609_v8 = vld [vmem:[%s16943_s8 + $0x164] ss:$16 sps:$4 sm:$0xff]   ;;  %v12619_v21 = vld [vmem:[%s16943_s8 + $0x140] ss:$16 sps:$4 sm:$0xff]  }
0x2aa6   : > { %v9251_v0 = vmul.f32 0.0052083335, %v9232_v18  ;;  %v9358_v43 = vadd.f32 %v9357_v15, %v9305_v33  ;;  %v9252_v40 = vmul.f32 0.0052083335, %v9236_v57  ;;  %v9362_v23 = vadd.f32 %v9361_v44, %v9307_v34  ;;  %9926 = vmatprep.subr.bf16.mxu0 %v12603_v6  ;;  %10039 = vmatprep.subr.bf16.mxu1 %v12605_v9  ;;  %v12611_v34 = vld [vmem:[%s16943_s8 + $0x16c] ss:$16 sps:$4 sm:$0xff]  }
0x2aa7   : > { %v9309_v12 = vmul.f32 %v16582_v31, %v16582_v31  ;;  %v9310_v3 = vmul.f32 %v16585_v52, %v16585_v52  ;;  %v9311_v7 = vmul.f32 %v16588_v37, %v16588_v37  ;;  %v9312_v28 = vmul.f32 %v16597_v4, %v16597_v4  ;;  %v12614_v18 = vld [vmem:[%s16943_s8 + $0x168] ss:$16 sps:$4 sm:$0xff]   ;;  %v12615_v57 = vld [vmem:[%s16943_s8 + $0x144] ss:$16 sps:$4 sm:$0xff]   ;;  %v12617_v44 = vld [vmem:[%s16943_s8 + $0x14c] ss:$16 sps:$4 sm:$0xff]  }
0x2aa8   : > { %v16616_v14 = vsub.f32 %v16310_v56, %v9251_v0  ;;  %v16619_v32 = vsub.f32 %v16315_v24, %v9251_v0  ;;  %9355 = vadd.xlane.f32.xlu1 %v9354_v5  ;;  %9359 = vadd.xlane.f32.xlu0 %v9358_v43  ;;  %v16622_v16 = vsub.f32 %v16321_v54, %v9252_v40  ;;  %v12607_v54 = vld [vmem:[%s16943_s8] ss:$16 sps:$4 sm:$0xff]   ;;  %v12620_v55 = vld [vmem:[%s16943_s8 + $0x148] ss:$16 sps:$4 sm:$0xff]   ;;  %v12621_v0 = vld [vmem:[%s16943_s8 + $0x124] ss:$16 sps:$4 sm:$0xff]  }
0x2aa9   : > { %v16631_v53 = vsub.f32 %v16326_v26, %v9252_v40  ;;  %v9365_v56 = vsel %vm611_vm1, %v9310_v3, 0.0  ;;  %v9369_v24 = vsel %vm611_vm1, %v9312_v28, 0.0  ;;  %9927 = vmatpush1.bf16.msra.mxu0 %v12607_v54  ;;  %10040 = vmatpush1.bf16.msra.mxu1 %v12608_v47  ;;  %v12623_v43 = vld [vmem:[%s16943_s8 + $0x12c] ss:$16 sps:$4 sm:$0xff]   ;;  %v12625_v40 = vld [vmem:[%s16943_s8 + $0x120] ss:$16 sps:$4 sm:$0xff]  }
0x2aaa   : > { %v9366_v10 = vadd.f32 %v9365_v56, %v9309_v12  ;;  %v9313_v11 = vmul.f32 %v16616_v14, %v16616_v14  ;;  %v9314_v26 = vmul.f32 %v16619_v32, %v16619_v32  ;;  %v9370_v49 = vadd.f32 %v9369_v24, %v9311_v7  ;;  %9936 = vmatprep.subr.bf16.mxu0 %v12609_v8  ;;  %v12627_v12 = vld [vmem:[%s16943_s8 + $0x104] ss:$16 sps:$4 sm:$0xff]   ;;  %v12629_v3 = vld [vmem:[%s16943_s8 + $0x10c] ss:$16 sps:$4 sm:$0xff]   ;;  %v12631_v7 = vld [vmem:[%s16943_s8 + $0x100] ss:$16 sps:$4 sm:$0xff]  }
0x2aab   : > { %v9316_v25 = vmul.f32 %v16631_v53, %v16631_v53  ;;  %v9315_v33 = vmul.f32 %v16622_v16, %v16622_v16  ;;  %10049 = vmatprep.subr.bf16.mxu1 %v12611_v34  ;;  %v12632_v28 = vld [vmem:[%s16943_s8 + $0x108] ss:$16 sps:$4 sm:$0xff]  }
0x2aac   : > { %9363 = vadd.xlane.f32.xlu1 %v9362_v23  ;;  %9367 = vadd.xlane.f32.xlu0 %v9366_v10  ;;  %v9373_v5 = vsel %vm611_vm1, %v9314_v26, 0.0  ;;  %v12626_v23 = vld [vmem:[%s16943_s8 + $0x128] ss:$16 sps:$4 sm:$0xff]  }
0x2aad   : > { %v9374_v58 = vadd.f32 %v9373_v5, %v9313_v11  ;;  %v9377_v17 = vsel %vm611_vm1, %v9316_v25, 0.0  ;;  %9937 = vmatpush2.bf16.msra.mxu0 %v12613_v29  ;;  %10050 = vmatpush2.bf16.msra.mxu1 %v12614_v18 }
0x2aae   : > { %v9378_v15 = vadd.f32 %v9377_v17, %v9315_v33  ;;  %9938 = vmatprep.subr.bf16.mxu0 %v12615_v57  ;;  %10051 = vmatprep.subr.bf16.mxu1 %v12617_v44  ;;  %v17282_v57 = vld [vmem:[#allocation36_spill] sm:$0xff] }
0x2ab0   : > { %9371 = vadd.xlane.f32.xlu1 %v9370_v49  ;;  %9375 = vadd.xlane.f32.xlu0 %v9374_v58  ;;  %v9172_v58 = vld [vmem:[%s16942_s7] sm:$0xf] }
0x2ab1   : > { %9939 = vmatpush2.bf16.msra.mxu0 %v12619_v21  ;;  %10052 = vmatpush2.bf16.msra.mxu1 %v12620_v55  ;;  %v9469_v44 = vrot.slane %v9172_v58, %v17282_v57  ;;  %v17283_v21 = vld [vmem:[#allocation9_spill] sm:$0xff] }
0x2ab2   : > { %9940 = vmatprep.subr.bf16.mxu0 %v12621_v0  ;;  %10053 = vmatprep.subr.bf16.mxu1 %v12623_v43  ;;  %v9465_v55 = vrot.slane %v9172_v58, %v17283_v21 }
0x2ab4   : > { %9379 = vadd.xlane.f32.xlu1 %v9378_v15 }
0x2ab5   : > { %9941 = vmatpush2.bf16.msra.mxu0 %v12625_v40  ;;  %10054 = vmatpush2.bf16.msra.mxu1 %v12626_v23 }
0x2ab6   : > { %9942 = vmatprep.subr.bf16.mxu0 %v12627_v12  ;;  %10055 = vmatprep.subr.bf16.mxu1 %v12629_v3 }
0x2ab9   : > { %9943 = vmatpush2.bf16.msra.mxu0 %v12631_v7  ;;  %10056 = vmatpush2.bf16.msra.mxu1 %v12632_v28  ;;  %v16705_v7 = vrot.slane %v9469_v44, %v17283_v21  ;;  %v17284_v28 = vld [vmem:[#allocation18_spill] sm:$0xff] }
0x2b1d   : > { %v9320_v6 = vpop.xlane.xlu0 %9319 }
0x2b1e   : > { %v9381_v9 = vmul.f32 0.0052083335, %v9320_v6  ;;  %v9519_v6 = vrot.slane %v9172_v58, %v17284_v28 }
0x2b20   : > { %v9397_v56 = vadd.f32 1e-05, %v9381_v9  ;;  %v16709_v9 = vrot.slane %v9465_v55, %v17283_v21 }
0x2b21   : > { %v9324_v24 = vpop.xlane.xlu1 %9323  ;;  %v9328_v54 = vpop.xlane.xlu0 %9327 }
0x2b22   : > { %12633 = vrsqrt.f32 %v9397_v56  ;;  %v9382_v47 = vmul.f32 0.0052083335, %v9324_v24  ;;  %v9383_v10 = vmul.f32 0.0052083335, %v9328_v54  ;;  %v17285_v56 = vld [vmem:[#allocation10_spill] sm:$0xff] }
0x2b23   : > { %v9515_v24 = vrot.slane %v9172_v58, %v17285_v56 }
0x2b24   : > { %v9398_v11 = vadd.f32 1e-05, %v9382_v47  ;;  %v9399_v26 = vadd.f32 1e-05, %v9383_v10 }
0x2b25   : > { %v9332_v25 = vpop.xlane.xlu1 %9331  ;;  %v9336_v49 = vpop.xlane.xlu0 %9335 }
0x2b26   : > { %12635 = vrsqrt.f32 %v9398_v11  ;;  %v9384_v5 = vmul.f32 0.0052083335, %v9332_v25  ;;  %v9385_v33 = vmul.f32 0.0052083335, %v9336_v49 }
0x2b27   : > { %12637 = vrsqrt.f32 %v9399_v26 }
0x2b28   : > { %v9400_v8 = vadd.f32 1e-05, %v9384_v5  ;;  %v9401_v34 = vadd.f32 1e-05, %v9385_v33  ;;  %v16716_v33 = vrot.slane %v9519_v6, %v17285_v56 }
0x2b29   : > { %v9340_v17 = vpop.xlane.xlu1 %9339  ;;  %v9344_v29 = vpop.xlane.xlu0 %9343 }
0x2b2a   : > { %12639 = vrsqrt.f32 %v9400_v8  ;;  %v9386_v18 = vmul.f32 0.0052083335, %v9340_v17  ;;  %v9387_v15 = vmul.f32 0.0052083335, %v9344_v29 }
0x2b2b   : > { %12641 = vrsqrt.f32 %v9401_v34  ;;  %v16720_v34 = vrot.slane %v9515_v24, %v17285_v56 }
0x2b2c   : > { %v9402_v0 = vadd.f32 1e-05, %v9386_v18  ;;  %v9403_v43 = vadd.f32 1e-05, %v9387_v15 }
0x2b2d   : > { %v9348_v40 = vpop.xlane.xlu1 %9347  ;;  %v9352_v3 = vpop.xlane.xlu0 %9351 }
0x2b2e   : > { %12643 = vrsqrt.f32 %v9402_v0  ;;  %v9388_v23 = vmul.f32 0.0052083335, %v9348_v40  ;;  %v9389_v26 = vmul.f32 0.0052083335, %v9352_v3 }
0x2b2f   : > { %v12634_v12 = vpop.eup %12633  ;;  %12645 = vrsqrt.f32 %v9403_v43 }
0x2b30   : > { %v9404_v54 = vadd.f32 1e-05, %v9388_v23  ;;  %v9430_v47 = vmul.f32 %v12634_v12, %v16437_v2  ;;  %v9429_v10 = vmul.f32 %v12634_v12, %v16434_v39  ;;  %v9405_v15 = vadd.f32 1e-05, %v9389_v26 }
0x2b31   : > { %v9356_v11 = vpop.xlane.xlu1 %9355  ;;  %v9360_v0 = vpop.xlane.xlu0 %9359 }
0x2b32   : > { %12647 = vrsqrt.f32 %v9404_v54  ;;  %v9390_v25 = vmul.f32 0.0052083335, %v9356_v11  ;;  %v9481_v5 = vmul.f32 %v16705_v7, %v9430_v47  ;;  %v9480_v8 = vmul.f32 %v16709_v9, %v9429_v10 }
0x2b33   : > { %v12636_v49 = vpop.eup %12635  ;;  %v9391_v47 = vmul.f32 0.0052083335, %v9360_v0 }
0x2b34   : > { %v12638_v58 = vpop.eup %12637  ;;  %v9406_v2 = vadd.f32 1e-05, %v9390_v25  ;;  %v9432_v39 = vmul.f32 %v12636_v49, %v16457_v13  ;;  %v9431_v29 = vmul.f32 %v12636_v49, %v16454_v1  ;;  %v9531_v43 = vadd.f32 %v16716_v33, %v9481_v5 }
0x2b35   : > { %v9364_v17 = vpop.xlane.xlu1 %9363  ;;  %v9434_v18 = vmul.f32 %v12638_v58, %v16443_v48  ;;  %v9530_v23 = vadd.f32 %v16720_v34, %v9480_v8  ;;  %v9433_v24 = vmul.f32 %v12638_v58, %v16440_v22 }
0x2b36   : > { %v9483_v44 = vmul.f32 %v16705_v7, %v9432_v39  ;;  %v9482_v40 = vmul.f32 %v16709_v9, %v9431_v29  ;;  %12649 = vrsqrt.f32 %v9406_v2  ;;  %v9392_v12 = vmul.f32 0.0052083335, %v9364_v17 }
0x2b37   : > { %v12640_v55 = vpop.eup %12639  ;;  %v9485_v6 = vmul.f32 %v16705_v7, %v9434_v18  ;;  %12651 = vrsqrt.f32 %v9405_v15  ;;  %v9484_v2 = vmul.f32 %v16709_v9, %v9433_v24  ;;  %v9407_v17 = vadd.f32 1e-05, %v9391_v47 }
0x2b38   : > { %v9533_v13 = vadd.f32 %v16716_v33, %v9483_v44  ;;  %v9436_v3 = vmul.f32 %v12640_v55, %v16463_v19  ;;  %v12642_v1 = vpop.eup %12641  ;;  %v9532_v48 = vadd.f32 %v16720_v34, %v9482_v40  ;;  %v9435_v54 = vmul.f32 %v12640_v55, %v16460_v30  ;;  %v9368_v44 = vpop.xlane.xlu0 %9367 }
0x2b39   : > { %v9408_v5 = vadd.f32 1e-05, %v9392_v12  ;;  %v9438_v19 = vmul.f32 %v12642_v1, %v16479_v62  ;;  %v9372_v8 = vpop.xlane.xlu1 %9371  ;;  %v9535_v30 = vadd.f32 %v16716_v33, %v9485_v6  ;;  %v9534_v40 = vadd.f32 %v16720_v34, %v9484_v2 }
0x2b3a   : > { %v9563_v10 = vpack.c.bf16 %v9533_v13, %v9531_v43  ;;  %v9562_v26 = vpack.c.bf16 %v9532_v48, %v9530_v23  ;;  %v9487_v25 = vmul.f32 %v16705_v7, %v9436_v3  ;;  %v9486_v49 = vmul.f32 %v16709_v9, %v9435_v54 }
0x2b3b   : > { %v12644_v11 = vpop.eup %12643  ;;  %v9489_v29 = vmul.f32 %v16705_v7, %v9438_v19  ;;  %12653 = vrsqrt.f32 %v9408_v5  ;;  %v9394_v0 = vmul.f32 0.0052083335, %v9372_v8  ;;  %v9437_v23 = vmul.f32 %v12642_v1, %v16476_v59 }
0x2b3c   : > { %11020 = vmatprep.mubr.msk.bf16.mxu0 %vm611_vm1, %v9563_v10  ;;  %11028 = vmatprep.mubr.msk.bf16.mxu1 %vm611_vm1, %v9563_v10  ;;  %v9440_v22 = vmul.f32 %v12644_v11, %v16485_v38  ;;  %v9537_v58 = vadd.f32 %v16716_v33, %v9487_v25  ;;  %v12646_v39 = vpop.eup %12645  ;;  %v9536_v38 = vadd.f32 %v16720_v34, %v9486_v49  ;;  %12655 = vrsqrt.f32 %v9407_v17 }
0x2b3d   : > { %9945 = vmatmul.mubr.bf16.vlgmr.msra.gmra.mxu0 %v9562_v26  ;;  %10058 = vmatmul.mubr.bf16.vlgmr.msra.gmra.mxu1 %v9562_v26  ;;  %v9439_v55 = vmul.f32 %v12644_v11, %v16482_v20  ;;  %v9393_v13 = vmul.f32 0.0052083335, %v9368_v44  ;;  %v9539_v3 = vadd.f32 %v16716_v33, %v9489_v29  ;;  %v9442_v20 = vmul.f32 %v12646_v39, %v16501_v41  ;;  %v9380_v11 = vpop.xlane.xlu1 %9379  ;;  %v9376_v26 = vpop.xlane.xlu0 %9375 }
0x2b3e   : > { %v9491_v18 = vmul.f32 %v16705_v7, %v9440_v22  ;;  %v9565_v62 = vpack.c.bf16 %v9537_v58, %v9535_v30  ;;  %v9564_v48 = vpack.c.bf16 %v9536_v38, %v9534_v40  ;;  %v9410_v24 = vadd.f32 1e-05, %v9394_v0 }
0x2b3f   : > { %v12648_v15 = vpop.eup %12647  ;;  %v9490_v6 = vmul.f32 %v16709_v9, %v9439_v55  ;;  %v9488_v59 = vmul.f32 %v16709_v9, %v9437_v23  ;;  %v9493_v41 = vmul.f32 %v16705_v7, %v9442_v20  ;;  %v9396_v5 = vmul.f32 0.0052083335, %v9380_v11 }
0x2b40   : > { %v9541_v43 = vadd.f32 %v16716_v33, %v9491_v18  ;;  %11021 = vmatprep.mubr.msk.bf16.mxu0 %vm611_vm1, %v9565_v62  ;;  %11029 = vmatprep.mubr.msk.bf16.mxu1 %vm611_vm1, %v9565_v62  ;;  %v9444_v12 = vmul.f32 %v12648_v15, %v16507_v50  ;;  %v9409_v50 = vadd.f32 1e-05, %v9393_v13  ;;  %v9443_v49 = vmul.f32 %v12648_v15, %v16504_v27 }
0x2b41   : > { %v9540_v25 = vadd.f32 %v16720_v34, %v9490_v6  ;;  %12657 = vrsqrt.f32 %v9410_v24  ;;  %v9538_v8 = vadd.f32 %v16720_v34, %v9488_v59  ;;  %v9441_v30 = vmul.f32 %v12646_v39, %v16498_v46 }
0x2b42   : > { %v9567_v54 = vpack.c.bf16 %v9541_v43, %v9539_v3  ;;  %v9495_v47 = vmul.f32 %v16705_v7, %v9444_v12  ;;  %12659 = vrsqrt.f32 %v9409_v50  ;;  %v9395_v58 = vmul.f32 0.0052083335, %v9376_v26 }
0x2b43   : > { %v12650_v10 = vpop.eup %12649  ;;  %v9543_v2 = vadd.f32 %v16716_v33, %v9493_v41  ;;  %v9566_v29 = vpack.c.bf16 %v9540_v25, %v9538_v8  ;;  %v9494_v18 = vmul.f32 %v16709_v9, %v9443_v49  ;;  %v9412_v27 = vadd.f32 1e-05, %v9396_v5 }
0x2b44   : > { %v12652_v1 = vpop.eup %12651  ;;  %v9545_v19 = vadd.f32 %v16716_v33, %v9495_v47  ;;  %v9448_v22 = vmul.f32 %v12650_v10, %v16535_v60  ;;  %v9492_v60 = vmul.f32 %v16709_v9, %v9441_v30  ;;  %v9411_v38 = vadd.f32 1e-05, %v9395_v58 }
0x2b45   : > { %9955 = vmatmul.mubr.bf16.gmra.mxu0 %v9564_v48  ;;  %10068 = vmatmul.mubr.bf16.gmra.mxu1 %v9564_v48  ;;  %v9446_v17 = vmul.f32 %v12652_v1, %v16523_v51  ;;  %v9544_v39 = vadd.f32 %v16720_v34, %v9494_v18  ;;  %v9447_v55 = vmul.f32 %v12650_v10, %v16526_v63  ;;  %12661 = vrsqrt.f32 %v9412_v27 }
0x2b46   : > { %11022 = vmatprep.mubr.msk.bf16.mxu0 %vm611_vm1, %v9567_v54  ;;  %11030 = vmatprep.mubr.msk.bf16.mxu1 %vm611_vm1, %v9567_v54  ;;  %v9569_v15 = vpack.c.bf16 %v9545_v19, %v9543_v2  ;;  %v9499_v44 = vmul.f32 %v16705_v7, %v9448_v22  ;;  %v9542_v40 = vadd.f32 %v16720_v34, %v9492_v60  ;;  %12663 = vrsqrt.f32 %v9411_v38 }
0x2b47   : > { %v9497_v46 = vmul.f32 %v16705_v7, %v9446_v17  ;;  %v9445_v23 = vmul.f32 %v12652_v1, %v16520_v61  ;;  %v9498_v20 = vmul.f32 %v16709_v9, %v9447_v55 }
0x2b48   : > { %v12654_v62 = vpop.eup %12653  ;;  %v9549_v0 = vadd.f32 %v16716_v33, %v9499_v44  ;;  %v9568_v3 = vpack.c.bf16 %v9544_v39, %v9542_v40 }
0x2b49   : > { %v12656_v51 = vpop.eup %12655  ;;  %v9452_v43 = vmul.f32 %v12654_v62, %v16563_v42  ;;  %v9547_v12 = vadd.f32 %v16716_v33, %v9497_v46  ;;  %v9496_v42 = vmul.f32 %v16709_v9, %v9445_v23  ;;  %v9451_v54 = vmul.f32 %v12654_v62, %v16560_v35 }
0x2b4a   : > { %v9450_v13 = vmul.f32 %v12656_v51, %v16557_v45  ;;  %v9548_v45 = vadd.f32 %v16720_v34, %v9498_v20  ;;  %v9449_v59 = vmul.f32 %v12656_v51, %v16554_v36 }
0x2b4b   : > { %v9571_v48 = vpack.c.bf16 %v9549_v0, %v9547_v12  ;;  %v9503_v63 = vmul.f32 %v16705_v7, %v9452_v43  ;;  %v9546_v11 = vadd.f32 %v16720_v34, %v9496_v42  ;;  %v9502_v26 = vmul.f32 %v16709_v9, %v9451_v54 }
0x2b4c   : > { %v9501_v61 = vmul.f32 %v16705_v7, %v9450_v13  ;;  %v9500_v35 = vmul.f32 %v16709_v9, %v9449_v59 }
0x2b4d   : > { %9965 = vmatmul.mubr.bf16.gmra.mxu0 %v9566_v29  ;;  %10078 = vmatmul.mubr.bf16.gmra.mxu1 %v9566_v29  ;;  %v9553_v47 = vadd.f32 %v16716_v33, %v9503_v63  ;;  %v9570_v1 = vpack.c.bf16 %v9548_v45, %v9546_v11 }
0x2b4e   : > { %11023 = vmatprep.mubr.msk.bf16.mxu0 %vm611_vm1, %v9569_v15  ;;  %11031 = vmatprep.mubr.msk.bf16.mxu1 %vm611_vm1, %v9569_v15  ;;  %v12658_v6 = vpop.eup %12657  ;;  %v9551_v50 = vadd.f32 %v16716_v33, %v9501_v61  ;;  %v9550_v30 = vadd.f32 %v16720_v34, %v9500_v35 }
0x2b4f   : > { %v12660_v24 = vpop.eup %12659  ;;  %v9456_v10 = vmul.f32 %v12658_v6, %v16597_v4  ;;  %v9455_v19 = vmul.f32 %v12658_v6, %v16588_v37 }
0x2b50   : > { %v9454_v41 = vmul.f32 %v12660_v24, %v16585_v52  ;;  %v9573_v25 = vpack.c.bf16 %v9553_v47, %v9551_v50  ;;  %v9552_v52 = vadd.f32 %v16720_v34, %v9502_v26  ;;  %v9453_v58 = vmul.f32 %v12660_v24, %v16582_v31 }
0x2b51   : > { %v9507_v49 = vmul.f32 %v16705_v7, %v9456_v10  ;;  %v9506_v18 = vmul.f32 %v16709_v9, %v9455_v19 }
0x2b52   : > { %v12662_v5 = vpop.eup %12661  ;;  %v9505_v36 = vmul.f32 %v16705_v7, %v9454_v41  ;;  %v9572_v29 = vpack.c.bf16 %v9552_v52, %v9550_v30  ;;  %v9504_v37 = vmul.f32 %v16709_v9, %v9453_v58 }
0x2b53   : > { %v12664_v4 = vpop.eup %12663  ;;  %v9557_v22 = vadd.f32 %v16716_v33, %v9507_v49  ;;  %v9460_v8 = vmul.f32 %v12662_v5, %v16631_v53  ;;  %v9556_v53 = vadd.f32 %v16720_v34, %v9506_v18 }
0x2b54   : > { %v9555_v2 = vadd.f32 %v16716_v33, %v9505_v36  ;;  %v9458_v17 = vmul.f32 %v12664_v4, %v16619_v32  ;;  %v9459_v32 = vmul.f32 %v12662_v5, %v16622_v16  ;;  %v9554_v62 = vadd.f32 %v16720_v34, %v9504_v37 }
0x2b55   : > { %9975 = vmatmul.mubr.bf16.gmra.mxu0 %v9568_v3  ;;  %10088 = vmatmul.mubr.bf16.gmra.mxu1 %v9568_v3  ;;  %v9511_v15 = vmul.f32 %v16705_v7, %v9460_v8  ;;  %v9457_v60 = vmul.f32 %v12664_v4, %v16616_v14  ;;  %v9626_v14 = vld [vmem:[%s16944_s9] sm:$0xf] }
0x2b56   : > { %11024 = vmatprep.mubr.msk.bf16.mxu0 %vm611_vm1, %v9571_v48  ;;  %11032 = vmatprep.mubr.msk.bf16.mxu1 %vm611_vm1, %v9571_v48  ;;  %v9575_v27 = vpack.c.bf16 %v9557_v22, %v9555_v2  ;;  %v9509_v31 = vmul.f32 %v16705_v7, %v9458_v17  ;;  %v9574_v46 = vpack.c.bf16 %v9556_v53, %v9554_v62 }
0x2b57   : > { %v9561_v44 = vadd.f32 %v16716_v33, %v9511_v15  ;;  %v9510_v51 = vmul.f32 %v16709_v9, %v9459_v32  ;;  %v9508_v7 = vmul.f32 %v16709_v9, %v9457_v60  ;;  %v16837_v9 = vrot.slane %v9626_v14, %v17282_v57 }
0x2b58   : > { %v9559_v38 = vadd.f32 %v16716_v33, %v9509_v31  ;;  %v16834_v33 = vrot.slane %v9626_v14, %v17283_v21  ;;  %v16840_v43 = vrot.slane %v9626_v14, %v17285_v56  ;;  %v16843_v40 = vrot.slane %v9626_v14, %v17284_v28 }
0x2b59   : > { %v9560_v16 = vadd.f32 %v16720_v34, %v9510_v51  ;;  %v9558_v55 = vadd.f32 %v16720_v34, %v9508_v7 }
0x2b5a   : > { %v9577_v39 = vpack.c.bf16 %v9561_v44, %v9559_v38 }
0x2b5b   : > { %v9576_v0 = vpack.c.bf16 %v9560_v16, %v9558_v55 }
0x2b5d   : > { %9985 = vmatmul.mubr.bf16.gmra.mxu0 %v9570_v1  ;;  %10098 = vmatmul.mubr.bf16.gmra.mxu1 %v9570_v1 }
0x2b5e   : > { %11025 = vmatprep.mubr.msk.bf16.mxu0 %vm611_vm1, %v9573_v25  ;;  %11033 = vmatprep.mubr.msk.bf16.mxu1 %vm611_vm1, %v9573_v25 }
0x2b65   : > { %9995 = vmatmul.mubr.bf16.gmra.mxu0 %v9572_v29  ;;  %10108 = vmatmul.mubr.bf16.gmra.mxu1 %v9572_v29 }
0x2b66   : > { %11026 = vmatprep.mubr.msk.bf16.mxu0 %vm611_vm1, %v9575_v27  ;;  %11034 = vmatprep.mubr.msk.bf16.mxu1 %vm611_vm1, %v9575_v27 }
0x2b6d   : > { %10005 = vmatmul.mubr.bf16.gmra.mxu0 %v9574_v46  ;;  %10118 = vmatmul.mubr.bf16.gmra.mxu1 %v9574_v46 }
0x2b6e   : > { %11027 = vmatprep.mubr.msk.bf16.mxu0 %vm611_vm1, %v9577_v39  ;;  %11035 = vmatprep.mubr.msk.bf16.mxu1 %vm611_vm1, %v9577_v39 }
0x2b75   : > { %10015 = vmatmul.mubr.bf16.gmra.mxu0 %v9576_v0  ;;  %10128 = vmatmul.mubr.bf16.gmra.mxu1 %v9576_v0 }
0x2bfd   : > { %v9946_v34 = vpop.f32.mrf.mxu0  ;;  %v10059_v23 = vpop.f32.mrf.mxu1 }
0x2bfe   : > { %v9947_v12 = vadd.f32 %v9946_v34, %v16834_v33  ;;  %v10060_v13 = vadd.f32 %v10059_v23, %v16837_v9 }
0x2bff   : > { %v9948_v3 = vpop.f32.mrf.mxu0  ;;  %v10061_v20 = vpop.f32.mrf.mxu1 }
0x2c00   : > { %10138 = vst [vmem:[#allocation3] sm:$0xff] %v9947_v12  ;;  %10140 = vst [vmem:[#allocation3 + $0x10] sm:$0xff] %v10060_v13  ;;  %v9949_v21 = vadd.f32 %v9948_v3, %v16840_v43  ;;  %v10062_v57 = vadd.f32 %v10061_v20, %v16843_v40 }
0x2c01   : > { %v9950_v48 = vpop.f32.mrf.mxu0  ;;  %v10063_v56 = vpop.f32.mrf.mxu1 }
0x2c02   : > { %10139 = vst [vmem:[#allocation3 + $0x8] sm:$0xff] %v9949_v21  ;;  %10141 = vst [vmem:[#allocation3 + $0x18] sm:$0xff] %v10062_v57  ;;  %v9951_v28 = vadd.f32 %v9950_v48, %v16834_v33  ;;  %v10064_v63 = vadd.f32 %v10063_v56, %v16837_v9 }
0x2c03   : > { %v9952_v6 = vpop.f32.mrf.mxu0  ;;  %v10065_v42 = vpop.f32.mrf.mxu1 }
0x2c04   : > { %10142 = vst [vmem:[#allocation3 + $0x20] sm:$0xff] %v9951_v28  ;;  %10144 = vst [vmem:[#allocation3 + $0x30] sm:$0xff] %v10064_v63  ;;  %v9953_v61 = vadd.f32 %v9952_v6, %v16840_v43  ;;  %v10066_v24 = vadd.f32 %v10065_v42, %v16843_v40 }
0x2c05   : > { %v9956_v45 = vpop.f32.mrf.mxu0  ;;  %v10069_v54 = vpop.f32.mrf.mxu1 }
0x2c06   : > { %10143 = vst [vmem:[#allocation3 + $0x28] sm:$0xff] %v9953_v61  ;;  %10145 = vst [vmem:[#allocation3 + $0x38] sm:$0xff] %v10066_v24  ;;  %v9957_v47 = vadd.f32 %v9956_v45, %v16834_v33  ;;  %v10070_v10 = vadd.f32 %v10069_v54, %v16837_v9 }
0x2c07   : > { %v9958_v11 = vpop.f32.mrf.mxu0  ;;  %v10071_v59 = vpop.f32.mrf.mxu1 }
0x2c08   : > { %10146 = vst [vmem:[#allocation3 + $0x40] sm:$0xff] %v9957_v47  ;;  %10148 = vst [vmem:[#allocation3 + $0x50] sm:$0xff] %v10070_v10  ;;  %v9959_v50 = vadd.f32 %v9958_v11, %v16840_v43  ;;  %v10072_v41 = vadd.f32 %v10071_v59, %v16843_v40 }
0x2c09   : > { %v9960_v1 = vpop.f32.mrf.mxu0  ;;  %v10073_v26 = vpop.f32.mrf.mxu1 }
0x2c0a   : > { %10147 = vst [vmem:[#allocation3 + $0x48] sm:$0xff] %v9959_v50  ;;  %10149 = vst [vmem:[#allocation3 + $0x58] sm:$0xff] %v10072_v41  ;;  %v9961_v25 = vadd.f32 %v9960_v1, %v16834_v33  ;;  %v10074_v49 = vadd.f32 %v10073_v26, %v16837_v9 }
0x2c0b   : > { %v9962_v5 = vpop.f32.mrf.mxu0  ;;  %v10075_v35 = vpop.f32.mrf.mxu1 }
0x2c0c   : > { %10150 = vst [vmem:[#allocation3 + $0x60] sm:$0xff] %v9961_v25  ;;  %10152 = vst [vmem:[#allocation3 + $0x70] sm:$0xff] %v10074_v49  ;;  %v9963_v36 = vadd.f32 %v9962_v5, %v16840_v43  ;;  %v10076_v4 = vadd.f32 %v10075_v35, %v16843_v40 }
0x2c0d   : > { %v9966_v52 = vpop.f32.mrf.mxu0  ;;  %v10079_v19 = vpop.f32.mrf.mxu1 }
0x2c0e   : > { %10151 = vst [vmem:[#allocation3 + $0x68] sm:$0xff] %v9963_v36  ;;  %10153 = vst [vmem:[#allocation3 + $0x78] sm:$0xff] %v10076_v4  ;;  %v9967_v22 = vadd.f32 %v9966_v52, %v16834_v33  ;;  %v10080_v8 = vadd.f32 %v10079_v19, %v16837_v9 }
0x2c0f   : > { %v9968_v30 = vpop.f32.mrf.mxu0  ;;  %v10081_v58 = vpop.f32.mrf.mxu1 }
0x2c10   : > { %10154 = vst [vmem:[#allocation3 + $0x80] sm:$0xff] %v9967_v22  ;;  %10156 = vst [vmem:[#allocation3 + $0x90] sm:$0xff] %v10080_v8  ;;  %v9969_v2 = vadd.f32 %v9968_v30, %v16840_v43  ;;  %v10082_v17 = vadd.f32 %v10081_v58, %v16843_v40 }
0x2c11   : > { %v9970_v29 = vpop.f32.mrf.mxu0  ;;  %v10083_v18 = vpop.f32.mrf.mxu1 }
0x2c12   : > { %10155 = vst [vmem:[#allocation3 + $0x88] sm:$0xff] %v9969_v2  ;;  %10157 = vst [vmem:[#allocation3 + $0x98] sm:$0xff] %v10082_v17  ;;  %v9971_v27 = vadd.f32 %v9970_v29, %v16834_v33  ;;  %v10084_v15 = vadd.f32 %v10083_v18, %v16837_v9 }
0x2c13   : > { %v9972_v37 = vpop.f32.mrf.mxu0  ;;  %v10085_v31 = vpop.f32.mrf.mxu1 }
0x2c14   : > { %10158 = vst [vmem:[#allocation3 + $0xa0] sm:$0xff] %v9971_v27  ;;  %10160 = vst [vmem:[#allocation3 + $0xb0] sm:$0xff] %v10084_v15  ;;  %v9973_v53 = vadd.f32 %v9972_v37, %v16840_v43  ;;  %v10086_v32 = vadd.f32 %v10085_v31, %v16843_v40 }
0x2c15   : > { %v9976_v44 = vpop.f32.mrf.mxu0  ;;  %v10089_v62 = vpop.f32.mrf.mxu1 }
0x2c16   : > { %10159 = vst [vmem:[#allocation3 + $0xa8] sm:$0xff] %v9973_v53  ;;  %10161 = vst [vmem:[#allocation3 + $0xb8] sm:$0xff] %v10086_v32  ;;  %v9977_v60 = vadd.f32 %v9976_v44, %v16834_v33  ;;  %v10090_v38 = vadd.f32 %v10089_v62, %v16837_v9 }
0x2c17   : > { %v9978_v46 = vpop.f32.mrf.mxu0  ;;  %v10091_v51 = vpop.f32.mrf.mxu1 }
0x2c18   : > { %10162 = vst [vmem:[#allocation3 + $0xc0] sm:$0xff] %v9977_v60  ;;  %10164 = vst [vmem:[#allocation3 + $0xd0] sm:$0xff] %v10090_v38  ;;  %v9979_v39 = vadd.f32 %v9978_v46, %v16840_v43  ;;  %v10092_v7 = vadd.f32 %v10091_v51, %v16843_v40 }
0x2c19   : > { %v9980_v16 = vpop.f32.mrf.mxu0  ;;  %v10093_v55 = vpop.f32.mrf.mxu1 }
0x2c1a   : > { %10163 = vst [vmem:[#allocation3 + $0xc8] sm:$0xff] %v9979_v39  ;;  %10165 = vst [vmem:[#allocation3 + $0xd8] sm:$0xff] %v10092_v7  ;;  %v9981_v0 = vadd.f32 %v9980_v16, %v16834_v33  ;;  %v10094_v14 = vadd.f32 %v10093_v55, %v16837_v9 }
0x2c1b   : > { %v9982_v34 = vpop.f32.mrf.mxu0  ;;  %v10095_v23 = vpop.f32.mrf.mxu1 }
0x2c1c   : > { %10166 = vst [vmem:[#allocation3 + $0xe0] sm:$0xff] %v9981_v0  ;;  %10168 = vst [vmem:[#allocation3 + $0xf0] sm:$0xff] %v10094_v14  ;;  %v9983_v12 = vadd.f32 %v9982_v34, %v16840_v43  ;;  %v10096_v13 = vadd.f32 %v10095_v23, %v16843_v40 }
0x2c1d   : > { %v9986_v3 = vpop.f32.mrf.mxu0  ;;  %v10099_v20 = vpop.f32.mrf.mxu1 }
0x2c1e   : > { %10167 = vst [vmem:[#allocation3 + $0xe8] sm:$0xff] %v9983_v12  ;;  %10169 = vst [vmem:[#allocation3 + $0xf8] sm:$0xff] %v10096_v13  ;;  %v9987_v21 = vadd.f32 %v9986_v3, %v16834_v33  ;;  %v10100_v57 = vadd.f32 %v10099_v20, %v16837_v9 }
0x2c1f   : > { %v9988_v48 = vpop.f32.mrf.mxu0  ;;  %v10101_v56 = vpop.f32.mrf.mxu1 }
0x2c20   : > { %10170 = vst [vmem:[#allocation3 + $0x100] sm:$0xff] %v9987_v21  ;;  %10172 = vst [vmem:[#allocation3 + $0x110] sm:$0xff] %v10100_v57  ;;  %v9989_v28 = vadd.f32 %v9988_v48, %v16840_v43  ;;  %v10102_v63 = vadd.f32 %v10101_v56, %v16843_v40 }
0x2c21   : > { %v9990_v6 = vpop.f32.mrf.mxu0  ;;  %v10103_v42 = vpop.f32.mrf.mxu1 }
0x2c22   : > { %10171 = vst [vmem:[#allocation3 + $0x108] sm:$0xff] %v9989_v28  ;;  %10173 = vst [vmem:[#allocation3 + $0x118] sm:$0xff] %v10102_v63  ;;  %v9991_v61 = vadd.f32 %v9990_v6, %v16834_v33  ;;  %v10104_v24 = vadd.f32 %v10103_v42, %v16837_v9 }
0x2c23   : > { %v9992_v45 = vpop.f32.mrf.mxu0  ;;  %v10105_v54 = vpop.f32.mrf.mxu1 }
0x2c24   : > { %10174 = vst [vmem:[#allocation3 + $0x120] sm:$0xff] %v9991_v61  ;;  %10176 = vst [vmem:[#allocation3 + $0x130] sm:$0xff] %v10104_v24  ;;  %v9993_v47 = vadd.f32 %v9992_v45, %v16840_v43  ;;  %v10106_v10 = vadd.f32 %v10105_v54, %v16843_v40 }
0x2c25   : > { %v9996_v11 = vpop.f32.mrf.mxu0  ;;  %v10109_v59 = vpop.f32.mrf.mxu1 }
0x2c26   : > { %10175 = vst [vmem:[#allocation3 + $0x128] sm:$0xff] %v9993_v47  ;;  %10177 = vst [vmem:[#allocation3 + $0x138] sm:$0xff] %v10106_v10  ;;  %v9997_v50 = vadd.f32 %v9996_v11, %v16834_v33  ;;  %v10110_v41 = vadd.f32 %v10109_v59, %v16837_v9 }
0x2c27   : > { %v9998_v1 = vpop.f32.mrf.mxu0  ;;  %v10111_v26 = vpop.f32.mrf.mxu1 }
0x2c28   : > { %10178 = vst [vmem:[#allocation3 + $0x140] sm:$0xff] %v9997_v50  ;;  %10180 = vst [vmem:[#allocation3 + $0x150] sm:$0xff] %v10110_v41  ;;  %v9999_v25 = vadd.f32 %v9998_v1, %v16840_v43  ;;  %v10112_v49 = vadd.f32 %v10111_v26, %v16843_v40 }
0x2c29   : > { %v10000_v5 = vpop.f32.mrf.mxu0  ;;  %v10113_v35 = vpop.f32.mrf.mxu1 }
0x2c2a   : > { %10179 = vst [vmem:[#allocation3 + $0x148] sm:$0xff] %v9999_v25  ;;  %10181 = vst [vmem:[#allocation3 + $0x158] sm:$0xff] %v10112_v49  ;;  %v10001_v36 = vadd.f32 %v10000_v5, %v16834_v33  ;;  %v10114_v4 = vadd.f32 %v10113_v35, %v16837_v9 }
0x2c2b   : > { %v10002_v52 = vpop.f32.mrf.mxu0  ;;  %v10115_v19 = vpop.f32.mrf.mxu1 }
0x2c2c   : > { %10182 = vst [vmem:[#allocation3 + $0x160] sm:$0xff] %v10001_v36  ;;  %10184 = vst [vmem:[#allocation3 + $0x170] sm:$0xff] %v10114_v4  ;;  %v10003_v22 = vadd.f32 %v10002_v52, %v16840_v43  ;;  %v10116_v8 = vadd.f32 %v10115_v19, %v16843_v40 }
0x2c2d   : > { %v10006_v30 = vpop.f32.mrf.mxu0  ;;  %v10119_v58 = vpop.f32.mrf.mxu1 }
0x2c2e   : > { %10183 = vst [vmem:[#allocation3 + $0x168] sm:$0xff] %v10003_v22  ;;  %10185 = vst [vmem:[#allocation3 + $0x178] sm:$0xff] %v10116_v8  ;;  %v10007_v2 = vadd.f32 %v10006_v30, %v16834_v33  ;;  %v10120_v17 = vadd.f32 %v10119_v58, %v16837_v9 }
0x2c2f   : > { %v10008_v29 = vpop.f32.mrf.mxu0  ;;  %v10121_v18 = vpop.f32.mrf.mxu1 }
0x2c30   : > { %10186 = vst [vmem:[#allocation3 + $0x180] sm:$0xff] %v10007_v2  ;;  %10188 = vst [vmem:[#allocation3 + $0x190] sm:$0xff] %v10120_v17  ;;  %v10009_v27 = vadd.f32 %v10008_v29, %v16840_v43  ;;  %v10122_v15 = vadd.f32 %v10121_v18, %v16843_v40 }
0x2c31   : > { %v10010_v37 = vpop.f32.mrf.mxu0  ;;  %v10123_v31 = vpop.f32.mrf.mxu1 }
0x2c32   : > { %10187 = vst [vmem:[#allocation3 + $0x188] sm:$0xff] %v10009_v27  ;;  %10189 = vst [vmem:[#allocation3 + $0x198] sm:$0xff] %v10122_v15  ;;  %v10011_v53 = vadd.f32 %v10010_v37, %v16834_v33  ;;  %v10124_v32 = vadd.f32 %v10123_v31, %v16837_v9 }
0x2c33   : > { %v10012_v44 = vpop.f32.mrf.mxu0  ;;  %v10125_v62 = vpop.f32.mrf.mxu1 }
0x2c34   : > { %10190 = vst [vmem:[#allocation3 + $0x1a0] sm:$0xff] %v10011_v53  ;;  %10192 = vst [vmem:[#allocation3 + $0x1b0] sm:$0xff] %v10124_v32  ;;  %v10013_v60 = vadd.f32 %v10012_v44, %v16840_v43  ;;  %v10126_v38 = vadd.f32 %v10125_v62, %v16843_v40 }
0x2c35   : > { %v10016_v46 = vpop.f32.mrf.mxu0  ;;  %v10129_v51 = vpop.f32.mrf.mxu1 }
0x2c36   : > { %10191 = vst [vmem:[#allocation3 + $0x1a8] sm:$0xff] %v10013_v60  ;;  %10193 = vst [vmem:[#allocation3 + $0x1b8] sm:$0xff] %v10126_v38  ;;  %v10017_v39 = vadd.f32 %v10016_v46, %v16834_v33  ;;  %v10130_v7 = vadd.f32 %v10129_v51, %v16837_v9 }
0x2c37   : > { %v10018_v16 = vpop.f32.mrf.mxu0  ;;  %v10131_v55 = vpop.f32.mrf.mxu1 }
0x2c38   : > { %10194 = vst [vmem:[#allocation3 + $0x1c0] sm:$0xff] %v10017_v39  ;;  %10196 = vst [vmem:[#allocation3 + $0x1d0] sm:$0xff] %v10130_v7  ;;  %v10019_v0 = vadd.f32 %v10018_v16, %v16840_v43  ;;  %v10132_v14 = vadd.f32 %v10131_v55, %v16843_v40 }
0x2c39   : > { %v10020_v34 = vpop.f32.mrf.mxu0  ;;  %v10133_v23 = vpop.f32.mrf.mxu1 }
0x2c3a   : > { %10195 = vst [vmem:[#allocation3 + $0x1c8] sm:$0xff] %v10019_v0  ;;  %10197 = vst [vmem:[#allocation3 + $0x1d8] sm:$0xff] %v10132_v14  ;;  %v10021_v12 = vadd.f32 %v10020_v34, %v16834_v33  ;;  %v10134_v13 = vadd.f32 %v10133_v23, %v16837_v9 }
0x2c3b   : > { %v10022_v3 = vpop.f32.mrf.mxu0  ;;  %v10135_v20 = vpop.f32.mrf.mxu1 }
0x2c3c   : > { %10198 = vst [vmem:[#allocation3 + $0x1e0] sm:$0xff] %v10021_v12  ;;  %10200 = vst [vmem:[#allocation3 + $0x1f0] sm:$0xff] %v10134_v13  ;;  %v10023_v21 = vadd.f32 %v10022_v3, %v16840_v43  ;;  %v10136_v57 = vadd.f32 %v10135_v20, %v16843_v40 }
0x2c3e   : > { %10199 = vst [vmem:[#allocation3 + $0x1e8] sm:$0xff] %v10023_v21  ;;  %10201 = vst [vmem:[#allocation3 + $0x1f8] sm:$0xff] %v10136_v57 }
0x2c3f PF: > { %s17286_s1 = sadd.s32 4294967295, %s12715_s15   ;;  %s12719_s16 = smov [#allocation3]  }
0x2c40   : > { %p16911_p7 = scmp.eq.s32.totalorder %s17286_s1, 5  ;;  %s10211_s24 = sshll.u32 %s12719_s16, 4  ;;  %s10212_s24 = int_to_ptr.vmem [resolvable:$true] %s10211_s24 }
0x2c41   : > { %s12665_s27 = scalar_lea.vmem %s10212_s24, 8192  ;;  %p12672_p11 = scmp.lt.s32.totalorder %s10212_s24, %s10212_s24 }
0x2c42   : > { %p12666_p8 = scmp.ne.s32.totalorder %s10212_s24, %s12665_s27  ;;  %p12673_p12 = scmp.lt.s32.totalorder %s12665_s27, %s12665_s27 }
0x2c44   : > { %p12667_p9 = pnand %p12666_p8, %p16911_p7  ;;  %p12674_p13 = por %p12673_p12, %p12672_p11 }
0x2c46   : > { %p12668_p10 = pneg %p12667_p9 }
0x2c48   : > { %p12675_p0 = pnand %p12674_p13, %p12668_p10 }
0x2c4a   : > { %12678 = shalt.err (!%p12675_p0)
}
0x2c4b   : > { %s12720_s30 = smov 512   ;;  %s12721_s23 = smov 32  }
0x2c4c   : > { %11678 = dma.vmem_to_hbm [thread:$0]  (%p16911_p7), %s10212_s24, 8192, %s16945_s10, [#allocation4], %s12720_s30, %s12720_s30, %s12721_s23  }
0x2c4d   : > { %12702 = dma.done.wait (%p16911_p7), [#allocation4], 8192  }
0x2c4e   : > { %12704 = vsyncadd (%p16911_p7), [#allocation4], 4294959104 }
0x2c4f PF: > { %s21_s15 = sadd.s32 1, %s12715_s15   ;;  %s17288_s13 = sld [smem:[#allocation6_spill]] }
0x2c50   : > { %p18_p1 = scmp.ge.s32.totalorder %s21_s15, 8   ;;  %s17289_s14 = sld [smem:[#allocation7_spill]] }
0x2c52   :  { %20 = sbr.rel (!%p18_p1) target bundleno = 4 (0x4), region = 124 }
0x2c57   :  { %10227 = vsyncpa [#allocation4], 1 }
0x2c58   :  { %10229 = vsyncpa [#allocation4 + $0x1], 1 }

</bundles_post_ra>
